<compile_context>
chip_gen: v7x
topology: tpu7x:2x2x1
jax: 0.10.0
libtpu: 0.0.40
codegen_flags: <defaults>
</compile_context>

<pallas_src>
import functools

import numpy as np
import jax
import jax.numpy as jnp
from jax.experimental import pallas as pl
from jax.experimental.pallas import tpu as pltpu

EPS = 1e-5


# ---------------------------------------------------------------------------
# Pallas kernel
# ---------------------------------------------------------------------------
def basic_block_kernel(*refs, n, ho, wo, cin, cout, stride, use_proj):
    f32, bf16 = jnp.float32, jnp.bfloat16
    m = n * ho * wo
    inv_cnt = 1.0 / float(m)

    nx = 1 if stride == 1 else 4
    x_refs = refs[:nx]
    w1_ref, g1_ref, b1_ref, w2_ref, g2_ref, b2_ref = refs[nx:nx + 6]
    if use_proj:
        w3_ref, g3_ref, b3_ref = refs[nx + 6:nx + 9]
    out_ref = refs[-1]

    def bn(y, gamma, beta):
        # Training-mode BatchNorm2d (biased variance): one pass over y for the
        # stats, scale/shift broadcast on the VPU (no M=1 broadcast matmuls).
        s1 = jnp.sum(y, axis=0, keepdims=True)               # (1, C)
        s2 = jnp.sum(y * y, axis=0, keepdims=True)           # (1, C)
        mean = s1 * inv_cnt
        var = jnp.maximum(s2 * inv_cnt - mean * mean, 0.0)   # guard cancellation
        scale = gamma * jax.lax.rsqrt(var + EPS)
        shift = beta - mean * scale
        return y * scale + shift

    # ---- conv1 tap windows (and the residual / 1x1 source) from the zero-
    #      padded input.  All slices are static and contiguous.
    if stride == 1:
        x = x_refs[0][...]                                   # (N, H+2, W+2, Cin) f32

        def tap1(dh, dw):
            return x[:, dh:dh + ho, dw:dw + wo, :]
    else:
        # Host de-interleaved by (h, w) parity: phase (ph, pw) holds
        # x_pad[:, ph::2, pw::2, :], so every stride-2 tap window is a static
        # contiguous slice (no strided / gather reads in-kernel).
        xs = [r[...] for r in x_refs]                        # each (N, Ho+1, Wo+1, Cin)

        def tap1(dh, dw):
            v = xs[(dh % 2) * 2 + (dw % 2)]
            return v[:, dh // 2:dh // 2 + ho, dw // 2:dw // 2 + wo, :]

    taps1 = [tap1(dh, dw).reshape(m, cin) for dh in range(3) for dw in range(3)]

    # ---- conv1: single MXU matmul (K = 9*Cin), bf16 inputs, f32 accumulation.
    lhs1 = jnp.concatenate([t.astype(bf16) for t in taps1], axis=-1)   # (M, 9*Cin)
    y1 = jnp.dot(lhs1, w1_ref[...], preferred_element_type=f32)        # (M, Cout)
    out1 = jnp.maximum(bn(y1, g1_ref[...], b1_ref[...]), 0.0)

    # ---- conv2 (always stride 1): zero-pad out1 (concat-based pad) and fuse
    #      the nine static tap windows into one matmul (K = 9*Cout).
    o1 = out1.reshape(n, ho, wo, cout)
    zw = jnp.zeros((n, ho, 1, cout), f32)
    o1 = jnp.concatenate([zw, o1, zw], axis=2)               # (N, Ho, Wo+2, C)
    zh = jnp.zeros((n, 1, wo + 2, cout), f32)
    o1 = jnp.concatenate([zh, o1, zh], axis=1)               # (N, Ho+2, Wo+2, C)
    lhs2 = jnp.concatenate(
        [o1[:, dh:dh + ho, dw:dw + wo, :].reshape(m, cout).astype(bf16)
         for dh in range(3) for dw in range(3)], axis=-1)    # (M, 9*Cout)
    y2 = jnp.dot(lhs2, w2_ref[...], preferred_element_type=f32)
    out2 = bn(y2, g2_ref[...], b2_ref[...])

    # ---- residual branch: the center tap is exactly x at the output pixels.
    center = taps1[4]                                        # (M, Cin) f32
    if use_proj:
        y3 = jnp.dot(center.astype(bf16), w3_ref[...], preferred_element_type=f32)
        res = bn(y3, g3_ref[...], b3_ref[...])
    else:
        res = center                                         # identity shortcut (f32)

    out_ref[...] = jnp.maximum(out2 + res, 0.0)


# ---------------------------------------------------------------------------
# Wrapper: layout plumbing + compact weight prep only.
# ---------------------------------------------------------------------------
def basic_block_forward(x_nchw, params, stride=1):
    n, cin, h, w = x_nchw.shape
    cout = params["w1"].shape[3]
    assert h % stride == 0 and w % stride == 0
    ho, wo = h // stride, w // stride
    use_proj = (stride > 1) or (cin != cout)
    m = n * ho * wo

    # NCHW -> NHWC, zero-pad H/W by 1 so no boundary masking is needed in-kernel.
    x_nhwc = jnp.transpose(x_nchw, (0, 2, 3, 1)).astype(jnp.float32)
    x_pad = jnp.pad(x_nhwc, ((0, 0), (1, 1), (1, 1), (0, 0)))

    if stride == 1:
        x_args = [x_pad]                                     # (N, H+2, W+2, Cin)
    else:
        # De-interleave by (h, w) parity -> stride-2 taps become contiguous.
        x_args = [x_pad[:, ph::2, pw::2, :] for ph in (0, 1) for pw in (0, 1)]

    bf = lambda a: jnp.asarray(a, jnp.float32).astype(jnp.bfloat16)
    vec = lambda k: jnp.asarray(params[k], jnp.float32).reshape(1, -1)

    # Compact conv weights: (3,3,Cin,Cout) -> (9*Cin, Cout); row order matches
    # the in-kernel lane concatenation (dh major, dw, then ci).
    args = x_args + [bf(params["w1"]).reshape(9 * cin, cout), vec("g1"), vec("b1"),
                     bf(params["w2"]).reshape(9 * cout, cout), vec("g2"), vec("b2")]
    if use_proj:  # no dummy operands when the shortcut is the identity
        args += [bf(params["w3"]).reshape(cin, cout), vec("g3"), vec("b3")]

    def full_spec(shape):
        nd = len(shape)
        return pl.BlockSpec(shape, lambda i, _nd=nd: (0,) * _nd)

    kernel = functools.partial(
        basic_block_kernel, n=n, ho=ho, wo=wo, cin=cin, cout=cout,
        stride=stride, use_proj=use_proj)

    out_flat = pl.pallas_call(
        kernel,
        out_shape=jax.ShapeDtypeStruct((m, cout), jnp.float32),
        grid=(1,),  # everything fits comfortably in VMEM at these shapes
        in_specs=[full_spec(a.shape) for a in args],
        out_specs=full_spec((m, cout)),
        compiler_params=pltpu.CompilerParams(
            dimension_semantics=("arbitrary",),
            vmem_limit_bytes=32 * 1024 * 1024),
    )(*args)

    # Layout plumbing back: (N*Ho*Wo, Cout) -> NHWC -> NCHW.
    return jnp.transpose(out_flat.reshape(n, ho, wo, cout), (0, 3, 1, 2))


# ---------------------------------------------------------------------------
# Pure-JAX f32 reference (same math, lax conv) for the correctness check.
# ---------------------------------------------------------------------------
def reference_forward(x_nchw, params, stride=1):
    x = jnp.transpose(x_nchw, (0, 2, 3, 1)).astype(jnp.float32)
    cin, cout = params["w1"].shape[2], params["w1"].shape[3]
    use_proj = (stride > 1) or (cin != cout)

    def conv(v, w, s, pad):
        return jax.lax.conv_general_dilated(
            v, w, window_strides=(s, s), padding=[(pad, pad), (pad, pad)],
            dimension_numbers=("NHWC", "HWIO", "NHWC"),
            precision=jax.lax.Precision.HIGHEST)

    def bn(v, gk, bk):
        mean = jnp.mean(v, axis=(0, 1, 2), keepdims=True)
        var = jnp.mean((v - mean) ** 2, axis=(0, 1, 2), keepdims=True)
        return ((v - mean) * jax.lax.rsqrt(var + EPS)
                * params[gk].reshape(1, 1, 1, -1) + params[bk].reshape(1, 1, 1, -1))

    out = jax.nn.relu(bn(conv(x, params["w1"], stride, 1), "g1", "b1"))
    out = bn(conv(out, params["w2"], 1, 1), "g2", "b2")
    res = x
    if use_proj:
        res = bn(conv(x, params["w3"], stride, 0), "g3", "b3")
    return jnp.transpose(jax.nn.relu(out + res), (0, 3, 1, 2))


if __name__ == "__main__":
    key = jax.random.PRNGKey(0)

    def make_params(k, cin, cout):
        ks = jax.random.split(k, 9)
        return {
            "w1": 0.2 * jax.random.normal(ks[0], (3, 3, cin, cout), jnp.float32),
            "g1": 1.0 + 0.1 * jax.random.normal(ks[1], (cout,), jnp.float32),
            "b1": 0.1 * jax.random.normal(ks[2], (cout,), jnp.float32),
            "w2": 0.2 * jax.random.normal(ks[3], (3, 3, cout, cout), jnp.float32),
            "g2": 1.0 + 0.1 * jax.random.normal(ks[4], (cout,), jnp.float32),
            "b2": 0.1 * jax.random.normal(ks[5], (cout,), jnp.float32),
            "w3": 0.2 * jax.random.normal(ks[6], (1, 1, cin, cout), jnp.float32),
            "g3": 1.0 + 0.1 * jax.random.normal(ks[7], (cout,), jnp.float32),
            "b3": 0.1 * jax.random.normal(ks[8], (cout,), jnp.float32),
        }

    n, h, w = 2, 16, 16
    # (cin, cout, stride): channel-change projection, strided projection,
    # and the identity-residual path.
    configs = [(4, 8, 1), (4, 8, 2), (8, 8, 1)]
    for t, (cin, cout, stride) in enumerate(configs):
        kp, kx = jax.random.split(jax.random.fold_in(key, t))
        params = make_params(kp, cin, cout)
        x = jax.random.normal(kx, (n, cin, h, w), jnp.float32)

        out = jax.block_until_ready(basic_block_forward(x, params, stride=stride))
        ref = reference_forward(x, params, stride=stride)
        # Tolerance absorbs bf16 MXU inputs (f32 accumulation) vs the all-f32
        # reference; structural/semantic bugs would produce O(1) errors.
        if not np.allclose(np.asarray(out), np.asarray(ref), atol=3e-2, rtol=3e-2):
            err = float(np.max(np.abs(np.asarray(out) - np.asarray(ref))))
            raise AssertionError(
                f"mismatch for cin={cin} cout={cout} stride={stride}: max err {err}")

    print("KERNEL_OK")
</pallas_src>

<mosaic_0001>
module attributes {stable_mosaic.version = 11 : i64} {
  func.func @basic_block_kernel(%arg0: i32, %arg1: memref<2x18x18x4xf32, #tpu.memory_space<vmem>>, %arg2: memref<36x8xbf16, #tpu.memory_space<vmem>>, %arg3: memref<1x8xf32, #tpu.memory_space<vmem>>, %arg4: memref<1x8xf32, #tpu.memory_space<vmem>>, %arg5: memref<72x8xbf16, #tpu.memory_space<vmem>>, %arg6: memref<1x8xf32, #tpu.memory_space<vmem>>, %arg7: memref<1x8xf32, #tpu.memory_space<vmem>>, %arg8: memref<4x8xbf16, #tpu.memory_space<vmem>>, %arg9: memref<1x8xf32, #tpu.memory_space<vmem>>, %arg10: memref<1x8xf32, #tpu.memory_space<vmem>>, %arg11: memref<512x8xf32, #tpu.memory_space<vmem>>) attributes {dimension_semantics = [#tpu.dimension_semantics<arbitrary>], iteration_bounds = array<i64: 1>, scalar_prefetch = 0 : i64, scratch_operands = 0 : i64, tpu.core_type = #tpu.core_type<tc>, window_params = [{pipeline_mode = #tpu.pipeline_mode<synchronous>, transform_indices = @transform_0, window_bounds = array<i64: 2, 18, 18, 4>}, {pipeline_mode = #tpu.pipeline_mode<synchronous>, transform_indices = @transform_1, window_bounds = array<i64: 36, 8>}, {pipeline_mode = #tpu.pipeline_mode<synchronous>, transform_indices = @transform_2, window_bounds = array<i64: 1, 8>}, {pipeline_mode = #tpu.pipeline_mode<synchronous>, transform_indices = @transform_3, window_bounds = array<i64: 1, 8>}, {pipeline_mode = #tpu.pipeline_mode<synchronous>, transform_indices = @transform_4, window_bounds = array<i64: 72, 8>}, {pipeline_mode = #tpu.pipeline_mode<synchronous>, transform_indices = @transform_5, window_bounds = array<i64: 1, 8>}, {pipeline_mode = #tpu.pipeline_mode<synchronous>, transform_indices = @transform_6, window_bounds = array<i64: 1, 8>}, {pipeline_mode = #tpu.pipeline_mode<synchronous>, transform_indices = @transform_7, window_bounds = array<i64: 4, 8>}, {pipeline_mode = #tpu.pipeline_mode<synchronous>, transform_indices = @transform_8, window_bounds = array<i64: 1, 8>}, {pipeline_mode = #tpu.pipeline_mode<synchronous>, transform_indices = @transform_9, window_bounds = array<i64: 1, 8>}, {pipeline_mode = #tpu.pipeline_mode<synchronous>, transform_indices = @transform_10, window_bounds = array<i64: 512, 8>}]} {
    %c0 = arith.constant 0 : index
    %c0_0 = arith.constant 0 : index
    %c0_1 = arith.constant 0 : index
    %c0_2 = arith.constant 0 : index
    %0 = vector.load %arg1[%c0, %c0_0, %c0_1, %c0_2] : memref<2x18x18x4xf32, #tpu.memory_space<vmem>>, vector<2x18x18x4xf32>
    %1 = vector.extract_strided_slice %0 {offsets = [0, 0, 0, 0], sizes = [2, 16, 16, 4], strides = [1, 1, 1, 1]} : vector<2x18x18x4xf32> to vector<2x16x16x4xf32>
    %2 = vector.shape_cast %1 : vector<2x16x16x4xf32> to vector<512x4xf32>
    %3 = vector.extract_strided_slice %0 {offsets = [0, 0, 1, 0], sizes = [2, 16, 16, 4], strides = [1, 1, 1, 1]} : vector<2x18x18x4xf32> to vector<2x16x16x4xf32>
    %4 = vector.shape_cast %3 : vector<2x16x16x4xf32> to vector<512x4xf32>
    %5 = vector.extract_strided_slice %0 {offsets = [0, 0, 2, 0], sizes = [2, 16, 16, 4], strides = [1, 1, 1, 1]} : vector<2x18x18x4xf32> to vector<2x16x16x4xf32>
    %6 = vector.shape_cast %5 : vector<2x16x16x4xf32> to vector<512x4xf32>
    %7 = vector.extract_strided_slice %0 {offsets = [0, 1, 0, 0], sizes = [2, 16, 16, 4], strides = [1, 1, 1, 1]} : vector<2x18x18x4xf32> to vector<2x16x16x4xf32>
    %8 = vector.shape_cast %7 : vector<2x16x16x4xf32> to vector<512x4xf32>
    %9 = vector.extract_strided_slice %0 {offsets = [0, 1, 1, 0], sizes = [2, 16, 16, 4], strides = [1, 1, 1, 1]} : vector<2x18x18x4xf32> to vector<2x16x16x4xf32>
    %10 = vector.shape_cast %9 : vector<2x16x16x4xf32> to vector<512x4xf32>
    %11 = vector.extract_strided_slice %0 {offsets = [0, 1, 2, 0], sizes = [2, 16, 16, 4], strides = [1, 1, 1, 1]} : vector<2x18x18x4xf32> to vector<2x16x16x4xf32>
    %12 = vector.shape_cast %11 : vector<2x16x16x4xf32> to vector<512x4xf32>
    %13 = vector.extract_strided_slice %0 {offsets = [0, 2, 0, 0], sizes = [2, 16, 16, 4], strides = [1, 1, 1, 1]} : vector<2x18x18x4xf32> to vector<2x16x16x4xf32>
    %14 = vector.shape_cast %13 : vector<2x16x16x4xf32> to vector<512x4xf32>
    %15 = vector.extract_strided_slice %0 {offsets = [0, 2, 1, 0], sizes = [2, 16, 16, 4], strides = [1, 1, 1, 1]} : vector<2x18x18x4xf32> to vector<2x16x16x4xf32>
    %16 = vector.shape_cast %15 : vector<2x16x16x4xf32> to vector<512x4xf32>
    %17 = vector.extract_strided_slice %0 {offsets = [0, 2, 2, 0], sizes = [2, 16, 16, 4], strides = [1, 1, 1, 1]} : vector<2x18x18x4xf32> to vector<2x16x16x4xf32>
    %18 = vector.shape_cast %17 : vector<2x16x16x4xf32> to vector<512x4xf32>
    %19 = arith.truncf %2 : vector<512x4xf32> to vector<512x4xbf16>
    %20 = arith.truncf %4 : vector<512x4xf32> to vector<512x4xbf16>
    %21 = arith.truncf %6 : vector<512x4xf32> to vector<512x4xbf16>
    %22 = arith.truncf %8 : vector<512x4xf32> to vector<512x4xbf16>
    %23 = arith.truncf %10 : vector<512x4xf32> to vector<512x4xbf16>
    %24 = arith.truncf %12 : vector<512x4xf32> to vector<512x4xbf16>
    %25 = arith.truncf %14 : vector<512x4xf32> to vector<512x4xbf16>
    %26 = arith.truncf %16 : vector<512x4xf32> to vector<512x4xbf16>
    %27 = arith.truncf %18 : vector<512x4xf32> to vector<512x4xbf16>
    %28 = tpu.concatenate %19, %20, %21, %22, %23, %24, %25, %26, %27 in 1 : vector<512x4xbf16>, vector<512x4xbf16>, vector<512x4xbf16>, vector<512x4xbf16>, vector<512x4xbf16>, vector<512x4xbf16>, vector<512x4xbf16>, vector<512x4xbf16>, vector<512x4xbf16> -> vector<512x36xbf16>
    %c0_3 = arith.constant 0 : index
    %c0_4 = arith.constant 0 : index
    %29 = vector.load %arg2[%c0_3, %c0_4] : memref<36x8xbf16, #tpu.memory_space<vmem>>, vector<36x8xbf16>
    %cst = arith.constant dense<0.000000e+00> : vector<512x8xf32>
    %30 = tpu.matmul %28, %29, %cst {dimension_numbers = #tpu.dot_dimension_numbers<[1], [0], [0], [1], [0, 0, 1, 1], [], []>} : vector<512x36xbf16>, vector<36x8xbf16>, vector<512x8xf32> -> vector<512x8xf32>
    %c0_5 = arith.constant 0 : index
    %c0_6 = arith.constant 0 : index
    %31 = vector.load %arg3[%c0_5, %c0_6] : memref<1x8xf32, #tpu.memory_space<vmem>>, vector<1x8xf32>
    %c0_7 = arith.constant 0 : index
    %c0_8 = arith.constant 0 : index
    %32 = vector.load %arg4[%c0_7, %c0_8] : memref<1x8xf32, #tpu.memory_space<vmem>>, vector<1x8xf32>
    %cst_9 = arith.constant dense<0.000000e+00> : vector<8xf32>
    %33 = vector.multi_reduction <add>, %30, %cst_9 [0] : vector<512x8xf32> to vector<8xf32>
    %34 = vector.shape_cast %33 : vector<8xf32> to vector<1x8xf32>
    %35 = arith.mulf %30, %30 : vector<512x8xf32>
    %cst_10 = arith.constant dense<0.000000e+00> : vector<8xf32>
    %36 = vector.multi_reduction <add>, %35, %cst_10 [0] : vector<512x8xf32> to vector<8xf32>
    %37 = vector.shape_cast %36 : vector<8xf32> to vector<1x8xf32>
    %cst_11 = arith.constant 0.001953125 : f32
    %38 = vector.broadcast %cst_11 : f32 to vector<1x8xf32>
    %39 = arith.mulf %34, %38 : vector<1x8xf32>
    %cst_12 = arith.constant 0.001953125 : f32
    %40 = vector.broadcast %cst_12 : f32 to vector<1x8xf32>
    %41 = arith.mulf %37, %40 : vector<1x8xf32>
    %42 = arith.mulf %39, %39 : vector<1x8xf32>
    %43 = arith.subf %41, %42 : vector<1x8xf32>
    %cst_13 = arith.constant 0.000000e+00 : f32
    %44 = vector.broadcast %cst_13 : f32 to vector<1x8xf32>
    %45 = arith.maximumf %43, %44 : vector<1x8xf32>
    %cst_14 = arith.constant 9.99999974E-6 : f32
    %46 = vector.broadcast %cst_14 : f32 to vector<1x8xf32>
    %47 = arith.addf %45, %46 : vector<1x8xf32>
    %48 = math.rsqrt %47 : vector<1x8xf32>
    %49 = arith.mulf %31, %48 : vector<1x8xf32>
    %50 = arith.mulf %39, %49 : vector<1x8xf32>
    %51 = arith.subf %32, %50 : vector<1x8xf32>
    %52 = vector.broadcast %49 : vector<1x8xf32> to vector<512x8xf32>
    %53 = arith.mulf %30, %52 : vector<512x8xf32>
    %54 = vector.broadcast %51 : vector<1x8xf32> to vector<512x8xf32>
    %55 = arith.addf %53, %54 : vector<512x8xf32>
    %cst_15 = arith.constant 0.000000e+00 : f32
    %56 = vector.broadcast %cst_15 : f32 to vector<512x8xf32>
    %57 = arith.maximumf %55, %56 : vector<512x8xf32>
    %58 = vector.shape_cast %57 : vector<512x8xf32> to vector<2x16x16x8xf32>
    %cst_16 = arith.constant 0.000000e+00 : f32
    %59 = vector.broadcast %cst_16 : f32 to vector<2x16x1x8xf32>
    %60 = tpu.concatenate %59, %58, %59 in 2 : vector<2x16x1x8xf32>, vector<2x16x16x8xf32>, vector<2x16x1x8xf32> -> vector<2x16x18x8xf32>
    %cst_17 = arith.constant 0.000000e+00 : f32
    %61 = vector.broadcast %cst_17 : f32 to vector<2x1x18x8xf32>
    %62 = tpu.concatenate %61, %60, %61 in 1 : vector<2x1x18x8xf32>, vector<2x16x18x8xf32>, vector<2x1x18x8xf32> -> vector<2x18x18x8xf32>
    %63 = vector.extract_strided_slice %62 {offsets = [0, 0, 0, 0], sizes = [2, 16, 16, 8], strides = [1, 1, 1, 1]} : vector<2x18x18x8xf32> to vector<2x16x16x8xf32>
    %64 = vector.shape_cast %63 : vector<2x16x16x8xf32> to vector<512x8xf32>
    %65 = arith.truncf %64 : vector<512x8xf32> to vector<512x8xbf16>
    %66 = vector.extract_strided_slice %62 {offsets = [0, 0, 1, 0], sizes = [2, 16, 16, 8], strides = [1, 1, 1, 1]} : vector<2x18x18x8xf32> to vector<2x16x16x8xf32>
    %67 = vector.shape_cast %66 : vector<2x16x16x8xf32> to vector<512x8xf32>
    %68 = arith.truncf %67 : vector<512x8xf32> to vector<512x8xbf16>
    %69 = vector.extract_strided_slice %62 {offsets = [0, 0, 2, 0], sizes = [2, 16, 16, 8], strides = [1, 1, 1, 1]} : vector<2x18x18x8xf32> to vector<2x16x16x8xf32>
    %70 = vector.shape_cast %69 : vector<2x16x16x8xf32> to vector<512x8xf32>
    %71 = arith.truncf %70 : vector<512x8xf32> to vector<512x8xbf16>
    %72 = vector.extract_strided_slice %62 {offsets = [0, 1, 0, 0], sizes = [2, 16, 16, 8], strides = [1, 1, 1, 1]} : vector<2x18x18x8xf32> to vector<2x16x16x8xf32>
    %73 = vector.shape_cast %72 : vector<2x16x16x8xf32> to vector<512x8xf32>
    %74 = arith.truncf %73 : vector<512x8xf32> to vector<512x8xbf16>
    %75 = vector.extract_strided_slice %62 {offsets = [0, 1, 1, 0], sizes = [2, 16, 16, 8], strides = [1, 1, 1, 1]} : vector<2x18x18x8xf32> to vector<2x16x16x8xf32>
    %76 = vector.shape_cast %75 : vector<2x16x16x8xf32> to vector<512x8xf32>
    %77 = arith.truncf %76 : vector<512x8xf32> to vector<512x8xbf16>
    %78 = vector.extract_strided_slice %62 {offsets = [0, 1, 2, 0], sizes = [2, 16, 16, 8], strides = [1, 1, 1, 1]} : vector<2x18x18x8xf32> to vector<2x16x16x8xf32>
    %79 = vector.shape_cast %78 : vector<2x16x16x8xf32> to vector<512x8xf32>
    %80 = arith.truncf %79 : vector<512x8xf32> to vector<512x8xbf16>
    %81 = vector.extract_strided_slice %62 {offsets = [0, 2, 0, 0], sizes = [2, 16, 16, 8], strides = [1, 1, 1, 1]} : vector<2x18x18x8xf32> to vector<2x16x16x8xf32>
    %82 = vector.shape_cast %81 : vector<2x16x16x8xf32> to vector<512x8xf32>
    %83 = arith.truncf %82 : vector<512x8xf32> to vector<512x8xbf16>
    %84 = vector.extract_strided_slice %62 {offsets = [0, 2, 1, 0], sizes = [2, 16, 16, 8], strides = [1, 1, 1, 1]} : vector<2x18x18x8xf32> to vector<2x16x16x8xf32>
    %85 = vector.shape_cast %84 : vector<2x16x16x8xf32> to vector<512x8xf32>
    %86 = arith.truncf %85 : vector<512x8xf32> to vector<512x8xbf16>
    %87 = vector.extract_strided_slice %62 {offsets = [0, 2, 2, 0], sizes = [2, 16, 16, 8], strides = [1, 1, 1, 1]} : vector<2x18x18x8xf32> to vector<2x16x16x8xf32>
    %88 = vector.shape_cast %87 : vector<2x16x16x8xf32> to vector<512x8xf32>
    %89 = arith.truncf %88 : vector<512x8xf32> to vector<512x8xbf16>
    %90 = tpu.concatenate %65, %68, %71, %74, %77, %80, %83, %86, %89 in 1 : vector<512x8xbf16>, vector<512x8xbf16>, vector<512x8xbf16>, vector<512x8xbf16>, vector<512x8xbf16>, vector<512x8xbf16>, vector<512x8xbf16>, vector<512x8xbf16>, vector<512x8xbf16> -> vector<512x72xbf16>
    %c0_18 = arith.constant 0 : index
    %c0_19 = arith.constant 0 : index
    %91 = vector.load %arg5[%c0_18, %c0_19] : memref<72x8xbf16, #tpu.memory_space<vmem>>, vector<72x8xbf16>
    %cst_20 = arith.constant dense<0.000000e+00> : vector<512x8xf32>
    %92 = tpu.matmul %90, %91, %cst_20 {dimension_numbers = #tpu.dot_dimension_numbers<[1], [0], [0], [1], [0, 0, 1, 1], [], []>} : vector<512x72xbf16>, vector<72x8xbf16>, vector<512x8xf32> -> vector<512x8xf32>
    %c0_21 = arith.constant 0 : index
    %c0_22 = arith.constant 0 : index
    %93 = vector.load %arg6[%c0_21, %c0_22] : memref<1x8xf32, #tpu.memory_space<vmem>>, vector<1x8xf32>
    %c0_23 = arith.constant 0 : index
    %c0_24 = arith.constant 0 : index
    %94 = vector.load %arg7[%c0_23, %c0_24] : memref<1x8xf32, #tpu.memory_space<vmem>>, vector<1x8xf32>
    %cst_25 = arith.constant dense<0.000000e+00> : vector<8xf32>
    %95 = vector.multi_reduction <add>, %92, %cst_25 [0] : vector<512x8xf32> to vector<8xf32>
    %96 = vector.shape_cast %95 : vector<8xf32> to vector<1x8xf32>
    %97 = arith.mulf %92, %92 : vector<512x8xf32>
    %cst_26 = arith.constant dense<0.000000e+00> : vector<8xf32>
    %98 = vector.multi_reduction <add>, %97, %cst_26 [0] : vector<512x8xf32> to vector<8xf32>
    %99 = vector.shape_cast %98 : vector<8xf32> to vector<1x8xf32>
    %cst_27 = arith.constant 0.001953125 : f32
    %100 = vector.broadcast %cst_27 : f32 to vector<1x8xf32>
    %101 = arith.mulf %96, %100 : vector<1x8xf32>
    %cst_28 = arith.constant 0.001953125 : f32
    %102 = vector.broadcast %cst_28 : f32 to vector<1x8xf32>
    %103 = arith.mulf %99, %102 : vector<1x8xf32>
    %104 = arith.mulf %101, %101 : vector<1x8xf32>
    %105 = arith.subf %103, %104 : vector<1x8xf32>
    %cst_29 = arith.constant 0.000000e+00 : f32
    %106 = vector.broadcast %cst_29 : f32 to vector<1x8xf32>
    %107 = arith.maximumf %105, %106 : vector<1x8xf32>
    %cst_30 = arith.constant 9.99999974E-6 : f32
    %108 = vector.broadcast %cst_30 : f32 to vector<1x8xf32>
    %109 = arith.addf %107, %108 : vector<1x8xf32>
    %110 = math.rsqrt %109 : vector<1x8xf32>
    %111 = arith.mulf %93, %110 : vector<1x8xf32>
    %112 = arith.mulf %101, %111 : vector<1x8xf32>
    %113 = arith.subf %94, %112 : vector<1x8xf32>
    %114 = vector.broadcast %111 : vector<1x8xf32> to vector<512x8xf32>
    %115 = arith.mulf %92, %114 : vector<512x8xf32>
    %116 = vector.broadcast %113 : vector<1x8xf32> to vector<512x8xf32>
    %117 = arith.addf %115, %116 : vector<512x8xf32>
    %118 = arith.truncf %10 : vector<512x4xf32> to vector<512x4xbf16>
    %c0_31 = arith.constant 0 : index
    %c0_32 = arith.constant 0 : index
    %119 = vector.load %arg8[%c0_31, %c0_32] : memref<4x8xbf16, #tpu.memory_space<vmem>>, vector<4x8xbf16>
    %cst_33 = arith.constant dense<0.000000e+00> : vector<512x8xf32>
    %120 = tpu.matmul %118, %119, %cst_33 {dimension_numbers = #tpu.dot_dimension_numbers<[1], [0], [0], [1], [0, 0, 1, 1], [], []>} : vector<512x4xbf16>, vector<4x8xbf16>, vector<512x8xf32> -> vector<512x8xf32>
    %c0_34 = arith.constant 0 : index
    %c0_35 = arith.constant 0 : index
    %121 = vector.load %arg9[%c0_34, %c0_35] : memref<1x8xf32, #tpu.memory_space<vmem>>, vector<1x8xf32>
    %c0_36 = arith.constant 0 : index
    %c0_37 = arith.constant 0 : index
    %122 = vector.load %arg10[%c0_36, %c0_37] : memref<1x8xf32, #tpu.memory_space<vmem>>, vector<1x8xf32>
    %cst_38 = arith.constant dense<0.000000e+00> : vector<8xf32>
    %123 = vector.multi_reduction <add>, %120, %cst_38 [0] : vector<512x8xf32> to vector<8xf32>
    %124 = vector.shape_cast %123 : vector<8xf32> to vector<1x8xf32>
    %125 = arith.mulf %120, %120 : vector<512x8xf32>
    %cst_39 = arith.constant dense<0.000000e+00> : vector<8xf32>
    %126 = vector.multi_reduction <add>, %125, %cst_39 [0] : vector<512x8xf32> to vector<8xf32>
    %127 = vector.shape_cast %126 : vector<8xf32> to vector<1x8xf32>
    %cst_40 = arith.constant 0.001953125 : f32
    %128 = vector.broadcast %cst_40 : f32 to vector<1x8xf32>
    %129 = arith.mulf %124, %128 : vector<1x8xf32>
    %cst_41 = arith.constant 0.001953125 : f32
    %130 = vector.broadcast %cst_41 : f32 to vector<1x8xf32>
    %131 = arith.mulf %127, %130 : vector<1x8xf32>
    %132 = arith.mulf %129, %129 : vector<1x8xf32>
    %133 = arith.subf %131, %132 : vector<1x8xf32>
    %cst_42 = arith.constant 0.000000e+00 : f32
    %134 = vector.broadcast %cst_42 : f32 to vector<1x8xf32>
    %135 = arith.maximumf %133, %134 : vector<1x8xf32>
    %cst_43 = arith.constant 9.99999974E-6 : f32
    %136 = vector.broadcast %cst_43 : f32 to vector<1x8xf32>
    %137 = arith.addf %135, %136 : vector<1x8xf32>
    %138 = math.rsqrt %137 : vector<1x8xf32>
    %139 = arith.mulf %121, %138 : vector<1x8xf32>
    %140 = arith.mulf %129, %139 : vector<1x8xf32>
    %141 = arith.subf %122, %140 : vector<1x8xf32>
    %142 = vector.broadcast %139 : vector<1x8xf32> to vector<512x8xf32>
    %143 = arith.mulf %120, %142 : vector<512x8xf32>
    %144 = vector.broadcast %141 : vector<1x8xf32> to vector<512x8xf32>
    %145 = arith.addf %143, %144 : vector<512x8xf32>
    %146 = arith.addf %117, %145 : vector<512x8xf32>
    %cst_44 = arith.constant 0.000000e+00 : f32
    %147 = vector.broadcast %cst_44 : f32 to vector<512x8xf32>
    %148 = arith.maximumf %146, %147 : vector<512x8xf32>
    %c0_45 = arith.constant 0 : index
    %c0_46 = arith.constant 0 : index
    %149 = vector.load %arg11[%c0_45, %c0_46] : memref<512x8xf32, #tpu.memory_space<vmem>>, vector<512x8xf32>
    tpu.vector_store %arg11[%c0_45, %c0_46], %148 {strides = array<i32>} : memref<512x8xf32, #tpu.memory_space<vmem>>, vector<512x8xf32>,
    return
  }
  func.func @transform_0(%arg0: i32) -> (i32, i32, i32, i32) {
    %c0_i32 = arith.constant 0 : i32
    %c0_i32_0 = arith.constant 0 : i32
    %c0_i32_1 = arith.constant 0 : i32
    %c0_i32_2 = arith.constant 0 : i32
    %c0_i32_3 = arith.constant 0 : i32
    return %c0_i32, %c0_i32_0, %c0_i32_1, %c0_i32_2 : i32, i32, i32, i32
  }
  func.func @transform_1(%arg0: i32) -> (i32, i32) {
    %c0_i32 = arith.constant 0 : i32
    %c0_i32_0 = arith.constant 0 : i32
    %c0_i32_1 = arith.constant 0 : i32
    return %c0_i32, %c0_i32_0 : i32, i32
  }
  func.func @transform_2(%arg0: i32) -> (i32, i32) {
    %c0_i32 = arith.constant 0 : i32
    %c0_i32_0 = arith.constant 0 : i32
    %c0_i32_1 = arith.constant 0 : i32
    return %c0_i32, %c0_i32_0 : i32, i32
  }
  func.func @transform_3(%arg0: i32) -> (i32, i32) {
    %c0_i32 = arith.constant 0 : i32
    %c0_i32_0 = arith.constant 0 : i32
    %c0_i32_1 = arith.constant 0 : i32
    return %c0_i32, %c0_i32_0 : i32, i32
  }
  func.func @transform_4(%arg0: i32) -> (i32, i32) {
    %c0_i32 = arith.constant 0 : i32
    %c0_i32_0 = arith.constant 0 : i32
    %c0_i32_1 = arith.constant 0 : i32
    return %c0_i32, %c0_i32_0 : i32, i32
  }
  func.func @transform_5(%arg0: i32) -> (i32, i32) {
    %c0_i32 = arith.constant 0 : i32
    %c0_i32_0 = arith.constant 0 : i32
    %c0_i32_1 = arith.constant 0 : i32
    return %c0_i32, %c0_i32_0 : i32, i32
  }
  func.func @transform_6(%arg0: i32) -> (i32, i32) {
    %c0_i32 = arith.constant 0 : i32
    %c0_i32_0 = arith.constant 0 : i32
    %c0_i32_1 = arith.constant 0 : i32
    return %c0_i32, %c0_i32_0 : i32, i32
  }
  func.func @transform_7(%arg0: i32) -> (i32, i32) {
    %c0_i32 = arith.constant 0 : i32
    %c0_i32_0 = arith.constant 0 : i32
    %c0_i32_1 = arith.constant 0 : i32
    return %c0_i32, %c0_i32_0 : i32, i32
  }
  func.func @transform_8(%arg0: i32) -> (i32, i32) {
    %c0_i32 = arith.constant 0 : i32
    %c0_i32_0 = arith.constant 0 : i32
    %c0_i32_1 = arith.constant 0 : i32
    return %c0_i32, %c0_i32_0 : i32, i32
  }
  func.func @transform_9(%arg0: i32) -> (i32, i32) {
    %c0_i32 = arith.constant 0 : i32
    %c0_i32_0 = arith.constant 0 : i32
    %c0_i32_1 = arith.constant 0 : i32
    return %c0_i32, %c0_i32_0 : i32, i32
  }
  func.func @transform_10(%arg0: i32) -> (i32, i32) {
    %c0_i32 = arith.constant 0 : i32
    %c0_i32_0 = arith.constant 0 : i32
    %c0_i32_1 = arith.constant 0 : i32
    return %c0_i32, %c0_i32_0 : i32, i32
  }
}

</mosaic_0001>

<bundles_post_ra>
// kernel: tpu_custom_call.1
= control target key start
LH: loop header
LB: loop body
LE: loop exit
PB: predicated region body
PF: predicated region fallthrough
CT: control target
= control target key end

     0   :  { %vm240_vm0 = vcmask 1046528   ;;  %s7482_s25 = smov 4   ;;  %vm465_vm1 = vcmask 1045504   ;;  %s7483_s14 = smov 8   ;;  %vm2121_vm2 = vcmask 1041408   ;;  %vm1484_vm3 = vcmask 31744   ;;  %s15595_s0 = inlined_call_operand.vmem [shape: f32[2,18,18,4], index: 0, kind: input, shape index: {}]   ;;  %s15596_s1 = inlined_call_operand.vmem [shape: bf16[36,8], index: 1, kind: input, shape index: {}]   ;;  %s15597_s2 = inlined_call_operand.vmem [shape: f32[1,8], index: 2, kind: input, shape index: {}]   ;;  %s15598_s3 = inlined_call_operand.vmem [shape: f32[1,8], index: 3, kind: input, shape index: {}]   ;;  %s15599_s4 = inlined_call_operand.vmem [shape: bf16[72,8], index: 4, kind: input, shape index: {}]   ;;  %s15600_s7 = inlined_call_operand.vmem [shape: bf16[4,8], index: 7, kind: input, shape index: {}]   ;;  %s15601_s8 = inlined_call_operand.vmem [shape: f32[1,8], index: 8, kind: input, shape index: {}]   ;;  %s15602_s9 = inlined_call_operand.vmem [shape: f32[1,8], index: 9, kind: input, shape index: {}]   ;;  %s15603_s5 = inlined_call_operand.vmem [shape: f32[1,8], index: 5, kind: input, shape index: {}]   ;;  %s15604_s6 = inlined_call_operand.vmem [shape: f32[1,8], index: 6, kind: input, shape index: {}]   ;;  %s15605_s10 = inlined_call_operand.vmem [shape: f32[512,8], index: 10, kind: output, shape index: {}]  }
   0x1   :  { %v7554_v0 = vld [vmem:[%s15595_s0 + $0x30] sm:$0xff]  ;;  %v7559_v1 = vld [vmem:[%s15595_s0 + $0x38] sm:$0xff]  ;;  %v7564_v2 = vld [vmem:[%s15595_s0 + $0x40] sm:$0x3]  ;;  %s7484_s16 = smov 12   ;;  %s7485_s19 = smov 16  }
   0x2   :  { %v251_v3 = vrot.slane %v7554_v0, 1  ;;  %v252_v4 = vrot.slane %v7559_v1, 1  ;;  %v254_v5 = vrot.slane %v7564_v2, 1  ;;  %v7572_v6 = vld [vmem:[%s15595_s0] sm:$0xff]  ;;  %v7577_v7 = vld [vmem:[%s15595_s0 + $0x8] sm:$0xff]  ;;  %v7586_v9 = vpack.c.bf16 %v7559_v1, %v7554_v0  ;;  %v7598_v13 = vld [vmem:[%s15595_s0 + $0x50] sm:$0xff] }
   0x3   :  { %16067 = vst [vmem:[#allocation2_spill] sm:$0xff] %v7572_v6  ;;  %16068 = vst [vmem:[#allocation3_spill] sm:$0xff] %v7577_v7  ;;  %v7582_v8 = vld [vmem:[%s15595_s0 + $0x48] sm:$0xff]  ;;  %v7591_v10 = vld [vmem:[%s15595_s0 + $0x10] sm:$0x3]  ;;  %v241_v11 = vrot.slane %v7572_v6, 1 }
   0x4   :  { %16069 = vst [vmem:[#allocation4_spill] sm:$0xff] %v7586_v9  ;;  %v242_v12 = vrot.slane %v7577_v7, 1  ;;  %v256_v14 = vrot.slane %v7582_v8, 1  ;;  %v253_v16 = vsel %vm240_vm0, %v251_v3, %v252_v4  ;;  %v255_v17 = vsel %vm240_vm0, %v252_v4, %v254_v5  ;;  %v7609_v19 = vld [vmem:[%s15595_s0 + $0x58] sm:$0x3]  ;;  %v7619_v21 = vld [vmem:[%s15595_s0 + $0x20] sm:$0xff] }
   0x5   :  { %v244_v18 = vrot.slane %v7591_v10, 1  ;;  %v7614_v20 = vld [vmem:[%s15595_s0 + $0x18] sm:$0xff]  ;;  %v7621_v22 = vpack.c.bf16 %v255_v17, %v253_v16  ;;  %v257_v24 = vrot.slane %v7598_v13, 1  ;;  %v259_v25 = vrot.slane %v7609_v19, 1  ;;  %v7629_v26 = vld [vmem:[%s15595_s0 + $0x28] sm:$0x3] }
   0x6   :  { %v243_v23 = vsel %vm240_vm0, %v241_v11, %v242_v12  ;;  %v7634_v27 = vld [vmem:[%s15595_s0 + $0x78] sm:$0xff]  ;;  %v7639_v28 = vld [vmem:[%s15595_s0 + $0x80] sm:$0xff]  ;;  %v246_v30 = vrot.slane %v7614_v20, 1  ;;  %v247_v31 = vrot.slane %v7619_v21, 1  ;;  %v249_v32 = vrot.slane %v7629_v26, 1  ;;  %v7663_v39 = vld [vmem:[%s15595_s0 + $0x68] sm:$0xff] }
   0x7   :  { %16070 = vst [vmem:[#allocation5_spill] sm:$0xff] %v7621_v22  ;;  %v245_v29 = vsel %vm240_vm0, %v242_v12, %v244_v18  ;;  %v7648_v33 = vld [vmem:[%s15595_s0 + $0x88] sm:$0x3]  ;;  %v7653_v34 = vld [vmem:[%s15595_s0 + $0x60] sm:$0xff]  ;;  %902 = vrot.lane.b32.xlu1 %v7621_v22, %s7482_s25  ;;  %v258_v36 = vsel %vm240_vm0, %v256_v14, %v257_v24  ;;  %v260_v37 = vsel %vm240_vm0, %v257_v24, %v259_v25  ;;  %v266_v38 = vrot.slane %v7634_v27, 1  ;;  %v7683_v46 = vld [vmem:[%s15595_s0 + $0xb0] sm:$0xff] }
   0x8   :  { %v790_v35 = vpack.c.bf16 %v245_v29, %v243_v23  ;;  %v7668_v40 = vld [vmem:[%s15595_s0 + $0x70] sm:$0x3]  ;;  %v7673_v41 = vld [vmem:[%s15595_s0 + $0xa8] sm:$0xff]  ;;  %v7675_v42 = vpack.c.bf16 %v260_v37, %v258_v36  ;;  %v248_v43 = vsel %vm240_vm0, %v246_v30, %v247_v31  ;;  %v250_v44 = vsel %vm240_vm0, %v247_v31, %v249_v32  ;;  %v7688_v47 = vld [vmem:[%s15595_s0 + $0xb8] sm:$0x3]  ;;  %s7486_s22 = smov 20  }
   0x9   :  { %v267_v45 = vrot.slane %v7639_v28, 1  ;;  %v7693_v48 = vld [vmem:[%s15595_s0 + $0x90] sm:$0xff]  ;;  %v7696_v49 = vpack.c.bf16 %v250_v44, %v248_v43  ;;  %v269_v50 = vrot.slane %v7648_v33, 1  ;;  %v261_v51 = vrot.slane %v7653_v34, 1  ;;  %v7704_v53 = vld [vmem:[%s15595_s0 + $0x98] sm:$0xff]  ;;  %v7729_v3 = vld [vmem:[%s15595_s0 + $0xe0] sm:$0xff] }
   0xa   :  { %16071 = vst [vmem:[#allocation6_spill] sm:$0xff] %v7675_v42  ;;  %898 = vrot.lane.b32.xlu0 %v790_v35, %s7482_s25  ;;  %v262_v52 = vrot.slane %v7663_v39, 1  ;;  %v264_v55 = vrot.slane %v7668_v40, 1  ;;  %v276_v56 = vrot.slane %v7673_v41, 1  ;;  %v277_v57 = vrot.slane %v7683_v46, 1  ;;  %v7718_v59 = vld [vmem:[%s15595_s0 + $0xd8] sm:$0xff] }
   0xb   :  { %16072 = vst [vmem:[#allocation7_spill] sm:$0xff] %v7696_v49  ;;  %v268_v54 = vsel %vm240_vm0, %v266_v38, %v267_v45  ;;  %v7713_v58 = vld [vmem:[%s15595_s0 + $0xa0] sm:$0x3]  ;;  %904 = vrot.lane.b32.xlu1 %v7675_v42, %s7482_s25  ;;  %v270_v60 = vsel %vm240_vm0, %v267_v45, %v269_v50  ;;  %v279_v62 = vrot.slane %v7688_v47, 1  ;;  %v271_v63 = vrot.slane %v7693_v48, 1  ;;  %16073 = vst [vmem:[#allocation8_spill] sm:$0xff] %v7729_v3 }
   0xc   :  { %v263_v61 = vsel %vm240_vm0, %v261_v51, %v262_v52  ;;  %v7734_v4 = vld [vmem:[%s15595_s0 + $0xe8] sm:$0x3]  ;;  %v7736_v5 = vpack.c.bf16 %v270_v60, %v268_v54  ;;  %v265_v11 = vsel %vm240_vm0, %v262_v52, %v264_v55  ;;  %v278_v12 = vsel %vm240_vm0, %v276_v56, %v277_v57  ;;  %v7744_v16 = vld [vmem:[%s15595_s0 + $0xc0] sm:$0xff]  ;;  %v7754_v18 = vld [vmem:[%s15595_s0 + $0xd0] sm:$0x3]  ;;  %s7488_s23 = smov 28  }
   0xd   :  { %16074 = vst [vmem:[#allocation9_spill] sm:$0xff] %v7734_v4  ;;  %v272_v14 = vrot.slane %v7704_v53, 1  ;;  %v7749_v17 = vld [vmem:[%s15595_s0 + $0xc8] sm:$0xff]  ;;  %v7758_v23 = vpack.c.bf16 %v265_v11, %v263_v61  ;;  %v280_v24 = vsel %vm240_vm0, %v277_v57, %v279_v62  ;;  %v274_v25 = vrot.slane %v7713_v58, 1  ;;  %v7776_v37 = vld [vmem:[%s15595_s0 + $0x110] sm:$0xff]  ;;  %v7797_v52 = vld [vmem:[%s15595_s0 + $0xf8] sm:$0xff] }
   0xe   :  { %16075 = vst [vmem:[#allocation10_spill] sm:$0xff] %v7736_v5  ;;  %900 = vrot.lane.b32.xlu0 %v7696_v49, %s7482_s25  ;;  %v286_v29 = vrot.slane %v7718_v59, 1  ;;  %v7766_v30 = vld [vmem:[%s15595_s0 + $0x108] sm:$0xff]  ;;  %v7768_v31 = vpack.c.bf16 %v280_v24, %v278_v12  ;;  %v287_v35 = vrot.slane %v7729_v3, 1  ;;  %v289_v36 = vrot.slane %v7734_v4, 1  ;;  %16079 = vst [vmem:[#allocation14_spill] sm:$0xff] %v7776_v37 }
   0xf   :  { %16076 = vst [vmem:[#allocation11_spill] sm:$0xff] %v7758_v23  ;;  %16077 = vst [vmem:[#allocation12_spill] sm:$0xff] %v7766_v30  ;;  %v273_v32 = vsel %vm240_vm0, %v271_v63, %v272_v14  ;;  %v7781_v38 = vld [vmem:[%s15595_s0 + $0x118] sm:$0x3]  ;;  %908 = vrot.lane.b32.xlu1 %v7736_v5, %s7482_s25  ;;  %v275_v43 = vsel %vm240_vm0, %v272_v14, %v274_v25  ;;  %v281_v44 = vrot.slane %v7744_v16, 1  ;;  %v282_v45 = vrot.slane %v7749_v17, 1 }
  0x10   :  { %16078 = vst [vmem:[#allocation13_spill] sm:$0xff] %v7768_v31  ;;  %16080 = vst [vmem:[#allocation15_spill] sm:$0xff] %v7781_v38  ;;  %v284_v50 = vrot.slane %v7754_v18, 1  ;;  %v7792_v51 = vld [vmem:[%s15595_s0 + $0xf0] sm:$0xff]  ;;  %v288_v54 = vsel %vm240_vm0, %v286_v29, %v287_v35  ;;  %v290_v55 = vsel %vm240_vm0, %v287_v35, %v289_v36  ;;  %v296_v56 = vrot.slane %v7766_v30, 1  ;;  %v7810_v60 = vld [vmem:[%s15595_s0 + $0x138] sm:$0xff] }
  0x11   :  { %16081 = vst [vmem:[#allocation16_spill] sm:$0xff] %v7792_v51  ;;  %16082 = vst [vmem:[#allocation17_spill] sm:$0xff] %v7797_v52  ;;  %v7805_v57 = vld [vmem:[%s15595_s0 + $0x100] sm:$0x3]  ;;  %v7819_v62 = vpack.c.bf16 %v275_v43, %v273_v32  ;;  %v283_v63 = vsel %vm240_vm0, %v281_v44, %v282_v45  ;;  %v297_v12 = vrot.slane %v7776_v37, 1  ;;  %v299_v24 = vrot.slane %v7781_v38, 1 }
  0x12   :  { %16083 = vst [vmem:[#allocation18_spill] sm:$0xff] %v7805_v57  ;;  %16084 = vst [vmem:[#allocation19_spill] sm:$0xff] %v7810_v60  ;;  %v7815_v61 = vld [vmem:[%s15595_s0 + $0x140] sm:$0xff]  ;;  %906 = vrot.lane.b32.xlu0 %v7758_v23, %s7482_s25  ;;  %v285_v11 = vsel %vm240_vm0, %v282_v45, %v284_v50  ;;  %v7827_v14 = vld [vmem:[%s15595_s0 + $0x148] sm:$0x3]  ;;  %v291_v25 = vrot.slane %v7792_v51, 1  ;;  %v7844_v36 = vpack.c.bf16 %v290_v55, %v288_v54 }
  0x13   :  { %16085 = vst [vmem:[#allocation20_spill] sm:$0xff] %v7815_v61  ;;  %16086 = vst [vmem:[#allocation21_spill] sm:$0xff] %v7819_v62  ;;  %v292_v29 = vrot.slane %v7797_v52, 1  ;;  %v7835_v32 = vld [vmem:[%s15595_s0 + $0x120] sm:$0xff]  ;;  %v7840_v35 = vld [vmem:[%s15595_s0 + $0x128] sm:$0xff]  ;;  %912 = vrot.lane.b32.xlu1 %v7768_v31, %s7482_s25  ;;  %v294_v43 = vrot.slane %v7805_v57, 1  ;;  %v7859_v5 = vpack.c.bf16 %v285_v11, %v283_v63  ;;  %v298_v54 = vsel %vm240_vm0, %v296_v56, %v297_v12 }
  0x14   :  { %16087 = vst [vmem:[#allocation22_spill] sm:$0xff] %v7827_v14  ;;  %16088 = vst [vmem:[#allocation23_spill] sm:$0xff] %v7835_v32  ;;  %v306_v44 = vrot.slane %v7810_v60, 1  ;;  %v307_v45 = vrot.slane %v7815_v61, 1  ;;  %v7852_v50 = vld [vmem:[%s15595_s0 + $0x130] sm:$0x3]  ;;  %v300_v55 = vsel %vm240_vm0, %v297_v12, %v299_v24 }
  0x15   :  { %16089 = vst [vmem:[#allocation24_spill] sm:$0xff] %v7840_v35  ;;  %16090 = vst [vmem:[#allocation25_spill] sm:$0xff] %v7844_v36  ;;  %v7857_v15 = vld [vmem:[%s15595_s0 + $0x168] sm:$0xff]  ;;  %v309_v31 = vrot.slane %v7827_v14, 1  ;;  %v7867_v23 = vld [vmem:[%s15595_s0 + $0x170] sm:$0xff]  ;;  %v293_v63 = vsel %vm240_vm0, %v291_v25, %v292_v29  ;;  %v295_v56 = vsel %vm240_vm0, %v292_v29, %v294_v43  ;;  %v301_v11 = vrot.slane %v7835_v32, 1 }
  0x16   :  { %16091 = vst [vmem:[#allocation26_spill] sm:$0xff] %v7852_v50  ;;  %16092 = vst [vmem:[#allocation27_spill] sm:$0xff] %v7857_v15  ;;  %v7872_v42 = vld [vmem:[%s15595_s0 + $0x178] sm:$0x3]  ;;  %910 = vrot.lane.b32.xlu0 %v7819_v62, %s7482_s25  ;;  %v302_v12 = vrot.slane %v7840_v35, 1  ;;  %v7883_v24 = vld [vmem:[%s15595_s0 + $0x150] sm:$0xff]  ;;  %v308_v29 = vsel %vm240_vm0, %v306_v44, %v307_v45  ;;  %v7901_v9 = vpack.c.bf16 %v300_v55, %v298_v54 }
  0x17   :  { %16093 = vst [vmem:[#allocation28_spill] sm:$0xff] %v7859_v5  ;;  %16094 = vst [vmem:[#allocation29_spill] sm:$0xff] %v7867_v23  ;;  %v7888_v49 = vld [vmem:[%s15595_s0 + $0x158] sm:$0xff]  ;;  %v7893_v25 = vld [vmem:[%s15595_s0 + $0x160] sm:$0x3]  ;;  %v310_v43 = vsel %vm240_vm0, %v307_v45, %v309_v31  ;;  %v304_v62 = vrot.slane %v7852_v50, 1  ;;  %916 = vrot.lane.b32.xlu1 %v7844_v36, %s7482_s25  ;;  %v7920_v45 = vpack.c.bf16 %v295_v56, %v293_v63 }
  0x18   :  { %16095 = vst [vmem:[#allocation30_spill] sm:$0xff] %v7872_v42  ;;  %16096 = vst [vmem:[#allocation31_spill] sm:$0xff] %v7883_v24  ;;  %v316_v22 = vrot.slane %v7857_v15, 1  ;;  %v317_v35 = vrot.slane %v7867_v23, 1  ;;  %v319_v32 = vrot.slane %v7872_v42, 1  ;;  %v7908_v14 = vld [vmem:[%s15595_s0 + $0x1c8] sm:$0xff]  ;;  %v7937_v63 = vpack.c.bf16 %v310_v43, %v308_v29 }
  0x19   :  { %16097 = vst [vmem:[#allocation32_spill] sm:$0xff] %v7888_v49  ;;  %16098 = vst [vmem:[#allocation33_spill] sm:$0xff] %v7893_v25  ;;  %v7913_v31 = vld [vmem:[%s15595_s0 + $0x1d0] sm:$0xff]  ;;  %v311_v54 = vrot.slane %v7883_v24, 1  ;;  %v312_v55 = vrot.slane %v7888_v49, 1  ;;  %v314_v36 = vrot.slane %v7893_v25, 1  ;;  %v303_v56 = vsel %vm240_vm0, %v301_v11, %v302_v12 }
  0x1a   :  { %16099 = vst [vmem:[#allocation34_spill] sm:$0xff] %v7901_v9  ;;  %16100 = vst [vmem:[#allocation35_spill] sm:$0xff] %v7908_v14  ;;  %v7918_v44 = vld [vmem:[%s15595_s0 + $0x1b0] sm:$0xff]  ;;  %v7928_v42 = vld [vmem:[%s15595_s0 + $0x1d8] sm:$0x3]  ;;  %914 = vrot.lane.b32.xlu0 %v7859_v5, %s7482_s25  ;;  %v305_v49 = vsel %vm240_vm0, %v302_v12, %v304_v62  ;;  %v318_v25 = vsel %vm240_vm0, %v316_v22, %v317_v35  ;;  %v320_v43 = vsel %vm240_vm0, %v317_v35, %v319_v32  ;;  %s7489_s24 = smov 32  }
  0x1b   :  { %16101 = vst [vmem:[#allocation36_spill] sm:$0xff] %v7913_v31  ;;  %16102 = vst [vmem:[#allocation37_spill] sm:$0xff] %v7918_v44  ;;  %v7933_v23 = vld [vmem:[%s15595_s0 + $0x1b8] sm:$0xff]  ;;  %v7945_v24 = vld [vmem:[%s15595_s0 + $0x1c0] sm:$0x3]  ;;  %v313_v11 = vsel %vm240_vm0, %v311_v54, %v312_v55  ;;  %v326_v62 = vrot.slane %v7908_v14, 1  ;;  %920 = vrot.lane.b32.xlu1 %v7901_v9, %s7482_s25  ;;  %v315_v50 = vsel %vm240_vm0, %v312_v55, %v314_v36 }
  0x1c   :  { %16103 = vst [vmem:[#allocation38_spill] sm:$0xff] %v7920_v45  ;;  %16104 = vst [vmem:[#allocation39_spill] sm:$0xff] %v7928_v42  ;;  %v99_v15 = vld [vmem:[%s15595_s0 + $0x1f8] sm:$0xff]  ;;  %v100_v29 = vld [vmem:[%s15595_s0 + $0x200] sm:$0xff]  ;;  %v327_v22 = vrot.slane %v7913_v31, 1  ;;  %v329_v32 = vrot.slane %v7928_v42, 1  ;;  %v7978_v36 = vpack.c.bf16 %v305_v49, %v303_v56  ;;  %v7980_v55 = vpack.c.bf16 %v320_v43, %v318_v25 }
  0x1d   :  { %16105 = vst [vmem:[#allocation40_spill] sm:$0xff] %v7933_v23  ;;  %16106 = vst [vmem:[#allocation41_spill] sm:$0xff] %v7937_v63  ;;  %v101_v12 = vld [vmem:[%s15595_s0 + $0x208] sm:$0x3]  ;;  %v96_v5 = vld [vmem:[%s15595_s0 + $0x1e0] sm:$0xff]  ;;  %v321_v35 = vrot.slane %v7918_v44, 1 }
  0x1e   :  { %16107 = vst [vmem:[#allocation42_spill] sm:$0xff] %v7945_v24  ;;  %v322_v54 = vrot.slane %v7933_v23, 1  ;;  %v97_v31 = vld [vmem:[%s15595_s0 + $0x1e8] sm:$0xff]  ;;  %v324_v14 = vrot.slane %v7945_v24, 1  ;;  %v336_v61 = vrot.slane %v99_v15, 1  ;;  %v337_v60 = vrot.slane %v100_v29, 1  ;;  %918 = vrot.lane.b32.xlu0 %v7920_v45, %s7482_s25 }
  0x1f   :  { %v98_v9 = vld [vmem:[%s15595_s0 + $0x1f0] sm:$0x3]  ;;  %16108 = vst [vmem:[#allocation43_spill] sm:$0xff] %v7978_v36  ;;  %16109 = vst [vmem:[#allocation44_spill] sm:$0xff] %v7980_v55  ;;  %v339_v23 = vrot.slane %v101_v12, 1  ;;  %v331_v44 = vrot.slane %v96_v5, 1  ;;  %v7988_v29 = vpack.c.bf16 %v315_v50, %v313_v11  ;;  %v328_v24 = vsel %vm240_vm0, %v326_v62, %v327_v22  ;;  %924 = vrot.lane.b32.xlu1 %v7937_v63, %s7482_s25 }
  0x20   :  { %v105_v42 = vld [vmem:[%s15595_s0 + $0x228] sm:$0xff]  ;;  %v106_v15 = vld [vmem:[%s15595_s0 + $0x230] sm:$0xff]  ;;  %v330_v45 = vsel %vm240_vm0, %v327_v22, %v329_v32  ;;  %v332_v49 = vrot.slane %v97_v31, 1  ;;  %v107_v25 = vld [vmem:[%s15595_s0 + $0x238] sm:$0x3]  ;;  %v323_v50 = vsel %vm240_vm0, %v321_v35, %v322_v54  ;;  %v325_v43 = vsel %vm240_vm0, %v322_v54, %v324_v14  ;;  %s7491_s30 = smov 40  }
  0x21   :  { %16110 = vst [vmem:[#allocation45_spill] sm:$0xff] %v7988_v29  ;;  %v102_v5 = vld [vmem:[%s15595_s0 + $0x210] sm:$0xff]  ;;  %v103_v56 = vld [vmem:[%s15595_s0 + $0x218] sm:$0xff]  ;;  %v338_v31 = vsel %vm240_vm0, %v336_v61, %v337_v60  ;;  %v334_v11 = vrot.slane %v98_v9, 1  ;;  %v104_v62 = vld [vmem:[%s15595_s0 + $0x220] sm:$0x3]  ;;  %v340_v12 = vsel %vm240_vm0, %v337_v60, %v339_v23 }
  0x22   :  { %v111_v22 = vld [vmem:[%s15595_s0 + $0x258] sm:$0xff]  ;;  %v333_v32 = vsel %vm240_vm0, %v331_v44, %v332_v49  ;;  %v346_v63 = vrot.slane %v105_v42, 1  ;;  %v347_v57 = vrot.slane %v106_v15, 1  ;;  %v112_v14 = vld [vmem:[%s15595_s0 + $0x260] sm:$0xff]  ;;  %v113_v9 = vld [vmem:[%s15595_s0 + $0x268] sm:$0x3]  ;;  %922 = vrot.lane.b32.xlu0 %v7978_v36, %s7482_s25 }
  0x23   :  { %v335_v61 = vsel %vm240_vm0, %v332_v49, %v334_v11  ;;  %v349_v35 = vrot.slane %v107_v25, 1  ;;  %v341_v54 = vrot.slane %v102_v5, 1  ;;  %v342_v23 = vrot.slane %v103_v56, 1  ;;  %v108_v42 = vld [vmem:[%s15595_s0 + $0x240] sm:$0xff]  ;;  %v109_v60 = vld [vmem:[%s15595_s0 + $0x248] sm:$0xff]  ;;  %928 = vrot.lane.b32.xlu1 %v7980_v55, %s7482_s25  ;;  %s7493_s11 = smov 56  }
  0x24   :  { %v344_v15 = vrot.slane %v104_v62, 1  ;;  %v356_v52 = vrot.slane %v111_v22, 1  ;;  %v110_v36 = vld [vmem:[%s15595_s0 + $0x250] sm:$0x3]  ;;  %v8035_v49 = vpack.c.bf16 %v330_v45, %v328_v24  ;;  %v806_v25 = vpack.c.bf16 %v325_v43, %v323_v50  ;;  %v117_v11 = vld [vmem:[%s15595_s0 + $0x288] sm:$0xff]  ;;  %s7494_s12 = smov 64  }
  0x25   :  { %v8037_v5 = vpack.c.bf16 %v340_v12, %v338_v31  ;;  %v357_v56 = vrot.slane %v112_v14, 1  ;;  %v118_v62 = vld [vmem:[%s15595_s0 + $0x290] sm:$0xff]  ;;  %v119_v22 = vld [vmem:[%s15595_s0 + $0x298] sm:$0x3]  ;;  %v8048_v44 = vpack.c.bf16 %v335_v61, %v333_v32  ;;  %v359_v24 = vrot.slane %v113_v9, 1 }
  0x26   :  { %16111 = vst [vmem:[#allocation46_spill] sm:$0xff] %v8035_v49  ;;  %v351_v45 = vrot.slane %v108_v42, 1  ;;  %v352_v50 = vrot.slane %v109_v60, 1  ;;  %v114_v43 = vld [vmem:[%s15595_s0 + $0x270] sm:$0xff]  ;;  %v115_v31 = vld [vmem:[%s15595_s0 + $0x278] sm:$0xff]  ;;  %926 = vrot.lane.b32.xlu0 %v7988_v29, %s7482_s25  ;;  %v348_v12 = vsel %vm240_vm0, %v346_v63, %v347_v57  ;;  %v350_v14 = vsel %vm240_vm0, %v347_v57, %v349_v35  ;;  %v124_v57 = vld [vmem:[%s15595_s0 + $0x2c0] sm:$0xff] }
  0x27   :  { %16112 = vst [vmem:[#allocation47_spill] sm:$0xff] %v8037_v5  ;;  %16113 = vst [vmem:[#allocation48_spill] sm:$0xff] %v8048_v44  ;;  %v343_v32 = vsel %vm240_vm0, %v341_v54, %v342_v23  ;;  %v354_v9 = vrot.slane %v110_v36, 1  ;;  %v116_v61 = vld [vmem:[%s15595_s0 + $0x280] sm:$0x3]  ;;  %v123_v42 = vld [vmem:[%s15595_s0 + $0x2b8] sm:$0xff]  ;;  %v345_v60 = vsel %vm240_vm0, %v342_v23, %v344_v15  ;;  %v358_v55 = vsel %vm240_vm0, %v356_v52, %v357_v56 }
  0x28   :  { %v366_v29 = vrot.slane %v117_v11, 1  ;;  %v367_v51 = vrot.slane %v118_v62, 1  ;;  %v125_v63 = vld [vmem:[%s15595_s0 + $0x2c8] sm:$0x3]  ;;  %v120_v36 = vld [vmem:[%s15595_s0 + $0x2a0] sm:$0xff]  ;;  %932 = vrot.lane.b32.xlu1 %v8035_v49, %s7482_s25  ;;  %v360_v35 = vsel %vm240_vm0, %v357_v56, %v359_v24  ;;  %v369_v52 = vrot.slane %v119_v22, 1 }
  0x29   :  { %v361_v54 = vrot.slane %v114_v43, 1  ;;  %v362_v23 = vrot.slane %v115_v31, 1  ;;  %v121_v15 = vld [vmem:[%s15595_s0 + $0x2a8] sm:$0xff]  ;;  %v122_v11 = vld [vmem:[%s15595_s0 + $0x2b0] sm:$0x3]  ;;  %v353_v62 = vsel %vm240_vm0, %v351_v45, %v352_v50  ;;  %v355_v38 = vsel %vm240_vm0, %v352_v50, %v354_v9 }
  0x2a   :  { %v364_v4 = vrot.slane %v116_v61, 1  ;;  %v376_v37 = vrot.slane %v123_v42, 1  ;;  %930 = vrot.lane.b32.xlu0 %v806_v25, %s7482_s25  ;;  %v8090_v56 = vpack.c.bf16 %v350_v14, %v348_v12  ;;  %v8092_v22 = vpack.c.bf16 %v345_v60, %v343_v32  ;;  %v129_v31 = vld [vmem:[%s15595_s0 + $0x2e8] sm:$0xff]  ;;  %v130_v50 = vld [vmem:[%s15595_s0 + $0x2f0] sm:$0xff]  ;;  %v131_v25 = vld [vmem:[%s15595_s0 + $0x2f8] sm:$0x3] }
  0x2b   :  { %v377_v24 = vrot.slane %v124_v57, 1  ;;  %v379_v43 = vrot.slane %v125_v63, 1  ;;  %v8097_v49 = vpack.c.bf16 %v360_v35, %v358_v55  ;;  %v371_v30 = vrot.slane %v120_v36, 1  ;;  %v126_v9 = vld [vmem:[%s15595_s0 + $0x2d0] sm:$0xff]  ;;  %v127_v61 = vld [vmem:[%s15595_s0 + $0x2d8] sm:$0xff]  ;;  %v136_v63 = vld [vmem:[%s15595_s0 + $0x320] sm:$0xff] }
  0x2c   :  { %16114 = vst [vmem:[#allocation49_spill] sm:$0xff] %v8090_v56  ;;  %16115 = vst [vmem:[#allocation50_spill] sm:$0xff] %v8092_v22  ;;  %v372_v45 = vrot.slane %v121_v15, 1  ;;  %v374_v3 = vrot.slane %v122_v11, 1  ;;  %936 = vrot.lane.b32.xlu1 %v8037_v5, %s7482_s25  ;;  %v8107_v12 = vpack.c.bf16 %v355_v38, %v353_v62  ;;  %v368_v55 = vsel %vm240_vm0, %v366_v29, %v367_v51  ;;  %v128_v42 = vld [vmem:[%s15595_s0 + $0x2e0] sm:$0x3] }
  0x2d   :  { %16116 = vst [vmem:[#allocation51_spill] sm:$0xff] %v8097_v49  ;;  %v370_v14 = vsel %vm240_vm0, %v367_v51, %v369_v52  ;;  %v363_v32 = vsel %vm240_vm0, %v361_v54, %v362_v23  ;;  %v365_v38 = vsel %vm240_vm0, %v362_v23, %v364_v4  ;;  %v378_v29 = vsel %vm240_vm0, %v376_v37, %v377_v24  ;;  %v135_v57 = vld [vmem:[%s15595_s0 + $0x318] sm:$0xff]  ;;  %v137_v52 = vld [vmem:[%s15595_s0 + $0x328] sm:$0x3]  ;;  %v132_v54 = vld [vmem:[%s15595_s0 + $0x300] sm:$0xff] }
  0x2e   :  { %16117 = vst [vmem:[#allocation52_spill] sm:$0xff] %v8107_v12  ;;  %v380_v51 = vsel %vm240_vm0, %v377_v24, %v379_v43  ;;  %v386_v60 = vrot.slane %v129_v31, 1  ;;  %934 = vrot.lane.b32.xlu0 %v8048_v44, %s7482_s25  ;;  %v373_v36 = vsel %vm240_vm0, %v371_v30, %v372_v45  ;;  %v375_v4 = vsel %vm240_vm0, %v372_v45, %v374_v3  ;;  %v133_v23 = vld [vmem:[%s15595_s0 + $0x308] sm:$0xff]  ;;  %v134_v3 = vld [vmem:[%s15595_s0 + $0x310] sm:$0x3] }
  0x2f   :  { %v387_v35 = vrot.slane %v130_v50, 1  ;;  %v389_v37 = vrot.slane %v131_v25, 1  ;;  %v8143_v15 = vpack.c.bf16 %v370_v14, %v368_v55  ;;  %v381_v11 = vrot.slane %v126_v9, 1  ;;  %v16150_v5 = vld [vmem:[#allocation39_spill] sm:$0xff] }
  0x30   :  { %v382_v30 = vrot.slane %v127_v61, 1  ;;  %v384_v62 = vrot.slane %v128_v42, 1  ;;  %940 = vrot.lane.b32.xlu1 %v8090_v56, %s7482_s25  ;;  %v8150_v24 = vpack.c.bf16 %v365_v38, %v363_v32  ;;  %v8152_v43 = vpack.c.bf16 %v380_v51, %v378_v29 }
  0x31   :  { %16118 = vst [vmem:[#allocation53_spill] sm:$0xff] %v8143_v15  ;;  %v396_v31 = vrot.slane %v135_v57, 1  ;;  %v397_v45 = vrot.slane %v136_v63, 1  ;;  %v8154_v50 = vpack.c.bf16 %v375_v4, %v373_v36  ;;  %v399_v25 = vrot.slane %v137_v52, 1 }
  0x32   :  { %16119 = vst [vmem:[#allocation54_spill] sm:$0xff] %v8150_v24  ;;  %16120 = vst [vmem:[#allocation55_spill] sm:$0xff] %v8152_v43  ;;  %v391_v55 = vrot.slane %v132_v54, 1  ;;  %v392_v14 = vrot.slane %v133_v23, 1  ;;  %938 = vrot.lane.b32.xlu0 %v8092_v22, %s7482_s25  ;;  %v388_v9 = vsel %vm240_vm0, %v386_v60, %v387_v35  ;;  %v390_v61 = vsel %vm240_vm0, %v387_v35, %v389_v37 }
  0x33   :  { %16121 = vst [vmem:[#allocation56_spill] sm:$0xff] %v8154_v50  ;;  %v394_v42 = vrot.slane %v134_v3, 1  ;;  %v471_v32 = vrot.slane %v7614_v20, 2  ;;  %v383_v38 = vsel %vm240_vm0, %v381_v11, %v382_v30  ;;  %v385_v29 = vsel %vm240_vm0, %v382_v30, %v384_v62 }
  0x34   :  { %v472_v51 = vrot.slane %v7619_v21, 2  ;;  %v474_v57 = vrot.slane %v7629_v26, 2  ;;  %944 = vrot.lane.b32.xlu1 %v8097_v49, %s7482_s25  ;;  %v398_v63 = vsel %vm240_vm0, %v396_v31, %v397_v45  ;;  %v466_v60 = vrot.slane %v7572_v6, 2  ;;  %v16151_v6 = vld [vmem:[#allocation37_spill] sm:$0xff] }
  0x35   :  { %v467_v36 = vrot.slane %v7577_v7, 2  ;;  %v481_v4 = vrot.slane %v7582_v8, 2  ;;  %v400_v35 = vsel %vm240_vm0, %v397_v45, %v399_v25  ;;  %v393_v37 = vsel %vm240_vm0, %v391_v55, %v392_v14 }
  0x36   :  { %v395_v52 = vsel %vm240_vm0, %v392_v14, %v394_v42  ;;  %v482_v54 = vrot.slane %v7598_v13, 2  ;;  %942 = vrot.lane.b32.xlu0 %v8107_v12, %s7482_s25  ;;  %v473_v26 = vsel %vm465_vm1, %v471_v32, %v472_v51  ;;  %v16122_v11 = vrot.slane %v7591_v10, 2  ;;  %v16145_v12 = vld [vmem:[#allocation32_spill] sm:$0xff] }
  0x37   :  { %v8179_v23 = vsel %vm465_vm1, %v466_v60, %v467_v36  ;;  %v484_v62 = vrot.slane %v7609_v19, 2  ;;  %v475_v3 = vsel %vm465_vm1, %v472_v51, %v474_v57  ;;  %v476_v45 = vrot.slane %v7554_v0, 2 }
  0x38   :  { %v8184_v30 = vsel %vm465_vm1, %v467_v36, %v16122_v11  ;;  %v477_v25 = vrot.slane %v7559_v1, 2  ;;  %948 = vrot.lane.b32.xlu1 %v8143_v15, %s7482_s25  ;;  %v483_v55 = vsel %vm465_vm1, %v481_v4, %v482_v54  ;;  %v479_v10 = vrot.slane %v7564_v2, 2 }
  0x39   :  { %v491_v14 = vrot.slane %v7634_v27, 2  ;;  %v492_v19 = vrot.slane %v7639_v28, 2  ;;  %v485_v42 = vsel %vm465_vm1, %v482_v54, %v484_v62  ;;  %v494_v51 = vrot.slane %v7648_v33, 2 }
  0x3a   :  { %v478_v32 = vsel %vm465_vm1, %v476_v45, %v477_v25  ;;  %v486_v0 = vrot.slane %v7653_v34, 2  ;;  %946 = vrot.lane.b32.xlu0 %v8150_v24, %s7482_s25  ;;  %v480_v1 = vsel %vm465_vm1, %v477_v25, %v479_v10  ;;  %v487_v2 = vrot.slane %v7663_v39, 2 }
  0x3b   :  { %v493_v57 = vsel %vm465_vm1, %v491_v14, %v492_v19  ;;  %v489_v60 = vrot.slane %v7668_v40, 2  ;;  %v8208_v36 = vpack.c.bf16 %v480_v1, %v478_v32  ;;  %v495_v4 = vsel %vm465_vm1, %v492_v19, %v494_v51  ;;  %v16128_v32 = vld [vmem:[#allocation12_spill] sm:$0xff] }
  0x3c   :  { %v501_v54 = vrot.slane %v7673_v41, 2  ;;  %v502_v33 = vrot.slane %v7683_v46, 2  ;;  %952 = vrot.lane.b32.xlu1 %v8152_v43, %s7482_s25  ;;  %v8215_v11 = vpack.c.bf16 %v390_v61, %v388_v9  ;;  %v504_v62 = vrot.slane %v7688_v47, 2 }
  0x3d   :  { %v8218_v45 = vpack.c.bf16 %v385_v29, %v383_v38  ;;  %v8220_v25 = vpack.c.bf16 %v400_v35, %v398_v63  ;;  %v8222_v40 = vpack.c.bf16 %v395_v52, %v393_v37  ;;  %v8224_v10 = vpack.c.bf16 %v475_v3, %v473_v26  ;;  %v16132_v3 = vld [vmem:[#allocation16_spill] sm:$0xff]  ;;  %v16133_v37 = vld [vmem:[#allocation17_spill] sm:$0xff] }
  0x3e   :  { %16123 = vst [vmem:[#allocation57_spill] sm:$0xff] %v8215_v11  ;;  %950 = vrot.lane.b32.xlu0 %v8154_v50, %s7482_s25  ;;  %v8228_v14 = vpack.c.bf16 %v485_v42, %v483_v55  ;;  %v8230_v19 = vpack.c.bf16 %v495_v4, %v493_v57  ;;  %v8233_v9 = vsel %vm465_vm1, %v486_v0, %v487_v2  ;;  %v506_v63 = vrot.slane %v7744_v16, 2  ;;  %v16127_v55 = vld [vmem:[#allocation8_spill] sm:$0xff]  ;;  %v16129_v0 = vld [vmem:[#allocation14_spill] sm:$0xff]  ;;  %v16130_v57 = vld [vmem:[#allocation9_spill] sm:$0xff] }
  0x3f   :  { %16124 = vst [vmem:[#allocation58_spill] sm:$0xff] %v8218_v45  ;;  %16125 = vst [vmem:[#allocation59_spill] sm:$0xff] %v8220_v25  ;;  %v8236_v47 = vsel %vm465_vm1, %v487_v2, %v489_v60  ;;  %v8239_v61 = vsel %vm465_vm1, %v501_v54, %v502_v33  ;;  %v8247_v35 = vsel %vm465_vm1, %v502_v33, %v504_v62  ;;  %v507_v52 = vrot.slane %v7749_v17, 2  ;;  %v16131_v54 = vld [vmem:[#allocation15_spill] sm:$0xff]  ;;  %v16134_v2 = vld [vmem:[#allocation18_spill] sm:$0xff] }
  0x40   :  { %16126 = vst [vmem:[#allocation60_spill] sm:$0xff] %v8222_v40  ;;  %956 = vrot.lane.b32.xlu1 %v8215_v11, %s7482_s25  ;;  %v509_v26 = vrot.slane %v7754_v18, 2  ;;  %v521_v51 = vrot.slane %v16128_v32, 2  ;;  %v522_v1 = vrot.slane %v16129_v0, 2  ;;  %v524_v33 = vrot.slane %v16131_v54, 2  ;;  %v16140_v50 = vld [vmem:[#allocation26_spill] sm:$0xff] }
  0x41   :  { %v508_v60 = vsel %vm465_vm1, %v506_v63, %v507_v52  ;;  %v516_v42 = vrot.slane %v16132_v3, 2  ;;  %v517_v38 = vrot.slane %v16133_v37, 2  ;;  %v519_v31 = vrot.slane %v16134_v2, 2  ;;  %v16135_v63 = vld [vmem:[#allocation19_spill] sm:$0xff]  ;;  %v16139_v2 = vld [vmem:[#allocation24_spill] sm:$0xff] }
  0x42   :  { %954 = vrot.lane.b32.xlu0 %v8218_v45, %s7482_s25  ;;  %v510_v4 = vsel %vm465_vm1, %v507_v52, %v509_v26  ;;  %v523_v62 = vsel %vm465_vm1, %v521_v51, %v522_v1  ;;  %v525_v29 = vsel %vm465_vm1, %v522_v1, %v524_v33  ;;  %v531_v11 = vrot.slane %v16135_v63, 2  ;;  %v16136_v52 = vld [vmem:[#allocation20_spill] sm:$0xff]  ;;  %v16137_v51 = vld [vmem:[#allocation22_spill] sm:$0xff]  ;;  %v16138_v45 = vld [vmem:[#allocation23_spill] sm:$0xff] }
  0x43   :  { %v8262_v18 = vpack.c.bf16 %v510_v4, %v508_v60  ;;  %v532_v26 = vrot.slane %v16136_v52, 2  ;;  %v8273_v54 = vpack.c.bf16 %v525_v29, %v523_v62  ;;  %v518_v60 = vsel %vm465_vm1, %v516_v42, %v517_v38  ;;  %v16141_v42 = vld [vmem:[#allocation27_spill] sm:$0xff] }
  0x44   :  { %960 = vrot.lane.b32.xlu1 %v8220_v25, %s7482_s25  ;;  %v534_v4 = vrot.slane %v16137_v51, 2  ;;  %v526_v43 = vrot.slane %v16138_v45, 2  ;;  %v520_v25 = vsel %vm465_vm1, %v517_v38, %v519_v31  ;;  %v527_v33 = vrot.slane %v16139_v2, 2  ;;  %v16142_v51 = vld [vmem:[#allocation29_spill] sm:$0xff]  ;;  %v16143_v38 = vld [vmem:[#allocation30_spill] sm:$0xff] }
  0x45   :  { %v533_v1 = vsel %vm465_vm1, %v531_v11, %v532_v26  ;;  %v529_v15 = vrot.slane %v16140_v50, 2  ;;  %v8284_v24 = vpack.c.bf16 %v520_v25, %v518_v60  ;;  %v541_v62 = vrot.slane %v16141_v42, 2  ;;  %v16144_v60 = vld [vmem:[#allocation31_spill] sm:$0xff] }
  0x46   :  { %958 = vrot.lane.b32.xlu0 %v8222_v40, %s7482_s25  ;;  %v535_v29 = vsel %vm465_vm1, %v532_v26, %v534_v4  ;;  %v542_v49 = vrot.slane %v16142_v51, 2  ;;  %v528_v31 = vsel %vm465_vm1, %v526_v43, %v527_v33  ;;  %v544_v50 = vrot.slane %v16143_v38, 2  ;;  %v16147_v43 = vld [vmem:[#allocation33_spill] sm:$0xff]  ;;  %v16149_v38 = vld [vmem:[#allocation36_spill] sm:$0xff] }
  0x47   :  { %v8291_v40 = vpack.c.bf16 %v535_v29, %v533_v1  ;;  %v530_v11 = vsel %vm465_vm1, %v527_v33, %v529_v15  ;;  %v536_v4 = vrot.slane %v16144_v60, 2  ;;  %v537_v56 = vrot.slane %v16145_v12, 2  ;;  %v16148_v15 = vld [vmem:[#allocation35_spill] sm:$0xff] }
  0x48   :  { %996 = vrot.lane.b32.xlu1 %v8224_v10, %s7483_s14  ;;  %v8296_v25 = vpack.c.bf16 %v530_v11, %v528_v31  ;;  %v543_v26 = vsel %vm465_vm1, %v541_v62, %v542_v49  ;;  %v16146_v22 = vpack.c.bf16 %v8184_v30, %v8179_v23  ;;  %v545_v1 = vsel %vm465_vm1, %v542_v49, %v544_v50  ;;  %v16152_v23 = vld [vmem:[#allocation40_spill] sm:$0xff]  ;;  %v16153_v50 = vld [vmem:[#allocation42_spill] sm:$0xff] }
  0x49   :  { %v539_v29 = vrot.slane %v16147_v43, 2  ;;  %v551_v33 = vrot.slane %v16148_v15, 2  ;;  %v552_v31 = vrot.slane %v16149_v38, 2  ;;  %v8309_v11 = vpack.c.bf16 %v545_v1, %v543_v26 }
  0x4a   :  { %994 = vrot.lane.b32.xlu0 %v16146_v22, %s7483_s14  ;;  %v538_v62 = vsel %vm465_vm1, %v536_v4, %v537_v56  ;;  %v554_v44 = vrot.slane %v16150_v5, 2  ;;  %v546_v7 = vrot.slane %v16151_v6, 2  ;;  %v547_v30 = vrot.slane %v16152_v23, 2  ;;  %v16199_v6 = vld [vmem:[#allocation34_spill] sm:$0xff] }
  0x4b   :  { %v540_v22 = vsel %vm465_vm1, %v537_v56, %v539_v29  ;;  %v553_v49 = vsel %vm465_vm1, %v551_v33, %v552_v31  ;;  %v549_v43 = vrot.slane %v16153_v50, 2  ;;  %v8322_v26 = vpack.c.bf16 %v8236_v47, %v8233_v9 }
  0x4c   :  { %1000 = vrot.lane.b32.xlu1 %v8228_v14, %s7483_s14  ;;  %v8324_v4 = vpack.c.bf16 %v540_v22, %v538_v62  ;;  %v555_v5 = vsel %vm465_vm1, %v552_v31, %v554_v44  ;;  %v8331_v56 = vpack.c.bf16 %v8247_v35, %v8239_v61  ;;  %v548_v29 = vsel %vm465_vm1, %v546_v7, %v547_v30 }
  0x4d   :  { %v8333_v1 = vpack.c.bf16 %v555_v5, %v553_v49  ;;  %v550_v33 = vsel %vm465_vm1, %v547_v30, %v549_v43  ;;  %v16154_v9 = vrot.slane %v7704_v53, 2  ;;  %v16155_v47 = vrot.slane %v7693_v48, 2 }
  0x4e   :  { %998 = vrot.lane.b32.xlu0 %v8208_v36, %s7483_s14  ;;  %v16156_v44 = vrot.slane %v7713_v58, 2  ;;  %v16158_v61 = vrot.slane %v16127_v55, 2  ;;  %v16159_v35 = vrot.slane %v7718_v59, 2  ;;  %v838_v49 = vpack.c.bf16 %v550_v33, %v548_v29 }
  0x4f   :  { %v498_v62 = vsel %vm465_vm1, %v16155_v47, %v16154_v9  ;;  %v16157_v31 = vmov %v16154_v9  ;;  %v16160_v30 = vrot.slane %v16130_v57, 2  ;;  %v8361_v43 = vpack.c.bf16 %v7749_v17, %v7744_v16 }
  0x50   :  { %v500_v22 = vsel %vm465_vm1, %v16157_v31, %v16156_v44  ;;  %v513_v7 = vsel %vm465_vm1, %v16159_v35, %v16158_v61  ;;  %1004 = vrot.lane.b32.xlu1 %v8230_v19, %s7483_s14  ;;  %v16161_v50 = vmov %v16158_v61  ;;  %v8365_v5 = vpack.c.bf16 %v16129_v0, %v16128_v32 }
  0x51   :  { %v515_v58 = vsel %vm465_vm1, %v16161_v50, %v16160_v30  ;;  %v8369_v29 = vpack.c.bf16 %v16133_v37, %v16132_v3  ;;  %v8373_v33 = vpack.c.bf16 %v16136_v52, %v16135_v63  ;;  %v8377_v57 = vpack.c.bf16 %v16139_v2, %v16138_v45  ;;  %v16162_v63 = vld [vmem:[#allocation4_spill] sm:$0xff]  ;;  %v7427_v52 = vld [vmem:[%s15596_s1 + $0x8] sm:$0xff]  }
  0x52   :  { %v8381_v16 = vpack.c.bf16 %v16142_v51, %v16141_v42  ;;  %v8385_v17 = vpack.c.bf16 %v16145_v12, %v16144_v60  ;;  %1002 = vrot.lane.b32.xlu0 %v8322_v26, %s7483_s14  ;;  %v8389_v37 = vpack.c.bf16 %v500_v22, %v498_v62  ;;  %v8393_v3 = vpack.c.bf16 %v16149_v38, %v16148_v15  ;;  %v7426_v12 = vld [vmem:[%s15596_s1] sm:$0xff]   ;;  %v16164_v2 = vld [vmem:[#allocation7_spill] sm:$0xff] }
  0x53   :  { %v8399_v32 = vpack.c.bf16 %v515_v58, %v513_v7  ;;  %v8427_v0 = vpack.c.bf16 %v7619_v21, %v7614_v20  ;;  %7192 = vmatprep.subr.bf16.mxu0 %v7426_v12  ;;  %7402 = vmatprep.subr.bf16.mxu1 %v7426_v12  ;;  %v16163_v20 = vld [vmem:[#allocation5_spill] sm:$0xff]  ;;  %v7428_v21 = vld [vmem:[%s15596_s1 + $0x10] ss:$0 sps:$4 sm:$0x33]   ;;  %v8450_v51 = vpack.c.bf16 %v7598_v13, %v7582_v8  ;;  %s7487_s1 = smov 24   ;;  %v16165_v8 = vld [vmem:[#allocation6_spill] sm:$0xff] }
  0x54   :  { %1008 = vrot.lane.b32.xlu1 %v8331_v56, %s7483_s14  ;;  %7193 = vmatpush3.bf16.msra.mxu0 %v7426_v12  ;;  %v2123_v42 = vsel %vm2121_vm2, %v7428_v21, 0  ;;  %v8474_v38 = vpack.c.bf16 %v7663_v39, %v7653_v34  ;;  %v16166_v34 = vld [vmem:[#allocation11_spill] sm:$0xff]  ;;  %v8502_v31 = vpack.c.bf16 %v7639_v28, %v7634_v27  ;;  %v16169_v27 = vld [vmem:[#allocation10_spill] sm:$0xff]  ;;  %vm1581_vm4 = vcmask 64512  }
  0x55   :  { %7405 = vmatpush3.bf16.msra.mxu1 %v7426_v12  ;;  %7194 = vmatprep.subr.bf16.mxu0 %v7427_v52  ;;  %vm1646_vm5 = vcmask 97280   ;;  %vm1711_vm6 = vcmask 130048   ;;  %vm1776_vm7 = vcmask 162816   ;;  %vm1841_vm8 = vcmask 195584  }
  0x56   :  { %1006 = vrot.lane.b32.xlu0 %v8389_v37, %s7483_s14  ;;  %7403 = vmatprep.subr.bf16.mxu1 %v7427_v52  ;;  %vm1906_vm9 = vcmask 228352   ;;  %vm1971_vm10 = vcmask 261120   ;;  %vm2056_vm11 = vcmask 293888   ;;  %vm3024_vm12 = vcmask 1040384  }
  0x57   :  { %vm5141_vm13 = vcmask 1043456   ;;  %vm4783_vm14 = vcmask 326656   ;;  %vm4848_vm15 = vcmask 392192  }
  0x58   :  { %1012 = vrot.lane.b32.xlu1 %v8399_v32, %s7483_s14  ;;  %7195 = vmatpush3.bf16.msra.mxu0 %v7427_v52 }
  0x59   :  { %7406 = vmatpush3.bf16.msra.mxu1 %v7427_v52  ;;  %7408 = vmatprep.subr.msk.bf16.mxu0 %vm2121_vm2, %v7428_v21  ;;  %v8558_v52 = vpack.c.bf16 %v7683_v46, %v7673_v41  ;;  %v16183_v41 = vld [vmem:[#allocation13_spill] sm:$0xff] }
  0x5a   :  { %1010 = vrot.lane.b32.xlu0 %v8262_v18, %s7483_s14  ;;  %7409 = vmatprep.subr.msk.bf16.mxu1 %vm2121_vm2, %v7428_v21 }
  0x5c   :  { %1016 = vrot.lane.b32.xlu1 %v8273_v54, %s7483_s14  ;;  %7197 = vmatpush3.bf16.msra.mxu0 %v2123_v42 }
  0x5d   :  { %7407 = vmatpush3.bf16.msra.mxu1 %v2123_v42 }
  0x5e   :  { %1014 = vrot.lane.b32.xlu0 %v8284_v24, %s7483_s14 }
  0x60   :  { %1020 = vrot.lane.b32.xlu1 %v8291_v40, %s7483_s14 }
  0x62   :  { %1018 = vrot.lane.b32.xlu0 %v8296_v25, %s7483_s14 }
  0x64   :  { %1024 = vrot.lane.b32.xlu1 %v8309_v11, %s7483_s14 }
  0x66   :  { %1022 = vrot.lane.b32.xlu0 %v8324_v4, %s7483_s14 }
  0x68   :  { %1028 = vrot.lane.b32.xlu1 %v8333_v1, %s7483_s14 }
  0x6a   :  { %1026 = vrot.lane.b32.xlu0 %v838_v49, %s7483_s14  ;;  %v8530_v49 = vpack.c.bf16 %v7704_v53, %v7693_v48  ;;  %v16176_v48 = vld [vmem:[#allocation21_spill] sm:$0xff] }
  0x6c   :  { %1092 = vrot.lane.b32.xlu1 %v16162_v63, %s7484_s16 }
  0x6e   :  { %1090 = vrot.lane.b32.xlu0 %v8427_v0, %s7484_s16 }
  0x70   :  { %1158 = vrot.lane.b32.xlu1 %v16163_v20, %s7485_s19 }
  0x72   :  { %1156 = vrot.lane.b32.xlu0 %v16164_v2, %s7485_s19 }
  0x74   :  { %1224 = vrot.lane.b32.xlu1 %v8208_v36, %s7486_s22 }
  0x76   :  { %1222 = vrot.lane.b32.xlu0 %v8224_v10, %s7486_s22 }
  0x78   :  { %1290 = vrot.lane.b32.xlu1 %v8450_v51, %s7487_s1 }
  0x79   :  { %v8458_v60 = vpop.permute.xlu1 %902 }
  0x7a   :  { %1288 = vrot.lane.b32.xlu0 %v16162_v63, %s7487_s1 }
  0x7c   :  { %v8460_v15 = vpop.permute.xlu0 %898  ;;  %1356 = vrot.lane.b32.xlu1 %v16165_v8, %s7488_s23 }
  0x7d   :  { %v8466_v13 = vpop.permute.xlu1 %904 }
  0x7e   :  { %1354 = vrot.lane.b32.xlu0 %v16163_v20, %s7488_s23 }
  0x80   :  { %v8468_v10 = vpop.permute.xlu0 %900  ;;  %1422 = vrot.lane.b32.xlu1 %v8228_v14, %s7489_s24 }
  0x81   :  { %v8478_v9 = vpop.permute.xlu1 %908 }
  0x82   :  { %1420 = vrot.lane.b32.xlu0 %v8208_v36, %s7489_s24 }
  0x84   :  { %v8480_v47 = vpop.permute.xlu0 %906  ;;  %1096 = vrot.lane.b32.xlu1 %v8474_v38, %s7484_s16 }
  0x85   :  { %v8486_v62 = vpop.permute.xlu1 %912 }
  0x86   :  { %1094 = vrot.lane.b32.xlu0 %v8450_v51, %s7484_s16 }
  0x88   :  { %v8488_v44 = vpop.permute.xlu0 %910  ;;  %1162 = vrot.lane.b32.xlu1 %v16166_v34, %s7485_s19 }
  0x89   :  { %v8494_v39 = vpop.permute.xlu1 %916 }
  0x8a   :  { %1160 = vrot.lane.b32.xlu0 %v16165_v8, %s7485_s19 }
  0x8c   :  { %v8496_v36 = vpop.permute.xlu0 %914  ;;  %1228 = vrot.lane.b32.xlu1 %v8322_v26, %s7486_s22 }
  0x8d   :  { %v8506_v22 = vpop.permute.xlu1 %920 }
  0x8e   :  { %1226 = vrot.lane.b32.xlu0 %v8228_v14, %s7486_s22 }
  0x90   :  { %v8508_v61 = vpop.permute.xlu0 %918  ;;  %1294 = vrot.lane.b32.xlu1 %v8502_v31, %s7487_s1 }
  0x91   :  { %v8514_v35 = vpop.permute.xlu1 %924 }
  0x92   :  { %1292 = vrot.lane.b32.xlu0 %v8474_v38, %s7487_s1  ;;  %16167 = vst [vmem:[#allocation8_spill] sm:$0xff] %v8514_v35 }
  0x94   :  { %v8516_v7 = vpop.permute.xlu0 %922  ;;  %1360 = vrot.lane.b32.xlu1 %v16169_v27, %s7488_s23 }
  0x95   :  { %16168 = vst [vmem:[#allocation12_spill] sm:$0xff] %v8516_v7  ;;  %v8522_v28 = vpop.permute.xlu1 %928 }
  0x96   :  { %1358 = vrot.lane.b32.xlu0 %v16166_v34, %s7488_s23  ;;  %16170 = vst [vmem:[#allocation14_spill] sm:$0xff] %v8522_v28 }
  0x98   :  { %v8524_v14 = vpop.permute.xlu0 %926  ;;  %1426 = vrot.lane.b32.xlu1 %v8230_v19, %s7489_s24 }
  0x99   :  { %16171 = vst [vmem:[#allocation9_spill] sm:$0xff] %v8524_v14  ;;  %v16202_v14 = vld [vmem:[#allocation2_spill] sm:$0xff] }
  0x9a   :  { %1424 = vrot.lane.b32.xlu0 %v8322_v26, %s7489_s24  ;;  %v8534_v30 = vpop.permute.xlu1 %932 }
  0x9b   :  { %16172 = vst [vmem:[#allocation15_spill] sm:$0xff] %v8534_v30 }
  0x9c   :  { %v8536_v50 = vpop.permute.xlu0 %930  ;;  %1100 = vrot.lane.b32.xlu1 %v8530_v49, %s7484_s16 }
  0x9d   :  { %16173 = vst [vmem:[#allocation16_spill] sm:$0xff] %v8536_v50 }
  0x9e   :  { %1098 = vrot.lane.b32.xlu0 %v8502_v31, %s7484_s16  ;;  %v8542_v58 = vpop.permute.xlu1 %936 }
  0x9f   :  { %16174 = vst [vmem:[#allocation17_spill] sm:$0xff] %v8542_v58 }
  0xa0   :  { %v8544_v12 = vpop.permute.xlu0 %934  ;;  %1166 = vrot.lane.b32.xlu1 %v16176_v48, %s7485_s19 }
  0xa1   :  { %16175 = vst [vmem:[#allocation18_spill] sm:$0xff] %v8544_v12 }
  0xa2   :  { %1164 = vrot.lane.b32.xlu0 %v16169_v27, %s7485_s19  ;;  %v8550_v53 = vpop.permute.xlu1 %940 }
  0xa3   :  { %16177 = vst [vmem:[#allocation19_spill] sm:$0xff] %v8550_v53 }
  0xa4   :  { %v8552_v26 = vpop.permute.xlu0 %938  ;;  %1232 = vrot.lane.b32.xlu1 %v8389_v37, %s7486_s22 }
  0xa5   :  { %16178 = vst [vmem:[#allocation20_spill] sm:$0xff] %v8552_v26 }
  0xa6   :  { %1230 = vrot.lane.b32.xlu0 %v8230_v19, %s7486_s22  ;;  %v8562_v21 = vpop.permute.xlu1 %944 }
  0xa7   :  { %16179 = vst [vmem:[#allocation22_spill] sm:$0xff] %v8562_v21  ;;  %v16192_v21 = vld [vmem:[#allocation38_spill] sm:$0xff] }
  0xa8   :  { %v8564_v42 = vpop.permute.xlu0 %942  ;;  %1298 = vrot.lane.b32.xlu1 %v8558_v52, %s7487_s1 }
  0xa9   :  { %16180 = vst [vmem:[#allocation23_spill] sm:$0xff] %v8564_v42 }
  0xaa   :  { %1296 = vrot.lane.b32.xlu0 %v8530_v49, %s7487_s1  ;;  %v8570_v45 = vpop.permute.xlu1 %948 }
  0xab   :  { %16181 = vst [vmem:[#allocation24_spill] sm:$0xff] %v8570_v45 }
  0xac   :  { %v8572_v27 = vpop.permute.xlu0 %946  ;;  %1364 = vrot.lane.b32.xlu1 %v16183_v41, %s7488_s23 }
  0xad   :  { %16182 = vst [vmem:[#allocation26_spill] sm:$0xff] %v8572_v27 }
  0xae   :  { %1362 = vrot.lane.b32.xlu0 %v16176_v48, %s7488_s23  ;;  %v8578_v46 = vpop.permute.xlu1 %952 }
  0xaf   :  { %16184 = vst [vmem:[#allocation27_spill] sm:$0xff] %v8578_v46 }
  0xb0   :  { %v8580_v19 = vpop.permute.xlu0 %950  ;;  %1430 = vrot.lane.b32.xlu1 %v8331_v56, %s7489_s24 }
  0xb1   :  { %16185 = vst [vmem:[#allocation29_spill] sm:$0xff] %v8580_v19  ;;  %v16190_v19 = vld [vmem:[#allocation28_spill] sm:$0xff] }
  0xb2   :  { %1428 = vrot.lane.b32.xlu0 %v8389_v37, %s7489_s24  ;;  %v8586_v34 = vpop.permute.xlu1 %956 }
  0xb3   :  { %16186 = vst [vmem:[#allocation30_spill] sm:$0xff] %v8586_v34 }
  0xb4   :  { %v8588_v8 = vpop.permute.xlu0 %954  ;;  %1104 = vrot.lane.b32.xlu1 %v8361_v43, %s7484_s16 }
  0xb5   :  { %16187 = vst [vmem:[#allocation31_spill] sm:$0xff] %v8588_v8  ;;  %v8606_v8 = vpack.c.bf16 %v16127_v55, %v7718_v59  ;;  %v16191_v59 = vld [vmem:[#allocation25_spill] sm:$0xff] }
  0xb6   :  { %1102 = vrot.lane.b32.xlu0 %v8558_v52, %s7484_s16  ;;  %v8594_v48 = vpop.permute.xlu1 %960 }
  0xb7   :  { %16188 = vst [vmem:[#allocation32_spill] sm:$0xff] %v8594_v48 }
  0xb8   :  { %v8596_v20 = vpop.permute.xlu0 %958  ;;  %1170 = vrot.lane.b32.xlu1 %v16190_v19, %s7485_s19 }
  0xb9   :  { %16189 = vst [vmem:[#allocation33_spill] sm:$0xff] %v8596_v20 }
  0xba   :  { %1168 = vrot.lane.b32.xlu0 %v16183_v41, %s7485_s19  ;;  %v997_v37 = vpop.permute.xlu1 %996 }
  0xbc   :  { %v995_v34 = vpop.permute.xlu0 %994  ;;  %1236 = vrot.lane.b32.xlu1 %v8262_v18, %s7486_s22 }
  0xbe   :  { %1234 = vrot.lane.b32.xlu0 %v8331_v56, %s7486_s22  ;;  %v8610_v48 = vpop.permute.xlu1 %1000 }
  0xc0   :  { %v8612_v20 = vpop.permute.xlu0 %998  ;;  %1302 = vrot.lane.b32.xlu1 %v8606_v8, %s7487_s1 }
  0xc2   :  { %1300 = vrot.lane.b32.xlu0 %v8361_v43, %s7487_s1  ;;  %v8618_v41 = vpop.permute.xlu1 %1004 }
  0xc4   :  { %v8620_v46 = vpop.permute.xlu0 %1002  ;;  %1368 = vrot.lane.b32.xlu1 %v16191_v59, %s7488_s23 }
  0xc6   :  { %1366 = vrot.lane.b32.xlu0 %v16190_v19, %s7488_s23  ;;  %v8626_v55 = vpop.permute.xlu1 %1008 }
  0xc8   :  { %v8628_v56 = vpop.permute.xlu0 %1006  ;;  %1434 = vrot.lane.b32.xlu1 %v8399_v32, %s7489_s24 }
  0xca   :  { %1432 = vrot.lane.b32.xlu0 %v8262_v18, %s7489_s24  ;;  %v8634_v27 = vpop.permute.xlu1 %1012 }
  0xcc   :  { %v8636_v45 = vpop.permute.xlu0 %1010  ;;  %1108 = vrot.lane.b32.xlu1 %v8369_v29, %s7484_s16 }
  0xce   :  { %1106 = vrot.lane.b32.xlu0 %v8606_v8, %s7484_s16  ;;  %v8642_v19 = vpop.permute.xlu1 %1016 }
  0xd0   :  { %v8644_v42 = vpop.permute.xlu0 %1014  ;;  %1174 = vrot.lane.b32.xlu1 %v16192_v21, %s7485_s19 }
  0xd2   :  { %1172 = vrot.lane.b32.xlu0 %v16191_v59, %s7485_s19  ;;  %v8650_v18 = vpop.permute.xlu1 %1020 }
  0xd3   :  { %16193 = vst [vmem:[#allocation35_spill] sm:$0xff] %v8650_v18 }
  0xd4   :  { %v8652_v26 = vpop.permute.xlu0 %1018  ;;  %1240 = vrot.lane.b32.xlu1 %v8284_v24, %s7486_s22 }
  0xd5   :  { %16194 = vst [vmem:[#allocation36_spill] sm:$0xff] %v8652_v26 }
  0xd6   :  { %1238 = vrot.lane.b32.xlu0 %v8399_v32, %s7486_s22  ;;  %v8658_v53 = vpop.permute.xlu1 %1024 }
  0xd7   :  { %16195 = vst [vmem:[#allocation39_spill] sm:$0xff] %v8658_v53  ;;  %v16201_v53 = vld [vmem:[#allocation3_spill] sm:$0xff] }
  0xd8   :  { %v8660_v12 = vpop.permute.xlu0 %1022  ;;  %1306 = vrot.lane.b32.xlu1 %v8365_v5, %s7487_s1  ;;  %v16203_v28 = vpack.c.bf16 %v16201_v53, %v16202_v14 }
  0xd9   :  { %16196 = vst [vmem:[#allocation42_spill] sm:$0xff] %v8660_v12  ;;  %v1490_v12 = vsel %vm1484_vm3, %v8427_v0, %v8468_v10 }
  0xda   :  { %1304 = vrot.lane.b32.xlu0 %v8369_v29, %s7487_s1  ;;  %v8666_v59 = vpop.permute.xlu1 %1028  ;;  %v1487_v26 = vsel %vm1484_vm3, %v16203_v28, %v8460_v15 }
  0xdb   :  { %16197 = vst [vmem:[#allocation4_spill] sm:$0xff] %v8666_v59  ;;  %v1583_v7 = vsel %vm1581_vm4, %v1487_v26, %v995_v34 }
  0xdc   :  { %v8668_v58 = vpop.permute.xlu0 %1026  ;;  %1372 = vrot.lane.b32.xlu1 %v16199_v6, %s7488_s23 }
  0xdd   :  { %16198 = vst [vmem:[#allocation61_spill] sm:$0xff] %v8668_v58 }
  0xde   :  { %1370 = vrot.lane.b32.xlu0 %v16192_v21, %s7488_s23  ;;  %v1093_v32 = vpop.permute.xlu1 %1092  ;;  %v16200_v21 = vld [vmem:[#allocation43_spill] sm:$0xff] }
  0xe0   :  { %v1091_v23 = vpop.permute.xlu0 %1090  ;;  %1438 = vrot.lane.b32.xlu1 %v8273_v54, %s7489_s24 }
  0xe1   :  { %v1648_v0 = vsel %vm1646_vm5, %v1583_v7, %v1091_v23 }
  0xe2   :  { %1436 = vrot.lane.b32.xlu0 %v8284_v24, %s7489_s24  ;;  %v1159_v50 = vpop.permute.xlu1 %1158 }
  0xe4   :  { %v1157_v30 = vpop.permute.xlu0 %1156  ;;  %1112 = vrot.lane.b32.xlu1 %v8377_v57, %s7484_s16 }
  0xe5   :  { %v1713_v15 = vsel %vm1711_vm6, %v1648_v0, %v1157_v30 }
  0xe6   :  { %1110 = vrot.lane.b32.xlu0 %v8365_v5, %s7484_s16  ;;  %v1225_v58 = vpop.permute.xlu1 %1224 }
  0xe8   :  { %v1223_v59 = vpop.permute.xlu0 %1222  ;;  %1178 = vrot.lane.b32.xlu1 %v16200_v21, %s7485_s19 }
  0xea   :  { %1176 = vrot.lane.b32.xlu0 %v16199_v6, %s7485_s19  ;;  %v1291_v2 = vpop.permute.xlu1 %1290  ;;  %v1585_v6 = vsel %vm1581_vm4, %v1490_v12, %v997_v37 }
  0xeb   :  { %v1650_v35 = vsel %vm1646_vm5, %v1585_v6, %v1093_v32  ;;  %v16205_v32 = vld [vmem:[#allocation45_spill] sm:$0xff] }
  0xec   :  { %v1289_v24 = vpop.permute.xlu0 %1288  ;;  %1244 = vrot.lane.b32.xlu1 %v8296_v25, %s7486_s22  ;;  %v1715_v10 = vsel %vm1711_vm6, %v1650_v35, %v1159_v50 }
  0xed   :  { %v1780_v28 = vsel %vm1776_vm7, %v1715_v10, %v1225_v58  ;;  %v16204_v58 = vld [vmem:[#allocation41_spill] sm:$0xff]  ;;  %v1493_v10 = vsel %vm1484_vm3, %v16162_v63, %v8458_v60 }
  0xee   :  { %1242 = vrot.lane.b32.xlu0 %v8273_v54, %s7486_s22  ;;  %v1357_v18 = vpop.permute.xlu1 %1356  ;;  %v1778_v54 = vsel %vm1776_vm7, %v1713_v15, %v1223_v59  ;;  %v1845_v34 = vsel %vm1841_vm8, %v1780_v28, %v1291_v2  ;;  %v1587_v28 = vsel %vm1581_vm4, %v1493_v10, %v8612_v20 }
  0xef   :  { %v1843_v23 = vsel %vm1841_vm8, %v1778_v54, %v1289_v24  ;;  %v1910_v35 = vsel %vm1906_vm9, %v1845_v34, %v1357_v18 }
  0xf0   :  { %v1355_v14 = vpop.permute.xlu0 %1354  ;;  %1310 = vrot.lane.b32.xlu1 %v8373_v33, %s7487_s1 }
  0xf1   :  { %v1908_v7 = vsel %vm1906_vm9, %v1843_v23, %v1355_v14  ;;  %v85_v23 = vld [vmem:[%s15595_s0 + $0x188] sm:$0xff] }
  0xf2   :  { %1308 = vrot.lane.b32.xlu0 %v8377_v57, %s7487_s1  ;;  %v1423_v6 = vpop.permute.xlu1 %1422 }
  0xf3   :  { %v1975_v30 = vsel %vm1971_vm10, %v1910_v35, %v1423_v6  ;;  %v84_v6 = vld [vmem:[%s15595_s0 + $0x180] sm:$0xff]  ;;  %v86_v35 = vld [vmem:[%s15595_s0 + $0x190] sm:$0x3] }
  0xf4   :  { %v1421_v50 = vpop.permute.xlu0 %1420  ;;  %1376 = vrot.lane.b32.xlu1 %v16204_v58, %s7488_s23  ;;  %v854_v10 = vpack.c.bf16 %v85_v23, %v84_v6 }
  0xf5   :  { %v1973_v12 = vsel %vm1971_vm10, %v1908_v7, %v1421_v50 }
  0xf6   :  { %1374 = vrot.lane.b32.xlu0 %v16200_v21, %s7488_s23  ;;  %7198 = vmatprep.mubr.msk.bf16.mxu0 %vm2056_vm11, %v1973_v12  ;;  %v1097_v2 = vpop.permute.xlu1 %1096 }
  0xf7   :  { %7199 = vmatmul.mubr.msk.bf16.vlgmr.msra.gmra.mrb[0].mxu0 %vm2056_vm11, %v1975_v30 }
  0xf8   :  { %v1095_v53 = vpop.permute.xlu0 %1094  ;;  %1442 = vrot.lane.b32.xlu1 %v8291_v40, %s7489_s24 }
  0xf9   :  { %v1652_v34 = vsel %vm1646_vm5, %v1587_v28, %v1095_v53  ;;  %v16206_v53 = vld [vmem:[#allocation44_spill] sm:$0xff] }
  0xfa   :  { %1440 = vrot.lane.b32.xlu0 %v8296_v25, %s7489_s24  ;;  %v1163_v26 = vpop.permute.xlu1 %1162  ;;  %v1496_v25 = vsel %vm1484_vm3, %v8450_v51, %v8466_v13 }
  0xfb   :  { %v1589_v14 = vsel %vm1581_vm4, %v1496_v25, %v8610_v48  ;;  %v710_v25 = vrot.slane %v84_v6, 2 }
  0xfc   :  { %v1161_v37 = vpop.permute.xlu0 %1160  ;;  %1116 = vrot.lane.b32.xlu1 %v8385_v17, %s7484_s16  ;;  %v1654_v54 = vsel %vm1646_vm5, %v1589_v14, %v1097_v2  ;;  %v711_v14 = vrot.slane %v85_v23, 2 }
  0xfd   :  { %v1719_v51 = vsel %vm1711_vm6, %v1654_v54, %v1163_v26  ;;  %v1717_v63 = vsel %vm1711_vm6, %v1652_v34, %v1161_v37  ;;  %v696_v37 = vrot.slane %v84_v6, 1  ;;  %v713_v54 = vrot.slane %v86_v35, 2 }
  0xfe   :  { %1114 = vrot.lane.b32.xlu0 %v8373_v33, %s7484_s16  ;;  %v1229_v59 = vpop.permute.xlu1 %1228 }
  0xff   :  { %v1784_v60 = vsel %vm1776_vm7, %v1719_v51, %v1229_v59  ;;  %v697_v59 = vrot.slane %v85_v23, 1 }
 0x100   :  { %v1227_v18 = vpop.permute.xlu0 %1226  ;;  %1182 = vrot.lane.b32.xlu1 %v16205_v32, %s7485_s19 }
 0x102   :  { %1180 = vrot.lane.b32.xlu0 %v16204_v58, %s7485_s19  ;;  %v1295_v24 = vpop.permute.xlu1 %1294 }
 0x103   :  { %v1849_v48 = vsel %vm1841_vm8, %v1784_v60, %v1295_v24  ;;  %v714_v60 = vsel %vm465_vm1, %v711_v14, %v713_v54 }
 0x104   :  { %v1293_v0 = vpop.permute.xlu0 %1292  ;;  %1248 = vrot.lane.b32.xlu1 %v8324_v4, %s7486_s22 }
 0x106   :  { %1246 = vrot.lane.b32.xlu0 %v8291_v40, %s7486_s22  ;;  %v1361_v15 = vpop.permute.xlu1 %1360  ;;  %v1782_v40 = vsel %vm1776_vm7, %v1717_v63, %v1227_v18  ;;  %v699_v18 = vrot.slane %v86_v35, 1  ;;  %v712_v63 = vsel %vm465_vm1, %v710_v25, %v711_v14 }
 0x107   :  { %v1847_v7 = vsel %vm1841_vm8, %v1782_v40, %v1293_v0  ;;  %v1914_v30 = vsel %vm1906_vm9, %v1849_v48, %v1361_v15  ;;  %v698_v15 = vsel %vm240_vm0, %v696_v37, %v697_v59  ;;  %v87_v48 = vld [vmem:[%s15595_s0 + $0x198] sm:$0xff]  ;;  %v858_v23 = vpack.c.bf16 %v714_v60, %v712_v63 }
 0x108   :  { %v1359_v13 = vpop.permute.xlu0 %1358  ;;  %1314 = vrot.lane.b32.xlu1 %v8381_v16, %s7487_s1  ;;  %v700_v28 = vsel %vm240_vm0, %v697_v59, %v699_v18  ;;  %v730_v35 = vrot.slane %v87_v48, 1 }
 0x109   :  { %v1912_v50 = vsel %vm1906_vm9, %v1847_v7, %v1359_v13  ;;  %v8786_v13 = vpack.c.bf16 %v700_v28, %v698_v15  ;;  %v1499_v15 = vsel %vm1484_vm3, %v8474_v38, %v8480_v47 }
 0x10a   :  { %1312 = vrot.lane.b32.xlu0 %v8385_v17, %s7487_s1  ;;  %v1427_v20 = vpop.permute.xlu1 %1426 }
 0x10b   :  { %v1979_v12 = vsel %vm1971_vm10, %v1914_v30, %v1427_v20  ;;  %16207 = vst [vmem:[#allocation3_spill] sm:$0xff] %v8786_v13  ;;  %v89_v20 = vld [vmem:[%s15595_s0 + $0x1a8] sm:$0x3] }
 0x10c   :  { %v1425_v2 = vpop.permute.xlu0 %1424  ;;  %1380 = vrot.lane.b32.xlu1 %v16206_v53, %s7488_s23  ;;  %v733_v30 = vrot.slane %v89_v20, 1  ;;  %v747_v14 = vrot.slane %v89_v20, 2 }
 0x10d   :  { %v1977_v26 = vsel %vm1971_vm10, %v1912_v50, %v1425_v2 }
 0x10e   :  { %1378 = vrot.lane.b32.xlu0 %v16205_v32, %s7488_s23  ;;  %7202 = vmatprep.mubr.msk.bf16.mxu0 %vm2056_vm11, %v1977_v26  ;;  %v1101_v24 = vpop.permute.xlu1 %1100  ;;  %v744_v26 = vrot.slane %v87_v48, 2 }
 0x10f   :  { %7203 = vmatmul.mubr.msk.bf16.gmra.mrb[4].mxu0 %vm2056_vm11, %v1979_v12  ;;  %v1502_v12 = vsel %vm1484_vm3, %v8502_v31, %v8478_v9  ;;  %v1591_v31 = vsel %vm1581_vm4, %v1499_v15, %v8620_v46 }
 0x110   :  { %v1099_v0 = vpop.permute.xlu0 %1098  ;;  %1446 = vrot.lane.b32.xlu1 %v8309_v11, %s7489_s24  ;;  %v1593_v28 = vsel %vm1581_vm4, %v1502_v12, %v8618_v41 }
 0x111   :  { %v1658_v54 = vsel %vm1646_vm5, %v1593_v28, %v1101_v24  ;;  %v1656_v63 = vsel %vm1646_vm5, %v1591_v31, %v1099_v0 }
 0x112   :  { %1444 = vrot.lane.b32.xlu0 %v8324_v4, %s7489_s24  ;;  %v1167_v34 = vpop.permute.xlu1 %1166  ;;  %v88_v4 = vld [vmem:[%s15595_s0 + $0x1a0] sm:$0xff] }
 0x113   :  { %v731_v7 = vrot.slane %v88_v4, 1  ;;  %v860_v37 = vpack.c.bf16 %v88_v4, %v87_v48  ;;  %v745_v59 = vrot.slane %v88_v4, 2  ;;  %v1723_v60 = vsel %vm1711_vm6, %v1658_v54, %v1167_v34  ;;  %v16208_v54 = vld [vmem:[#allocation48_spill] sm:$0xff] }
 0x114   :  { %v1165_v51 = vpop.permute.xlu0 %1164  ;;  %1120 = vrot.lane.b32.xlu1 %v854_v10, %s7484_s16 }
 0x115   :  { %v732_v18 = vsel %vm240_vm0, %v730_v35, %v731_v7  ;;  %v734_v25 = vsel %vm240_vm0, %v731_v7, %v733_v30  ;;  %v1721_v47 = vsel %vm1711_vm6, %v1656_v63, %v1165_v51  ;;  %v748_v4 = vsel %vm465_vm1, %v745_v59, %v747_v14 }
 0x116   :  { %1118 = vrot.lane.b32.xlu0 %v8381_v16, %s7484_s16  ;;  %v1233_v40 = vpop.permute.xlu1 %1232  ;;  %v862_v38 = vpack.c.bf16 %v734_v25, %v732_v18 }
 0x117   :  { %v1788_v41 = vsel %vm1776_vm7, %v1723_v60, %v1233_v40 }
 0x118   :  { %v1231_v6 = vpop.permute.xlu0 %1230  ;;  %1186 = vrot.lane.b32.xlu1 %v8786_v13, %s7485_s19 }
 0x119   :  { %v1786_v46 = vsel %vm1776_vm7, %v1721_v47, %v1231_v6  ;;  %v7443_v47 = vld [vmem:[%s15595_s0 + $0x1f8] sm:$0xff] }
 0x11a   :  { %1184 = vrot.lane.b32.xlu0 %v16206_v53, %s7485_s19  ;;  %v1299_v50 = vpop.permute.xlu1 %1298 }
 0x11b   :  { %v1853_v24 = vsel %vm1841_vm8, %v1788_v41, %v1299_v50  ;;  %v7440_v50 = vld [vmem:[%s15595_s0 + $0x1e0] sm:$0xff]  ;;  %v561_v41 = vrot.slane %v7443_v47, 2 }
 0x11c   :  { %v1297_v2 = vpop.permute.xlu0 %1296  ;;  %1252 = vrot.lane.b32.xlu1 %v858_v23, %s7486_s22  ;;  %v556_v12 = vrot.slane %v7440_v50, 2 }
 0x11d   :  { %v1851_v34 = vsel %vm1841_vm8, %v1786_v46, %v1297_v2  ;;  %v7441_v2 = vld [vmem:[%s15595_s0 + $0x1e8] sm:$0xff] }
 0x11e   :  { %1250 = vrot.lane.b32.xlu0 %v8309_v11, %s7486_s22  ;;  %v1365_v9 = vpop.permute.xlu1 %1364  ;;  %v746_v11 = vsel %vm465_vm1, %v744_v26, %v745_v59  ;;  %v557_v26 = vrot.slane %v7441_v2, 2  ;;  %v8851_v18 = vpack.c.bf16 %v7441_v2, %v7440_v50  ;;  %v7445_v46 = vld [vmem:[%s15595_s0 + $0x208] sm:$0x3] }
 0x11f   :  { %v1918_v20 = vsel %vm1906_vm9, %v1853_v24, %v1365_v9  ;;  %v864_v7 = vpack.c.bf16 %v748_v4, %v746_v11  ;;  %v7444_v11 = vld [vmem:[%s15595_s0 + $0x200] sm:$0xff]  ;;  %v564_v24 = vrot.slane %v7445_v46, 2 }
 0x120   :  { %v1363_v48 = vpop.permute.xlu0 %1362  ;;  %1318 = vrot.lane.b32.xlu1 %v860_v37, %s7487_s1  ;;  %v7442_v37 = vld [vmem:[%s15595_s0 + $0x1f0] sm:$0x3]  ;;  %v558_v15 = vsel %vm465_vm1, %v556_v12, %v557_v26  ;;  %v562_v4 = vrot.slane %v7444_v11, 2 }
 0x121   :  { %v1916_v35 = vsel %vm1906_vm9, %v1851_v34, %v1363_v48  ;;  %v559_v59 = vrot.slane %v7442_v37, 2  ;;  %v16210_v37 = vld [vmem:[#allocation47_spill] sm:$0xff] }
 0x122   :  { %1316 = vrot.lane.b32.xlu0 %v854_v10, %s7487_s1  ;;  %v1431_v0 = vpop.permute.xlu1 %1430 }
 0x123   :  { %v1983_v51 = vsel %vm1971_vm10, %v1918_v20, %v1431_v0  ;;  %v560_v28 = vsel %vm465_vm1, %v557_v26, %v559_v59  ;;  %v1505_v0 = vsel %vm1484_vm3, %v8530_v49, %v8488_v44 }
 0x124   :  { %v1429_v40 = vpop.permute.xlu0 %1428  ;;  %1384 = vrot.lane.b32.xlu1 %v862_v38, %s7488_s23  ;;  %v840_v63 = vpack.c.bf16 %v560_v28, %v558_v15  ;;  %v1508_v38 = vsel %vm1484_vm3, %v8558_v52, %v8486_v62  ;;  %v8880_v62 = vpack.c.bf16 %v7444_v11, %v7443_v47  ;;  %v1595_v20 = vsel %vm1581_vm4, %v1505_v0, %v8628_v56  ;;  %v7448_v47 = vld [vmem:[%s15595_s0 + $0x220] sm:$0x3] }
 0x125   :  { %v1981_v30 = vsel %vm1971_vm10, %v1916_v35, %v1429_v40  ;;  %v1597_v52 = vsel %vm1581_vm4, %v1508_v38, %v8626_v55  ;;  %v565_v55 = vsel %vm465_vm1, %v562_v4, %v564_v24 }
 0x126   :  { %1382 = vrot.lane.b32.xlu0 %v8786_v13, %s7488_s23  ;;  %7206 = vmatprep.mubr.msk.bf16.mxu0 %vm2056_vm11, %v1981_v30  ;;  %v1105_v10 = vpop.permute.xlu1 %1104 }
 0x127   :  { %7207 = vmatmul.mubr.msk.bf16.gmra.mrb[8].mxu0 %vm2056_vm11, %v1983_v51  ;;  %v1662_v35 = vsel %vm1646_vm5, %v1597_v52, %v1105_v10 }
 0x128   :  { %v1103_v6 = vpop.permute.xlu0 %1102  ;;  %1450 = vrot.lane.b32.xlu1 %v864_v7, %s7489_s24 }
 0x129   :  { %v1660_v51 = vsel %vm1646_vm5, %v1595_v20, %v1103_v6  ;;  %v16211_v20 = vld [vmem:[#allocation50_spill] sm:$0xff] }
 0x12a   :  { %1448 = vrot.lane.b32.xlu0 %v858_v23, %s7489_s24  ;;  %v1171_v25 = vpop.permute.xlu1 %1170  ;;  %v16209_v23 = vld [vmem:[#allocation46_spill] sm:$0xff] }
 0x12b   :  { %v1727_v40 = vsel %vm1711_vm6, %v1662_v35, %v1171_v25 }
 0x12c   :  { %v1169_v14 = vpop.permute.xlu0 %1168  ;;  %1124 = vrot.lane.b32.xlu1 %v8851_v18, %s7484_s16 }
 0x12d   :  { %v1725_v44 = vsel %vm1711_vm6, %v1660_v51, %v1169_v14  ;;  %v1511_v51 = vsel %vm1484_vm3, %v8361_v43, %v8496_v36  ;;  %v7449_v43 = vld [vmem:[%s15595_s0 + $0x228] sm:$0xff] }
 0x12e   :  { %1122 = vrot.lane.b32.xlu0 %v8393_v3, %s7484_s16  ;;  %v1237_v9 = vpop.permute.xlu1 %1236  ;;  %v571_v36 = vrot.slane %v7449_v43, 2 }
 0x12f   :  { %v1792_v49 = vsel %vm1776_vm7, %v1727_v40, %v1237_v9 }
 0x130   :  { %v1235_v31 = vpop.permute.xlu0 %1234  ;;  %1190 = vrot.lane.b32.xlu1 %v16208_v54, %s7485_s19 }
 0x131   :  { %v1790_v56 = vsel %vm1776_vm7, %v1725_v44, %v1235_v31  ;;  %v7446_v31 = vld [vmem:[%s15595_s0 + $0x210] sm:$0xff]  ;;  %v1599_v44 = vsel %vm1581_vm4, %v1511_v51, %v8636_v45 }
 0x132   :  { %1188 = vrot.lane.b32.xlu0 %v16209_v23, %s7485_s19  ;;  %v1303_v60 = vpop.permute.xlu1 %1302  ;;  %v7450_v45 = vld [vmem:[%s15595_s0 + $0x230] sm:$0xff] }
 0x133   :  { %v1857_v30 = vsel %vm1841_vm8, %v1792_v49, %v1303_v60  ;;  %v566_v60 = vrot.slane %v7446_v31, 2  ;;  %v7454_v51 = vld [vmem:[%s15595_s0 + $0x250] sm:$0x3] }
 0x134   :  { %v1301_v48 = vpop.permute.xlu0 %1300  ;;  %1256 = vrot.lane.b32.xlu1 %v840_v63, %s7486_s22 }
 0x135   :  { %v1855_v6 = vsel %vm1841_vm8, %v1790_v56, %v1301_v48  ;;  %v7447_v48 = vld [vmem:[%s15595_s0 + $0x218] sm:$0xff]  ;;  %v572_v56 = vrot.slane %v7450_v45, 2 }
 0x136   :  { %1254 = vrot.lane.b32.xlu0 %v8333_v1, %s7486_s22  ;;  %v1369_v34 = vpop.permute.xlu1 %1368  ;;  %v563_v1 = vsel %vm465_vm1, %v561_v41, %v562_v4  ;;  %v567_v38 = vrot.slane %v7447_v48, 2  ;;  %v569_v41 = vrot.slane %v7448_v47, 2  ;;  %v8924_v11 = vpack.c.bf16 %v7447_v48, %v7446_v31 }
 0x137   :  { %v1922_v50 = vsel %vm1906_vm9, %v1857_v30, %v1369_v34  ;;  %v841_v59 = vpack.c.bf16 %v565_v55, %v563_v1  ;;  %v7451_v30 = vld [vmem:[%s15595_s0 + $0x238] sm:$0x3]  ;;  %v573_v31 = vsel %vm465_vm1, %v571_v36, %v572_v56 }
 0x138   :  { %v1367_v7 = vpop.permute.xlu0 %1366  ;;  %1322 = vrot.lane.b32.xlu1 %v8880_v62, %s7487_s1  ;;  %v568_v24 = vsel %vm465_vm1, %v566_v60, %v567_v38  ;;  %v570_v0 = vsel %vm465_vm1, %v567_v38, %v569_v41  ;;  %v16212_v38 = vld [vmem:[#allocation49_spill] sm:$0xff] }
 0x139   :  { %v1920_v12 = vsel %vm1906_vm9, %v1855_v6, %v1367_v7  ;;  %v842_v35 = vpack.c.bf16 %v570_v0, %v568_v24  ;;  %v8962_v6 = vpack.c.bf16 %v7450_v45, %v7449_v43  ;;  %v7452_v0 = vld [vmem:[%s15595_s0 + $0x240] sm:$0xff]  ;;  %v1517_v43 = vsel %vm1484_vm3, %v8369_v29, %v8508_v61 }
 0x13a   :  { %1320 = vrot.lane.b32.xlu0 %v8851_v18, %s7487_s1  ;;  %v1435_v10 = vpop.permute.xlu1 %1434 }
 0x13b   :  { %v1987_v2 = vsel %vm1971_vm10, %v1922_v50, %v1435_v10  ;;  %v574_v10 = vrot.slane %v7451_v30, 2 }
 0x13c   :  { %v1433_v26 = vpop.permute.xlu0 %1432  ;;  %1388 = vrot.lane.b32.xlu1 %v16210_v37, %s7488_s23 }
 0x13d   :  { %v1985_v25 = vsel %vm1971_vm10, %v1920_v12, %v1433_v26  ;;  %v575_v60 = vsel %vm465_vm1, %v572_v56, %v574_v10  ;;  %v16213_v56 = vld [vmem:[#allocation52_spill] sm:$0xff] }
 0x13e   :  { %1386 = vrot.lane.b32.xlu0 %v16208_v54, %s7488_s23  ;;  %7210 = vmatprep.mubr.msk.bf16.mxu0 %vm2056_vm11, %v1985_v25  ;;  %v1109_v14 = vpop.permute.xlu1 %1108  ;;  %v843_v47 = vpack.c.bf16 %v575_v60, %v573_v31  ;;  %v7457_v60 = vld [vmem:[%s15595_s0 + $0x268] sm:$0x3] }
 0x13f   :  { %7211 = vmatmul.mubr.msk.bf16.gmra.mrb[12].mxu0 %vm2056_vm11, %v1987_v2 }
 0x140   :  { %v1107_v15 = vpop.permute.xlu0 %1106  ;;  %1454 = vrot.lane.b32.xlu1 %v841_v59, %s7489_s24 }
 0x141   :  { %v1664_v1 = vsel %vm1646_vm5, %v1599_v44, %v1107_v15 }
 0x142   :  { %1452 = vrot.lane.b32.xlu0 %v840_v63, %s7489_s24  ;;  %v1175_v28 = vpop.permute.xlu1 %1174 }
 0x144   :  { %v1173_v9 = vpop.permute.xlu0 %1172  ;;  %1032 = vrot.lane.b32.xlu1 %v841_v59, %s7483_s14 }
 0x146   :  { %1030 = vrot.lane.b32.xlu0 %v840_v63, %s7483_s14  ;;  %v1241_v4 = vpop.permute.xlu1 %1240  ;;  %v1514_v63 = vsel %vm1484_vm3, %v8606_v8, %v8494_v39 }
 0x147   :  { %v1601_v40 = vsel %vm1581_vm4, %v1514_v63, %v8634_v27  ;;  %v1729_v27 = vsel %vm1711_vm6, %v1664_v1, %v1173_v9  ;;  %v1520_v1 = vsel %vm1484_vm3, %v8365_v5, %v8506_v22 }
 0x148   :  { %v1239_v46 = vpop.permute.xlu0 %1238  ;;  %1128 = vrot.lane.b32.xlu1 %v8924_v11, %s7484_s16  ;;  %v1666_v49 = vsel %vm1646_vm5, %v1601_v40, %v1109_v14  ;;  %v579_v40 = vrot.slane %v7454_v51, 2 }
 0x149   :  { %v1731_v8 = vsel %vm1711_vm6, %v1666_v49, %v1175_v28  ;;  %v1794_v50 = vsel %vm1776_vm7, %v1729_v27, %v1239_v46  ;;  %v1603_v27 = vsel %vm1581_vm4, %v1517_v43, %v8644_v42  ;;  %v7459_v43 = vld [vmem:[%s15595_s0 + $0x278] sm:$0xff] }
 0x14a   :  { %1126 = vrot.lane.b32.xlu0 %v8880_v62, %s7484_s16  ;;  %v1307_v52 = vpop.permute.xlu1 %1306  ;;  %v1796_v55 = vsel %vm1776_vm7, %v1731_v8, %v1241_v4 }
 0x14b   :  { %v1861_v12 = vsel %vm1841_vm8, %v1796_v55, %v1307_v52  ;;  %v576_v52 = vrot.slane %v7452_v0, 2 }
 0x14c   :  { %v1305_v34 = vpop.permute.xlu0 %1304  ;;  %1194 = vrot.lane.b32.xlu1 %v16211_v20, %s7485_s19 }
 0x14d   :  { %v1859_v26 = vsel %vm1841_vm8, %v1794_v50, %v1305_v34  ;;  %v7453_v34 = vld [vmem:[%s15595_s0 + $0x248] sm:$0xff] }
 0x14e   :  { %1192 = vrot.lane.b32.xlu0 %v16210_v37, %s7485_s19  ;;  %v1373_v7 = vpop.permute.xlu1 %1372  ;;  %v577_v63 = vrot.slane %v7453_v34, 2 }
 0x14f   :  { %v1926_v25 = vsel %vm1906_vm9, %v1861_v12, %v1373_v7  ;;  %v8996_v7 = vpack.c.bf16 %v7453_v34, %v7452_v0 }
 0x150   :  { %v1371_v39 = vpop.permute.xlu0 %1370  ;;  %1260 = vrot.lane.b32.xlu1 %v842_v35, %s7486_s22  ;;  %v578_v8 = vsel %vm465_vm1, %v576_v52, %v577_v63 }
 0x151   :  { %v1924_v14 = vsel %vm1906_vm9, %v1859_v26, %v1371_v39  ;;  %v580_v39 = vsel %vm465_vm1, %v577_v63, %v579_v40 }
 0x152   :  { %1258 = vrot.lane.b32.xlu0 %v841_v59, %s7486_s22  ;;  %v1439_v2 = vpop.permute.xlu1 %1438  ;;  %v844_v29 = vpack.c.bf16 %v580_v39, %v578_v8  ;;  %v7458_v8 = vld [vmem:[%s15595_s0 + $0x270] sm:$0xff] }
 0x153   :  { %v1991_v15 = vsel %vm1971_vm10, %v1926_v25, %v1439_v2  ;;  %v586_v39 = vrot.slane %v7458_v8, 2 }
 0x154   :  { %v1437_v28 = vpop.permute.xlu0 %1436  ;;  %1326 = vrot.lane.b32.xlu1 %v8962_v6, %s7487_s1 }
 0x155   :  { %v1989_v9 = vsel %vm1971_vm10, %v1924_v14, %v1437_v28 }
 0x156   :  { %1324 = vrot.lane.b32.xlu0 %v8924_v11, %s7487_s1  ;;  %7214 = vmatprep.mubr.msk.bf16.mxu0 %vm2056_vm11, %v1989_v9  ;;  %v1113_v59 = vpop.permute.xlu1 %1112  ;;  %v7456_v9 = vld [vmem:[%s15595_s0 + $0x260] sm:$0xff] }
 0x157   :  { %7215 = vmatmul.mubr.msk.bf16.gmra.mrb[16].mxu0 %vm2056_vm11, %v1991_v15  ;;  %v7455_v15 = vld [vmem:[%s15595_s0 + $0x258] sm:$0xff]  ;;  %v582_v31 = vrot.slane %v7456_v9, 2 }
 0x158   :  { %v1111_v48 = vpop.permute.xlu0 %1110  ;;  %1392 = vrot.lane.b32.xlu1 %v16212_v38, %s7488_s23  ;;  %v581_v28 = vrot.slane %v7455_v15, 2 }
 0x159   :  { %v1668_v22 = vsel %vm1646_vm5, %v1603_v27, %v1111_v48  ;;  %v9041_v48 = vpack.c.bf16 %v7456_v9, %v7455_v15 }
 0x15a   :  { %1390 = vrot.lane.b32.xlu0 %v16211_v20, %s7488_s23  ;;  %v1179_v41 = vpop.permute.xlu1 %1178 }
 0x15c   :  { %v1177_v4 = vpop.permute.xlu0 %1176  ;;  %1458 = vrot.lane.b32.xlu1 %v843_v47, %s7489_s24 }
 0x15d   :  { %v1733_v61 = vsel %vm1711_vm6, %v1668_v22, %v1177_v4 }
 0x15e   :  { %1456 = vrot.lane.b32.xlu0 %v842_v35, %s7489_s24  ;;  %v1245_v46 = vpop.permute.xlu1 %1244 }
 0x160   :  { %v1243_v24 = vpop.permute.xlu0 %1242  ;;  %1036 = vrot.lane.b32.xlu1 %v843_v47, %s7483_s14 }
 0x161   :  { %v1798_v30 = vsel %vm1776_vm7, %v1733_v61, %v1243_v24 }
 0x162   :  { %1034 = vrot.lane.b32.xlu0 %v842_v35, %s7483_s14  ;;  %v1311_v44 = vpop.permute.xlu1 %1310  ;;  %v1605_v35 = vsel %vm1581_vm4, %v1520_v1, %v8642_v19 }
 0x163   :  { %v1670_v5 = vsel %vm1646_vm5, %v1605_v35, %v1113_v59  ;;  %v584_v59 = vrot.slane %v7457_v60, 2  ;;  %v587_v35 = vrot.slane %v7459_v43, 2 }
 0x164   :  { %v1309_v49 = vpop.permute.xlu0 %1308  ;;  %1132 = vrot.lane.b32.xlu1 %v8996_v7, %s7484_s16  ;;  %v1735_v55 = vsel %vm1711_vm6, %v1670_v5, %v1179_v41  ;;  %v16216_v5 = vld [vmem:[#allocation12_spill] sm:$0xff] }
 0x165   :  { %v1800_v19 = vsel %vm1776_vm7, %v1735_v55, %v1245_v46  ;;  %v1863_v50 = vsel %vm1841_vm8, %v1798_v30, %v1309_v49  ;;  %v583_v46 = vsel %vm465_vm1, %v581_v28, %v582_v31  ;;  %v585_v24 = vsel %vm465_vm1, %v582_v31, %v584_v59  ;;  %v16215_v49 = vld [vmem:[#allocation8_spill] sm:$0xff]  ;;  %v16217_v55 = vld [vmem:[#allocation35_spill] sm:$0xff] }
 0x166   :  { %1130 = vrot.lane.b32.xlu0 %v8962_v6, %s7484_s16  ;;  %v1377_v36 = vpop.permute.xlu1 %1376  ;;  %v1865_v10 = vsel %vm1841_vm8, %v1800_v19, %v1311_v44  ;;  %v845_v34 = vpack.c.bf16 %v585_v24, %v583_v46  ;;  %v1526_v1 = vsel %vm1484_vm3, %v8373_v33, %v16215_v49  ;;  %v1523_v22 = vsel %vm1484_vm3, %v8377_v57, %v16216_v5  ;;  %v16218_v19 = vld [vmem:[#allocation36_spill] sm:$0xff]  ;;  %v16220_v5 = vld [vmem:[#allocation53_spill] sm:$0xff] }
 0x167   :  { %v1930_v12 = vsel %vm1906_vm9, %v1865_v10, %v1377_v36  ;;  %v7460_v36 = vld [vmem:[%s15595_s0 + $0x280] sm:$0x3]  ;;  %v9074_v33 = vpack.c.bf16 %v7459_v43, %v7458_v8  ;;  %v1607_v30 = vsel %vm1581_vm4, %v1523_v22, %v16218_v19  ;;  %v16222_v19 = vld [vmem:[#allocation9_spill] sm:$0xff] }
 0x168   :  { %v1375_v45 = vpop.permute.xlu0 %1374  ;;  %1198 = vrot.lane.b32.xlu1 %v16213_v56, %s7485_s19  ;;  %v589_v27 = vrot.slane %v7460_v36, 2 }
 0x169   :  { %v1928_v2 = vsel %vm1906_vm9, %v1863_v50, %v1375_v45  ;;  %v1609_v45 = vsel %vm1581_vm4, %v1526_v1, %v16217_v55 }
 0x16a   :  { %1196 = vrot.lane.b32.xlu0 %v16212_v38, %s7485_s19  ;;  %v1443_v42 = vpop.permute.xlu1 %1442 }
 0x16b   :  { %v1995_v26 = vsel %vm1971_vm10, %v1930_v12, %v1443_v42 }
 0x16c   :  { %v1441_v25 = vpop.permute.xlu0 %1440  ;;  %1264 = vrot.lane.b32.xlu1 %v844_v29, %s7486_s22 }
 0x16d   :  { %v1993_v14 = vsel %vm1971_vm10, %v1928_v2, %v1441_v25 }
 0x16e   :  { %1262 = vrot.lane.b32.xlu0 %v843_v47, %s7486_s22  ;;  %7218 = vmatprep.mubr.msk.bf16.mxu0 %vm2056_vm11, %v1993_v14  ;;  %v1117_v41 = vpop.permute.xlu1 %1116  ;;  %v16214_v47 = vld [vmem:[#allocation51_spill] sm:$0xff] }
 0x16f   :  { %7219 = vmatmul.mubr.msk.bf16.gmra.mrb[20].mxu0 %vm2056_vm11, %v1995_v26  ;;  %v1674_v10 = vsel %vm1646_vm5, %v1609_v45, %v1117_v41  ;;  %v590_v26 = vsel %vm465_vm1, %v587_v35, %v589_v27  ;;  %v16219_v41 = vld [vmem:[#allocation54_spill] sm:$0xff] }
 0x170   :  { %v1115_v4 = vpop.permute.xlu0 %1114  ;;  %1330 = vrot.lane.b32.xlu1 %v9041_v48, %s7487_s1  ;;  %v16221_v45 = vld [vmem:[#allocation14_spill] sm:$0xff] }
 0x171   :  { %v1672_v42 = vsel %vm1646_vm5, %v1607_v30, %v1115_v4  ;;  %v1529_v30 = vsel %vm1484_vm3, %v8385_v17, %v16222_v19  ;;  %v7464_v17 = vld [vmem:[%s15595_s0 + $0x2a0] sm:$0xff] }
 0x172   :  { %1328 = vrot.lane.b32.xlu0 %v8996_v7, %s7487_s1  ;;  %v1183_v0 = vpop.permute.xlu1 %1182  ;;  %v7468_v19 = vld [vmem:[%s15595_s0 + $0x2c0] sm:$0xff] }
 0x173   :  { %v1739_v50 = vsel %vm1711_vm6, %v1674_v10, %v1183_v0  ;;  %v16223_v10 = vld [vmem:[#allocation39_spill] sm:$0xff] }
 0x174   :  { %v1181_v52 = vpop.permute.xlu0 %1180  ;;  %1396 = vrot.lane.b32.xlu1 %v16214_v47, %s7488_s23 }
 0x175   :  { %v1737_v57 = vsel %vm1711_vm6, %v1672_v42, %v1181_v52  ;;  %v7461_v52 = vld [vmem:[%s15595_s0 + $0x288] sm:$0xff] }
 0x176   :  { %1394 = vrot.lane.b32.xlu0 %v16213_v56, %s7488_s23  ;;  %v1249_v63 = vpop.permute.xlu1 %1248 }
 0x177   :  { %v1804_v2 = vsel %vm1776_vm7, %v1739_v50, %v1249_v63  ;;  %v591_v63 = vrot.slane %v7461_v52, 2 }
 0x178   :  { %v1247_v51 = vpop.permute.xlu0 %1246  ;;  %1462 = vrot.lane.b32.xlu1 %v845_v34, %s7489_s24 }
 0x179   :  { %v1802_v25 = vsel %vm1776_vm7, %v1737_v57, %v1247_v51  ;;  %v7462_v51 = vld [vmem:[%s15595_s0 + $0x290] sm:$0xff] }
 0x17a   :  { %1460 = vrot.lane.b32.xlu0 %v844_v29, %s7489_s24  ;;  %v1315_v40 = vpop.permute.xlu1 %1314  ;;  %v9115_v1 = vpack.c.bf16 %v7462_v51, %v7461_v52 }
 0x17b   :  { %v1869_v14 = vsel %vm1841_vm8, %v1804_v2, %v1315_v40  ;;  %v592_v40 = vrot.slane %v7462_v51, 2 }
 0x17c   :  { %v1313_v44 = vpop.permute.xlu0 %1312  ;;  %1040 = vrot.lane.b32.xlu1 %v845_v34, %s7483_s14 }
 0x17d   :  { %v1867_v28 = vsel %vm1841_vm8, %v1802_v25, %v1313_v44  ;;  %v7463_v44 = vld [vmem:[%s15595_s0 + $0x298] sm:$0x3]  ;;  %v593_v43 = vsel %vm465_vm1, %v591_v63, %v592_v40  ;;  %v596_v25 = vrot.slane %v7464_v17, 2 }
 0x17e   :  { %1038 = vrot.lane.b32.xlu0 %v844_v29, %s7483_s14  ;;  %v1381_v61 = vpop.permute.xlu1 %1380  ;;  %v588_v29 = vsel %vm465_vm1, %v586_v39, %v587_v35  ;;  %v594_v49 = vrot.slane %v7463_v44, 2 }
 0x17f   :  { %v1934_v9 = vsel %vm1906_vm9, %v1869_v14, %v1381_v61  ;;  %v846_v4 = vpack.c.bf16 %v590_v26, %v588_v29  ;;  %v1532_v61 = vsel %vm1484_vm3, %v8381_v16, %v16221_v45  ;;  %v7467_v45 = vld [vmem:[%s15595_s0 + $0x2b8] sm:$0xff] }
 0x180   :  { %v1379_v12 = vpop.permute.xlu0 %1378  ;;  %1136 = vrot.lane.b32.xlu1 %v9074_v33, %s7484_s16  ;;  %v595_v35 = vsel %vm465_vm1, %v592_v40, %v594_v49  ;;  %v1613_v42 = vsel %vm1581_vm4, %v1532_v61, %v16223_v10  ;;  %v601_v61 = vrot.slane %v7467_v45, 2  ;;  %v7469_v10 = vld [vmem:[%s15595_s0 + $0x2c8] sm:$0x3] }
 0x181   :  { %v1932_v31 = vsel %vm1906_vm9, %v1867_v28, %v1379_v12  ;;  %v847_v22 = vpack.c.bf16 %v595_v35, %v593_v43  ;;  %v16224_v12 = vld [vmem:[#allocation42_spill] sm:$0xff]  ;;  %v7465_v28 = vld [vmem:[%s15595_s0 + $0x2a8] sm:$0xff]  ;;  %v16225_v35 = vld [vmem:[#allocation56_spill] sm:$0xff] }
 0x182   :  { %1134 = vrot.lane.b32.xlu0 %v9041_v48, %s7484_s16  ;;  %v1447_v15 = vpop.permute.xlu1 %1446  ;;  %v1611_v57 = vsel %vm1581_vm4, %v1529_v30, %v16224_v12  ;;  %v602_v30 = vrot.slane %v7468_v19, 2 }
 0x183   :  { %v1999_v60 = vsel %vm1971_vm10, %v1934_v9, %v1447_v15  ;;  %v597_v9 = vrot.slane %v7465_v28, 2 }
 0x184   :  { %v1445_v59 = vpop.permute.xlu0 %1444  ;;  %1202 = vrot.lane.b32.xlu1 %v16219_v41, %s7485_s19 }
 0x185   :  { %v1997_v46 = vsel %vm1971_vm10, %v1932_v31, %v1445_v59  ;;  %v7466_v31 = vld [vmem:[%s15595_s0 + $0x2b0] sm:$0x3]  ;;  %v9155_v59 = vpack.c.bf16 %v7465_v28, %v7464_v17  ;;  %v16227_v17 = vld [vmem:[#allocation55_spill] sm:$0xff] }
 0x186   :  { %1200 = vrot.lane.b32.xlu0 %v16214_v47, %s7485_s19  ;;  %7222 = vmatprep.mubr.msk.bf16.mxu0 %vm2056_vm11, %v1997_v46  ;;  %v1121_v24 = vpop.permute.xlu1 %1120  ;;  %v16230_v28 = vld [vmem:[#allocation40_spill] sm:$0xff] }
 0x187   :  { %7223 = vmatmul.mubr.msk.bf16.gmra.mrb[24].mxu0 %vm2056_vm11, %v1999_v60  ;;  %v1678_v2 = vsel %vm1646_vm5, %v1613_v42, %v1121_v24  ;;  %v599_v60 = vrot.slane %v7466_v31, 2  ;;  %v604_v42 = vrot.slane %v7469_v10, 2 }
 0x188   :  { %v1119_v0 = vpop.permute.xlu0 %1118  ;;  %1268 = vrot.lane.b32.xlu1 %v846_v4, %s7486_s22 }
 0x189   :  { %v1676_v29 = vsel %vm1646_vm5, %v1611_v57, %v1119_v0 }
 0x18a   :  { %1266 = vrot.lane.b32.xlu0 %v845_v34, %s7486_s22  ;;  %v1187_v8 = vpop.permute.xlu1 %1186 }
 0x18b   :  { %v1743_v26 = vsel %vm1711_vm6, %v1678_v2, %v1187_v8  ;;  %v598_v8 = vsel %vm465_vm1, %v596_v25, %v597_v9  ;;  %v603_v2 = vsel %vm465_vm1, %v601_v61, %v602_v30 }
 0x18c   :  { %v1185_v39 = vpop.permute.xlu0 %1184  ;;  %1334 = vrot.lane.b32.xlu1 %v9115_v1, %s7487_s1 }
 0x18d   :  { %v1741_v14 = vsel %vm1711_vm6, %v1676_v29, %v1185_v39  ;;  %v600_v39 = vsel %vm465_vm1, %v597_v9, %v599_v60  ;;  %v605_v29 = vsel %vm465_vm1, %v602_v30, %v604_v42  ;;  %v16231_v9 = vld [vmem:[#allocation37_spill] sm:$0xff]  ;;  %v7470_v30 = vld [vmem:[%s15595_s0 + $0x2d0] sm:$0xff] }
 0x18e   :  { %1332 = vrot.lane.b32.xlu0 %v9074_v33, %s7487_s1  ;;  %v1253_v36 = vpop.permute.xlu1 %1252  ;;  %v849_v25 = vpack.c.bf16 %v605_v29, %v603_v2  ;;  %v16232_v31 = vpack.c.bf16 %v16230_v28, %v16231_v9  ;;  %v606_v10 = vrot.slane %v7470_v30, 2  ;;  %v7471_v42 = vld [vmem:[%s15595_s0 + $0x2d8] sm:$0xff] }
 0x18f   :  { %v1808_v15 = vsel %vm1776_vm7, %v1743_v26, %v1253_v36  ;;  %v848_v36 = vpack.c.bf16 %v600_v39, %v598_v8  ;;  %v9238_v29 = vpack.c.bf16 %v7471_v42, %v7470_v30 }
 0x190   :  { %v1251_v27 = vpop.permute.xlu0 %1250  ;;  %1400 = vrot.lane.b32.xlu1 %v16220_v5, %s7488_s23 }
 0x191   :  { %v1806_v46 = vsel %vm1776_vm7, %v1741_v14, %v1251_v27  ;;  %v16226_v27 = vld [vmem:[#allocation7_spill] sm:$0xff] }
 0x192   :  { %1398 = vrot.lane.b32.xlu0 %v16219_v41, %s7488_s23  ;;  %v1319_v34 = vpop.permute.xlu1 %1318  ;;  %v16228_v14 = vld [vmem:[#allocation15_spill] sm:$0xff] }
 0x193   :  { %v1873_v24 = vsel %vm1841_vm8, %v1808_v15, %v1319_v34  ;;  %v16229_v15 = vld [vmem:[#allocation16_spill] sm:$0xff] }
 0x194   :  { %v1317_v55 = vpop.permute.xlu0 %1316  ;;  %1466 = vrot.lane.b32.xlu1 %v847_v22, %s7489_s24  ;;  %v1535_v60 = vsel %vm1484_vm3, %v16232_v31, %v16229_v15 }
 0x195   :  { %v1871_v52 = vsel %vm1841_vm8, %v1806_v46, %v1317_v55  ;;  %v16233_v46 = vld [vmem:[#allocation4_spill] sm:$0xff] }
 0x196   :  { %1464 = vrot.lane.b32.xlu0 %v846_v4, %s7489_s24  ;;  %v1385_v50 = vpop.permute.xlu1 %1384 }
 0x197   :  { %v1938_v63 = vsel %vm1906_vm9, %v1873_v24, %v1385_v50  ;;  %v9189_v50 = vpack.c.bf16 %v7468_v19, %v7467_v45 }
 0x198   :  { %v1383_v16 = vpop.permute.xlu0 %1382  ;;  %1044 = vrot.lane.b32.xlu1 %v847_v22, %s7483_s14 }
 0x199   :  { %v1936_v51 = vsel %vm1906_vm9, %v1871_v52, %v1383_v16  ;;  %v16234_v52 = vld [vmem:[#allocation61_spill] sm:$0xff] }
 0x19a   :  { %1042 = vrot.lane.b32.xlu0 %v846_v4, %s7483_s14  ;;  %v1451_v0 = vpop.permute.xlu1 %1450 }
 0x19b   :  { %v2003_v40 = vsel %vm1971_vm10, %v1938_v63, %v1451_v0  ;;  %v1615_v63 = vsel %vm1581_vm4, %v1535_v60, %v16234_v52 }
 0x19c   :  { %v1449_v44 = vpop.permute.xlu0 %1448  ;;  %1140 = vrot.lane.b32.xlu1 %v9155_v59, %s7484_s16 }
 0x19d   :  { %v2001_v49 = vsel %vm1971_vm10, %v1936_v51, %v1449_v44 }
 0x19e   :  { %1138 = vrot.lane.b32.xlu0 %v9115_v1, %s7484_s16  ;;  %7226 = vmatprep.mubr.msk.bf16.mxu0 %vm2056_vm11, %v2001_v49  ;;  %v1125_v4 = vpop.permute.xlu1 %1124 }
 0x19f   :  { %7227 = vmatmul.mubr.msk.bf16.gmra.mrb[28].mxu0 %vm2056_vm11, %v2003_v40 }
 0x1a0   :  { %v1123_v43 = vpop.permute.xlu0 %1122  ;;  %1206 = vrot.lane.b32.xlu1 %v16225_v35, %s7485_s19  ;;  %7338 = vmatprep.mubr.msk.bf16.mxu0 %vm1484_vm3, %v16226_v27 }
 0x1a2   :  { %1204 = vrot.lane.b32.xlu0 %v16220_v5, %s7485_s19  ;;  %v1191_v34 = vpop.permute.xlu1 %1190 }
 0x1a4   :  { %v1189_v55 = vpop.permute.xlu0 %1188  ;;  %1272 = vrot.lane.b32.xlu1 %v848_v36, %s7486_s22 }
 0x1a6   :  { %1270 = vrot.lane.b32.xlu0 %v847_v22, %s7486_s22  ;;  %v1257_v12 = vpop.permute.xlu1 %1256  ;;  %v1538_v22 = vsel %vm1484_vm3, %v8393_v3, %v16228_v14  ;;  %v1680_v3 = vsel %vm1646_vm5, %v1615_v63, %v1123_v43  ;;  %v7475_v63 = vld [vmem:[%s15595_s0 + $0x2f8] sm:$0x3] }
 0x1a7   :  { %v1617_v24 = vsel %vm1581_vm4, %v1538_v22, %v16233_v46  ;;  %v1745_v49 = vsel %vm1711_vm6, %v1680_v3, %v1189_v55  ;;  %v7473_v46 = vld [vmem:[%s15595_s0 + $0x2e8] sm:$0xff] }
 0x1a8   :  { %v1255_v57 = vpop.permute.xlu0 %1254  ;;  %1338 = vrot.lane.b32.xlu1 %v9189_v50, %s7487_s1  ;;  %v1682_v51 = vsel %vm1646_vm5, %v1617_v24, %v1125_v4  ;;  %v611_v24 = vrot.slane %v7473_v46, 2 }
 0x1a9   :  { %v1747_v40 = vsel %vm1711_vm6, %v1682_v51, %v1191_v34  ;;  %v1810_v39 = vsel %vm1776_vm7, %v1745_v49, %v1255_v57  ;;  %v7472_v57 = vld [vmem:[%s15595_s0 + $0x2e0] sm:$0x3]  ;;  %v614_v51 = vrot.slane %v7475_v63, 2 }
 0x1aa   :  { %1336 = vrot.lane.b32.xlu0 %v9155_v59, %s7487_s1  ;;  %v1323_v26 = vpop.permute.xlu1 %1322  ;;  %v1812_v8 = vsel %vm1776_vm7, %v1747_v40, %v1257_v12  ;;  %v607_v12 = vrot.slane %v7471_v42, 2  ;;  %v609_v2 = vrot.slane %v7472_v57, 2 }
 0x1ab   :  { %v1877_v27 = vsel %vm1841_vm8, %v1812_v8, %v1323_v26 }
 0x1ac   :  { %v1321_v16 = vpop.permute.xlu0 %1320  ;;  %1404 = vrot.lane.b32.xlu1 %v16227_v17, %s7488_s23  ;;  %v608_v14 = vsel %vm465_vm1, %v606_v10, %v607_v12  ;;  %v610_v22 = vsel %vm465_vm1, %v607_v12, %v609_v2 }
 0x1ad   :  { %v1875_v4 = vsel %vm1841_vm8, %v1810_v39, %v1321_v16  ;;  %v9251_v9 = vpack.c.bf16 %v610_v22, %v608_v14 }
 0x1ae   :  { %1402 = vrot.lane.b32.xlu0 %v16225_v35, %s7488_s23  ;;  %v1389_v0 = vpop.permute.xlu1 %1388 }
 0x1af   :  { %v1942_v43 = vsel %vm1906_vm9, %v1877_v27, %v1389_v0  ;;  %v7474_v0 = vld [vmem:[%s15595_s0 + $0x2f0] sm:$0xff]  ;;  %v16236_v27 = vld [vmem:[#allocation17_spill] sm:$0xff] }
 0x1b0   :  { %v1387_v44 = vpop.permute.xlu0 %1386  ;;  %1470 = vrot.lane.b32.xlu1 %v849_v25, %s7489_s24  ;;  %v612_v52 = vrot.slane %v7474_v0, 2  ;;  %v9266_v3 = vpack.c.bf16 %v7474_v0, %v7473_v46 }
 0x1b1   :  { %v1940_v34 = vsel %vm1906_vm9, %v1875_v4, %v1387_v44  ;;  %v16237_v4 = vld [vmem:[#allocation18_spill] sm:$0xff] }
 0x1b2   :  { %1468 = vrot.lane.b32.xlu0 %v848_v36, %s7489_s24  ;;  %v1455_v45 = vpop.permute.xlu1 %1454  ;;  %v613_v49 = vsel %vm465_vm1, %v611_v24, %v612_v52  ;;  %v615_v8 = vsel %vm465_vm1, %v612_v52, %v614_v51  ;;  %v7477_v24 = vld [vmem:[%s15595_s0 + $0x308] sm:$0xff] }
 0x1b3   :  { %v2007_v61 = vsel %vm1971_vm10, %v1942_v43, %v1455_v45  ;;  %v1544_v45 = vsel %vm1484_vm3, %v8880_v62, %v16236_v27  ;;  %v617_v0 = vrot.slane %v7477_v24, 2 }
 0x1b4   :  { %v1453_v19 = vpop.permute.xlu0 %1452  ;;  %1048 = vrot.lane.b32.xlu1 %v849_v25, %s7483_s14 }
 0x1b5   :  { %v2005_v55 = vsel %vm1971_vm10, %v1940_v34, %v1453_v19  ;;  %v16238_v34 = vld [vmem:[#allocation57_spill] sm:$0xff] }
 0x1b6   :  { %1046 = vrot.lane.b32.xlu0 %v848_v36, %s7483_s14  ;;  %7230 = vmatprep.mubr.msk.bf16.mxu1 %vm2056_vm11, %v2005_v55  ;;  %v1033_v26 = vpop.permute.xlu1 %1032  ;;  %v16235_v36 = vld [vmem:[#allocation58_spill] sm:$0xff] }
 0x1b7   :  { %7231 = vmatmul.mubr.msk.bf16.vlgmr.msra.gmra.mrb[0].mxu1 %vm2056_vm11, %v2007_v61  ;;  %v9283_v61 = vpack.c.bf16 %v615_v8, %v613_v49  ;;  %v1621_v19 = vsel %vm1581_vm4, %v1544_v45, %v1033_v26 }
 0x1b8   :  { %v1031_v16 = vpop.permute.xlu0 %1030  ;;  %1144 = vrot.lane.b32.xlu1 %v9238_v29, %s7484_s16 }
 0x1ba   :  { %1142 = vrot.lane.b32.xlu0 %v9189_v50, %s7484_s16  ;;  %v1129_v15 = vpop.permute.xlu1 %1128 }
 0x1bb   :  { %v1686_v30 = vsel %vm1646_vm5, %v1621_v19, %v1129_v15 }
 0x1bc   :  { %v1127_v28 = vpop.permute.xlu0 %1126  ;;  %1210 = vrot.lane.b32.xlu1 %v16235_v36, %s7485_s19 }
 0x1be   :  { %1208 = vrot.lane.b32.xlu0 %v16227_v17, %s7485_s19  ;;  %v1195_v31 = vpop.permute.xlu1 %1194 }
 0x1bf   :  { %v1751_v62 = vsel %vm1711_vm6, %v1686_v30, %v1195_v31 }
 0x1c0   :  { %v1193_v60 = vpop.permute.xlu0 %1192  ;;  %1276 = vrot.lane.b32.xlu1 %v9251_v9, %s7486_s22 }
 0x1c2   :  { %1274 = vrot.lane.b32.xlu0 %v849_v25, %s7486_s22  ;;  %v1261_v40 = vpop.permute.xlu1 %1260  ;;  %v1541_v25 = vsel %vm1484_vm3, %v8851_v18, %v16237_v4 }
 0x1c3   :  { %v1619_v55 = vsel %vm1581_vm4, %v1541_v25, %v1031_v16  ;;  %v1816_v2 = vsel %vm1776_vm7, %v1751_v62, %v1261_v40 }
 0x1c4   :  { %v1259_v44 = vpop.permute.xlu0 %1258  ;;  %1342 = vrot.lane.b32.xlu1 %v9266_v3, %s7487_s1  ;;  %v1684_v10 = vsel %vm1646_vm5, %v1619_v55, %v1127_v28 }
 0x1c5   :  { %v1749_v12 = vsel %vm1711_vm6, %v1684_v10, %v1193_v60  ;;  %v7476_v60 = vld [vmem:[%s15595_s0 + $0x300] sm:$0xff] }
 0x1c6   :  { %1340 = vrot.lane.b32.xlu0 %v9238_v29, %s7487_s1  ;;  %v1327_v39 = vpop.permute.xlu1 %1326  ;;  %v1814_v26 = vsel %vm1776_vm7, %v1749_v12, %v1259_v44  ;;  %v616_v46 = vrot.slane %v7476_v60, 2  ;;  %v9340_v12 = vpack.c.bf16 %v7477_v24, %v7476_v60 }
 0x1c7   :  { %v1881_v15 = vsel %vm1841_vm8, %v1816_v2, %v1327_v39 }
 0x1c8   :  { %v1325_v43 = vpop.permute.xlu0 %1324  ;;  %1408 = vrot.lane.b32.xlu1 %v16238_v34, %s7488_s23  ;;  %v618_v60 = vsel %vm465_vm1, %v616_v46, %v617_v0  ;;  %v7479_v46 = vld [vmem:[%s15595_s0 + $0x318] sm:$0xff] }
 0x1c9   :  { %v1879_v28 = vsel %vm1841_vm8, %v1814_v26, %v1325_v43 }
 0x1ca   :  { %v9289_v42 = vpop.f32.mrb[0].mxu0  ;;  %1406 = vrot.lane.b32.xlu0 %v16235_v36, %s7488_s23  ;;  %v1393_v18 = vpop.permute.xlu1 %1392 }
 0x1cb   :  { %v9295_v57 = vpop.f32.mrb[1].mxu0  ;;  %v2551_v52 = vmul.f32 %v9289_v42, %v9289_v42  ;;  %v2419_v49 = vsel %vm1581_vm4, %v9289_v42, 0.0  ;;  %v1946_v8 = vsel %vm1906_vm9, %v1881_v15, %v1393_v18  ;;  %v7478_v18 = vld [vmem:[%s15595_s0 + $0x310] sm:$0x3] }
 0x1cc   :  { %v2549_v16 = vmul.f32 %v9295_v57, %v9295_v57  ;;  %v9301_v14 = vpop.f32.mrb[2].mxu0  ;;  %v1391_v22 = vpop.permute.xlu0 %1390  ;;  %1474 = vrot.lane.b32.xlu1 %v9283_v61, %s7489_s24  ;;  %v2416_v63 = vsel %vm1581_vm4, %v9295_v57, 0.0  ;;  %v619_v62 = vrot.slane %v7478_v18, 2  ;;  %v9389_v18 = vld [vmem:[%s15595_s0 + $0x338] sm:$0xff] }
 0x1cd   :  { %v9307_v31 = vpop.f32.mrb[3].mxu0  ;;  %v2552_v39 = vmul.f32 %v9301_v14, %v9301_v14  ;;  %v1944_v4 = vsel %vm1906_vm9, %v1879_v28, %v1391_v22  ;;  %v2616_v2 = vsel %vm1581_vm4, %v2551_v52, 0.0  ;;  %v2421_v26 = vsel %vm1581_vm4, %v9301_v14, 0.0 }
 0x1ce   :  { %v2417_v51 = vsel %vm1581_vm4, %v9307_v31, 0.0  ;;  %v2550_v40 = vmul.f32 %v9307_v31, %v9307_v31  ;;  %1472 = vrot.lane.b32.xlu0 %v9251_v9, %s7489_s24  ;;  %v1459_v44 = vpop.permute.xlu1 %1458  ;;  %v2613_v45 = vsel %vm1581_vm4, %v2549_v16, 0.0  ;;  %v620_v24 = vsel %vm465_vm1, %v617_v0, %v619_v62 }
 0x1cf   :  { %v2418_v27 = vadd.f32 %v2417_v51, %v2416_v63  ;;  %v2011_v43 = vsel %vm1971_vm10, %v1946_v8, %v1459_v44  ;;  %v2618_v28 = vsel %vm1581_vm4, %v2552_v39, 0.0  ;;  %v9358_v44 = vpack.c.bf16 %v620_v24, %v618_v60  ;;  %v7480_v39 = vld [vmem:[%s15595_s0 + $0x320] sm:$0xff] }
 0x1d0   :  { %v2614_v25 = vsel %vm1581_vm4, %v2550_v40, 0.0  ;;  %v1457_v19 = vpop.permute.xlu0 %1456  ;;  %1052 = vrot.lane.b32.xlu1 %v9283_v61, %s7483_s14  ;;  %v16239_v40 = vld [vmem:[#allocation60_spill] sm:$0xff]  ;;  %v621_v0 = vrot.slane %v7479_v46, 2  ;;  %v9404_v60 = vld [vmem:[%s15595_s0 + $0x340] sm:$0x3] }
 0x1d1   :  { %v2420_v55 = vadd.f32 %v2419_v49, %v2418_v27  ;;  %v2615_v30 = vadd.f32 %v2614_v25, %v2613_v45  ;;  %v2009_v10 = vsel %vm1971_vm10, %v1944_v4, %v1457_v19  ;;  %v622_v27 = vrot.slane %v7480_v39, 2  ;;  %v7481_v45 = vld [vmem:[%s15595_s0 + $0x328] sm:$0x3] }
 0x1d2   :  { %1050 = vrot.lane.b32.xlu0 %v9251_v9, %s7483_s14  ;;  %7234 = vmatprep.mubr.msk.bf16.mxu1 %vm2056_vm11, %v2009_v10  ;;  %v1037_v16 = vpop.permute.xlu1 %1036  ;;  %v624_v4 = vrot.slane %v7481_v45, 2  ;;  %v9373_v25 = vpack.c.bf16 %v7480_v39, %v7479_v46  ;;  %v9384_v10 = vld [vmem:[%s15595_s0 + $0x330] sm:$0xff]  ;;  %v704_v35 = vrot.slane %v9404_v60, 1 }
 0x1d3   :  { %v2617_v22 = vadd.f32 %v2616_v2, %v2615_v30  ;;  %7235 = vmatmul.mubr.msk.bf16.gmra.mrb[4].mxu1 %vm2056_vm11, %v2011_v43  ;;  %v2422_v15 = vadd.f32 %v2421_v26, %v2420_v55  ;;  %v623_v55 = vsel %vm465_vm1, %v621_v0, %v622_v27  ;;  %v16241_v2 = vld [vmem:[#allocation20_spill] sm:$0xff]  ;;  %v702_v0 = vrot.slane %v9389_v18, 1 }
 0x1d4   :  { %v1035_v63 = vpop.permute.xlu0 %1034  ;;  %1148 = vrot.lane.b32.xlu1 %v9340_v12, %s7484_s16  ;;  %v625_v30 = vsel %vm465_vm1, %v622_v27, %v624_v4  ;;  %v1547_v26 = vsel %vm1484_vm3, %v8924_v11, %v16241_v2  ;;  %v715_v11 = vrot.slane %v9384_v10, 2 }
 0x1d5   :  { %v2619_v52 = vadd.f32 %v2618_v28, %v2617_v22  ;;  %v9408_v46 = vpack.c.bf16 %v625_v30, %v623_v55  ;;  %v716_v55 = vrot.slane %v9389_v18, 2  ;;  %v9424_v30 = vpack.c.bf16 %v9389_v18, %v9384_v10 }
 0x1d6   :  { %1146 = vrot.lane.b32.xlu0 %v9266_v3, %s7484_s16  ;;  %v1133_v9 = vpop.permute.xlu1 %1132 }
 0x1d8   :  { %v1131_v51 = vpop.permute.xlu0 %1130  ;;  %1214 = vrot.lane.b32.xlu1 %v16239_v40, %s7485_s19 }
 0x1da   :  { %1212 = vrot.lane.b32.xlu0 %v16238_v34, %s7485_s19  ;;  %v1199_v49 = vpop.permute.xlu1 %1198  ;;  %v1623_v34 = vsel %vm1581_vm4, %v1547_v26, %v1035_v63 }
 0x1db   :  { %v1688_v63 = vsel %vm1646_vm5, %v1623_v34, %v1131_v51 }
 0x1dc   :  { %v1197_v8 = vpop.permute.xlu0 %1196  ;;  %1280 = vrot.lane.b32.xlu1 %v9358_v44, %s7486_s22 }
 0x1de   :  { %1278 = vrot.lane.b32.xlu0 %v9283_v61, %s7486_s22  ;;  %v1265_v43 = vpop.permute.xlu1 %1264  ;;  %v16240_v61 = vld [vmem:[#allocation19_spill] sm:$0xff] }
 0x1df   :  { %v1550_v62 = vsel %vm1484_vm3, %v8962_v6, %v16240_v61  ;;  %v701_v6 = vrot.slane %v9384_v10, 1  ;;  %v16242_v61 = vld [vmem:[#allocation59_spill] sm:$0xff] }
 0x1e0   :  { %v1263_v19 = vpop.permute.xlu0 %1262  ;;  %1346 = vrot.lane.b32.xlu1 %v9373_v25, %s7487_s1  ;;  %v1625_v2 = vsel %vm1581_vm4, %v1550_v62, %v1037_v16 }
 0x1e2   :  { %v9397_v22 = vpop.f32.mrb[4].mxu0  ;;  %1344 = vrot.lane.b32.xlu0 %v9340_v12, %s7487_s1  ;;  %v1331_v28 = vpop.permute.xlu1 %1330 }
 0x1e3   :  { %v9406_v24 = vpop.f32.mrb[5].mxu0  ;;  %v2555_v5 = vmul.f32 %v9397_v22, %v9397_v22 }
 0x1e4   :  { %v2423_v39 = vsel %vm1581_vm4, %v9406_v24, 0.0  ;;  %v2553_v27 = vmul.f32 %v9406_v24, %v9406_v24  ;;  %v9417_v45 = vpop.f32.mrb[6].mxu0  ;;  %v1329_v4 = vpop.permute.xlu0 %1328  ;;  %1412 = vrot.lane.b32.xlu1 %v16242_v61, %s7488_s23 }
 0x1e5   :  { %v2424_v36 = vadd.f32 %v2423_v39, %v2422_v15  ;;  %v9428_v17 = vpop.f32.mrb[7].mxu0  ;;  %v1690_v15 = vsel %vm1646_vm5, %v1625_v2, %v1133_v9  ;;  %v2427_v39 = vsel %vm1581_vm4, %v9397_v22, 0.0  ;;  %v1753_v9 = vsel %vm1711_vm6, %v1688_v63, %v1197_v8 }
 0x1e6   :  { %v2620_v41 = vsel %vm1581_vm4, %v2553_v27, 0.0  ;;  %v2425_v47 = vsel %vm1581_vm4, %v9428_v17, 0.0  ;;  %v2554_v10 = vmul.f32 %v9428_v17, %v9428_v17  ;;  %1410 = vrot.lane.b32.xlu0 %v16239_v40, %s7488_s23  ;;  %v1397_v16 = vpop.permute.xlu1 %1396  ;;  %v1755_v26 = vsel %vm1711_vm6, %v1690_v15, %v1199_v49 }
 0x1e7   :  { %v2621_v18 = vadd.f32 %v2620_v41, %v2619_v52  ;;  %v2426_v62 = vadd.f32 %v2425_v47, %v2424_v36  ;;  %v2556_v27 = vmul.f32 %v9417_v45, %v9417_v45  ;;  %v1820_v34 = vsel %vm1776_vm7, %v1755_v26, %v1265_v43 }
 0x1e8   :  { %v2622_v56 = vsel %vm1581_vm4, %v2554_v10, 0.0  ;;  %v1395_v38 = vpop.permute.xlu0 %1394  ;;  %1478 = vrot.lane.b32.xlu1 %v9408_v46, %s7489_s24  ;;  %v1818_v36 = vsel %vm1776_vm7, %v1753_v9, %v1263_v19  ;;  %v2624_v52 = vsel %vm1581_vm4, %v2555_v5, 0.0  ;;  %v1885_v51 = vsel %vm1841_vm8, %v1820_v34, %v1331_v28 }
 0x1e9   :  { %v2428_v41 = vadd.f32 %v2427_v39, %v2426_v62  ;;  %v2623_v47 = vadd.f32 %v2622_v56, %v2621_v18  ;;  %v2429_v49 = vsel %vm1581_vm4, %v9417_v45, 0.0  ;;  %v1883_v10 = vsel %vm1841_vm8, %v1818_v36, %v1329_v4 }
 0x1ea   :  { %1476 = vrot.lane.b32.xlu0 %v9358_v44, %s7489_s24  ;;  %v1463_v2 = vpop.permute.xlu1 %1462  ;;  %v1950_v43 = vsel %vm1906_vm9, %v1885_v51, %v1397_v16  ;;  %v2626_v56 = vsel %vm1581_vm4, %v2556_v27, 0.0  ;;  %v1948_v19 = vsel %vm1906_vm9, %v1883_v10, %v1395_v38  ;;  %v703_v63 = vsel %vm240_vm0, %v701_v6, %v702_v0  ;;  %v143_v27 = vld [vmem:[%s15595_s0 + $0x358] sm:$0x3] }
 0x1eb   :  { %v2625_v8 = vadd.f32 %v2624_v52, %v2623_v47  ;;  %v2430_v15 = vadd.f32 %v2429_v49, %v2428_v41  ;;  %v2015_v5 = vsel %vm1971_vm10, %v1950_v43, %v1463_v2  ;;  %v705_v4 = vsel %vm240_vm0, %v702_v0, %v704_v35  ;;  %v142_v0 = vld [vmem:[%s15595_s0 + $0x350] sm:$0xff] }
 0x1ec   :  { %v1461_v28 = vpop.permute.xlu0 %1460  ;;  %1056 = vrot.lane.b32.xlu1 %v9408_v46, %s7483_s14  ;;  %v718_v62 = vrot.slane %v9404_v60, 2  ;;  %v9478_v6 = vpack.c.bf16 %v705_v4, %v703_v63  ;;  %v717_v35 = vsel %vm465_vm1, %v715_v11, %v716_v55  ;;  %v736_v34 = vrot.slane %v142_v0, 1 }
 0x1ed   :  { %v2013_v18 = vsel %vm1971_vm10, %v1948_v19, %v1461_v28  ;;  %v2627_v16 = vadd.f32 %v2626_v56, %v2625_v8  ;;  %v738_v41 = vrot.slane %v143_v27, 1  ;;  %v750_v2 = vrot.slane %v142_v0, 2 }
 0x1ee   :  { %1054 = vrot.lane.b32.xlu0 %v9358_v44, %s7483_s14  ;;  %7238 = vmatprep.mubr.msk.bf16.mxu1 %vm2056_vm11, %v2013_v18  ;;  %v1041_v38 = vpop.permute.xlu1 %1040  ;;  %16243 = vst [vmem:[#allocation2_spill] sm:$0xff] %v9478_v6  ;;  %v719_v60 = vsel %vm465_vm1, %v716_v55, %v718_v62  ;;  %v141_v44 = vld [vmem:[%s15595_s0 + $0x348] sm:$0xff]  ;;  %v752_v8 = vrot.slane %v143_v27, 2 }
 0x1ef   :  { %7239 = vmatmul.mubr.msk.bf16.gmra.mrb[8].mxu1 %vm2056_vm11, %v2015_v5  ;;  %v9495_v11 = vpack.c.bf16 %v719_v60, %v717_v35  ;;  %v735_v55 = vrot.slane %v141_v44, 1  ;;  %v861_v52 = vpack.c.bf16 %v142_v0, %v141_v44  ;;  %v749_v49 = vrot.slane %v141_v44, 2 }
 0x1f0   :  { %v9474_v26 = vpop.permute.xlu0 %1038  ;;  %1152 = vrot.lane.b32.xlu1 %v9424_v30, %s7484_s16  ;;  %v739_v10 = vsel %vm240_vm0, %v736_v34, %v738_v41  ;;  %v753_v60 = vsel %vm465_vm1, %v750_v2, %v752_v8  ;;  %v16244_v8 = vld [vmem:[#allocation22_spill] sm:$0xff] }
 0x1f1   :  { %v737_v51 = vsel %vm240_vm0, %v735_v55, %v736_v34 }
 0x1f2   :  { %1150 = vrot.lane.b32.xlu0 %v9373_v25, %s7484_s16  ;;  %v1137_v39 = vpop.permute.xlu1 %1136  ;;  %v863_v4 = vpack.c.bf16 %v739_v10, %v737_v51 }
 0x1f4   :  { %v1135_v9 = vpop.permute.xlu0 %1134  ;;  %1218 = vrot.lane.b32.xlu1 %v9478_v6, %s7485_s19 }
 0x1f6   :  { %1216 = vrot.lane.b32.xlu0 %v16242_v61, %s7485_s19  ;;  %v1203_v47 = vpop.permute.xlu1 %1202  ;;  %v16252_v61 = vld [vmem:[#allocation32_spill] sm:$0xff] }
 0x1f8   :  { %v1201_v36 = vpop.permute.xlu0 %1200  ;;  %1284 = vrot.lane.b32.xlu1 %v9495_v11, %s7486_s22 }
 0x1fa   :  { %v9503_v43 = vpop.f32.mrb[8].mxu0  ;;  %1282 = vrot.lane.b32.xlu0 %v9408_v46, %s7486_s22  ;;  %v1269_v56 = vpop.permute.xlu1 %1268  ;;  %v751_v46 = vsel %vm465_vm1, %v749_v49, %v750_v2 }
 0x1fb   :  { %v9507_v19 = vpop.f32.mrb[9].mxu0  ;;  %v2559_v44 = vmul.f32 %v9503_v43, %v9503_v43  ;;  %v865_v10 = vpack.c.bf16 %v753_v60, %v751_v46 }
 0x1fc   :  { %v2431_v5 = vsel %vm1581_vm4, %v9507_v19, 0.0  ;;  %v2557_v28 = vmul.f32 %v9507_v19, %v9507_v19  ;;  %v9513_v63 = vpop.f32.mrb[10].mxu0  ;;  %v1267_v18 = vpop.permute.xlu0 %1266  ;;  %1350 = vrot.lane.b32.xlu1 %v861_v52, %s7487_s1  ;;  %v2435_v52 = vsel %vm1581_vm4, %v9503_v43, 0.0 }
 0x1fd   :  { %v2432_v62 = vadd.f32 %v2431_v5, %v2430_v15  ;;  %v9516_v35 = vpop.f32.mrb[11].mxu0  ;;  %v2560_v51 = vmul.f32 %v9513_v63, %v9513_v63  ;;  %v1556_v5 = vsel %vm1484_vm3, %v9041_v48, %v16244_v8 }
 0x1fe   :  { %v2628_v0 = vsel %vm1581_vm4, %v2557_v28, 0.0  ;;  %v2433_v27 = vsel %vm1581_vm4, %v9516_v35, 0.0  ;;  %v2558_v55 = vmul.f32 %v9516_v35, %v9516_v35  ;;  %1348 = vrot.lane.b32.xlu0 %v9424_v30, %s7487_s1  ;;  %v1335_v15 = vpop.permute.xlu1 %1334 }
 0x1ff   :  { %v2629_v34 = vadd.f32 %v2628_v0, %v2627_v16  ;;  %v2434_v41 = vadd.f32 %v2433_v27, %v2432_v62  ;;  %v16245_v16 = vld [vmem:[#allocation23_spill] sm:$0xff]  ;;  %v1629_v0 = vsel %vm1581_vm4, %v1556_v5, %v1041_v38  ;;  %v2632_v27 = vsel %vm1581_vm4, %v2559_v44, 0.0 }
 0x200   :  { %v2630_v49 = vsel %vm1581_vm4, %v2558_v55, 0.0  ;;  %v1333_v2 = vpop.permute.xlu0 %1332  ;;  %1416 = vrot.lane.b32.xlu1 %v863_v4, %s7488_s23  ;;  %v1553_v62 = vsel %vm1484_vm3, %v8996_v7, %v16245_v16  ;;  %v2437_v55 = vsel %vm1581_vm4, %v9513_v63, 0.0  ;;  %v1694_v46 = vsel %vm1646_vm5, %v1629_v0, %v1137_v39 }
 0x201   :  { %v2436_v30 = vadd.f32 %v2435_v52, %v2434_v41  ;;  %v2631_v28 = vadd.f32 %v2630_v49, %v2629_v34  ;;  %v1627_v48 = vsel %vm1581_vm4, %v1553_v62, %v9474_v26  ;;  %v1759_v38 = vsel %vm1711_vm6, %v1694_v46, %v1203_v47 }
 0x202   :  { %1414 = vrot.lane.b32.xlu0 %v9478_v6, %s7488_s23  ;;  %v1401_v4 = vpop.permute.xlu1 %1400  ;;  %v1692_v7 = vsel %vm1646_vm5, %v1627_v48, %v1135_v9  ;;  %v2634_v44 = vsel %vm1581_vm4, %v2560_v51, 0.0  ;;  %v1824_v49 = vsel %vm1776_vm7, %v1759_v38, %v1269_v56 }
 0x203   :  { %v2633_v60 = vadd.f32 %v2632_v27, %v2631_v28  ;;  %v2438_v34 = vadd.f32 %v2437_v55, %v2436_v30  ;;  %v1757_v52 = vsel %vm1711_vm6, %v1692_v7, %v1201_v36  ;;  %v1889_v39 = vsel %vm1841_vm8, %v1824_v49, %v1335_v15 }
 0x204   :  { %v1399_v41 = vpop.permute.xlu0 %1398  ;;  %1482 = vrot.lane.b32.xlu1 %v865_v10, %s7489_s24  ;;  %v1822_v26 = vsel %vm1776_vm7, %v1757_v52, %v1267_v18  ;;  %v1954_v51 = vsel %vm1906_vm9, %v1889_v39, %v1401_v4 }
 0x205   :  { %v2635_v8 = vadd.f32 %v2634_v44, %v2633_v60  ;;  %v1887_v47 = vsel %vm1841_vm8, %v1822_v26, %v1333_v2 }
 0x206   :  { %1480 = vrot.lane.b32.xlu0 %v9495_v11, %s7489_s24  ;;  %v1467_v9 = vpop.permute.xlu1 %1466  ;;  %v1952_v5 = vsel %vm1906_vm9, %v1887_v47, %v1399_v41 }
 0x207   :  { %v2019_v10 = vsel %vm1971_vm10, %v1954_v51, %v1467_v9 }
 0x208   :  { %v1465_v36 = vpop.permute.xlu0 %1464 }
 0x209   :  { %v2017_v56 = vsel %vm1971_vm10, %v1952_v5, %v1465_v36 }
 0x20a   :  { %7242 = vmatprep.mubr.msk.bf16.mxu1 %vm2056_vm11, %v2017_v56  ;;  %v1045_v18 = vpop.permute.xlu1 %1044 }
 0x20b   :  { %7243 = vmatmul.mubr.msk.bf16.gmra.mrb[12].mxu1 %vm2056_vm11, %v2019_v10 }
 0x20c   :  { %v1043_v15 = vpop.permute.xlu0 %1042 }
 0x20e   :  { %v1141_v30 = vpop.permute.xlu1 %1140 }
 0x210   :  { %v1139_v11 = vpop.permute.xlu0 %1138 }
 0x212   :  { %v9567_v28 = vpop.f32.mrb[12].mxu0  ;;  %v1207_v2 = vpop.permute.xlu1 %1206 }
 0x213   :  { %v9569_v16 = vpop.f32.mrb[13].mxu0  ;;  %v2563_v46 = vmul.f32 %v9567_v28, %v9567_v28  ;;  %v2443_v49 = vsel %vm1581_vm4, %v9567_v28, 0.0 }
 0x214   :  { %v2439_v62 = vsel %vm1581_vm4, %v9569_v16, 0.0  ;;  %v2561_v0 = vmul.f32 %v9569_v16, %v9569_v16  ;;  %v9575_v27 = vpop.f32.mrb[14].mxu0  ;;  %v1205_v55 = vpop.permute.xlu0 %1204 }
 0x215   :  { %v2440_v4 = vadd.f32 %v2439_v62, %v2438_v34  ;;  %v9577_v48 = vpop.f32.mrb[15].mxu0  ;;  %v2564_v34 = vmul.f32 %v9575_v27, %v9575_v27  ;;  %v2640_v51 = vsel %vm1581_vm4, %v2563_v46, 0.0  ;;  %v2445_v5 = vsel %vm1581_vm4, %v9575_v27, 0.0 }
 0x216   :  { %v2636_v60 = vsel %vm1581_vm4, %v2561_v0, 0.0  ;;  %v2441_v7 = vsel %vm1581_vm4, %v9577_v48, 0.0  ;;  %v2562_v38 = vmul.f32 %v9577_v48, %v9577_v48  ;;  %v1273_v44 = vpop.permute.xlu1 %1272  ;;  %v16246_v0 = vld [vmem:[#allocation24_spill] sm:$0xff] }
 0x217   :  { %v2637_v41 = vadd.f32 %v2636_v60, %v2635_v8  ;;  %v2442_v52 = vadd.f32 %v2441_v7, %v2440_v4  ;;  %v2642_v56 = vsel %vm1581_vm4, %v2564_v34, 0.0  ;;  %v1562_v4 = vsel %vm1484_vm3, %v9115_v1, %v16246_v0  ;;  %v16247_v7 = vld [vmem:[#allocation26_spill] sm:$0xff] }
 0x218   :  { %v2638_v26 = vsel %vm1581_vm4, %v2562_v38, 0.0  ;;  %v1271_v39 = vpop.permute.xlu0 %1270  ;;  %v1559_v38 = vsel %vm1484_vm3, %v9074_v33, %v16247_v7  ;;  %v1633_v46 = vsel %vm1581_vm4, %v1562_v4, %v1045_v18 }
 0x219   :  { %v2444_v9 = vadd.f32 %v2443_v49, %v2442_v52  ;;  %v2639_v47 = vadd.f32 %v2638_v26, %v2637_v41  ;;  %v1631_v52 = vsel %vm1581_vm4, %v1559_v38, %v1043_v15  ;;  %v1698_v49 = vsel %vm1646_vm5, %v1633_v46, %v1141_v30 }
 0x21a   :  { %v1339_v10 = vpop.permute.xlu1 %1338  ;;  %v1696_v26 = vsel %vm1646_vm5, %v1631_v52, %v1139_v11  ;;  %v1763_v34 = vsel %vm1711_vm6, %v1698_v49, %v1207_v2 }
 0x21b   :  { %v2641_v36 = vadd.f32 %v2640_v51, %v2639_v47  ;;  %v2446_v8 = vadd.f32 %v2445_v5, %v2444_v9  ;;  %v1761_v47 = vsel %vm1711_vm6, %v1696_v26, %v1205_v55  ;;  %v1828_v1 = vsel %vm1776_vm7, %v1763_v34, %v1273_v44 }
 0x21c   :  { %v1337_v62 = vpop.permute.xlu0 %1336  ;;  %v1826_v51 = vsel %vm1776_vm7, %v1761_v47, %v1271_v39  ;;  %v1893_v33 = vsel %vm1841_vm8, %v1828_v1, %v1339_v10 }
 0x21d   :  { %v2643_v60 = vadd.f32 %v2642_v56, %v2641_v36  ;;  %v1891_v18 = vsel %vm1841_vm8, %v1826_v51, %v1337_v62 }
 0x21e   :  { %v1405_v41 = vpop.permute.xlu1 %1404 }
 0x21f   :  { %v1958_v15 = vsel %vm1906_vm9, %v1893_v33, %v1405_v41 }
 0x220   :  { %v1403_v9 = vpop.permute.xlu0 %1402 }
 0x221   :  { %v1956_v30 = vsel %vm1906_vm9, %v1891_v18, %v1403_v9 }
 0x222   :  { %v1471_v5 = vpop.permute.xlu1 %1470 }
 0x223   :  { %v2023_v11 = vsel %vm1971_vm10, %v1958_v15, %v1471_v5 }
 0x224   :  { %v1469_v36 = vpop.permute.xlu0 %1468 }
 0x225   :  { %v2021_v2 = vsel %vm1971_vm10, %v1956_v30, %v1469_v36 }
 0x226   :  { %7246 = vmatprep.mubr.msk.bf16.mxu1 %vm2056_vm11, %v2021_v2  ;;  %v1049_v55 = vpop.permute.xlu1 %1048 }
 0x227   :  { %7247 = vmatmul.mubr.msk.bf16.gmra.mrb[16].mxu1 %vm2056_vm11, %v2023_v11 }
 0x228   :  { %v1047_v44 = vpop.permute.xlu0 %1046 }
 0x22a   :  { %v9617_v39 = vpop.f32.mrb[16].mxu0  ;;  %v1145_v10 = vpop.permute.xlu1 %1144 }
 0x22b   :  { %v9619_v56 = vpop.f32.mrb[17].mxu0  ;;  %v2567_v41 = vmul.f32 %v9617_v39, %v9617_v39  ;;  %v2451_v1 = vsel %vm1581_vm4, %v9617_v39, 0.0 }
 0x22c   :  { %v2447_v62 = vsel %vm1581_vm4, %v9619_v56, 0.0  ;;  %v2565_v0 = vmul.f32 %v9619_v56, %v9619_v56  ;;  %v9625_v4 = vpop.f32.mrb[18].mxu0  ;;  %v1143_v7 = vpop.permute.xlu0 %1142 }
 0x22d   :  { %v2448_v38 = vadd.f32 %v2447_v62, %v2446_v8  ;;  %v9627_v46 = vpop.f32.mrb[19].mxu0  ;;  %v2568_v8 = vmul.f32 %v9625_v4, %v9625_v4  ;;  %v2648_v15 = vsel %vm1581_vm4, %v2567_v41, 0.0  ;;  %v2453_v30 = vsel %vm1581_vm4, %v9625_v4, 0.0 }
 0x22e   :  { %v2644_v52 = vsel %vm1581_vm4, %v2565_v0, 0.0  ;;  %v2449_v49 = vsel %vm1581_vm4, %v9627_v46, 0.0  ;;  %v2566_v26 = vmul.f32 %v9627_v46, %v9627_v46  ;;  %v1211_v34 = vpop.permute.xlu1 %1210 }
 0x22f   :  { %v2645_v9 = vadd.f32 %v2644_v52, %v2643_v60  ;;  %v2450_v47 = vadd.f32 %v2449_v49, %v2448_v38  ;;  %v2650_v2 = vsel %vm1581_vm4, %v2568_v8, 0.0  ;;  %v16248_v49 = vld [vmem:[#allocation27_spill] sm:$0xff] }
 0x230   :  { %v2646_v51 = vsel %vm1581_vm4, %v2566_v26, 0.0  ;;  %v1209_v33 = vpop.permute.xlu0 %1208  ;;  %v1568_v26 = vsel %vm1484_vm3, %v9189_v50, %v16248_v49 }
 0x231   :  { %v2452_v5 = vadd.f32 %v2451_v1, %v2450_v47  ;;  %v2647_v18 = vadd.f32 %v2646_v51, %v2645_v9  ;;  %v16249_v47 = vld [vmem:[#allocation29_spill] sm:$0xff]  ;;  %v1637_v9 = vsel %vm1581_vm4, %v1568_v26, %v1049_v55 }
 0x232   :  { %v1277_v11 = vpop.permute.xlu1 %1276  ;;  %v1565_v41 = vsel %vm1484_vm3, %v9155_v59, %v16249_v47 }
 0x233   :  { %v2649_v36 = vadd.f32 %v2648_v15, %v2647_v18  ;;  %v2454_v60 = vadd.f32 %v2453_v30, %v2452_v5  ;;  %v1635_v51 = vsel %vm1581_vm4, %v1565_v41, %v1047_v44  ;;  %v1702_v5 = vsel %vm1646_vm5, %v1637_v9, %v1145_v10 }
 0x234   :  { %v1275_v62 = vpop.permute.xlu0 %1274  ;;  %v1700_v8 = vsel %vm1646_vm5, %v1635_v51, %v1143_v7  ;;  %v1767_v18 = vsel %vm1711_vm6, %v1702_v5, %v1211_v34 }
 0x235   :  { %v2651_v0 = vadd.f32 %v2650_v2, %v2649_v36  ;;  %v1765_v30 = vsel %vm1711_vm6, %v1700_v8, %v1209_v33  ;;  %v1832_v50 = vsel %vm1776_vm7, %v1767_v18, %v1277_v11 }
 0x236   :  { %v1343_v38 = vpop.permute.xlu1 %1342  ;;  %v1830_v36 = vsel %vm1776_vm7, %v1765_v30, %v1275_v62 }
 0x237   :  { %v1897_v59 = vsel %vm1841_vm8, %v1832_v50, %v1343_v38 }
 0x238   :  { %v1341_v52 = vpop.permute.xlu0 %1340 }
 0x239   :  { %v1895_v55 = vsel %vm1841_vm8, %v1830_v36, %v1341_v52 }
 0x23a   :  { %v1409_v1 = vpop.permute.xlu1 %1408 }
 0x23b   :  { %v1962_v44 = vsel %vm1906_vm9, %v1897_v59, %v1409_v1 }
 0x23c   :  { %v1407_v15 = vpop.permute.xlu0 %1406 }
 0x23d   :  { %v1960_v10 = vsel %vm1906_vm9, %v1895_v55, %v1407_v15 }
 0x23e   :  { %v1475_v2 = vpop.permute.xlu1 %1474 }
 0x23f   :  { %v2027_v7 = vsel %vm1971_vm10, %v1962_v44, %v1475_v2 }
 0x240   :  { %v1473_v49 = vpop.permute.xlu0 %1472 }
 0x241   :  { %v2025_v34 = vsel %vm1971_vm10, %v1960_v10, %v1473_v49 }
 0x242   :  { %v9665_v26 = vpop.f32.mrb[20].mxu0  ;;  %7250 = vmatprep.mubr.msk.bf16.mxu1 %vm2056_vm11, %v2025_v34  ;;  %v1053_v33 = vpop.permute.xlu1 %1052 }
 0x243   :  { %v9668_v11 = vpop.f32.mrb[21].mxu0  ;;  %7251 = vmatmul.mubr.msk.bf16.gmra.mrb[20].mxu1 %vm2056_vm11, %v2027_v7  ;;  %v2571_v1 = vmul.f32 %v9665_v26, %v9665_v26  ;;  %v2459_v50 = vsel %vm1581_vm4, %v9665_v26, 0.0 }
 0x244   :  { %v2455_v62 = vsel %vm1581_vm4, %v9668_v11, 0.0  ;;  %v2569_v38 = vmul.f32 %v9668_v11, %v9668_v11  ;;  %v9675_v52 = vpop.f32.mrb[22].mxu0  ;;  %v1051_v47 = vpop.permute.xlu0 %1050 }
 0x245   :  { %v2456_v41 = vadd.f32 %v2455_v62, %v2454_v60  ;;  %v9677_v9 = vpop.f32.mrb[23].mxu0  ;;  %v2572_v60 = vmul.f32 %v9675_v52, %v9675_v52  ;;  %v2656_v44 = vsel %vm1581_vm4, %v2571_v1, 0.0  ;;  %v2461_v10 = vsel %vm1581_vm4, %v9675_v52, 0.0  ;;  %v16251_v1 = vld [vmem:[#allocation31_spill] sm:$0xff] }
 0x246   :  { %v2652_v51 = vsel %vm1581_vm4, %v2569_v38, 0.0  ;;  %v2457_v5 = vsel %vm1581_vm4, %v9677_v9, 0.0  ;;  %v2570_v8 = vmul.f32 %v9677_v9, %v9677_v9  ;;  %v1149_v18 = vpop.permute.xlu1 %1148 }
 0x247   :  { %v2653_v15 = vadd.f32 %v2652_v51, %v2651_v0  ;;  %v2458_v30 = vadd.f32 %v2457_v5, %v2456_v41  ;;  %v2658_v34 = vsel %vm1581_vm4, %v2572_v60, 0.0 }
 0x248   :  { %v2654_v36 = vsel %vm1581_vm4, %v2570_v8, 0.0  ;;  %v1147_v59 = vpop.permute.xlu0 %1146  ;;  %v16250_v8 = vld [vmem:[#allocation30_spill] sm:$0xff] }
 0x249   :  { %v2460_v2 = vadd.f32 %v2459_v50, %v2458_v30  ;;  %v2655_v55 = vadd.f32 %v2654_v36, %v2653_v15  ;;  %v1574_v15 = vsel %vm1484_vm3, %v9266_v3, %v16250_v8  ;;  %v1571_v50 = vsel %vm1484_vm3, %v9238_v29, %v16251_v1 }
 0x24a   :  { %v1215_v7 = vpop.permute.xlu1 %1214  ;;  %v1641_v36 = vsel %vm1581_vm4, %v1574_v15, %v1053_v33 }
 0x24b   :  { %v2657_v49 = vadd.f32 %v2656_v44, %v2655_v55  ;;  %v2462_v0 = vadd.f32 %v2461_v10, %v2460_v2  ;;  %v1639_v2 = vsel %vm1581_vm4, %v1571_v50, %v1051_v47  ;;  %v1706_v60 = vsel %vm1646_vm5, %v1641_v36, %v1149_v18 }
 0x24c   :  { %v1213_v62 = vpop.permute.xlu0 %1212  ;;  %v1704_v44 = vsel %vm1646_vm5, %v1639_v2, %v1147_v59  ;;  %v1771_v10 = vsel %vm1711_vm6, %v1706_v60, %v1215_v7 }
 0x24d   :  { %v2659_v38 = vadd.f32 %v2658_v34, %v2657_v49  ;;  %v1769_v49 = vsel %vm1711_vm6, %v1704_v44, %v1213_v62 }
 0x24e   :  { %v1281_v41 = vpop.permute.xlu1 %1280 }
 0x24f   :  { %v1836_v3 = vsel %vm1776_vm7, %v1771_v10, %v1281_v41 }
 0x250   :  { %v1279_v51 = vpop.permute.xlu0 %1278 }
 0x251   :  { %v1834_v29 = vsel %vm1776_vm7, %v1769_v49, %v1279_v51 }
 0x252   :  { %v1347_v5 = vpop.permute.xlu1 %1346 }
 0x253   :  { %v1901_v33 = vsel %vm1841_vm8, %v1836_v3, %v1347_v5 }
 0x254   :  { %v1345_v6 = vpop.permute.xlu0 %1344 }
 0x255   :  { %v1899_v47 = vsel %vm1841_vm8, %v1834_v29, %v1345_v6 }
 0x256   :  { %v1413_v30 = vpop.permute.xlu1 %1412 }
 0x257   :  { %v1966_v18 = vsel %vm1906_vm9, %v1901_v33, %v1413_v30 }
 0x258   :  { %v1411_v55 = vpop.permute.xlu0 %1410 }
 0x259   :  { %v1964_v1 = vsel %vm1906_vm9, %v1899_v47, %v1411_v55 }
 0x25a   :  { %v9708_v34 = vpop.f32.mrb[24].mxu0  ;;  %v1479_v8 = vpop.permute.xlu1 %1478 }
 0x25b   :  { %v9712_v15 = vpop.f32.mrb[25].mxu0  ;;  %v2575_v51 = vmul.f32 %v9708_v34, %v9708_v34  ;;  %v2031_v50 = vsel %vm1971_vm10, %v1966_v18, %v1479_v8 }
 0x25c   :  { %v2463_v59 = vsel %vm1581_vm4, %v9712_v15, 0.0  ;;  %v2573_v7 = vmul.f32 %v9712_v15, %v9712_v15  ;;  %v9720_v62 = vpop.f32.mrb[26].mxu0  ;;  %v1477_v41 = vpop.permute.xlu0 %1476 }
 0x25d   :  { %v2464_v5 = vadd.f32 %v2463_v59, %v2462_v0  ;;  %v9726_v6 = vpop.f32.mrb[27].mxu0  ;;  %v2029_v36 = vsel %vm1971_vm10, %v1964_v1, %v1477_v41  ;;  %v2467_v0 = vsel %vm1581_vm4, %v9708_v34, 0.0  ;;  %v2576_v49 = vmul.f32 %v9720_v62, %v9720_v62 }
 0x25e   :  { %v2660_v30 = vsel %vm1581_vm4, %v2573_v7, 0.0  ;;  %v2465_v2 = vsel %vm1581_vm4, %v9726_v6, 0.0  ;;  %v2574_v60 = vmul.f32 %v9726_v6, %v9726_v6  ;;  %v1057_v44 = vpop.permute.xlu1 %1056  ;;  %7254 = vmatprep.mubr.msk.bf16.mxu1 %vm2056_vm11, %v2029_v36  ;;  %v2664_v47 = vsel %vm1581_vm4, %v2575_v51, 0.0  ;;  %v16253_v51 = vld [vmem:[#allocation33_spill] sm:$0xff] }
 0x25f   :  { %v2661_v55 = vadd.f32 %v2660_v30, %v2659_v38  ;;  %v2466_v10 = vadd.f32 %v2465_v2, %v2464_v5  ;;  %7255 = vmatmul.mubr.msk.bf16.gmra.mrb[24].mxu1 %vm2056_vm11, %v2031_v50  ;;  %v2469_v38 = vsel %vm1581_vm4, %v9720_v62, 0.0  ;;  %v2666_v41 = vsel %vm1581_vm4, %v2576_v49, 0.0 }
 0x260   :  { %v2662_v3 = vsel %vm1581_vm4, %v2574_v60, 0.0  ;;  %v1055_v8 = vpop.permute.xlu0 %1054 }
 0x261   :  { %v2468_v29 = vadd.f32 %v2467_v0, %v2466_v10  ;;  %v2663_v33 = vadd.f32 %v2662_v3, %v2661_v55  ;;  %v1580_v55 = vsel %vm1484_vm3, %v9373_v25, %v16252_v61  ;;  %v1577_v10 = vsel %vm1484_vm3, %v9340_v12, %v16253_v51 }
 0x262   :  { %v1153_v18 = vpop.permute.xlu1 %1152  ;;  %v1645_v3 = vsel %vm1581_vm4, %v1580_v55, %v1057_v44  ;;  %v1643_v49 = vsel %vm1581_vm4, %v1577_v10, %v1055_v8 }
 0x263   :  { %v2665_v59 = vadd.f32 %v2664_v47, %v2663_v33  ;;  %v2470_v7 = vadd.f32 %v2469_v38, %v2468_v29  ;;  %v1710_v29 = vsel %vm1646_vm5, %v1645_v3, %v1153_v18 }
 0x264   :  { %v1151_v1 = vpop.permute.xlu0 %1150 }
 0x265   :  { %v2667_v5 = vadd.f32 %v2666_v41, %v2665_v59  ;;  %v1708_v33 = vsel %vm1646_vm5, %v1643_v49, %v1151_v1  ;;  %vm5076_vm5 = vcmask 588800  }
 0x266   :  { %v1219_v30 = vpop.permute.xlu1 %1218 }
 0x267   :  { %v1775_v59 = vsel %vm1711_vm6, %v1710_v29, %v1219_v30 }
 0x268   :  { %v1217_v36 = vpop.permute.xlu0 %1216 }
 0x269   :  { %v1773_v25 = vsel %vm1711_vm6, %v1708_v33, %v1217_v36 }
 0x26a   :  { %v1285_v2 = vpop.permute.xlu1 %1284 }
 0x26b   :  { %v1840_v12 = vsel %vm1776_vm7, %v1775_v59, %v1285_v2 }
 0x26c   :  { %v1283_v60 = vpop.permute.xlu0 %1282 }
 0x26d   :  { %v1838_v41 = vsel %vm1776_vm7, %v1773_v25, %v1283_v60 }
 0x26e   :  { %v1351_v50 = vpop.permute.xlu1 %1350 }
 0x26f   :  { %v1905_v55 = vsel %vm1841_vm8, %v1840_v12, %v1351_v50 }
 0x270   :  { %v1349_v0 = vpop.permute.xlu0 %1348 }
 0x271   :  { %v1903_v30 = vsel %vm1841_vm8, %v1838_v41, %v1349_v0 }
 0x272   :  { %v9755_v47 = vpop.f32.mrb[28].mxu0  ;;  %v1417_v38 = vpop.permute.xlu1 %1416 }
 0x273   :  { %v9759_v61 = vpop.f32.mrb[29].mxu0  ;;  %v2579_v2 = vmul.f32 %v9755_v47, %v9755_v47  ;;  %v2475_v50 = vsel %vm1581_vm4, %v9755_v47, 0.0 }
 0x274   :  { %v2471_v44 = vsel %vm1581_vm4, %v9759_v61, 0.0  ;;  %v2577_v8 = vmul.f32 %v9759_v61, %v9759_v61  ;;  %v9767_v18 = vpop.f32.mrb[30].mxu0  ;;  %v1415_v1 = vpop.permute.xlu0 %1414 }
 0x275   :  { %v2472_v36 = vadd.f32 %v2471_v44, %v2470_v7  ;;  %v9771_v51 = vpop.f32.mrb[31].mxu0  ;;  %v1970_v7 = vsel %vm1906_vm9, %v1905_v55, %v1417_v38  ;;  %v2580_v33 = vmul.f32 %v9767_v18, %v9767_v18  ;;  %v1968_v59 = vsel %vm1906_vm9, %v1903_v30, %v1415_v1 }
 0x276   :  { %v2668_v60 = vsel %vm1581_vm4, %v2577_v8, 0.0  ;;  %v2473_v10 = vsel %vm1581_vm4, %v9771_v51, 0.0  ;;  %v2578_v3 = vmul.f32 %v9771_v51, %v9771_v51  ;;  %v1483_v49 = vpop.permute.xlu1 %1482  ;;  %v2672_v20 = vsel %vm1581_vm4, %v2579_v2, 0.0 }
 0x277   :  { %v2669_v29 = vadd.f32 %v2668_v60, %v2667_v5  ;;  %v2474_v0 = vadd.f32 %v2473_v10, %v2472_v36  ;;  %v2035_v12 = vsel %vm1971_vm10, %v1970_v7, %v1483_v49  ;;  %v2477_v5 = vsel %vm1581_vm4, %v9767_v18, 0.0 }
 0x278   :  { %v2670_v25 = vsel %vm1581_vm4, %v2578_v3, 0.0  ;;  %v1481_v41 = vpop.permute.xlu0 %1480  ;;  %v2674_v55 = vsel %vm1581_vm4, %v2580_v33, 0.0 }
 0x279   :  { %v2476_v44 = vadd.f32 %v2475_v50, %v2474_v0  ;;  %v2671_v8 = vadd.f32 %v2670_v25, %v2669_v29  ;;  %v2033_v40 = vsel %vm1971_vm10, %v1968_v59, %v1481_v41 }
 0x27a   :  { %7258 = vmatprep.mubr.msk.bf16.mxu1 %vm2056_vm11, %v2033_v40 }
 0x27b   :  { %v2673_v38 = vadd.f32 %v2672_v20, %v2671_v8  ;;  %7259 = vmatmul.mubr.msk.bf16.gmra.mrb[28].mxu1 %vm2056_vm11, %v2035_v12  ;;  %v2478_v1 = vadd.f32 %v2477_v5, %v2476_v44 }
 0x27d   :  { %v2675_v30 = vadd.f32 %v2674_v55, %v2673_v38 }
 0x28a   :  { %v9795_v36 = vpop.f32.mrb[0].mxu1 }
 0x28b   :  { %v9797_v60 = vpop.f32.mrb[1].mxu1  ;;  %v2583_v49 = vmul.f32 %v9795_v36, %v9795_v36  ;;  %v2483_v59 = vsel %vm1581_vm4, %v9795_v36, 0.0 }
 0x28c   :  { %v2479_v10 = vsel %vm1581_vm4, %v9797_v60, 0.0  ;;  %v2581_v2 = vmul.f32 %v9797_v60, %v9797_v60  ;;  %v9803_v3 = vpop.f32.mrb[2].mxu1 }
 0x28d   :  { %v2480_v40 = vadd.f32 %v2479_v10, %v2478_v1  ;;  %v9805_v20 = vpop.f32.mrb[3].mxu1  ;;  %v2584_v25 = vmul.f32 %v9803_v3, %v9803_v3  ;;  %v2680_v8 = vsel %vm1581_vm4, %v2583_v49, 0.0  ;;  %v2485_v5 = vsel %vm1581_vm4, %v9803_v3, 0.0 }
 0x28e   :  { %v2676_v50 = vsel %vm1581_vm4, %v2581_v2, 0.0  ;;  %v2481_v29 = vsel %vm1581_vm4, %v9805_v20, 0.0  ;;  %v2582_v7 = vmul.f32 %v9805_v20, %v9805_v20 }
 0x28f   :  { %v2677_v0 = vadd.f32 %v2676_v50, %v2675_v30  ;;  %v2482_v33 = vadd.f32 %v2481_v29, %v2480_v40  ;;  %v2682_v55 = vsel %vm1581_vm4, %v2584_v25, 0.0 }
 0x290   :  { %v2678_v12 = vsel %vm1581_vm4, %v2582_v7, 0.0 }
 0x291   :  { %v2484_v41 = vadd.f32 %v2483_v59, %v2482_v33  ;;  %v2679_v44 = vadd.f32 %v2678_v12, %v2677_v0 }
 0x293   :  { %v2681_v38 = vadd.f32 %v2680_v8, %v2679_v44  ;;  %v2486_v1 = vadd.f32 %v2485_v5, %v2484_v41 }
 0x295   :  { %v2683_v30 = vadd.f32 %v2682_v55, %v2681_v38 }
 0x2a6   :  { %v9823_v10 = vpop.f32.mrb[4].mxu1 }
 0x2a7   :  { %v9825_v2 = vpop.f32.mrb[5].mxu1  ;;  %v2587_v0 = vmul.f32 %v9823_v10, %v9823_v10  ;;  %v2491_v44 = vsel %vm1581_vm4, %v9823_v10, 0.0 }
 0x2a8   :  { %v2487_v40 = vsel %vm1581_vm4, %v9825_v2, 0.0  ;;  %v2585_v50 = vmul.f32 %v9825_v2, %v9825_v2  ;;  %v9831_v29 = vpop.f32.mrb[6].mxu1 }
 0x2a9   :  { %16254 = vst [vmem:[#allocation8_spill] sm:$0xff] %v9831_v29  ;;  %v2488_v49 = vadd.f32 %v2487_v40, %v2486_v1  ;;  %v9833_v7 = vpop.f32.mrb[7].mxu1  ;;  %v2588_v8 = vmul.f32 %v9831_v29, %v9831_v29  ;;  %v2688_v55 = vsel %vm1581_vm4, %v2587_v0, 0.0  ;;  %v2493_v40 = vsel %vm1581_vm4, %v9831_v29, 0.0 }
 0x2aa   :  { %v2684_v33 = vsel %vm1581_vm4, %v2585_v50, 0.0  ;;  %v2489_v59 = vsel %vm1581_vm4, %v9833_v7, 0.0  ;;  %v2586_v25 = vmul.f32 %v9833_v7, %v9833_v7 }
 0x2ab   :  { %v2685_v12 = vadd.f32 %v2684_v33, %v2683_v30  ;;  %v2490_v41 = vadd.f32 %v2489_v59, %v2488_v49  ;;  %v2690_v30 = vsel %vm1581_vm4, %v2588_v8, 0.0 }
 0x2ac   :  { %v2686_v5 = vsel %vm1581_vm4, %v2586_v25, 0.0 }
 0x2ad   :  { %v2492_v38 = vadd.f32 %v2491_v44, %v2490_v41  ;;  %v2687_v1 = vadd.f32 %v2686_v5, %v2685_v12 }
 0x2af   :  { %v2689_v50 = vadd.f32 %v2688_v55, %v2687_v1  ;;  %v2494_v37 = vadd.f32 %v2493_v40, %v2492_v38 }
 0x2b1   :  { %v2691_v49 = vadd.f32 %v2690_v30, %v2689_v50 }
 0x2c2   :  { %v9851_v33 = vpop.f32.mrb[8].mxu1 }
 0x2c3   :  { %16255 = vst [vmem:[#allocation12_spill] sm:$0xff] %v9851_v33  ;;  %v9853_v59 = vpop.f32.mrb[9].mxu1  ;;  %v2591_v44 = vmul.f32 %v9851_v33, %v9851_v33  ;;  %v2499_v40 = vsel %vm1581_vm4, %v9851_v33, 0.0 }
 0x2c4   :  { %16256 = vst [vmem:[#allocation35_spill] sm:$0xff] %v9853_v59  ;;  %v2495_v54 = vsel %vm1581_vm4, %v9853_v59, 0.0  ;;  %v2589_v25 = vmul.f32 %v9853_v59, %v9853_v59  ;;  %v9859_v12 = vpop.f32.mrb[10].mxu1 }
 0x2c5   :  { %16257 = vst [vmem:[#allocation36_spill] sm:$0xff] %v9859_v12  ;;  %v2496_v0 = vadd.f32 %v2495_v54, %v2494_v37  ;;  %v9861_v41 = vpop.f32.mrb[11].mxu1  ;;  %v2592_v54 = vmul.f32 %v9859_v12, %v9859_v12  ;;  %v2501_v23 = vsel %vm1581_vm4, %v9859_v12, 0.0 }
 0x2c6   :  { %16258 = vst [vmem:[#allocation14_spill] sm:$0xff] %v9861_v41  ;;  %v2692_v8 = vsel %vm1581_vm4, %v2589_v25, 0.0  ;;  %v2497_v5 = vsel %vm1581_vm4, %v9861_v41, 0.0  ;;  %v2590_v38 = vmul.f32 %v9861_v41, %v9861_v41  ;;  %v2696_v25 = vsel %vm1581_vm4, %v2591_v44, 0.0 }
 0x2c7   :  { %v2693_v1 = vadd.f32 %v2692_v8, %v2691_v49  ;;  %v2498_v55 = vadd.f32 %v2497_v5, %v2496_v0  ;;  %v2698_v49 = vsel %vm1581_vm4, %v2592_v54, 0.0 }
 0x2c8   :  { %v2694_v37 = vsel %vm1581_vm4, %v2590_v38, 0.0 }
 0x2c9   :  { %v2500_v50 = vadd.f32 %v2499_v40, %v2498_v55  ;;  %v2695_v30 = vadd.f32 %v2694_v37, %v2693_v1 }
 0x2cb   :  { %v2697_v13 = vadd.f32 %v2696_v25, %v2695_v30  ;;  %v2502_v53 = vadd.f32 %v2501_v23, %v2500_v50 }
 0x2cd   :  { %v2699_v0 = vadd.f32 %v2698_v49, %v2697_v13 }
 0x2de   :  { %v9879_v8 = vpop.f32.mrb[12].mxu1 }
 0x2df   :  { %16259 = vst [vmem:[#allocation9_spill] sm:$0xff] %v9879_v8  ;;  %v9881_v5 = vpop.f32.mrb[13].mxu1  ;;  %v2595_v23 = vmul.f32 %v9879_v8, %v9879_v8  ;;  %v2507_v30 = vsel %vm1581_vm4, %v9879_v8, 0.0 }
 0x2e0   :  { %16260 = vst [vmem:[#allocation39_spill] sm:$0xff] %v9881_v5  ;;  %v2503_v32 = vsel %vm1581_vm4, %v9881_v5, 0.0  ;;  %v2593_v38 = vmul.f32 %v9881_v5, %v9881_v5  ;;  %v9887_v1 = vpop.f32.mrb[14].mxu1 }
 0x2e1   :  { %16261 = vst [vmem:[#allocation42_spill] sm:$0xff] %v9887_v1  ;;  %v2504_v44 = vadd.f32 %v2503_v32, %v2502_v53  ;;  %v9889_v55 = vpop.f32.mrb[15].mxu1  ;;  %v2596_v32 = vmul.f32 %v9887_v1, %v9887_v1  ;;  %v2509_v58 = vsel %vm1581_vm4, %v9887_v1, 0.0 }
 0x2e2   :  { %16262 = vst [vmem:[#allocation7_spill] sm:$0xff] %v9889_v55  ;;  %v2700_v13 = vsel %vm1581_vm4, %v2593_v38, 0.0  ;;  %v2505_v40 = vsel %vm1581_vm4, %v9889_v55, 0.0  ;;  %v2594_v54 = vmul.f32 %v9889_v55, %v9889_v55  ;;  %v2704_v38 = vsel %vm1581_vm4, %v2595_v23, 0.0 }
 0x2e3   :  { %v2701_v37 = vadd.f32 %v2700_v13, %v2699_v0  ;;  %v2506_v50 = vadd.f32 %v2505_v40, %v2504_v44  ;;  %v2706_v0 = vsel %vm1581_vm4, %v2596_v32, 0.0 }
 0x2e4   :  { %v2702_v53 = vsel %vm1581_vm4, %v2594_v54, 0.0 }
 0x2e5   :  { %v2508_v25 = vadd.f32 %v2507_v30, %v2506_v50  ;;  %v2703_v49 = vadd.f32 %v2702_v53, %v2701_v37 }
 0x2e7   :  { %v2705_v21 = vadd.f32 %v2704_v38, %v2703_v49  ;;  %v2510_v5 = vadd.f32 %v2509_v58, %v2508_v25 }
 0x2e9   :  { %v2707_v44 = vadd.f32 %v2706_v0, %v2705_v21 }
 0x2fa   :  { %v9907_v13 = vpop.f32.mrb[16].mxu1 }
 0x2fb   :  { %16263 = vst [vmem:[#allocation15_spill] sm:$0xff] %v9907_v13  ;;  %v9909_v40 = vpop.f32.mrb[17].mxu1  ;;  %v2599_v58 = vmul.f32 %v9907_v13, %v9907_v13  ;;  %v2515_v49 = vsel %vm1581_vm4, %v9907_v13, 0.0 }
 0x2fc   :  { %16264 = vst [vmem:[#allocation16_spill] sm:$0xff] %v9909_v40  ;;  %v2511_v8 = vsel %vm1581_vm4, %v9909_v40, 0.0  ;;  %v2597_v54 = vmul.f32 %v9909_v40, %v9909_v40  ;;  %v9915_v37 = vpop.f32.mrb[18].mxu1 }
 0x2fd   :  { %16265 = vst [vmem:[#allocation40_spill] sm:$0xff] %v9915_v37  ;;  %v2512_v23 = vadd.f32 %v2511_v8, %v2510_v5  ;;  %v9917_v50 = vpop.f32.mrb[19].mxu1  ;;  %v2600_v8 = vmul.f32 %v9915_v37, %v9915_v37  ;;  %v2517_v40 = vsel %vm1581_vm4, %v9915_v37, 0.0 }
 0x2fe   :  { %16266 = vst [vmem:[#allocation37_spill] sm:$0xff] %v9917_v50  ;;  %v2708_v21 = vsel %vm1581_vm4, %v2597_v54, 0.0  ;;  %v2513_v30 = vsel %vm1581_vm4, %v9917_v50, 0.0  ;;  %v2598_v32 = vmul.f32 %v9917_v50, %v9917_v50  ;;  %v2712_v54 = vsel %vm1581_vm4, %v2599_v58, 0.0 }
 0x2ff   :  { %v2709_v53 = vadd.f32 %v2708_v21, %v2707_v44  ;;  %v2514_v25 = vadd.f32 %v2513_v30, %v2512_v23  ;;  %v2714_v44 = vsel %vm1581_vm4, %v2600_v8, 0.0  ;;  %v15751_v21 = vmov 0.0  }
 0x300   :  { %v2710_v5 = vsel %vm1581_vm4, %v2598_v32, 0.0  ;;  %v3373_v30 = vrot.slane %v15751_v21, 1 }
 0x301   :  { %v2516_v38 = vadd.f32 %v2515_v49, %v2514_v25  ;;  %v2711_v0 = vadd.f32 %v2710_v5, %v2709_v53 }
 0x302   :  { %v9936_v13 = vpack.c.bf16 %v3373_v30, %v3373_v30 }
 0x303   :  { %v2713_v1 = vadd.f32 %v2712_v54, %v2711_v0  ;;  %v2518_v55 = vadd.f32 %v2517_v40, %v2516_v38 }
 0x304   :  { %16267 = vst [vmem:[#allocation4_spill] sm:$0xff] %v9936_v13  ;;  %3930 = vrot.lane.b32.xlu0 %v9936_v13, %s7483_s14 }
 0x305   :  { %v2715_v23 = vadd.f32 %v2714_v44, %v2713_v1 }
 0x316   :  { %v9940_v32 = vpop.f32.mrb[20].mxu1 }
 0x317   :  { %16268 = vst [vmem:[#allocation61_spill] sm:$0xff] %v9940_v32  ;;  %v9942_v53 = vpop.f32.mrb[21].mxu1  ;;  %v2603_v8 = vmul.f32 %v9940_v32, %v9940_v32  ;;  %v2523_v30 = vsel %vm1581_vm4, %v9940_v32, 0.0 }
 0x318   :  { %16269 = vst [vmem:[#allocation17_spill] sm:$0xff] %v9942_v53  ;;  %v2519_v58 = vsel %vm1581_vm4, %v9942_v53, 0.0  ;;  %v2601_v40 = vmul.f32 %v9942_v53, %v9942_v53  ;;  %v9948_v25 = vpop.f32.mrb[22].mxu1 }
 0x319   :  { %16270 = vst [vmem:[#allocation18_spill] sm:$0xff] %v9948_v25  ;;  %v2520_v1 = vadd.f32 %v2519_v58, %v2518_v55  ;;  %v9950_v49 = vpop.f32.mrb[23].mxu1  ;;  %v2604_v55 = vmul.f32 %v9948_v25, %v9948_v25  ;;  %v2525_v53 = vsel %vm1581_vm4, %v9948_v25, 0.0 }
 0x31a   :  { %16271 = vst [vmem:[#allocation19_spill] sm:$0xff] %v9950_v49  ;;  %v2716_v5 = vsel %vm1581_vm4, %v2601_v40, 0.0  ;;  %v2521_v38 = vsel %vm1581_vm4, %v9950_v49, 0.0  ;;  %v2602_v0 = vmul.f32 %v9950_v49, %v9950_v49  ;;  %v2720_v40 = vsel %vm1581_vm4, %v2603_v8, 0.0 }
 0x31b   :  { %v2717_v54 = vadd.f32 %v2716_v5, %v2715_v23  ;;  %v2522_v44 = vadd.f32 %v2521_v38, %v2520_v1  ;;  %v2722_v23 = vsel %vm1581_vm4, %v2604_v55, 0.0 }
 0x31c   :  { %v2718_v58 = vsel %vm1581_vm4, %v2602_v0, 0.0 }
 0x31d   :  { %v2524_v21 = vadd.f32 %v2523_v30, %v2522_v44  ;;  %v2719_v13 = vadd.f32 %v2718_v58, %v2717_v54 }
 0x31f   :  { %v2721_v37 = vadd.f32 %v2720_v40, %v2719_v13  ;;  %v2526_v50 = vadd.f32 %v2525_v53, %v2524_v21 }
 0x321   :  { %v2723_v1 = vadd.f32 %v2722_v23, %v2721_v37 }
 0x332   :  { %v9968_v5 = vpop.f32.mrb[24].mxu1 }
 0x333   :  { %16272 = vst [vmem:[#allocation20_spill] sm:$0xff] %v9968_v5  ;;  %v9970_v38 = vpop.f32.mrb[25].mxu1  ;;  %v2607_v13 = vmul.f32 %v9968_v5, %v9968_v5  ;;  %v2531_v58 = vsel %vm1581_vm4, %v9968_v5, 0.0 }
 0x334   :  { %16273 = vst [vmem:[#allocation22_spill] sm:$0xff] %v9970_v38  ;;  %v2527_v32 = vsel %vm1581_vm4, %v9970_v38, 0.0  ;;  %v2605_v0 = vmul.f32 %v9970_v38, %v9970_v38  ;;  %v9976_v54 = vpop.f32.mrb[26].mxu1 }
 0x335   :  { %16274 = vst [vmem:[#allocation23_spill] sm:$0xff] %v9976_v54  ;;  %v2528_v8 = vadd.f32 %v2527_v32, %v2526_v50  ;;  %v9978_v44 = vpop.f32.mrb[27].mxu1  ;;  %v2608_v50 = vmul.f32 %v9976_v54, %v9976_v54  ;;  %v2533_v38 = vsel %vm1581_vm4, %v9976_v54, 0.0 }
 0x336   :  { %16275 = vst [vmem:[#allocation24_spill] sm:$0xff] %v9978_v44  ;;  %v2724_v37 = vsel %vm1581_vm4, %v2605_v0, 0.0  ;;  %v2529_v21 = vsel %vm1581_vm4, %v9978_v44, 0.0  ;;  %v2606_v53 = vmul.f32 %v9978_v44, %v9978_v44  ;;  %v2728_v0 = vsel %vm1581_vm4, %v2607_v13, 0.0 }
 0x337   :  { %v2725_v30 = vadd.f32 %v2724_v37, %v2723_v1  ;;  %v2530_v55 = vadd.f32 %v2529_v21, %v2528_v8  ;;  %v2730_v1 = vsel %vm1581_vm4, %v2608_v50, 0.0 }
 0x338   :  { %v2726_v32 = vsel %vm1581_vm4, %v2606_v53, 0.0 }
 0x339   :  { %v2532_v40 = vadd.f32 %v2531_v58, %v2530_v55  ;;  %v2727_v23 = vadd.f32 %v2726_v32, %v2725_v30 }
 0x33b   :  { %v2729_v25 = vadd.f32 %v2728_v0, %v2727_v23  ;;  %v2534_v49 = vadd.f32 %v2533_v38, %v2532_v40 }
 0x33d   :  { %v2731_v8 = vadd.f32 %v2730_v1, %v2729_v25 }
 0x34e   :  { %v9996_v37 = vpop.f32.mrb[28].mxu1 }
 0x34f   :  { %16276 = vst [vmem:[#allocation26_spill] sm:$0xff] %v9996_v37  ;;  %v9998_v21 = vpop.f32.mrb[29].mxu1  ;;  %v2611_v38 = vmul.f32 %v9996_v37, %v9996_v37  ;;  %v2539_v23 = vsel %vm1581_vm4, %v9996_v37, 0.0 }
 0x350   :  { %16277 = vst [vmem:[#allocation27_spill] sm:$0xff] %v9998_v21  ;;  %v2535_v5 = vsel %vm1581_vm4, %v9998_v21, 0.0  ;;  %v2609_v53 = vmul.f32 %v9998_v21, %v9998_v21  ;;  %v10004_v30 = vpop.f32.mrb[30].mxu1 }
 0x351   :  { %16278 = vst [vmem:[#allocation29_spill] sm:$0xff] %v10004_v30  ;;  %v2536_v13 = vadd.f32 %v2535_v5, %v2534_v49  ;;  %v2402_v55 = vpop.f32.mrb[31].mxu1  ;;  %v2612_v0 = vmul.f32 %v10004_v30, %v10004_v30  ;;  %v2736_v21 = vsel %vm1581_vm4, %v2611_v38, 0.0 }
 0x352   :  { %v2732_v58 = vsel %vm1581_vm4, %v2609_v53, 0.0  ;;  %v2537_v25 = vsel %vm1581_vm4, %v2402_v55, 0.0  ;;  %v2610_v50 = vmul.f32 %v2402_v55, %v2402_v55  ;;  %v2541_v53 = vsel %vm1581_vm4, %v10004_v30, 0.0 }
 0x353   :  { %v2733_v32 = vadd.f32 %v2732_v58, %v2731_v8  ;;  %v2538_v40 = vadd.f32 %v2537_v25, %v2536_v13  ;;  %v2738_v8 = vsel %vm1581_vm4, %v2612_v0, 0.0  ;;  %v2757_v0 = vlaneseq }
 0x354   :  { %v2734_v1 = vsel %vm1581_vm4, %v2610_v50, 0.0 }
 0x355   :  { %v2540_v49 = vadd.f32 %v2539_v23, %v2538_v40  ;;  %v2735_v5 = vadd.f32 %v2734_v1, %v2733_v32 }
 0x357   :  { %v2542_v54 = vadd.f32 %v2541_v53, %v2540_v49  ;;  %v2737_v44 = vadd.f32 %v2736_v21, %v2735_v5 }
 0x359   :  { %v2543_v13 = vrot.slane %v2542_v54, 4  ;;  %v2739_v58 = vadd.f32 %v2738_v8, %v2737_v44  ;;  %v2758_v44 = vshrl.u32 %v2757_v0, 7  ;;  %v16286_v0 = vld [vmem:[#allocation39_spill] sm:$0xff] }
 0x35b   :  { %v2544_v25 = vadd.f32 %v2543_v13, %v2542_v54  ;;  %v2740_v37 = vrot.slane %v2739_v58, 4  ;;  %v2414_v54 = vld [vmem:[%s15597_s2] sm:$0x1] }
 0x35d   :  { %v2545_v12 = vrot.slane %v2544_v25, 2  ;;  %v2741_v33 = vadd.f32 %v2740_v37, %v2739_v58 }
 0x35f   :  { %v2546_v41 = vadd.f32 %v2545_v12, %v2544_v25  ;;  %v2742_v59 = vrot.slane %v2741_v33, 2  ;;  %v10022_v12 = vsub.s32 0, %v2758_v44 }
 0x361   :  { %v2547_v50 = vrot.slane %v2546_v41, 1  ;;  %v2743_v40 = vadd.f32 %v2742_v59, %v2741_v33  ;;  %16279 = vst [vmem:[#allocation30_spill] sm:$0xff] %v10022_v12  ;;  %v2415_v59 = vld [vmem:[%s15598_s3] sm:$0x1] }
 0x363   :  { %v2548_v32 = vadd.f32 %v2547_v50, %v2546_v41  ;;  %v2744_v23 = vrot.slane %v2743_v40, 1 }
 0x365   :  { %v2745_v38 = vadd.f32 %v2744_v23, %v2743_v40  ;;  %v2746_v1 = vmul.f32 0.001953125, %v2548_v32 }
 0x367   :  { %v2747_v29 = vmul.f32 0.001953125, %v2745_v38  ;;  %v2748_v30 = vmul.f32 %v2746_v1, %v2746_v1 }
 0x369   :  { %v2749_v49 = vsub.f32 %v2747_v29, %v2748_v30 }
 0x36b   :  { %v2750_v21 = vmax.f32 %v2749_v49, 0.0 }
 0x36d   :  { %v2751_v5 = vadd.f32 1e-05, %v2750_v21  ;;  %v16284_v21 = vld [vmem:[#allocation12_spill] sm:$0xff] }
 0x36f   :  { %7434 = vrsqrt.f32 %v2751_v5  ;;  %v16285_v5 = vld [vmem:[#allocation36_spill] sm:$0xff] }
 0x379   :  { %v7435_v37 = vpop.eup %7434 }
 0x37a   :  { %v2753_v33 = vmul.f32 %v7435_v37, %v2414_v54  ;;  %v16287_v54 = vld [vmem:[#allocation7_spill] sm:$0xff] }
 0x37c   :  { %v2754_v41 = vmul.f32 %v2753_v33, %v2746_v1  ;;  %v10028_v29 = vrot.slane %v2753_v33, %v10022_v12  ;;  %v16288_v33 = vld [vmem:[#allocation9_spill] sm:$0xff] }
 0x37e   :  { %v2755_v30 = vsub.f32 %v2415_v59, %v2754_v41  ;;  %v2823_v53 = vmul.f32 %v10028_v29, %v2402_v55  ;;  %v10033_v8 = vmul.f32 %v10028_v29, %v9295_v57  ;;  %v10037_v13 = vmul.f32 %v10028_v29, %v9307_v31  ;;  %v16289_v41 = vld [vmem:[#allocation42_spill] sm:$0xff] }
 0x37f   :  { %v10041_v58 = vmul.f32 %v9289_v42, %v10028_v29  ;;  %v10045_v25 = vmul.f32 %v9301_v14, %v10028_v29  ;;  %v10049_v50 = vmul.f32 %v10028_v29, %v9406_v24  ;;  %v10053_v57 = vmul.f32 %v10028_v29, %v9428_v17 }
 0x380   :  { %v10056_v55 = vrot.slane %v2755_v30, %v10022_v12  ;;  %v10060_v31 = vmul.f32 %v9397_v22, %v10028_v29  ;;  %v10064_v42 = vmul.f32 %v9417_v45, %v10028_v29  ;;  %v10068_v14 = vmul.f32 %v10028_v29, %v9507_v19  ;;  %v16301_v12 = vld [vmem:[#allocation18_spill] sm:$0xff] }
 0x381   :  { %v10072_v24 = vmul.f32 %v10028_v29, %v9516_v35  ;;  %v10076_v17 = vmul.f32 %v9503_v43, %v10028_v29  ;;  %v10080_v22 = vmul.f32 %v9513_v63, %v10028_v29  ;;  %v10084_v45 = vmul.f32 %v10028_v29, %v9569_v16 }
 0x382   :  { %v2893_v40 = vadd.f32 %v10056_v55, %v2823_v53  ;;  %v10089_v19 = vmul.f32 %v10028_v29, %v9577_v48  ;;  %v10093_v35 = vmul.f32 %v9567_v28, %v10028_v29  ;;  %v10097_v43 = vmul.f32 %v9575_v27, %v10028_v29  ;;  %v16290_v53 = vld [vmem:[#allocation16_spill] sm:$0xff] }
 0x383   :  { %v10101_v63 = vmul.f32 %v10028_v29, %v9619_v56  ;;  %v10105_v16 = vmul.f32 %v10028_v29, %v9627_v46  ;;  %v10109_v48 = vmul.f32 %v9617_v39, %v10028_v29  ;;  %v10113_v28 = vmul.f32 %v9625_v4, %v10028_v29 }
 0x384   :  { %v2957_v32 = vmax.f32 %v2893_v40, 0.0  ;;  %v10117_v27 = vmul.f32 %v10028_v29, %v9668_v11  ;;  %v10121_v56 = vmul.f32 %v10028_v29, %v9677_v9  ;;  %v10125_v46 = vmul.f32 %v9665_v26, %v10028_v29 }
 0x385   :  { %v10129_v39 = vmul.f32 %v9675_v52, %v10028_v29  ;;  %v10133_v4 = vmul.f32 %v10028_v29, %v9712_v15  ;;  %v10137_v11 = vmul.f32 %v10028_v29, %v9726_v6  ;;  %v10141_v9 = vmul.f32 %v9708_v34, %v10028_v29 }
 0x386   :  { %v10145_v26 = vmul.f32 %v9720_v62, %v10028_v29  ;;  %v10149_v52 = vmul.f32 %v10028_v29, %v9759_v61  ;;  %v10153_v15 = vmul.f32 %v10028_v29, %v9771_v51  ;;  %v10157_v6 = vmul.f32 %v9755_v47, %v10028_v29 }
 0x387   :  { %v10161_v34 = vmul.f32 %v9767_v18, %v10028_v29  ;;  %v10165_v62 = vmul.f32 %v10028_v29, %v9797_v60  ;;  %v10169_v61 = vmul.f32 %v10028_v29, %v9805_v20  ;;  %v10173_v51 = vmul.f32 %v9795_v36, %v10028_v29  ;;  %v16281_v36 = vld [vmem:[#allocation8_spill] sm:$0xff] }
 0x388   :  { %v10177_v47 = vmul.f32 %v9803_v3, %v10028_v29  ;;  %v10181_v18 = vmul.f32 %v10028_v29, %v9825_v2  ;;  %v10183_v23 = vrot.slane %v2957_v32, 7  ;;  %v10187_v60 = vmul.f32 %v10028_v29, %v9833_v7  ;;  %v16282_v3 = vld [vmem:[#allocation35_spill] sm:$0xff]  ;;  %v16283_v2 = vld [vmem:[#allocation14_spill] sm:$0xff]  ;;  %v16291_v32 = vld [vmem:[#allocation37_spill] sm:$0xff] }
 0x389   :  { %v10191_v20 = vmul.f32 %v9823_v10, %v10028_v29  ;;  %v10195_v38 = vmul.f32 %v16281_v36, %v10028_v29  ;;  %v10199_v1 = vmul.f32 %v10028_v29, %v16282_v3  ;;  %v10203_v49 = vmul.f32 %v10028_v29, %v16283_v2  ;;  %v16292_v3 = vld [vmem:[#allocation15_spill] sm:$0xff] }
 0x38a   :  { %16280 = vst [vmem:[#allocation31_spill] sm:$0xff] %v10183_v23  ;;  %v10207_v7 = vmul.f32 %v16284_v21, %v10028_v29  ;;  %v10211_v10 = vmul.f32 %v16285_v5, %v10028_v29  ;;  %v10215_v44 = vmul.f32 %v10028_v29, %v16286_v0  ;;  %v10219_v37 = vmul.f32 %v10028_v29, %v16287_v54  ;;  %v16293_v21 = vld [vmem:[#allocation40_spill] sm:$0xff]  ;;  %v16295_v0 = vld [vmem:[#allocation17_spill] sm:$0xff]  ;;  %v16303_v23 = vld [vmem:[#allocation22_spill] sm:$0xff] }
 0x38b   :  { %v10223_v59 = vmul.f32 %v16288_v33, %v10028_v29  ;;  %v10227_v30 = vmul.f32 %v16289_v41, %v10028_v29  ;;  %v10231_v40 = vmul.f32 %v10028_v29, %v16290_v53  ;;  %v10235_v36 = vmul.f32 %v10028_v29, %v16291_v32  ;;  %v16297_v33 = vld [vmem:[#allocation19_spill] sm:$0xff]  ;;  %v16299_v53 = vld [vmem:[#allocation61_spill] sm:$0xff] }
 0x38c   :  { %v10239_v2 = vmul.f32 %v16292_v3, %v10028_v29  ;;  %v10243_v5 = vmul.f32 %v16293_v21, %v10028_v29  ;;  %v10247_v54 = vmul.f32 %v10028_v29, %v16295_v0  ;;  %v10251_v41 = vmul.f32 %v10028_v29, %v16297_v33 }
 0x38d   :  { %v10255_v32 = vmul.f32 %v16299_v53, %v10028_v29  ;;  %v10259_v3 = vmul.f32 %v16301_v12, %v10028_v29  ;;  %v10263_v21 = vmul.f32 %v10028_v29, %v16303_v23 }
 0x38e   :  { %16294 = vst [vmem:[#allocation32_spill] sm:$0xff] %v10243_v5  ;;  %16296 = vst [vmem:[#allocation33_spill] sm:$0xff] %v10247_v54  ;;  %v16305_v5 = vld [vmem:[#allocation24_spill] sm:$0xff] }
 0x38f   :  { %16298 = vst [vmem:[#allocation8_spill] sm:$0xff] %v10251_v41  ;;  %16300 = vst [vmem:[#allocation35_spill] sm:$0xff] %v10255_v32  ;;  %v10267_v0 = vmul.f32 %v10028_v29, %v16305_v5  ;;  %v16306_v54 = vld [vmem:[#allocation20_spill] sm:$0xff]  ;;  %v16307_v41 = vld [vmem:[#allocation23_spill] sm:$0xff] }
 0x390   :  { %16302 = vst [vmem:[#allocation14_spill] sm:$0xff] %v10259_v3  ;;  %16304 = vst [vmem:[#allocation12_spill] sm:$0xff] %v10263_v21  ;;  %v10271_v33 = vmul.f32 %v16306_v54, %v10028_v29  ;;  %v10275_v53 = vmul.f32 %v16307_v41, %v10028_v29  ;;  %v16308_v32 = vld [vmem:[#allocation27_spill] sm:$0xff]  ;;  %v16309_v3 = vld [vmem:[#allocation26_spill] sm:$0xff]  ;;  %v10291_v54 = vadd.f32 %v10056_v55, %v10033_v8 }
 0x391   :  { %v10279_v12 = vmul.f32 %v10028_v29, %v16308_v32  ;;  %v10283_v23 = vmul.f32 %v16309_v3, %v10028_v29  ;;  %v16310_v21 = vld [vmem:[#allocation29_spill] sm:$0xff]  ;;  %v10295_v41 = vadd.f32 %v10056_v55, %v10037_v13  ;;  %v10299_v32 = vadd.f32 %v10056_v55, %v10041_v58 }
 0x392   :  { %v10287_v5 = vmul.f32 %v16310_v21, %v10028_v29  ;;  %v10303_v3 = vadd.f32 %v10056_v55, %v10045_v25  ;;  %v10307_v29 = vadd.f32 %v10056_v55, %v10049_v50  ;;  %v10311_v8 = vadd.f32 %v10056_v55, %v10053_v57 }
 0x393   :  { %v10315_v13 = vadd.f32 %v10056_v55, %v10060_v31  ;;  %v10319_v58 = vadd.f32 %v10056_v55, %v10064_v42  ;;  %v10323_v25 = vadd.f32 %v10056_v55, %v10068_v14  ;;  %v10327_v50 = vadd.f32 %v10056_v55, %v10072_v24 }
 0x394   :  { %v10331_v57 = vadd.f32 %v10056_v55, %v10076_v17  ;;  %v10335_v31 = vadd.f32 %v10056_v55, %v10080_v22  ;;  %v10339_v42 = vadd.f32 %v10056_v55, %v10084_v45  ;;  %v10343_v14 = vadd.f32 %v10056_v55, %v10089_v19 }
 0x395   :  { %v10347_v24 = vadd.f32 %v10056_v55, %v10093_v35  ;;  %v10351_v17 = vadd.f32 %v10056_v55, %v10097_v43  ;;  %v10355_v22 = vadd.f32 %v10056_v55, %v10101_v63  ;;  %v10359_v45 = vadd.f32 %v10056_v55, %v10105_v16  ;;  %v16318_v21 = vld [vmem:[#allocation32_spill] sm:$0xff] }
 0x396   :  { %v10363_v19 = vadd.f32 %v10056_v55, %v10109_v48  ;;  %v10367_v35 = vadd.f32 %v10056_v55, %v10113_v28  ;;  %v10371_v43 = vadd.f32 %v10056_v55, %v10117_v27  ;;  %v10375_v63 = vadd.f32 %v10056_v55, %v10121_v56 }
 0x397   :  { %v10379_v16 = vadd.f32 %v10056_v55, %v10125_v46  ;;  %v10383_v48 = vadd.f32 %v10056_v55, %v10129_v39  ;;  %v10387_v28 = vadd.f32 %v10056_v55, %v10133_v4  ;;  %v10391_v27 = vadd.f32 %v10056_v55, %v10137_v11 }
 0x398   :  { %v10395_v56 = vadd.f32 %v10056_v55, %v10141_v9  ;;  %v10399_v46 = vadd.f32 %v10056_v55, %v10145_v26  ;;  %v10403_v39 = vadd.f32 %v10056_v55, %v10149_v52  ;;  %v10407_v4 = vadd.f32 %v10056_v55, %v10153_v15 }
 0x399   :  { %v10411_v11 = vadd.f32 %v10056_v55, %v10157_v6  ;;  %v10415_v9 = vadd.f32 %v10056_v55, %v10161_v34  ;;  %v10419_v26 = vadd.f32 %v10056_v55, %v10165_v62  ;;  %v10423_v52 = vadd.f32 %v10056_v55, %v10169_v61 }
 0x39a   :  { %v10427_v15 = vadd.f32 %v10056_v55, %v10173_v51  ;;  %v10431_v6 = vadd.f32 %v10056_v55, %v10177_v47  ;;  %v10435_v34 = vadd.f32 %v10056_v55, %v10181_v18  ;;  %v10439_v62 = vadd.f32 %v10056_v55, %v10187_v60 }
 0x39b   :  { %v10443_v61 = vadd.f32 %v10056_v55, %v10191_v20  ;;  %v10447_v51 = vadd.f32 %v10056_v55, %v10195_v38  ;;  %v10451_v47 = vadd.f32 %v10056_v55, %v10199_v1  ;;  %v10455_v18 = vadd.f32 %v10056_v55, %v10203_v49 }
 0x39c   :  { %v10459_v60 = vadd.f32 %v10056_v55, %v10207_v7  ;;  %v10463_v20 = vadd.f32 %v10056_v55, %v10211_v10  ;;  %v10467_v38 = vadd.f32 %v10056_v55, %v10215_v44  ;;  %v10471_v1 = vadd.f32 %v10056_v55, %v10219_v37 }
 0x39d   :  { %16311 = vst [vmem:[#allocation36_spill] sm:$0xff] %v10447_v51  ;;  %16312 = vst [vmem:[#allocation39_spill] sm:$0xff] %v10451_v47  ;;  %v10475_v49 = vadd.f32 %v10056_v55, %v10223_v59  ;;  %v10479_v7 = vadd.f32 %v10056_v55, %v10227_v30  ;;  %v10483_v10 = vadd.f32 %v10056_v55, %v10231_v40 }
 0x39e   :  { %v10487_v44 = vadd.f32 %v10056_v55, %v10235_v36  ;;  %v10491_v37 = vadd.f32 %v10056_v55, %v10239_v2  ;;  %v10495_v59 = vadd.f32 %v10056_v55, %v16318_v21 }
 0x39f   :  { %16313 = vst [vmem:[#allocation7_spill] sm:$0xff] %v10475_v49  ;;  %16314 = vst [vmem:[#allocation9_spill] sm:$0xff] %v10479_v7  ;;  %v16320_v49 = vld [vmem:[#allocation33_spill] sm:$0xff]  ;;  %v16322_v7 = vld [vmem:[#allocation8_spill] sm:$0xff] }
 0x3a0   :  { %16315 = vst [vmem:[#allocation42_spill] sm:$0xff] %v10483_v10  ;;  %16316 = vst [vmem:[#allocation16_spill] sm:$0xff] %v10487_v44  ;;  %v10499_v30 = vadd.f32 %v10056_v55, %v16320_v49  ;;  %v10503_v40 = vadd.f32 %v10056_v55, %v16322_v7  ;;  %v16324_v10 = vld [vmem:[#allocation35_spill] sm:$0xff]  ;;  %v16326_v44 = vld [vmem:[#allocation14_spill] sm:$0xff]  ;;  %v10519_v49 = vadd.f32 %v10056_v55, %v10267_v0 }
 0x3a1   :  { %16317 = vst [vmem:[#allocation37_spill] sm:$0xff] %v10491_v37  ;;  %16319 = vst [vmem:[#allocation15_spill] sm:$0xff] %v10495_v59  ;;  %v10507_v36 = vadd.f32 %v10056_v55, %v16324_v10  ;;  %v10511_v2 = vadd.f32 %v10056_v55, %v16326_v44  ;;  %v16328_v37 = vld [vmem:[#allocation12_spill] sm:$0xff]  ;;  %v10523_v7 = vadd.f32 %v10056_v55, %v10271_v33  ;;  %v2899_v33 = vmax.f32 %v10303_v3, 0.0 }
 0x3a2   :  { %16321 = vst [vmem:[#allocation40_spill] sm:$0xff] %v10499_v30  ;;  %16323 = vst [vmem:[#allocation17_spill] sm:$0xff] %v10503_v40  ;;  %v10515_v21 = vadd.f32 %v10056_v55, %v16328_v37  ;;  %v10527_v10 = vadd.f32 %v10056_v55, %v10275_v53  ;;  %v10531_v44 = vadd.f32 %v10056_v55, %v10279_v12 }
 0x3a3   :  { %16325 = vst [vmem:[#allocation19_spill] sm:$0xff] %v10507_v36  ;;  %16327 = vst [vmem:[#allocation61_spill] sm:$0xff] %v10511_v2  ;;  %v10535_v37 = vadd.f32 %v10056_v55, %v10283_v23  ;;  %v10539_v0 = vadd.f32 %v10056_v55, %v10287_v5  ;;  %v3029_v53 = vrot.slane %v2899_v33, 7 }
 0x3a4   :  { %16329 = vst [vmem:[#allocation18_spill] sm:$0xff] %v10515_v21  ;;  %16330 = vst [vmem:[#allocation22_spill] sm:$0xff] %v10519_v49  ;;  %v2898_v49 = vmax.f32 %v10299_v32, 0.0 }
 0x3a5   :  { %16331 = vst [vmem:[#allocation24_spill] sm:$0xff] %v10523_v7  ;;  %16332 = vst [vmem:[#allocation20_spill] sm:$0xff] %v10527_v10  ;;  %v16336_v10 = vld [vmem:[#allocation31_spill] sm:$0xff]  ;;  %v10554_v55 = vsel %vm3024_vm12, %v3029_v53, 0.0 }
 0x3a6   :  { %16333 = vst [vmem:[#allocation23_spill] sm:$0xff] %v10531_v44  ;;  %16334 = vst [vmem:[#allocation27_spill] sm:$0xff] %v10535_v37  ;;  %v3028_v7 = vrot.slane %v2898_v49, 7  ;;  %v10545_v21 = vsel %vm3024_vm12, %v16336_v10, 0.0  ;;  %v3383_v3 = vrot.slane %v10554_v55, 1  ;;  %v2896_v10 = vmax.f32 %v10291_v54, 0.0 }
 0x3a7   :  { %16335 = vst [vmem:[#allocation26_spill] sm:$0xff] %v10539_v0  ;;  %16337 = vst [vmem:[#allocation29_spill] sm:$0xff] %v10545_v21  ;;  %v2897_v0 = vmax.f32 %v10295_v41, 0.0  ;;  %v16359_v49 = vmax.f32 %v10307_v29, 0.0  ;;  %v16364_v29 = vmax.f32 %v10327_v50, 0.0  ;;  %v16369_v50 = vmax.f32 %v10347_v24, 0.0 }
 0x3a8   :  { %v10548_v12 = vsel %vm3024_vm12, 0.0, %v3028_v7  ;;  %v10551_v23 = vsel %vm3024_vm12, %v3028_v7, %v3029_v53  ;;  %16340 = vst [vmem:[#allocation8_spill] sm:$0xff] %v10554_v55  ;;  %v16343_v53 = vld [vmem:[#allocation9_spill] sm:$0xff]  ;;  %v3025_v21 = vrot.slane %v2896_v10, 7  ;;  %v16374_v24 = vmax.f32 %v10367_v35, 0.0 }
 0x3a9   :  { %16338 = vst [vmem:[#allocation32_spill] sm:$0xff] %v10548_v12  ;;  %16339 = vst [vmem:[#allocation33_spill] sm:$0xff] %v10551_v23  ;;  %v3380_v5 = vrot.slane %v10548_v12, 1  ;;  %v3381_v32 = vrot.slane %v10551_v23, 1  ;;  %v16342_v12 = vld [vmem:[#allocation7_spill] sm:$0xff]  ;;  %v10648_v40 = vrot.slane %v16359_v49, 7 }
 0x3aa   :  { %v16379_v35 = vmax.f32 %v10387_v28, 0.0  ;;  %v16384_v28 = vmax.f32 %v10407_v4, 0.0  ;;  %v16391_v4 = vmax.f32 %v10427_v15, 0.0 }
 0x3ab   :  { %v3382_v7 = vsel %vm240_vm0, %v3380_v5, %v3381_v32  ;;  %v3384_v37 = vsel %vm240_vm0, %v3381_v32, %v3383_v3  ;;  %v3026_v32 = vrot.slane %v2897_v0, 7  ;;  %v16351_v33 = vld [vmem:[#allocation22_spill] sm:$0xff]  ;;  %v16360_v5 = vmax.f32 %v10311_v8, 0.0 }
 0x3ac   :  { %v10567_v44 = vpack.c.bf16 %v3384_v37, %v3382_v7  ;;  %v10620_v7 = vsel %vm3024_vm12, 0.0, %v3025_v21  ;;  %v16352_v30 = vld [vmem:[#allocation24_spill] sm:$0xff]  ;;  %v16365_v8 = vmax.f32 %v10331_v57, 0.0  ;;  %v16370_v57 = vmax.f32 %v10351_v17, 0.0 }
 0x3ad   :  { %16347 = vst [vmem:[#allocation14_spill] sm:$0xff] %v10620_v7  ;;  %v10624_v10 = vsel %vm3024_vm12, %v3025_v21, %v3026_v32  ;;  %v3375_v47 = vrot.slane %v10620_v7, 1  ;;  %v16353_v36 = vld [vmem:[#allocation20_spill] sm:$0xff]  ;;  %v16354_v59 = vld [vmem:[#allocation23_spill] sm:$0xff]  ;;  %v10652_v21 = vrot.slane %v16360_v5, 7  ;;  %v16361_v7 = vmax.f32 %v10315_v13, 0.0 }
 0x3ae   :  { %16341 = vst [vmem:[#allocation35_spill] sm:$0xff] %v10567_v44  ;;  %3934 = vrot.lane.b32.xlu0 %v10567_v44, %s7483_s14  ;;  %16348 = vst [vmem:[#allocation12_spill] sm:$0xff] %v10624_v10  ;;  %v10627_v44 = vsel %vm3024_vm12, %v3026_v32, 0.0  ;;  %v3376_v37 = vrot.slane %v10624_v10, 1  ;;  %v16355_v32 = vld [vmem:[#allocation27_spill] sm:$0xff]  ;;  %v16356_v54 = vld [vmem:[#allocation26_spill] sm:$0xff] }
 0x3af   :  { %16349 = vst [vmem:[#allocation7_spill] sm:$0xff] %v10627_v44  ;;  %v3378_v3 = vrot.slane %v10627_v44, 1  ;;  %v3034_v41 = vrot.slane %v16361_v7, 7  ;;  %v10670_v49 = vrot.slane %v16365_v8, 7  ;;  %v16366_v13 = vmax.f32 %v10335_v31, 0.0 }
 0x3b0   :  { %v3377_v0 = vsel %vm240_vm0, %v3375_v47, %v3376_v37  ;;  %v16362_v47 = vmax.f32 %v10319_v58, 0.0  ;;  %v16367_v58 = vmax.f32 %v10339_v42, 0.0  ;;  %v16368_v7 = vmax.f32 %v10343_v14, 0.0 }
 0x3b1   :  { %v3379_v51 = vsel %vm240_vm0, %v3376_v37, %v3378_v3  ;;  %v16363_v3 = vmax.f32 %v10323_v25, 0.0  ;;  %v10674_v5 = vrot.slane %v16366_v13, 7  ;;  %v16371_v31 = vmax.f32 %v10355_v22, 0.0 }
 0x3b2   :  { %v10644_v2 = vpack.c.bf16 %v3379_v51, %v3377_v0  ;;  %v3035_v37 = vrot.slane %v16362_v47, 7  ;;  %v10666_v51 = vrot.slane %v16364_v29, 7  ;;  %v10678_v25 = vrot.slane %v16367_v58, 7 }
 0x3b3   :  { %v10660_v10 = vrot.slane %v16363_v3, 7  ;;  %v10682_v0 = vrot.slane %v16368_v7, 7  ;;  %v10686_v47 = vrot.slane %v16369_v50, 7  ;;  %v10690_v3 = vrot.slane %v16370_v57, 7 }
 0x3b4   :  { %16358 = vst [vmem:[#allocation9_spill] sm:$0xff] %v10644_v2  ;;  %3932 = vrot.lane.b32.xlu1 %v10644_v2, %s7483_s14  ;;  %v10694_v29 = vrot.slane %v16371_v31, 7  ;;  %v16372_v42 = vmax.f32 %v10359_v45, 0.0  ;;  %v16373_v14 = vmax.f32 %v10363_v19, 0.0  ;;  %v10706_v58 = vrot.slane %v16374_v24, 7 }
 0x3b5   :  { %v16375_v17 = vmax.f32 %v10371_v43, 0.0  ;;  %v16376_v22 = vmax.f32 %v10375_v63, 0.0  ;;  %v16377_v45 = vmax.f32 %v10379_v16, 0.0  ;;  %v16378_v19 = vmax.f32 %v10383_v48, 0.0 }
 0x3b6   :  { %v10698_v8 = vrot.slane %v16372_v42, 7  ;;  %v10702_v13 = vrot.slane %v16373_v14, 7  ;;  %v10726_v42 = vrot.slane %v16379_v35, 7  ;;  %v16380_v43 = vmax.f32 %v10391_v27, 0.0 }
 0x3b7   :  { %v10710_v7 = vrot.slane %v16375_v17, 7  ;;  %v10714_v50 = vrot.slane %v16376_v22, 7  ;;  %v10718_v57 = vrot.slane %v16377_v45, 7  ;;  %v10722_v31 = vrot.slane %v16378_v19, 7 }
 0x3b8   :  { %v10730_v14 = vrot.slane %v16380_v43, 7  ;;  %v16381_v63 = vmax.f32 %v10395_v56, 0.0  ;;  %v16382_v16 = vmax.f32 %v10399_v46, 0.0  ;;  %v16383_v48 = vmax.f32 %v10403_v39, 0.0 }
 0x3b9   :  { %v10746_v45 = vrot.slane %v16384_v28, 7  ;;  %v16385_v27 = vmax.f32 %v10411_v11, 0.0  ;;  %v16387_v56 = vmax.f32 %v10415_v9, 0.0  ;;  %v16389_v46 = vmax.f32 %v10419_v26, 0.0 }
 0x3ba   :  { %v10734_v24 = vrot.slane %v16381_v63, 7  ;;  %v10738_v17 = vrot.slane %v16382_v16, 7  ;;  %v10742_v22 = vrot.slane %v16383_v48, 7  ;;  %v16390_v39 = vmax.f32 %v10423_v52, 0.0 }
 0x3bb   :  { %v10750_v19 = vrot.slane %v16385_v27, 7  ;;  %v10754_v35 = vrot.slane %v16387_v56, 7  ;;  %v10758_v43 = vrot.slane %v16389_v46, 7  ;;  %v10766_v16 = vrot.slane %v16391_v4, 7  ;;  %v16396_v46 = vld [vmem:[#allocation36_spill] sm:$0xff]  ;;  %v16398_v4 = vld [vmem:[#allocation39_spill] sm:$0xff] }
 0x3bc   :  { %v10762_v63 = vrot.slane %v16390_v39, 7  ;;  %v16392_v11 = vmax.f32 %v10431_v6, 0.0  ;;  %v16393_v9 = vmax.f32 %v10435_v34, 0.0  ;;  %v16394_v26 = vmax.f32 %v10439_v62, 0.0 }
 0x3bd   :  { %16386 = vst [vmem:[#allocation22_spill] sm:$0xff] %v10750_v19  ;;  %16388 = vst [vmem:[#allocation24_spill] sm:$0xff] %v10754_v35  ;;  %v16395_v52 = vmax.f32 %v10443_v61, 0.0  ;;  %v16397_v15 = vmax.f32 %v16396_v46, 0.0  ;;  %v16399_v6 = vmax.f32 %v16398_v4, 0.0  ;;  %v16400_v34 = vmax.f32 %v10455_v18, 0.0 }
 0x3be   :  { %v10770_v48 = vrot.slane %v16392_v11, 7  ;;  %v10774_v28 = vrot.slane %v16393_v9, 7  ;;  %v10778_v27 = vrot.slane %v16394_v26, 7  ;;  %v16401_v62 = vmax.f32 %v10459_v60, 0.0 }
 0x3bf   :  { %v10782_v56 = vrot.slane %v16395_v52, 7  ;;  %v10786_v39 = vrot.slane %v16397_v15, 7  ;;  %v10790_v11 = vrot.slane %v16399_v6, 7  ;;  %v10794_v9 = vrot.slane %v16400_v34, 7 }
 0x3c0   :  { %v10798_v26 = vrot.slane %v16401_v62, 7  ;;  %v16402_v61 = vmax.f32 %v10463_v20, 0.0  ;;  %v16404_v46 = vmax.f32 %v10467_v38, 0.0  ;;  %v16405_v4 = vmax.f32 %v10471_v1, 0.0 }
 0x3c1   :  { %v16407_v18 = vmax.f32 %v16342_v12, 0.0  ;;  %v16408_v60 = vmax.f32 %v16343_v53, 0.0  ;;  %v10821_v20 = vsel %vm3024_vm12, %v3034_v41, %v3035_v37  ;;  %v10827_v38 = vsel %vm3024_vm12, %v3035_v37, 0.0 }
 0x3c2   :  { %v10802_v52 = vrot.slane %v16402_v61, 7  ;;  %v10806_v15 = vrot.slane %v16404_v46, 7  ;;  %v10810_v6 = vrot.slane %v16405_v4, 7  ;;  %16410 = vst [vmem:[#allocation26_spill] sm:$0xff] %v10821_v20  ;;  %v10824_v61 = vsel %vm3024_vm12, 0.0, %v3034_v41  ;;  %16412 = vst [vmem:[#allocation39_spill] sm:$0xff] %v10827_v38 }
 0x3c3   :  { %v10814_v34 = vrot.slane %v16407_v18, 7  ;;  %v10818_v62 = vrot.slane %v16408_v60, 7  ;;  %16411 = vst [vmem:[#allocation36_spill] sm:$0xff] %v10824_v61  ;;  %v3391_v1 = vrot.slane %v10821_v20, 1  ;;  %v10833_v12 = vsel %vm3024_vm12, %v10648_v40, %v10652_v21 }
 0x3c4   :  { %16403 = vst [vmem:[#allocation20_spill] sm:$0xff] %v10802_v52  ;;  %16406 = vst [vmem:[#allocation23_spill] sm:$0xff] %v10810_v6  ;;  %v3390_v53 = vrot.slane %v10824_v61, 1  ;;  %v3393_v46 = vrot.slane %v10827_v38, 1  ;;  %v10840_v4 = vsel %vm3024_vm12, %v10660_v10, %v10666_v51  ;;  %v10845_v41 = vsel %vm3024_vm12, %v10670_v49, %v10674_v5 }
 0x3c5   :  { %16409 = vst [vmem:[#allocation27_spill] sm:$0xff] %v10818_v62  ;;  %16413 = vst [vmem:[#allocation62_spill] sm:$0xff] %v10833_v12  ;;  %v10850_v37 = vsel %vm3024_vm12, %v10678_v25, %v10682_v0  ;;  %v10855_v18 = vsel %vm3024_vm12, %v10686_v47, %v10690_v3  ;;  %v10860_v60 = vsel %vm3024_vm12, %v10694_v29, %v10698_v8 }
 0x3c6   :  { %16414 = vst [vmem:[#allocation63_spill] sm:$0xff] %v10840_v4  ;;  %16415 = vst [vmem:[#allocation64_spill] sm:$0xff] %v10845_v41  ;;  %v10865_v44 = vsel %vm3024_vm12, %v10702_v13, %v10706_v58  ;;  %v3392_v38 = vsel %vm240_vm0, %v3390_v53, %v3391_v1  ;;  %v3394_v20 = vsel %vm240_vm0, %v3391_v1, %v3393_v46  ;;  %v16446_v4 = vld [vmem:[#allocation40_spill] sm:$0xff] }
 0x3c7   :  { %16416 = vst [vmem:[#allocation65_spill] sm:$0xff] %v10850_v37  ;;  %16417 = vst [vmem:[#allocation66_spill] sm:$0xff] %v10855_v18  ;;  %v10872_v61 = vsel %vm3024_vm12, %v10710_v7, %v10714_v50  ;;  %v10877_v2 = vsel %vm3024_vm12, %v10718_v57, %v10722_v31  ;;  %v10879_v55 = vpack.c.bf16 %v3394_v20, %v3392_v38  ;;  %v16443_v37 = vld [vmem:[#allocation15_spill] sm:$0xff]  ;;  %v16447_v41 = vmax.f32 %v16446_v4, 0.0 }
 0x3c8   :  { %16418 = vst [vmem:[#allocation67_spill] sm:$0xff] %v10860_v60  ;;  %16419 = vst [vmem:[#allocation68_spill] sm:$0xff] %v10865_v44  ;;  %v10884_v23 = vsel %vm3024_vm12, %v10726_v42, %v10730_v14  ;;  %v10889_v1 = vsel %vm3024_vm12, %v10734_v24, %v10738_v17  ;;  %v10894_v53 = vsel %vm3024_vm12, %v10742_v22, %v10746_v45  ;;  %v16440_v60 = vld [vmem:[#allocation37_spill] sm:$0xff]  ;;  %v16444_v18 = vmax.f32 %v16443_v37, 0.0 }
 0x3c9   :  { %16420 = vst [vmem:[#allocation69_spill] sm:$0xff] %v10872_v61  ;;  %16421 = vst [vmem:[#allocation70_spill] sm:$0xff] %v10877_v2  ;;  %v10899_v20 = vsel %vm3024_vm12, %v10758_v43, %v10762_v63  ;;  %v10904_v38 = vsel %vm3024_vm12, %v10766_v16, %v10770_v48  ;;  %v10909_v46 = vsel %vm3024_vm12, %v10774_v28, %v10778_v27  ;;  %3938 = vrot.lane.b32.xlu0 %v10879_v55, %s7483_s14 }
 0x3ca   :  { %16422 = vst [vmem:[#allocation71_spill] sm:$0xff] %v10879_v55  ;;  %16423 = vst [vmem:[#allocation72_spill] sm:$0xff] %v10884_v23  ;;  %v10914_v23 = vsel %vm3024_vm12, %v10782_v56, %v10786_v39  ;;  %v16434_v55 = vld [vmem:[#allocation42_spill] sm:$0xff]  ;;  %v16461_v4 = vmax.f32 %v16351_v33, 0.0  ;;  %v16471_v33 = vmax.f32 %v16356_v54, 0.0  ;;  %v11014_v54 = vsel %vm3024_vm12, 0.0, %v10678_v25 }
 0x3cb   :  { %16424 = vst [vmem:[#allocation73_spill] sm:$0xff] %v10889_v1  ;;  %16425 = vst [vmem:[#allocation74_spill] sm:$0xff] %v10894_v53  ;;  %v10921_v53 = vsel %vm3024_vm12, %v10790_v11, %v10794_v9  ;;  %v11034_v25 = vsel %vm3024_vm12, 0.0, %v10718_v57  ;;  %v11054_v57 = vsel %vm3024_vm12, 0.0, %v10758_v43  ;;  %v11074_v43 = vsel %vm3024_vm12, 0.0, %v10798_v26 }
 0x3cc   :  { %16426 = vst [vmem:[#allocation75_spill] sm:$0xff] %v10899_v20  ;;  %16427 = vst [vmem:[#allocation76_spill] sm:$0xff] %v10904_v38  ;;  %v10926_v38 = vsel %vm3024_vm12, %v10798_v26, %v10802_v52  ;;  %v16435_v20 = vmax.f32 %v16434_v55, 0.0  ;;  %v16458_v52 = vld [vmem:[#allocation18_spill] sm:$0xff] }
 0x3cd   :  { %16428 = vst [vmem:[#allocation77_spill] sm:$0xff] %v10909_v46  ;;  %16429 = vst [vmem:[#allocation78_spill] sm:$0xff] %v10914_v23  ;;  %v10931_v46 = vsel %vm3024_vm12, %v10806_v15, %v10810_v6  ;;  %v10936_v23 = vsel %vm3024_vm12, %v10814_v34, %v10818_v62  ;;  %v10956_v62 = vrot.slane %v16447_v41, 7  ;;  %v16452_v6 = vld [vmem:[#allocation19_spill] sm:$0xff]  ;;  %v16459_v37 = vmax.f32 %v16458_v52, 0.0 }
 0x3ce   :  { %16430 = vst [vmem:[#allocation79_spill] sm:$0xff] %v10921_v53  ;;  %16431 = vst [vmem:[#allocation80_spill] sm:$0xff] %v10926_v38  ;;  %v10940_v1 = vrot.slane %v16435_v20, 7  ;;  %v16437_v53 = vld [vmem:[#allocation16_spill] sm:$0xff]  ;;  %v16441_v38 = vmax.f32 %v16440_v60, 0.0  ;;  %v10976_v41 = vrot.slane %v16461_v4, 7 }
 0x3cf   :  { %16432 = vst [vmem:[#allocation81_spill] sm:$0xff] %v10931_v46  ;;  %16433 = vst [vmem:[#allocation82_spill] sm:$0xff] %v10936_v23  ;;  %v16438_v61 = vmax.f32 %v16437_v53, 0.0  ;;  %v10952_v46 = vrot.slane %v16444_v18, 7  ;;  %v16449_v23 = vld [vmem:[#allocation17_spill] sm:$0xff]  ;;  %v16453_v53 = vmax.f32 %v16452_v6, 0.0 }
 0x3d0   :  { %16436 = vst [vmem:[#allocation42_spill] sm:$0xff] %v10940_v1  ;;  %v10948_v44 = vrot.slane %v16441_v38, 7  ;;  %16448 = vst [vmem:[#allocation40_spill] sm:$0xff] %v10956_v62  ;;  %v16450_v55 = vmax.f32 %v16449_v23, 0.0  ;;  %v10972_v18 = vrot.slane %v16459_v37, 7  ;;  %v16463_v23 = vmax.f32 %v16352_v30, 0.0 }
 0x3d1   :  { %v10944_v2 = vrot.slane %v16438_v61, 7  ;;  %16445 = vst [vmem:[#allocation15_spill] sm:$0xff] %v10952_v46  ;;  %v10964_v61 = vrot.slane %v16453_v53, 7  ;;  %16462 = vst [vmem:[#allocation83_spill] sm:$0xff] %v10976_v41  ;;  %v16465_v6 = vmax.f32 %v16353_v36, 0.0  ;;  %v16469_v52 = vmax.f32 %v16355_v32, 0.0 }
 0x3d2   :  { %16442 = vst [vmem:[#allocation37_spill] sm:$0xff] %v10948_v44  ;;  %v10960_v20 = vrot.slane %v16450_v55, 7  ;;  %16460 = vst [vmem:[#allocation18_spill] sm:$0xff] %v10972_v18  ;;  %v10980_v55 = vrot.slane %v16463_v23, 7  ;;  %v10996_v4 = vrot.slane %v16471_v33, 7  ;;  %v11002_v36 = vsel %vm3024_vm12, 0.0, %v10648_v40 }
 0x3d3   :  { %16439 = vst [vmem:[#allocation16_spill] sm:$0xff] %v10944_v2  ;;  %16454 = vst [vmem:[#allocation19_spill] sm:$0xff] %v10964_v61  ;;  %v16455_v2 = vld [vmem:[#allocation61_spill] sm:$0xff]  ;;  %v10984_v53 = vrot.slane %v16465_v6, 7  ;;  %v10992_v37 = vrot.slane %v16469_v52, 7  ;;  %v11010_v32 = vsel %vm3024_vm12, 0.0, %v10670_v49 }
 0x3d4   :  { %16451 = vst [vmem:[#allocation17_spill] sm:$0xff] %v10960_v20  ;;  %v16456_v60 = vmax.f32 %v16455_v2, 0.0  ;;  %16464 = vst [vmem:[#allocation84_spill] sm:$0xff] %v10980_v55  ;;  %v16467_v2 = vmax.f32 %v16354_v59, 0.0  ;;  %v11006_v59 = vsel %vm3024_vm12, 0.0, %v10660_v10  ;;  %v11018_v6 = vsel %vm3024_vm12, 0.0, %v10686_v47 }
 0x3d5   :  { %16466 = vst [vmem:[#allocation85_spill] sm:$0xff] %v10984_v53  ;;  %16470 = vst [vmem:[#allocation87_spill] sm:$0xff] %v10992_v37  ;;  %v11022_v40 = vsel %vm3024_vm12, 0.0, %v10694_v29  ;;  %v11026_v10 = vsel %vm3024_vm12, 0.0, %v10702_v13  ;;  %v11030_v49 = vsel %vm3024_vm12, 0.0, %v10710_v7  ;;  %v11038_v47 = vsel %vm3024_vm12, 0.0, %v10726_v42 }
 0x3d6   :  { %v10968_v38 = vrot.slane %v16456_v60, 7  ;;  %v10988_v60 = vrot.slane %v16467_v2, 7  ;;  %16472 = vst [vmem:[#allocation88_spill] sm:$0xff] %v10996_v4  ;;  %16475 = vst [vmem:[#allocation89_spill] sm:$0xff] %v11002_v36  ;;  %v11042_v29 = vsel %vm3024_vm12, 0.0, %v10734_v24  ;;  %v11046_v13 = vsel %vm3024_vm12, 0.0, %v10742_v22 }
 0x3d7   :  { %v11050_v7 = vsel %vm3024_vm12, 0.0, %v10750_v19  ;;  %v11058_v42 = vsel %vm3024_vm12, 0.0, %v10766_v16  ;;  %v11062_v24 = vsel %vm3024_vm12, 0.0, %v10774_v28  ;;  %v11066_v22 = vsel %vm3024_vm12, 0.0, %v10782_v56 }
 0x3d8   :  { %16457 = vst [vmem:[#allocation61_spill] sm:$0xff] %v10968_v38  ;;  %16468 = vst [vmem:[#allocation86_spill] sm:$0xff] %v10988_v60  ;;  %v11070_v2 = vsel %vm3024_vm12, 0.0, %v10790_v11  ;;  %v11078_v16 = vsel %vm3024_vm12, 0.0, %v10806_v15  ;;  %v11082_v28 = vsel %vm3024_vm12, 0.0, %v10814_v34  ;;  %v11086_v56 = vsel %vm3024_vm12, 0.0, %v10940_v1 }
 0x3d9   :  { %16476 = vst [vmem:[#allocation90_spill] sm:$0xff] %v11050_v7  ;;  %16477 = vst [vmem:[#allocation91_spill] sm:$0xff] %v11086_v56  ;;  %v11090_v11 = vsel %vm3024_vm12, 0.0, %v10948_v44  ;;  %v11094_v26 = vsel %vm3024_vm12, 0.0, %v10956_v62  ;;  %v11098_v15 = vsel %vm3024_vm12, 0.0, %v10964_v61  ;;  %v11102_v34 = vsel %vm3024_vm12, 0.0, %v10972_v18 }
 0x3da   :  { %16478 = vst [vmem:[#allocation92_spill] sm:$0xff] %v11090_v11  ;;  %16479 = vst [vmem:[#allocation93_spill] sm:$0xff] %v11094_v26  ;;  %v11106_v52 = vsel %vm3024_vm12, 0.0, %v10980_v55  ;;  %v11110_v33 = vsel %vm3024_vm12, 0.0, %v10988_v60  ;;  %v11114_v38 = vsel %vm3024_vm12, 0.0, %v10992_v37  ;;  %v11118_v30 = vsel %vm3024_vm12, %v10652_v21, 0.0 }
 0x3db   :  { %16480 = vst [vmem:[#allocation94_spill] sm:$0xff] %v11098_v15  ;;  %16481 = vst [vmem:[#allocation95_spill] sm:$0xff] %v11102_v34  ;;  %v11122_v18 = vsel %vm3024_vm12, %v10666_v51, 0.0  ;;  %v11126_v55 = vsel %vm3024_vm12, %v10674_v5, 0.0  ;;  %v11130_v60 = vsel %vm3024_vm12, %v10682_v0, 0.0  ;;  %v11134_v37 = vsel %vm3024_vm12, %v10690_v3, 0.0 }
 0x3dc   :  { %16482 = vst [vmem:[#allocation96_spill] sm:$0xff] %v11106_v52  ;;  %16483 = vst [vmem:[#allocation97_spill] sm:$0xff] %v11110_v33  ;;  %v11138_v21 = vsel %vm3024_vm12, %v10698_v8, 0.0  ;;  %v11142_v51 = vsel %vm3024_vm12, %v10706_v58, 0.0  ;;  %v11146_v5 = vsel %vm3024_vm12, %v10714_v50, 0.0  ;;  %v11150_v0 = vsel %vm3024_vm12, %v10722_v31, 0.0 }
 0x3dd   :  { %16484 = vst [vmem:[#allocation98_spill] sm:$0xff] %v11114_v38  ;;  %16485 = vst [vmem:[#allocation99_spill] sm:$0xff] %v11118_v30  ;;  %v11154_v3 = vsel %vm3024_vm12, %v10730_v14, 0.0  ;;  %v11158_v8 = vsel %vm3024_vm12, %v10738_v17, 0.0  ;;  %v11162_v58 = vsel %vm3024_vm12, %v10746_v45, 0.0  ;;  %v11166_v50 = vsel %vm3024_vm12, %v10754_v35, 0.0 }
 0x3de   :  { %16486 = vst [vmem:[#allocation100_spill] sm:$0xff] %v11126_v55  ;;  %16487 = vst [vmem:[#allocation101_spill] sm:$0xff] %v11134_v37  ;;  %v3385_v61 = vrot.slane %v11002_v36, 1  ;;  %v11171_v31 = vsel %vm3024_vm12, %v10762_v63, 0.0  ;;  %v11175_v14 = vsel %vm3024_vm12, %v10770_v48, 0.0  ;;  %v3386_v17 = vrot.slane %v10833_v12, 1 }
 0x3df   :  { %16488 = vst [vmem:[#allocation102_spill] sm:$0xff] %v11138_v21  ;;  %16489 = vst [vmem:[#allocation103_spill] sm:$0xff] %v11142_v51  ;;  %v3388_v62 = vrot.slane %v11118_v30, 1  ;;  %v11181_v45 = vsel %vm3024_vm12, %v10778_v27, 0.0  ;;  %v11185_v44 = vsel %vm3024_vm12, %v10786_v39, 0.0  ;;  %v11189_v63 = vsel %vm3024_vm12, %v10794_v9, 0.0 }
 0x3e0   :  { %16490 = vst [vmem:[#allocation104_spill] sm:$0xff] %v11146_v5  ;;  %16491 = vst [vmem:[#allocation105_spill] sm:$0xff] %v11150_v0  ;;  %v16497_v38 = vld [vmem:[#allocation20_spill] sm:$0xff]  ;;  %v16498_v1 = vld [vmem:[#allocation23_spill] sm:$0xff]  ;;  %v3387_v23 = vsel %vm240_vm0, %v3385_v61, %v3386_v17  ;;  %v16523_v11 = vrot.slane %v11122_v18, 1  ;;  %v16586_v34 = vmov 0.0  }
 0x3e1   :  { %16492 = vst [vmem:[#allocation106_spill] sm:$0xff] %v11154_v3  ;;  %16493 = vst [vmem:[#allocation107_spill] sm:$0xff] %v11158_v8  ;;  %v11193_v48 = vsel %vm3024_vm12, %v16497_v38, 0.0  ;;  %v11197_v19 = vsel %vm3024_vm12, %v16498_v1, 0.0  ;;  %v16500_v35 = vld [vmem:[#allocation27_spill] sm:$0xff]  ;;  %v3389_v39 = vsel %vm240_vm0, %v3386_v17, %v3388_v62  ;;  %v16502_v41 = vld [vmem:[#allocation16_spill] sm:$0xff] }
 0x3e2   :  { %16494 = vst [vmem:[#allocation108_spill] sm:$0xff] %v11166_v50  ;;  %16495 = vst [vmem:[#allocation109_spill] sm:$0xff] %v11181_v45  ;;  %v11201_v27 = vsel %vm3024_vm12, %v16500_v35, 0.0  ;;  %v11207_v9 = vsel %vm3024_vm12, %v16502_v41, 0.0  ;;  %v11211_v38 = vsel %vm3024_vm12, %v10952_v46, 0.0  ;;  %v11215_v1 = vsel %vm3024_vm12, %v10960_v20, 0.0 }
 0x3e3   :  { %16496 = vst [vmem:[#allocation110_spill] sm:$0xff] %v11189_v63  ;;  %16499 = vst [vmem:[#allocation20_spill] sm:$0xff] %v11197_v19  ;;  %v11217_v50 = vpack.c.bf16 %v3389_v39, %v3387_v23  ;;  %v16507_v35 = vld [vmem:[#allocation61_spill] sm:$0xff]  ;;  %v16509_v61 = vld [vmem:[#allocation83_spill] sm:$0xff]  ;;  %v11229_v17 = vsel %vm3024_vm12, %v10984_v53, 0.0  ;;  %v11233_v46 = vsel %vm3024_vm12, %v10996_v4, 0.0 }
 0x3e4   :  { %16501 = vst [vmem:[#allocation23_spill] sm:$0xff] %v11201_v27  ;;  %16503 = vst [vmem:[#allocation27_spill] sm:$0xff] %v11207_v9  ;;  %v11221_v7 = vsel %vm3024_vm12, %v16507_v35, 0.0  ;;  %v11225_v62 = vsel %vm3024_vm12, %v16509_v61, 0.0  ;;  %v16513_v30 = vld [vmem:[#allocation64_spill] sm:$0xff]  ;;  %v16514_v12 = vld [vmem:[#allocation63_spill] sm:$0xff] }
 0x3e5   :  { %16504 = vst [vmem:[#allocation111_spill] sm:$0xff] %v11211_v38  ;;  %16505 = vst [vmem:[#allocation112_spill] sm:$0xff] %v11215_v1  ;;  %3936 = vrot.lane.b32.xlu1 %v11217_v50, %s7483_s14  ;;  %v3401_v4 = vrot.slane %v16513_v30, 1  ;;  %v16515_v36 = vld [vmem:[#allocation66_spill] sm:$0xff]  ;;  %v16516_v33 = vld [vmem:[#allocation65_spill] sm:$0xff]  ;;  %v16520_v20 = vrot.slane %v11010_v32, 1 }
 0x3e6   :  { %16506 = vst [vmem:[#allocation113_spill] sm:$0xff] %v11217_v50  ;;  %16508 = vst [vmem:[#allocation114_spill] sm:$0xff] %v11221_v7  ;;  %v3411_v50 = vrot.slane %v16515_v36, 1  ;;  %v3406_v23 = vrot.slane %v16516_v33, 1  ;;  %v16517_v27 = vld [vmem:[#allocation68_spill] sm:$0xff]  ;;  %v16518_v56 = vld [vmem:[#allocation67_spill] sm:$0xff] }
 0x3e7   :  { %16510 = vst [vmem:[#allocation115_spill] sm:$0xff] %v11225_v62  ;;  %16511 = vst [vmem:[#allocation116_spill] sm:$0xff] %v11229_v17  ;;  %v3421_v39 = vrot.slane %v16517_v27, 1  ;;  %v3416_v35 = vrot.slane %v16518_v56, 1  ;;  %v16519_v9 = vld [vmem:[#allocation70_spill] sm:$0xff]  ;;  %v3402_v53 = vsel %vm240_vm0, %v16520_v20, %v3401_v4  ;;  %v16521_v41 = vrot.slane %v11126_v55, 1 }
 0x3e8   :  { %16512 = vst [vmem:[#allocation117_spill] sm:$0xff] %v11233_v46  ;;  %v3396_v46 = vrot.slane %v16514_v12, 1  ;;  %v3431_v61 = vrot.slane %v16519_v9, 1  ;;  %v16522_v38 = vrot.slane %v11006_v59, 1  ;;  %v16526_v9 = vrot.slane %v11018_v6, 1  ;;  %v16593_v7 = vld [vmem:[#allocation90_spill] sm:$0xff] }
 0x3e9   :  { %v3404_v1 = vsel %vm240_vm0, %v3401_v4, %v16521_v41  ;;  %v16527_v55 = vrot.slane %v11134_v37, 1  ;;  %v16597_v17 = vld [vmem:[#allocation99_spill] sm:$0xff] }
 0x3ea   :  { %v3397_v26 = vsel %vm240_vm0, %v16522_v38, %v3396_v46  ;;  %v3399_v27 = vsel %vm240_vm0, %v3396_v46, %v16523_v11  ;;  %v11353_v36 = vpack.c.bf16 %v3404_v1, %v3402_v53  ;;  %v3412_v20 = vsel %vm240_vm0, %v16526_v9, %v3411_v50 }
 0x3eb   :  { %v11355_v56 = vpack.c.bf16 %v3399_v27, %v3397_v26  ;;  %v3414_v41 = vsel %vm240_vm0, %v3411_v50, %v16527_v55  ;;  %v16529_v38 = vrot.slane %v11014_v54, 1  ;;  %v16530_v46 = vrot.slane %v11130_v60, 1  ;;  %v16587_v15 = vld [vmem:[#allocation23_spill] sm:$0xff] }
 0x3ec   :  { %16524 = vst [vmem:[#allocation64_spill] sm:$0xff] %v11353_v36  ;;  %v11363_v4 = vpack.c.bf16 %v3414_v41, %v3412_v20  ;;  %v16531_v11 = vrot.slane %v11026_v10, 1  ;;  %3942 = vrot.lane.b32.xlu0 %v11353_v36, %s7483_s14  ;;  %v16533_v50 = vrot.slane %v11142_v51, 1  ;;  %v16534_v9 = vrot.slane %v11022_v40, 1  ;;  %v16546_v51 = vld [vmem:[#allocation72_spill] sm:$0xff] }
 0x3ed   :  { %16525 = vst [vmem:[#allocation63_spill] sm:$0xff] %v11355_v56  ;;  %v3407_v33 = vsel %vm240_vm0, %v16529_v38, %v3406_v23  ;;  %v3409_v53 = vsel %vm240_vm0, %v3406_v23, %v16530_v46  ;;  %3940 = vrot.lane.b32.xlu1 %v11355_v56, %s7483_s14  ;;  %v16535_v23 = vld [vmem:[#allocation69_spill] sm:$0xff]  ;;  %v16537_v38 = vrot.slane %v11138_v21, 1  ;;  %v16547_v21 = vld [vmem:[#allocation75_spill] sm:$0xff]  ;;  %v16598_v52 = vrot.slane %v16597_v17, 2 }
 0x3ee   :  { %16528 = vst [vmem:[#allocation118_spill] sm:$0xff] %v11363_v4  ;;  %v3422_v26 = vsel %vm240_vm0, %v16531_v11, %v3421_v39  ;;  %v11378_v55 = vpack.c.bf16 %v3409_v53, %v3407_v33  ;;  %v3424_v27 = vsel %vm240_vm0, %v3421_v39, %v16533_v50  ;;  %v3417_v1 = vsel %vm240_vm0, %v16534_v9, %v3416_v35  ;;  %v16545_v56 = vld [vmem:[#allocation73_spill] sm:$0xff] }
 0x3ef   :  { %v3426_v20 = vrot.slane %v16535_v23, 1  ;;  %v11387_v41 = vpack.c.bf16 %v3424_v27, %v3422_v26  ;;  %v3419_v46 = vsel %vm240_vm0, %v3416_v35, %v16537_v38  ;;  %v16538_v11 = vrot.slane %v11034_v25, 1 }
 0x3f0   :  { %16532 = vst [vmem:[#allocation119_spill] sm:$0xff] %v11378_v55  ;;  %v16539_v53 = vrot.slane %v11150_v0, 1  ;;  %v11398_v50 = vpack.c.bf16 %v3419_v46, %v3417_v1  ;;  %v16542_v9 = vrot.slane %v11030_v49, 1  ;;  %v16543_v27 = vrot.slane %v11146_v5, 1  ;;  %3946 = vrot.lane.b32.xlu0 %v11363_v4, %s7483_s14  ;;  %v16548_v1 = vld [vmem:[#allocation74_spill] sm:$0xff] }
 0x3f1   :  { %16536 = vst [vmem:[#allocation69_spill] sm:$0xff] %v11387_v41  ;;  %v3432_v33 = vsel %vm240_vm0, %v16538_v11, %v3431_v61  ;;  %v3441_v11 = vrot.slane %v16545_v56, 1  ;;  %v3436_v0 = vrot.slane %v16546_v51, 1  ;;  %3944 = vrot.lane.b32.xlu1 %v11378_v55, %s7483_s14  ;;  %v3446_v46 = vrot.slane %v16548_v1, 1 }
 0x3f2   :  { %v3434_v39 = vsel %vm240_vm0, %v3431_v61, %v16539_v53  ;;  %16540 = vst [vmem:[#allocation120_spill] sm:$0xff] %v11398_v50  ;;  %v3427_v26 = vsel %vm240_vm0, %v16542_v9, %v3426_v20  ;;  %v3429_v35 = vsel %vm240_vm0, %v3426_v20, %v16543_v27  ;;  %v3451_v61 = vrot.slane %v16547_v21, 1  ;;  %v16551_v9 = vld [vmem:[#allocation79_spill] sm:$0xff] }
 0x3f3   :  { %v11400_v36 = vpack.c.bf16 %v3434_v39, %v3432_v33  ;;  %v11408_v38 = vpack.c.bf16 %v3429_v35, %v3427_v26  ;;  %v16549_v33 = vld [vmem:[#allocation77_spill] sm:$0xff]  ;;  %v16550_v39 = vld [vmem:[#allocation76_spill] sm:$0xff]  ;;  %v3471_v26 = vrot.slane %v16551_v9, 1  ;;  %v16552_v27 = vrot.slane %v11042_v29, 1 }
 0x3f4   :  { %v3461_v53 = vrot.slane %v16549_v33, 1  ;;  %v3456_v20 = vrot.slane %v16550_v39, 1  ;;  %v16553_v5 = vrot.slane %v11158_v8, 1  ;;  %v16554_v4 = vrot.slane %v11038_v47, 1  ;;  %3950 = vrot.lane.b32.xlu0 %v11387_v41, %s7483_s14 }
 0x3f5   :  { %16541 = vst [vmem:[#allocation121_spill] sm:$0xff] %v11400_v36  ;;  %16544 = vst [vmem:[#allocation122_spill] sm:$0xff] %v11408_v38  ;;  %v3442_v35 = vsel %vm240_vm0, %v16552_v27, %v3441_v11  ;;  %v16555_v21 = vrot.slane %v11154_v3, 1  ;;  %v16558_v9 = vrot.slane %v11054_v57, 1  ;;  %v16559_v8 = vrot.slane %v11171_v31, 1  ;;  %3948 = vrot.lane.b32.xlu1 %v11398_v50, %s7483_s14 }
 0x3f6   :  { %v3444_v37 = vsel %vm240_vm0, %v3441_v11, %v16553_v5  ;;  %v3437_v55 = vsel %vm240_vm0, %v16554_v4, %v3436_v0  ;;  %v16561_v4 = vrot.slane %v11046_v13, 1 }
 0x3f7   :  { %v3439_v33 = vsel %vm240_vm0, %v3436_v0, %v16555_v21  ;;  %v11433_v1 = vpack.c.bf16 %v3444_v37, %v3442_v35  ;;  %v3452_v27 = vsel %vm240_vm0, %v16558_v9, %v3451_v61  ;;  %v3454_v5 = vsel %vm240_vm0, %v3451_v61, %v16559_v8  ;;  %v16567_v35 = vld [vmem:[#allocation78_spill] sm:$0xff] }
 0x3f8   :  { %v11435_v39 = vpack.c.bf16 %v3439_v33, %v3437_v55  ;;  %v11443_v11 = vpack.c.bf16 %v3454_v5, %v3452_v27  ;;  %v3447_v3 = vsel %vm240_vm0, %v16561_v4, %v3446_v46  ;;  %v16562_v21 = vrot.slane %v11162_v58, 1  ;;  %3954 = vrot.lane.b32.xlu0 %v11400_v36, %s7483_s14 }
 0x3f9   :  { %16556 = vst [vmem:[#allocation73_spill] sm:$0xff] %v11433_v1  ;;  %v16563_v0 = vrot.slane %v11062_v24, 1  ;;  %v16565_v61 = vrot.slane %v11181_v45, 1  ;;  %v16566_v9 = vrot.slane %v11058_v42, 1  ;;  %v3466_v27 = vrot.slane %v16567_v35, 1  ;;  %v16578_v45 = vld [vmem:[#allocation80_spill] sm:$0xff]  ;;  %3952 = vrot.lane.b32.xlu1 %v11408_v38, %s7483_s14 }
 0x3fa   :  { %16557 = vst [vmem:[#allocation72_spill] sm:$0xff] %v11435_v39  ;;  %16560 = vst [vmem:[#allocation123_spill] sm:$0xff] %v11443_v11  ;;  %v3449_v37 = vsel %vm240_vm0, %v3446_v46, %v16562_v21  ;;  %v16569_v4 = vrot.slane %v11175_v14, 1 }
 0x3fb   :  { %v3462_v55 = vsel %vm240_vm0, %v16563_v0, %v3461_v53  ;;  %v11458_v8 = vpack.c.bf16 %v3449_v37, %v3447_v3  ;;  %v3464_v33 = vsel %vm240_vm0, %v3461_v53, %v16565_v61  ;;  %v3457_v46 = vsel %vm240_vm0, %v16566_v9, %v3456_v20 }
 0x3fc   :  { %v11467_v5 = vpack.c.bf16 %v3464_v33, %v3462_v55  ;;  %v3459_v21 = vsel %vm240_vm0, %v3456_v20, %v16569_v4  ;;  %v16570_v0 = vrot.slane %v11070_v2, 1  ;;  %v16571_v37 = vrot.slane %v11189_v63, 1  ;;  %3958 = vrot.lane.b32.xlu0 %v11433_v1, %s7483_s14  ;;  %v16594_v4 = vld [vmem:[#allocation108_spill] sm:$0xff]  ;;  %v16601_v1 = vld [vmem:[#allocation33_spill] sm:$0xff] }
 0x3fd   :  { %16564 = vst [vmem:[#allocation124_spill] sm:$0xff] %v11458_v8  ;;  %v11478_v61 = vpack.c.bf16 %v3459_v21, %v3457_v46  ;;  %v16574_v9 = vrot.slane %v11066_v22, 1  ;;  %v16575_v33 = vrot.slane %v11185_v44, 1  ;;  %v16583_v21 = vrot.slane %v11193_v48, 1  ;;  %3956 = vrot.lane.b32.xlu1 %v11435_v39, %s7483_s14 }
 0x3fe   :  { %16568 = vst [vmem:[#allocation78_spill] sm:$0xff] %v11467_v5  ;;  %v3472_v3 = vsel %vm240_vm0, %v16570_v0, %v3471_v26  ;;  %v3474_v53 = vsel %vm240_vm0, %v3471_v26, %v16571_v37  ;;  %v16577_v0 = vld [vmem:[#allocation81_spill] sm:$0xff]  ;;  %v3476_v26 = vrot.slane %v16578_v45, 1 }
 0x3ff   :  { %16572 = vst [vmem:[#allocation125_spill] sm:$0xff] %v11478_v61  ;;  %v11480_v41 = vpack.c.bf16 %v3474_v53, %v3472_v3  ;;  %v3467_v55 = vsel %vm240_vm0, %v16574_v9, %v3466_v27  ;;  %v3469_v20 = vsel %vm240_vm0, %v3466_v27, %v16575_v33  ;;  %v3481_v63 = vrot.slane %v16577_v0, 1  ;;  %v16579_v27 = vld [vmem:[#allocation82_spill] sm:$0xff] }
 0x400   :  { %v11489_v50 = vpack.c.bf16 %v3469_v20, %v3467_v55  ;;  %v3486_v37 = vrot.slane %v16579_v27, 1  ;;  %v16580_v53 = vrot.slane %v11078_v16, 1  ;;  %v16581_v55 = vrot.slane %v11197_v19, 1  ;;  %3962 = vrot.lane.b32.xlu0 %v11443_v11, %s7483_s14 }
 0x401   :  { %16573 = vst [vmem:[#allocation126_spill] sm:$0xff] %v11480_v41  ;;  %v16582_v20 = vrot.slane %v11074_v43, 1  ;;  %v3479_v46 = vsel %vm240_vm0, %v3476_v26, %v16583_v21  ;;  %v16588_v19 = vrot.slane %v16587_v15, 1  ;;  %v16589_v21 = vld [vmem:[#allocation12_spill] sm:$0xff]  ;;  %3960 = vrot.lane.b32.xlu1 %v11458_v8, %s7483_s14  ;;  %v16609_v8 = vld [vmem:[#allocation65_spill] sm:$0xff] }
 0x402   :  { %16576 = vst [vmem:[#allocation127_spill] sm:$0xff] %v11489_v50  ;;  %v3482_v9 = vsel %vm240_vm0, %v16580_v53, %v3481_v63  ;;  %v3484_v33 = vsel %vm240_vm0, %v3481_v63, %v16581_v55  ;;  %v16584_v53 = vrot.slane %v11082_v28, 1  ;;  %v16595_v55 = vld [vmem:[#allocation14_spill] sm:$0xff]  ;;  %v11555_v63 = vpack.c.bf16 %v16514_v12, %v11006_v59 }
 0x403   :  { %v3477_v3 = vsel %vm240_vm0, %v16582_v20, %v3476_v26  ;;  %v11514_v36 = vpack.c.bf16 %v3484_v33, %v3482_v9  ;;  %v3617_v20 = vrot.slane %v16586_v34, 2  ;;  %v3489_v26 = vsel %vm240_vm0, %v3486_v37, %v16588_v19  ;;  %v16590_v9 = vld [vmem:[#allocation89_spill] sm:$0xff]  ;;  %v16591_v33 = vld [vmem:[#allocation62_spill] sm:$0xff] }
 0x404   :  { %v11516_v38 = vpack.c.bf16 %v3479_v46, %v3477_v3  ;;  %v3487_v62 = vsel %vm240_vm0, %v16584_v53, %v3486_v37  ;;  %v3620_v3 = vrot.slane %v16589_v21, 2  ;;  %v11536_v53 = vpack.c.bf16 %v16591_v33, %v16590_v9  ;;  %16599 = vst [vmem:[#allocation80_spill] sm:$0xff] %v11555_v63  ;;  %v16600_v37 = vld [vmem:[#allocation32_spill] sm:$0xff]  ;;  %3966 = vrot.lane.b32.xlu0 %v11467_v5, %s7483_s14 }
 0x405   :  { %v11531_v46 = vpack.c.bf16 %v3489_v26, %v3487_v62  ;;  %v3630_v34 = vrot.slane %v16591_v33, 2  ;;  %v11545_v62 = vpack.c.bf16 %v16589_v21, %v16595_v55  ;;  %v16596_v26 = vrot.slane %v16590_v9, 2  ;;  %3964 = vrot.lane.b32.xlu1 %v11478_v61, %s7483_s14 }
 0x406   :  { %16592 = vst [vmem:[#allocation81_spill] sm:$0xff] %v11536_v53  ;;  %v11557_v19 = vpack.c.bf16 %v3617_v20, %v3617_v20  ;;  %v11561_v53 = vpack.c.bf16 %v16601_v1, %v16600_v37  ;;  %v3640_v9 = vrot.slane %v16514_v12, 2  ;;  %v16604_v20 = vld [vmem:[#allocation7_spill] sm:$0xff]  ;;  %v3645_v12 = vrot.slane %v16513_v30, 2 }
 0x407   :  { %v3631_v39 = vsel %vm465_vm1, %v16596_v26, %v3630_v34  ;;  %v3633_v33 = vsel %vm465_vm1, %v3630_v34, %v16598_v52  ;;  %v16603_v52 = vrot.slane %v16595_v55, 2  ;;  %v16605_v34 = vrot.slane %v16604_v20, 2 }
 0x408   :  { %v11563_v21 = vpack.c.bf16 %v3633_v33, %v3631_v39  ;;  %v11582_v39 = vpack.c.bf16 %v16513_v30, %v11010_v32  ;;  %v16607_v33 = vrot.slane %v11006_v59, 2  ;;  %v16608_v55 = vrot.slane %v11122_v18, 2  ;;  %3970 = vrot.lane.b32.xlu0 %v11480_v41, %s7483_s14 }
 0x409   :  { %v11573_v17 = vsel %vm465_vm1, %v16603_v52, %v3620_v3  ;;  %v11578_v26 = vsel %vm465_vm1, %v3620_v3, %v16605_v34  ;;  %v11593_v20 = vpack.c.bf16 %v16609_v8, %v11014_v54  ;;  %v16611_v3 = vld [vmem:[#allocation66_spill] sm:$0xff]  ;;  %v16613_v30 = vrot.slane %v11010_v32, 2  ;;  %3968 = vrot.lane.b32.xlu1 %v11489_v50, %s7483_s14 }
 0x40a   :  { %16602 = vst [vmem:[#allocation82_spill] sm:$0xff] %v11563_v21  ;;  %16606 = vst [vmem:[#allocation23_spill] sm:$0xff] %v11582_v39  ;;  %v3641_v11 = vsel %vm465_vm1, %v16607_v33, %v3640_v9  ;;  %v3643_v52 = vsel %vm465_vm1, %v3640_v9, %v16608_v55  ;;  %v11597_v34 = vpack.c.bf16 %v16611_v3, %v11018_v6  ;;  %v16614_v39 = vld [vmem:[#allocation100_spill] sm:$0xff]  ;;  %v3650_v9 = vrot.slane %v16609_v8, 2 }
 0x40b   :  { %16610 = vst [vmem:[#allocation12_spill] sm:$0xff] %v11593_v20  ;;  %v11599_v63 = vpack.c.bf16 %v3643_v52, %v3641_v11  ;;  %v3646_v59 = vsel %vm465_vm1, %v16613_v30, %v3645_v12  ;;  %v16615_v33 = vrot.slane %v16614_v39, 2  ;;  %v16616_v20 = vld [vmem:[#allocation67_spill] sm:$0xff]  ;;  %v11620_v32 = vpack.c.bf16 %v16535_v23, %v11030_v49  ;;  %v16623_v30 = vld [vmem:[#allocation70_spill] sm:$0xff] }
 0x40c   :  { %16612 = vst [vmem:[#allocation89_spill] sm:$0xff] %v11597_v34  ;;  %v11612_v21 = vpack.c.bf16 %v16616_v20, %v11022_v40  ;;  %v16618_v34 = vld [vmem:[#allocation68_spill] sm:$0xff]  ;;  %v16621_v8 = vrot.slane %v11014_v54, 2  ;;  %v11641_v5 = vpack.c.bf16 %v16546_v51, %v11038_v47  ;;  %v11645_v54 = vpack.c.bf16 %v16545_v56, %v11042_v29  ;;  %3974 = vrot.lane.b32.xlu0 %v11514_v36, %s7483_s14 }
 0x40d   :  { %v3648_v18 = vsel %vm465_vm1, %v3645_v12, %v16615_v33  ;;  %v11616_v11 = vpack.c.bf16 %v16618_v34, %v11026_v10  ;;  %16620 = vst [vmem:[#allocation108_spill] sm:$0xff] %v11620_v32  ;;  %v16622_v12 = vrot.slane %v11130_v60, 2  ;;  %v3655_v33 = vrot.slane %v16611_v3, 2  ;;  %v16627_v60 = vld [vmem:[#allocation74_spill] sm:$0xff]  ;;  %3972 = vrot.lane.b32.xlu1 %v11516_v38, %s7483_s14 }
 0x40e   :  { %v11608_v55 = vpack.c.bf16 %v3648_v18, %v3646_v59  ;;  %16617 = vst [vmem:[#allocation62_spill] sm:$0xff] %v11612_v21  ;;  %v3651_v39 = vsel %vm465_vm1, %v16621_v8, %v3650_v9  ;;  %v11634_v59 = vpack.c.bf16 %v16623_v30, %v11034_v25  ;;  %16625 = vst [vmem:[#allocation99_spill] sm:$0xff] %v11641_v5  ;;  %v16631_v3 = vrot.slane %v11018_v6, 2  ;;  %v16639_v6 = vld [vmem:[#allocation79_spill] sm:$0xff] }
 0x40f   :  { %16619 = vst [vmem:[#allocation90_spill] sm:$0xff] %v11616_v11  ;;  %v3653_v52 = vsel %vm465_vm1, %v3650_v9, %v16622_v12  ;;  %16626 = vst [vmem:[#allocation32_spill] sm:$0xff] %v11645_v54  ;;  %v11649_v8 = vpack.c.bf16 %v16627_v60, %v11046_v13  ;;  %v16629_v9 = vld [vmem:[#allocation75_spill] sm:$0xff]  ;;  %v3670_v41 = vrot.slane %v16535_v23, 2  ;;  %v3680_v50 = vrot.slane %v16546_v51, 2 }
 0x410   :  { %16624 = vst [vmem:[#allocation14_spill] sm:$0xff] %v11634_v59  ;;  %v11637_v18 = vpack.c.bf16 %v3653_v52, %v3651_v39  ;;  %v11653_v12 = vpack.c.bf16 %v16629_v9, %v11054_v57  ;;  %v3656_v39 = vsel %vm465_vm1, %v16631_v3, %v3655_v33  ;;  %v16632_v52 = vld [vmem:[#allocation101_spill] sm:$0xff]  ;;  %v16634_v59 = vld [vmem:[#allocation76_spill] sm:$0xff]  ;;  %v11677_v3 = vpack.c.bf16 %v16639_v6, %v11070_v2 }
 0x411   :  { %16628 = vst [vmem:[#allocation33_spill] sm:$0xff] %v11649_v8  ;;  %v16633_v61 = vrot.slane %v16632_v52, 2  ;;  %v11663_v32 = vpack.c.bf16 %v16634_v59, %v11058_v42  ;;  %v16636_v8 = vld [vmem:[#allocation77_spill] sm:$0xff]  ;;  %v3665_v52 = vrot.slane %v16618_v34, 2  ;;  %v16647_v23 = vrot.slane %v11026_v10, 2  ;;  %v16651_v10 = vld [vmem:[#allocation104_spill] sm:$0xff]  ;;  %4023 = vrot.lane.b32.xlu0 %v11557_v19, %s7485_s19  ;;  %3976 = vrot.lane.b32.xlu1 %v11531_v46, %s7483_s14 }
 0x412   :  { %16630 = vst [vmem:[#allocation7_spill] sm:$0xff] %v11653_v12  ;;  %v11669_v11 = vpack.c.bf16 %v16636_v8, %v11062_v24  ;;  %v11673_v12 = vpack.c.bf16 %v16567_v35, %v11066_v22  ;;  %16640 = vst [vmem:[#allocation67_spill] sm:$0xff] %v11677_v3  ;;  %v3675_v3 = vrot.slane %v16623_v30, 2  ;;  %v16648_v30 = vld [vmem:[#allocation103_spill] sm:$0xff] }
 0x413   :  { %v3658_v5 = vsel %vm465_vm1, %v3655_v33, %v16633_v61  ;;  %16635 = vst [vmem:[#allocation65_spill] sm:$0xff] %v11663_v32  ;;  %v11689_v61 = vpack.c.bf16 %v16577_v0, %v11078_v16  ;;  %v3660_v33 = vrot.slane %v16616_v20, 2  ;;  %v3685_v32 = vrot.slane %v16545_v56, 2 }
 0x414   :  { %v11665_v54 = vpack.c.bf16 %v3658_v5, %v3656_v39  ;;  %16637 = vst [vmem:[#allocation66_spill] sm:$0xff] %v11669_v11  ;;  %16638 = vst [vmem:[#allocation100_spill] sm:$0xff] %v11673_v12  ;;  %v11685_v5 = vpack.c.bf16 %v16578_v45, %v11074_v43  ;;  %v11694_v39 = vpack.c.bf16 %v16579_v27, %v11082_v28  ;;  %v16645_v11 = vld [vmem:[#allocation102_spill] sm:$0xff]  ;;  %v16649_v51 = vrot.slane %v16648_v30, 2  ;;  %v16654_v30 = vld [vmem:[#allocation105_spill] sm:$0xff] }
 0x415   :  { %16642 = vst [vmem:[#allocation70_spill] sm:$0xff] %v11689_v61  ;;  %v16646_v61 = vrot.slane %v16645_v11, 2  ;;  %v3666_v34 = vsel %vm465_vm1, %v16647_v23, %v3665_v52  ;;  %v3625_v56 = vrot.slane %v16601_v1, 2  ;;  %v16655_v1 = vrot.slane %v16654_v30, 2  ;;  %4117 = vrot.lane.b32.xlu0 %v11545_v62, %s7487_s1 }
 0x416   :  { %16641 = vst [vmem:[#allocation68_spill] sm:$0xff] %v11685_v5  ;;  %16643 = vst [vmem:[#allocation74_spill] sm:$0xff] %v11694_v39  ;;  %v16644_v5 = vrot.slane %v11022_v40, 2  ;;  %v3690_v39 = vrot.slane %v16627_v60, 2  ;;  %v3668_v40 = vsel %vm465_vm1, %v3665_v52, %v16649_v51  ;;  %v16656_v51 = vrot.slane %v11038_v47, 2  ;;  %v7430_v47 = vld [vmem:[%s15599_s4 + $0x8] sm:$0xff]  }
 0x417   :  { %v3663_v20 = vsel %vm465_vm1, %v3660_v33, %v16646_v61  ;;  %v11724_v60 = vpack.c.bf16 %v3668_v40, %v3666_v34  ;;  %v3678_v34 = vsel %vm465_vm1, %v3675_v3, %v16655_v1  ;;  %v16665_v1 = vld [vmem:[#allocation22_spill] sm:$0xff] }
 0x418   :  { %v3661_v12 = vsel %vm465_vm1, %v16644_v5, %v3660_v33  ;;  %v16650_v5 = vrot.slane %v11030_v49, 2  ;;  %v3695_v33 = vrot.slane %v16629_v9, 2  ;;  %v7429_v49 = vld [vmem:[%s15599_s4] sm:$0xff]  }
 0x419   :  { %v11708_v21 = vpack.c.bf16 %v3663_v20, %v3661_v12  ;;  %v16652_v12 = vrot.slane %v16651_v10, 2  ;;  %v16653_v20 = vrot.slane %v11034_v25, 2  ;;  %v16657_v9 = vld [vmem:[#allocation106_spill] sm:$0xff]  ;;  %7262 = vmatprep.subr.bf16.mxu1 %v7429_v49 }
 0x41a   :  { %v3671_v11 = vsel %vm465_vm1, %v16650_v5, %v3670_v41  ;;  %v16658_v5 = vrot.slane %v16657_v9, 2  ;;  %7263 = vmatpush3.bf16.msra.mxu1 %v7429_v49  ;;  %v3705_v49 = vrot.slane %v16636_v8, 2 }
 0x41b   :  { %v3673_v61 = vsel %vm465_vm1, %v3670_v41, %v16652_v12  ;;  %v3676_v23 = vsel %vm465_vm1, %v16653_v20, %v3675_v3  ;;  %v3681_v41 = vsel %vm465_vm1, %v16656_v51, %v3680_v50  ;;  %v16660_v12 = vld [vmem:[#allocation107_spill] sm:$0xff]  ;;  %v11757_v3 = vpack.c.bf16 %v11578_v26, %v11573_v17  ;;  %7264 = vmatprep.subr.bf16.mxu1 %v7430_v47 }
 0x41c   :  { %v11733_v52 = vpack.c.bf16 %v3673_v61, %v3671_v11  ;;  %v11744_v40 = vpack.c.bf16 %v3678_v34, %v3676_v23  ;;  %v3683_v10 = vsel %vm465_vm1, %v3680_v50, %v16658_v5  ;;  %v16659_v11 = vrot.slane %v11042_v29, 2 }
 0x41d   :  { %v16661_v61 = vrot.slane %v16660_v12, 2  ;;  %v11762_v23 = vpack.c.bf16 %v3683_v10, %v3681_v41  ;;  %v16662_v29 = vrot.slane %v11046_v13, 2  ;;  %v16663_v17 = vrot.slane %v11162_v58, 2  ;;  %4025 = vrot.lane.b32.xlu1 %v11757_v3, %s7485_s19 }
 0x41e   :  { %v3686_v25 = vsel %vm465_vm1, %v16659_v11, %v3685_v32  ;;  %v16666_v51 = vrot.slane %v11054_v57, 2  ;;  %v3700_v41 = vrot.slane %v16634_v59, 2  ;;  %v16669_v12 = vrot.slane %v11175_v14, 2  ;;  %7265 = vmatpush3.bf16.msra.mxu1 %v7430_v47 }
 0x41f   :  { %v3688_v20 = vsel %vm465_vm1, %v3685_v32, %v16661_v61  ;;  %v3691_v30 = vsel %vm465_vm1, %v16662_v29, %v3690_v39  ;;  %v3693_v26 = vsel %vm465_vm1, %v3690_v39, %v16663_v17  ;;  %v16664_v32 = vld [vmem:[#allocation24_spill] sm:$0xff]  ;;  %v16667_v39 = vrot.slane %v11171_v31, 2 }
 0x420   :  { %v11764_v50 = vpack.c.bf16 %v3688_v20, %v3686_v25  ;;  %v3072_v34 = vsel %vm3024_vm12, %v16665_v1, %v16664_v32  ;;  %v3696_v13 = vsel %vm465_vm1, %v16666_v51, %v3695_v33  ;;  %v11783_v9 = vpack.c.bf16 %v3693_v26, %v3691_v30  ;;  %v7431_v31 = vld [vmem:[%s15599_s4 + $0x10] sm:$0xff]  }
 0x421   :  { %v11786_v5 = vpack.c.bf16 %v3072_v34, %v16593_v7  ;;  %v3868_v10 = vrot.slane %v3072_v34, 1  ;;  %v3884_v58 = vrot.slane %v3072_v34, 2  ;;  %v3698_v11 = vsel %vm465_vm1, %v3695_v33, %v16667_v39  ;;  %7266 = vmatprep.subr.bf16.mxu1 %v7431_v31  ;;  %4119 = vrot.lane.b32.xlu1 %v11561_v53, %s7487_s1 }
 0x422   :  { %v16668_v25 = vrot.slane %v11058_v42, 2  ;;  %v3703_v59 = vsel %vm465_vm1, %v3700_v41, %v16669_v12  ;;  %v16670_v61 = vrot.slane %v16600_v37, 2  ;;  %v16671_v33 = vrot.slane %v16593_v7, 1  ;;  %7267 = vmatpush3.bf16.msra.mxu1 %v7431_v31 }
 0x423   :  { %v16672_v29 = vrot.slane %v16594_v4, 1  ;;  %v16673_v30 = vrot.slane %v16593_v7, 2  ;;  %v16674_v17 = vrot.slane %v16594_v4, 2  ;;  %v11822_v32 = vpack.c.bf16 %v3698_v11, %v3696_v13 }
 0x424   :  { %v3701_v57 = vsel %vm465_vm1, %v16668_v25, %v3700_v41  ;;  %v3626_v20 = vsel %vm465_vm1, %v16670_v61, %v3625_v56  ;;  %v3869_v42 = vsel %vm240_vm0, %v16671_v33, %v3868_v10  ;;  %v3710_v1 = vrot.slane %v16567_v35, 2  ;;  %v16684_v33 = vld [vmem:[#allocation110_spill] sm:$0xff] }
 0x425   :  { %v3871_v14 = vsel %vm240_vm0, %v3868_v10, %v16672_v29  ;;  %v3885_v8 = vsel %vm465_vm1, %v16673_v30, %v3884_v58  ;;  %v3887_v26 = vsel %vm465_vm1, %v3884_v58, %v16674_v17  ;;  %v11827_v34 = vpack.c.bf16 %v3703_v59, %v3701_v57  ;;  %v16676_v10 = vld [vmem:[#allocation109_spill] sm:$0xff]  ;;  %v16686_v30 = vld [vmem:[#allocation16_spill] sm:$0xff] }
 0x426   :  { %v11817_v37 = vpack.c.bf16 %v3871_v14, %v3869_v42  ;;  %v11825_v7 = vpack.c.bf16 %v3887_v26, %v3885_v8  ;;  %v16675_v51 = vrot.slane %v11062_v24, 2  ;;  %v16677_v39 = vrot.slane %v16676_v10, 2  ;;  %v16680_v24 = vld [vmem:[#allocation8_spill] sm:$0xff]  ;;  %v7432_v59 = vld [vmem:[%s15599_s4 + $0x18] sm:$0xff]  }
 0x427   :  { %v16678_v13 = vrot.slane %v11066_v22, 2  ;;  %v16679_v47 = vrot.slane %v11185_v44, 2  ;;  %v3715_v11 = vrot.slane %v16639_v6, 2  ;;  %v16681_v57 = vrot.slane %v16680_v24, 2  ;;  %v16682_v44 = vld [vmem:[#allocation9_spill] sm:$0xff]  ;;  %7268 = vmatprep.subr.bf16.mxu1 %v7432_v59  ;;  %v16691_v10 = vld [vmem:[#allocation20_spill] sm:$0xff] }
 0x428   :  { %v3706_v41 = vsel %vm465_vm1, %v16675_v51, %v3705_v49  ;;  %v3708_v25 = vsel %vm465_vm1, %v3705_v49, %v16677_v39  ;;  %v3720_v22 = vrot.slane %v16578_v45, 2  ;;  %v3725_v61 = vrot.slane %v16577_v0, 2  ;;  %4183 = vrot.lane.b32.xlu0 %v16682_v44, %s7489_s24  ;;  %v16687_v45 = vld [vmem:[#allocation42_spill] sm:$0xff]  ;;  %v16696_v24 = vld [vmem:[#allocation117_spill] sm:$0xff]  ;;  %7269 = vmatpush3.bf16.msra.mxu1 %v7432_v59 }
 0x429   :  { %v11835_v4 = vpack.c.bf16 %v3708_v25, %v3706_v41  ;;  %v3711_v35 = vsel %vm465_vm1, %v16678_v13, %v3710_v1  ;;  %v3713_v58 = vsel %vm465_vm1, %v3710_v1, %v16679_v47  ;;  %v3628_v12 = vsel %vm465_vm1, %v3625_v56, %v16681_v57 }
 0x42a   :  { %v11850_v49 = vpack.c.bf16 %v3713_v58, %v3711_v35  ;;  %v16683_v6 = vrot.slane %v11070_v2, 2  ;;  %v16685_v42 = vrot.slane %v16684_v33, 2  ;;  %v3730_v14 = vrot.slane %v16579_v27, 2  ;;  %v16695_v35 = vld [vmem:[#allocation98_spill] sm:$0xff]  ;;  %v16699_v33 = vld [vmem:[#allocation15_spill] sm:$0xff] }
 0x42b   :  { %v3099_v0 = vsel %vm3024_vm12, %v16687_v45, %v16686_v30  ;;  %v16688_v17 = vrot.slane %v11074_v43, 2  ;;  %v16689_v2 = vrot.slane %v11193_v48, 2  ;;  %v16690_v51 = vrot.slane %v11078_v16, 2  ;;  %v7433_v16 = vld [vmem:[%s15599_s4 + $0x20] ss:$0 sps:$4 sm:$0xff]   ;;  %v16702_v30 = vld [vmem:[#allocation40_spill] sm:$0xff] }
 0x42c   :  { %v3716_v56 = vsel %vm465_vm1, %v16683_v6, %v3715_v11  ;;  %v3718_v29 = vsel %vm465_vm1, %v3715_v11, %v16685_v42  ;;  %v16692_v39 = vrot.slane %v16691_v10, 2  ;;  %v16693_v25 = vrot.slane %v11082_v28, 2  ;;  %v16697_v28 = vld [vmem:[#allocation35_spill] sm:$0xff]  ;;  %4249 = vrot.lane.b32.xlu0 %v11757_v3, %s7491_s30  ;;  %v16700_v42 = vld [vmem:[#allocation37_spill] sm:$0xff]  ;;  %7410 = vmatprep.subr.msk.bf16.mxu1 %vm5141_vm13, %v7433_v16  ;;  %v16710_v10 = vld [vmem:[#allocation92_spill] sm:$0xff]  ;;  %s7492_s4 = smov 48  }
 0x42d   :  { %v11868_v8 = vpack.c.bf16 %v3718_v29, %v3716_v56  ;;  %v3721_v26 = vsel %vm465_vm1, %v16688_v17, %v3720_v22  ;;  %v3723_v1 = vsel %vm465_vm1, %v3720_v22, %v16689_v2  ;;  %v3726_v41 = vsel %vm465_vm1, %v16690_v51, %v3725_v61  ;;  %4185 = vrot.lane.b32.xlu1 %v16697_v28, %s7489_s24 }
 0x42e   :  { %v11879_v27 = vpack.c.bf16 %v3723_v1, %v3721_v26  ;;  %v3728_v31 = vsel %vm465_vm1, %v3725_v61, %v16692_v39  ;;  %v3731_v43 = vsel %vm465_vm1, %v16693_v25, %v3730_v14  ;;  %v16694_v13 = vrot.slane %v16587_v15, 2  ;;  %v16698_v15 = vld [vmem:[#allocation91_spill] sm:$0xff] }
 0x42f   :  { %v11894_v58 = vpack.c.bf16 %v3728_v31, %v3726_v41  ;;  %v11904_v22 = vpack.c.bf16 %v3099_v0, %v16698_v15  ;;  %v3491_v61 = vrot.slane %v3099_v0, 1  ;;  %v3735_v44 = vrot.slane %v3099_v0, 2  ;;  %v16704_v26 = vld [vmem:[#allocation27_spill] sm:$0xff] }
 0x430   :  { %v3733_v48 = vsel %vm465_vm1, %v3730_v14, %v16694_v13  ;;  %v11906_v6 = vpack.c.bf16 %v3628_v12, %v3626_v20  ;;  %v5143_v56 = vsel %vm5141_vm13, %v7433_v16, 0  ;;  %v3102_v29 = vsel %vm3024_vm12, %v16700_v42, %v16699_v33  ;;  %v16701_v14 = vld [vmem:[#allocation17_spill] sm:$0xff]  ;;  %4314 = vrot.lane.b32.xlu0 %v11561_v53, %s7492_s4 }
 0x431   :  { %v11896_v11 = vpack.c.bf16 %v3733_v48, %v3731_v43  ;;  %v3105_v45 = vsel %vm3024_vm12, %v16702_v30, %v16701_v14  ;;  %v16703_v3 = vrot.slane %v16698_v15, 1  ;;  %v16705_v2 = vrot.slane %v16704_v26, 1  ;;  %v16712_v43 = vld [vmem:[#allocation93_spill] sm:$0xff]  ;;  %7271 = vmatpush3.bf16.msra.mxu1 %v5143_v56  ;;  %v16718_v30 = vld [vmem:[#allocation19_spill] sm:$0xff] }
 0x432   :  { %v16706_v12 = vrot.slane %v16698_v15, 2  ;;  %v16707_v0 = vrot.slane %v16704_v26, 2  ;;  %v11931_v39 = vpack.c.bf16 %v3102_v29, %v16710_v10  ;;  %v3496_v31 = vrot.slane %v3102_v29, 1  ;;  %4251 = vrot.lane.b32.xlu1 %v11906_v6, %s7491_s30  ;;  %v16717_v14 = vld [vmem:[#allocation61_spill] sm:$0xff] }
 0x433   :  { %v3492_v17 = vsel %vm240_vm0, %v16703_v3, %v3491_v61  ;;  %v3494_v20 = vsel %vm240_vm0, %v3491_v61, %v16705_v2  ;;  %v3740_v25 = vrot.slane %v3102_v29, 2  ;;  %v11938_v13 = vpack.c.bf16 %v3105_v45, %v16712_v43  ;;  %v16720_v29 = vld [vmem:[#allocation18_spill] sm:$0xff] }
 0x434   :  { %v3736_v59 = vsel %vm465_vm1, %v16706_v12, %v3735_v44  ;;  %v3738_v1 = vsel %vm465_vm1, %v3735_v44, %v16707_v0  ;;  %v11926_v51 = vpack.c.bf16 %v3494_v20, %v3492_v17  ;;  %16711 = vst [vmem:[#allocation76_spill] sm:$0xff] %v11931_v39  ;;  %v3501_v48 = vrot.slane %v3105_v45, 1  ;;  %v16715_v44 = vld [vmem:[#allocation111_spill] sm:$0xff]  ;;  %4376 = vrot.lane.b32.xlu0 %v16697_v28, %s7493_s11 }
 0x435   :  { %v11928_v41 = vpack.c.bf16 %v3738_v1, %v3736_v59  ;;  %16713 = vst [vmem:[#allocation77_spill] sm:$0xff] %v11938_v13  ;;  %v3745_v16 = vrot.slane %v3105_v45, 2  ;;  %v16714_v15 = vrot.slane %v16710_v10, 1  ;;  %v16716_v33 = vrot.slane %v16715_v44, 1  ;;  %v16719_v17 = vld [vmem:[#allocation83_spill] sm:$0xff] }
 0x436   :  { %16708 = vst [vmem:[#allocation75_spill] sm:$0xff] %v11926_v51  ;;  %v3108_v3 = vsel %vm3024_vm12, %v16718_v30, %v16717_v14  ;;  %v3111_v26 = vsel %vm3024_vm12, %v16720_v29, %v16719_v17  ;;  %v16722_v56 = vrot.slane %v16710_v10, 2  ;;  %v16723_v20 = vrot.slane %v16715_v44, 2 }
 0x437   :  { %16709 = vst [vmem:[#allocation101_spill] sm:$0xff] %v11928_v41  ;;  %v3497_v61 = vsel %vm240_vm0, %v16714_v15, %v3496_v31  ;;  %v3499_v42 = vsel %vm240_vm0, %v3496_v31, %v16716_v33  ;;  %v16724_v59 = vrot.slane %v16712_v43, 1  ;;  %v16726_v31 = vld [vmem:[#allocation112_spill] sm:$0xff]  ;;  %v3750_v29 = vrot.slane %v3108_v3, 2 }
 0x438   :  { %v11952_v2 = vpack.c.bf16 %v3499_v42, %v3497_v61  ;;  %v3741_v45 = vsel %vm465_vm1, %v16722_v56, %v3740_v25  ;;  %v3743_v12 = vsel %vm465_vm1, %v3740_v25, %v16723_v20  ;;  %v16727_v15 = vrot.slane %v16726_v31, 1  ;;  %v16730_v25 = vld [vmem:[#allocation81_spill] sm:$0xff]  ;;  %v16735_v56 = vld [vmem:[#allocation95_spill] sm:$0xff]  ;;  %4438 = vrot.lane.b32.xlu0 %v11906_v6, %s7494_s12 }
 0x439   :  { %v3502_v0 = vsel %vm240_vm0, %v16724_v59, %v3501_v48  ;;  %v11963_v1 = vpack.c.bf16 %v3743_v12, %v3741_v45  ;;  %v16728_v61 = vrot.slane %v16712_v43, 2  ;;  %v16729_v42 = vrot.slane %v16726_v31, 2  ;;  %4316 = vrot.lane.b32.xlu1 %v16730_v25, %s7492_s4  ;;  %v16738_v31 = vld [vmem:[#allocation114_spill] sm:$0xff] }
 0x43a   :  { %16721 = vst [vmem:[#allocation79_spill] sm:$0xff] %v11952_v2  ;;  %v3504_v33 = vsel %vm240_vm0, %v3501_v48, %v16727_v15  ;;  %v16733_v48 = vld [vmem:[#allocation94_spill] sm:$0xff]  ;;  %v3506_v43 = vrot.slane %v3108_v3, 1  ;;  %v11986_v45 = vpack.c.bf16 %v3111_v26, %v16735_v56  ;;  %v3755_v20 = vrot.slane %v3111_v26, 2  ;;  %v16740_v15 = vld [vmem:[#allocation85_spill] sm:$0xff]  ;;  %v16808_v2 = vld [vmem:[#allocation108_spill] sm:$0xff] }
 0x43b   :  { %16725 = vst [vmem:[#allocation102_spill] sm:$0xff] %v11963_v1  ;;  %v3746_v10 = vsel %vm465_vm1, %v16728_v61, %v3745_v16  ;;  %v3748_v44 = vsel %vm465_vm1, %v3745_v16, %v16729_v42  ;;  %v11978_v14 = vpack.c.bf16 %v3504_v33, %v3502_v0  ;;  %v11983_v17 = vpack.c.bf16 %v3108_v3, %v16733_v48  ;;  %v16741_v33 = vld [vmem:[#allocation84_spill] sm:$0xff]  ;;  %v16743_v42 = vld [vmem:[#allocation86_spill] sm:$0xff] }
 0x43c   :  { %v11980_v30 = vpack.c.bf16 %v3748_v44, %v3746_v10  ;;  %16736 = vst [vmem:[#allocation106_spill] sm:$0xff] %v11986_v45  ;;  %v3511_v16 = vrot.slane %v3111_v26, 1  ;;  %v16737_v12 = vrot.slane %v16733_v48, 1  ;;  %v16739_v28 = vrot.slane %v16738_v31, 1  ;;  %v16742_v10 = vld [vmem:[#allocation31_spill] sm:$0xff]  ;;  %4027 = vrot.lane.b32.xlu0 %v11906_v6, %s7485_s19 }
 0x43d   :  { %16731 = vst [vmem:[#allocation103_spill] sm:$0xff] %v11978_v14  ;;  %16734 = vst [vmem:[#allocation105_spill] sm:$0xff] %v11983_v17  ;;  %v3114_v61 = vsel %vm3024_vm12, %v16741_v33, %v16740_v15  ;;  %v3117_v3 = vsel %vm3024_vm12, %v16743_v42, %v16742_v10  ;;  %v16745_v26 = vrot.slane %v16733_v48, 2  ;;  %v16748_v15 = vld [vmem:[#allocation113_spill] sm:$0xff]  ;;  %v16750_v48 = vld [vmem:[#allocation115_spill] sm:$0xff] }
 0x43e   :  { %16732 = vst [vmem:[#allocation104_spill] sm:$0xff] %v11980_v30  ;;  %v3507_v59 = vsel %vm240_vm0, %v16737_v12, %v3506_v43  ;;  %v3509_v0 = vsel %vm240_vm0, %v3506_v43, %v16739_v28  ;;  %v16746_v12 = vrot.slane %v16738_v31, 2  ;;  %v16747_v43 = vrot.slane %v16735_v56, 1  ;;  %4378 = vrot.lane.b32.xlu1 %v16748_v15, %s7493_s11  ;;  %v16802_v17 = vld [vmem:[#allocation120_spill] sm:$0xff] }
 0x43f   :  { %v12000_v44 = vpack.c.bf16 %v3509_v0, %v3507_v59  ;;  %v3751_v57 = vsel %vm465_vm1, %v16745_v26, %v3750_v29  ;;  %v16751_v0 = vrot.slane %v16750_v48, 1  ;;  %v16752_v31 = vrot.slane %v16735_v56, 2  ;;  %v16759_v56 = vld [vmem:[#allocation116_spill] sm:$0xff] }
 0x440   :  { %v3753_v47 = vsel %vm465_vm1, %v3750_v29, %v16746_v12  ;;  %v3512_v28 = vsel %vm240_vm0, %v16747_v43, %v3511_v16  ;;  %v3516_v10 = vrot.slane %v3114_v61, 1  ;;  %v16754_v26 = vrot.slane %v16750_v48, 2  ;;  %v16755_v43 = vld [vmem:[#allocation96_spill] sm:$0xff]  ;;  %4121 = vrot.lane.b32.xlu0 %v16730_v25, %s7487_s1 }
 0x441   :  { %16744 = vst [vmem:[#allocation107_spill] sm:$0xff] %v12000_v44  ;;  %v12015_v59 = vpack.c.bf16 %v3753_v47, %v3751_v57  ;;  %v3514_v33 = vsel %vm240_vm0, %v3511_v16, %v16751_v0  ;;  %v3756_v29 = vsel %vm465_vm1, %v16752_v31, %v3755_v20  ;;  %v12029_v45 = vpack.c.bf16 %v3114_v61, %v16755_v43 }
 0x442   :  { %v12023_v42 = vpack.c.bf16 %v3514_v33, %v3512_v28  ;;  %v3758_v12 = vsel %vm465_vm1, %v3755_v20, %v16754_v26  ;;  %v3760_v47 = vrot.slane %v3114_v61, 2  ;;  %v16760_v0 = vrot.slane %v16759_v56, 1  ;;  %v16761_v28 = vld [vmem:[#allocation97_spill] sm:$0xff] }
 0x443   :  { %16749 = vst [vmem:[#allocation24_spill] sm:$0xff] %v12015_v59  ;;  %16756 = vst [vmem:[#allocation109_spill] sm:$0xff] %v12029_v45  ;;  %v12031_v57 = vpack.c.bf16 %v3758_v12, %v3756_v29  ;;  %v16758_v59 = vrot.slane %v16755_v43, 1  ;;  %v12040_v33 = vpack.c.bf16 %v3117_v3, %v16761_v28  ;;  %v16764_v20 = vrot.slane %v16755_v43, 2  ;;  %v16766_v45 = vld [vmem:[#allocation82_spill] sm:$0xff]  ;;  %v16769_v43 = vld [vmem:[#allocation87_spill] sm:$0xff] }
 0x444   :  { %16753 = vst [vmem:[#allocation22_spill] sm:$0xff] %v12023_v42  ;;  %v3519_v31 = vsel %vm240_vm0, %v3516_v10, %v16760_v0  ;;  %v16765_v61 = vrot.slane %v16759_v56, 2  ;;  %v3521_v12 = vrot.slane %v3117_v3, 1  ;;  %4440 = vrot.lane.b32.xlu1 %v16766_v45, %s7494_s12  ;;  %v16768_v0 = vld [vmem:[#allocation88_spill] sm:$0xff]  ;;  %v3891_v56 = vrot.slane %v16696_v24, 2  ;;  %4187 = vrot.lane.b32.xlu0 %v16748_v15, %s7489_s24  ;;  %v16787_v15 = vld [vmem:[#allocation63_spill] sm:$0xff] }
 0x445   :  { %16757 = vst [vmem:[#allocation8_spill] sm:$0xff] %v12031_v57  ;;  %v3517_v16 = vsel %vm240_vm0, %v16758_v59, %v3516_v10  ;;  %16762 = vst [vmem:[#allocation9_spill] sm:$0xff] %v12040_v33  ;;  %v3761_v26 = vsel %vm465_vm1, %v16764_v20, %v3760_v47  ;;  %v3888_v59 = vrot.slane %v16695_v35, 2  ;;  %v16799_v42 = vld [vmem:[#allocation62_spill] sm:$0xff] }
 0x446   :  { %v12042_v48 = vpack.c.bf16 %v3519_v31, %v3517_v16  ;;  %v3763_v29 = vsel %vm465_vm1, %v3760_v47, %v16765_v61  ;;  %v3765_v16 = vrot.slane %v3117_v3, 2  ;;  %v3120_v31 = vsel %vm3024_vm12, %v16769_v43, %v16768_v0  ;;  %v16771_v61 = vld [vmem:[#allocation29_spill] sm:$0xff] }
 0x447   :  { %v12055_v10 = vpack.c.bf16 %v3763_v29, %v3761_v26  ;;  %v16770_v47 = vrot.slane %v16761_v28, 1  ;;  %v16772_v33 = vrot.slane %v16771_v61, 1  ;;  %v12068_v57 = vpack.c.bf16 %v3120_v31, %v16695_v35 }
 0x448   :  { %16763 = vst [vmem:[#allocation110_spill] sm:$0xff] %v12042_v48  ;;  %v16775_v3 = vrot.slane %v16761_v28, 2  ;;  %v16776_v29 = vrot.slane %v16771_v61, 2  ;;  %v3873_v43 = vrot.slane %v3120_v31, 1  ;;  %4029 = vrot.lane.b32.xlu1 %v16766_v45, %s7485_s19  ;;  %v16781_v61 = vld [vmem:[#allocation36_spill] sm:$0xff]  ;;  %4253 = vrot.lane.b32.xlu0 %v16766_v45, %s7491_s30  ;;  %v12130_v45 = vpop.permute.xlu0 %3930 }
 0x449   :  { %16767 = vst [vmem:[#allocation16_spill] sm:$0xff] %v12055_v10  ;;  %v3522_v20 = vsel %vm240_vm0, %v16770_v47, %v3521_v12  ;;  %v3524_v48 = vsel %vm240_vm0, %v3521_v12, %v16772_v33  ;;  %16773 = vst [vmem:[#allocation42_spill] sm:$0xff] %v12068_v57  ;;  %v3889_v47 = vrot.slane %v3120_v31, 2  ;;  %v16778_v33 = vrot.slane %v16695_v35, 1 }
 0x44a   :  { %v12070_v6 = vpack.c.bf16 %v3524_v48, %v3522_v20  ;;  %v3766_v26 = vsel %vm465_vm1, %v16775_v3, %v3765_v16  ;;  %v3768_v0 = vsel %vm465_vm1, %v3765_v16, %v16776_v29  ;;  %v16779_v48 = vrot.slane %v16696_v24, 1  ;;  %v16782_v3 = vld [vmem:[#allocation26_spill] sm:$0xff] }
 0x44b   :  { %v12078_v10 = vpack.c.bf16 %v3768_v0, %v3766_v26  ;;  %v3874_v28 = vsel %vm240_vm0, %v16778_v33, %v3873_v43  ;;  %v3890_v16 = vsel %vm465_vm1, %v3888_v59, %v3889_v47  ;;  %v3892_v31 = vsel %vm465_vm1, %v3889_v47, %v3891_v56  ;;  %v16784_v0 = vld [vmem:[#allocation39_spill] sm:$0xff] }
 0x44c   :  { %16774 = vst [vmem:[#allocation20_spill] sm:$0xff] %v12070_v6  ;;  %v3876_v12 = vsel %vm240_vm0, %v3873_v43, %v16779_v48  ;;  %v12096_v26 = vpack.c.bf16 %v16782_v3, %v16781_v61  ;;  %v12098_v29 = vpack.c.bf16 %v3892_v31, %v3890_v16  ;;  %v3634_v35 = vrot.slane %v16781_v61, 2  ;;  %v16785_v43 = vld [vmem:[#allocation71_spill] sm:$0xff]  ;;  %v12138_v16 = vpop.permute.xlu0 %3934  ;;  %v16789_v31 = vld [vmem:[#allocation64_spill] sm:$0xff] }
 0x44d   :  { %16777 = vst [vmem:[#allocation98_spill] sm:$0xff] %v12078_v10  ;;  %v12090_v20 = vpack.c.bf16 %v3876_v12, %v3874_v28  ;;  %v3637_v33 = vrot.slane %v16784_v0, 2  ;;  %v3635_v24 = vrot.slane %v16782_v3, 2  ;;  %v16786_v28 = vld [vmem:[#allocation80_spill] sm:$0xff]  ;;  %v16788_v48 = vld [vmem:[#allocation23_spill] sm:$0xff]  ;;  %v12136_v12 = vpop.permute.xlu1 %3932  ;;  %vm4912_vm0 = vcmask 457728  }
 0x44e   :  { %16783 = vst [vmem:[#allocation35_spill] sm:$0xff] %v12098_v29  ;;  %4123 = vrot.lane.b32.xlu1 %v12096_v26, %s7487_s1  ;;  %4318 = vrot.lane.b32.xlu0 %v12096_v26, %s7492_s4 }
 0x44f   :  { %16780 = vst [vmem:[#allocation117_spill] sm:$0xff] %v12090_v20  ;;  %v3636_v59 = vsel %vm465_vm1, %v3634_v35, %v3635_v24  ;;  %v3638_v56 = vsel %vm465_vm1, %v3635_v24, %v3637_v33  ;;  %v16790_v35 = vld [vmem:[#allocation12_spill] sm:$0xff]  ;;  %v16794_v20 = vld [vmem:[#allocation118_spill] sm:$0xff]  ;;  %vm4976_vm1 = vcmask 523264  }
 0x450   :  { %v3834_v47 = vpack.c.bf16 %v3638_v56, %v3636_v59  ;;  %v12150_v3 = vpop.permute.xlu0 %3938 }
 0x452   :  { %4189 = vrot.lane.b32.xlu1 %v16785_v43, %s7489_s24  ;;  %4380 = vrot.lane.b32.xlu0 %v16785_v43, %s7493_s11 }
 0x456   :  { %4255 = vrot.lane.b32.xlu1 %v3834_v47, %s7491_s30  ;;  %4442 = vrot.lane.b32.xlu0 %v3834_v47, %s7494_s12 }
 0x457   :  { %v12148_v61 = vpop.permute.xlu1 %3936 }
 0x45a   :  { %4320 = vrot.lane.b32.xlu1 %v16786_v28, %s7492_s4  ;;  %4031 = vrot.lane.b32.xlu0 %v3834_v47, %s7485_s19 }
 0x45e   :  { %4382 = vrot.lane.b32.xlu1 %v16787_v15, %s7493_s11  ;;  %4125 = vrot.lane.b32.xlu0 %v16786_v28, %s7487_s1  ;;  %v12158_v33 = vpop.permute.xlu0 %3942 }
 0x45f   :  { %v12156_v0 = vpop.permute.xlu1 %3940 }
 0x462   :  { %4444 = vrot.lane.b32.xlu1 %v11599_v63, %s7494_s12  ;;  %4191 = vrot.lane.b32.xlu0 %v16787_v15, %s7489_s24  ;;  %v12166_v59 = vpop.permute.xlu0 %3946 }
 0x463   :  { %v12164_v24 = vpop.permute.xlu1 %3944 }
 0x466   :  { %4033 = vrot.lane.b32.xlu1 %v11599_v63, %s7485_s19  ;;  %4257 = vrot.lane.b32.xlu0 %v11599_v63, %s7491_s30  ;;  %v16791_v63 = vld [vmem:[#allocation119_spill] sm:$0xff]  ;;  %v12174_v43 = vpop.permute.xlu0 %3950 }
 0x467   :  { %v12172_v56 = vpop.permute.xlu1 %3948 }
 0x46a   :  { %4127 = vrot.lane.b32.xlu1 %v16788_v48, %s7487_s1  ;;  %4322 = vrot.lane.b32.xlu0 %v16788_v48, %s7492_s4  ;;  %v12182_v15 = vpop.permute.xlu0 %3954 }
 0x46b   :  { %v12180_v47 = vpop.permute.xlu1 %3952 }
 0x46e   :  { %4193 = vrot.lane.b32.xlu1 %v16789_v31, %s7489_s24  ;;  %4384 = vrot.lane.b32.xlu0 %v16789_v31, %s7493_s11  ;;  %v16792_v31 = vld [vmem:[#allocation89_spill] sm:$0xff]  ;;  %v12190_v29 = vpop.permute.xlu0 %3958 }
 0x46f   :  { %16793 = vst [vmem:[#allocation91_spill] sm:$0xff] %v12190_v29 }
 0x472   :  { %4259 = vrot.lane.b32.xlu1 %v11608_v55, %s7491_s30  ;;  %4446 = vrot.lane.b32.xlu0 %v11608_v55, %s7494_s12  ;;  %v12198_v10 = vpop.permute.xlu0 %3962 }
 0x473   :  { %16796 = vst [vmem:[#allocation37_spill] sm:$0xff] %v12198_v10 }
 0x476   :  { %4324 = vrot.lane.b32.xlu1 %v16790_v35, %s7492_s4  ;;  %4035 = vrot.lane.b32.xlu0 %v11608_v55, %s7485_s19  ;;  %v12188_v55 = vpop.permute.xlu1 %3956  ;;  %v12206_v6 = vpop.permute.xlu0 %3966 }
 0x477   :  { %16798 = vst [vmem:[#allocation40_spill] sm:$0xff] %v12206_v6 }
 0x47a   :  { %4386 = vrot.lane.b32.xlu1 %v16791_v63, %s7493_s11  ;;  %4129 = vrot.lane.b32.xlu0 %v16790_v35, %s7487_s1  ;;  %v12196_v57 = vpop.permute.xlu1 %3960  ;;  %v12214_v44 = vpop.permute.xlu0 %3970 }
 0x47b   :  { %16795 = vst [vmem:[#allocation15_spill] sm:$0xff] %v12196_v57  ;;  %16801 = vst [vmem:[#allocation92_spill] sm:$0xff] %v12214_v44 }
 0x47e   :  { %4448 = vrot.lane.b32.xlu1 %v11637_v18, %s7494_s12  ;;  %4195 = vrot.lane.b32.xlu0 %v16791_v63, %s7489_s24  ;;  %v12204_v63 = vpop.permute.xlu1 %3964 }
 0x47f   :  { %16797 = vst [vmem:[#allocation17_spill] sm:$0xff] %v12204_v63  ;;  %v12222_v63 = vpop.permute.xlu0 %3974 }
 0x480   :  { %16804 = vst [vmem:[#allocation111_spill] sm:$0xff] %v12222_v63 }
 0x482   :  { %4037 = vrot.lane.b32.xlu1 %v11637_v18, %s7485_s19  ;;  %4261 = vrot.lane.b32.xlu0 %v11637_v18, %s7491_s30  ;;  %v12212_v18 = vpop.permute.xlu1 %3968 }
 0x483   :  { %16800 = vst [vmem:[#allocation27_spill] sm:$0xff] %v12212_v18  ;;  %v4024_v18 = vpop.permute.xlu0 %4023 }
 0x486   :  { %4131 = vrot.lane.b32.xlu1 %v16792_v31, %s7487_s1  ;;  %4326 = vrot.lane.b32.xlu0 %v16792_v31, %s7492_s4  ;;  %v12220_v30 = vpop.permute.xlu1 %3972 }
 0x487   :  { %16803 = vst [vmem:[#allocation93_spill] sm:$0xff] %v12220_v30  ;;  %v4118_v6 = vpop.permute.xlu0 %4117  ;;  %v16806_v30 = vld [vmem:[#allocation90_spill] sm:$0xff] }
 0x48a   :  { %4197 = vrot.lane.b32.xlu1 %v16794_v20, %s7489_s24  ;;  %4388 = vrot.lane.b32.xlu0 %v16794_v20, %s7493_s11  ;;  %v12228_v20 = vpop.permute.xlu1 %3976 }
 0x48b   :  { %16805 = vst [vmem:[#allocation61_spill] sm:$0xff] %v12228_v20 }
 0x48e   :  { %4263 = vrot.lane.b32.xlu1 %v11665_v54, %s7491_s30  ;;  %4450 = vrot.lane.b32.xlu0 %v11665_v54, %s7494_s12 }
 0x48f   :  { %v4026_v44 = vpop.permute.xlu1 %4025 }
 0x492   :  { %4328 = vrot.lane.b32.xlu1 %v16799_v42, %s7492_s4  ;;  %4039 = vrot.lane.b32.xlu0 %v11665_v54, %s7485_s19  ;;  %v16807_v54 = vld [vmem:[#allocation69_spill] sm:$0xff] }
 0x493   :  { %v4120_v63 = vpop.permute.xlu1 %4119 }
 0x496   :  { %4390 = vrot.lane.b32.xlu1 %v16802_v17, %s7493_s11  ;;  %4133 = vrot.lane.b32.xlu0 %v16799_v42, %s7487_s1 }
 0x49a   :  { %4452 = vrot.lane.b32.xlu1 %v11708_v21, %s7494_s12  ;;  %4199 = vrot.lane.b32.xlu0 %v16802_v17, %s7489_s24  ;;  %v4184_v14 = vpop.permute.xlu0 %4183  ;;  %v4502_v17 = vsel %vm1581_vm4, 0.0|0.0, %v12130_v45  ;;  %v4505_v45 = vsel %vm1581_vm4, %v11545_v62, %v12136_v12 }
 0x49e   :  { %4041 = vrot.lane.b32.xlu1 %v11708_v21, %s7485_s19  ;;  %4265 = vrot.lane.b32.xlu0 %v11708_v21, %s7491_s30  ;;  %v4250_v13 = vpop.permute.xlu0 %4249  ;;  %v12253_v21 = vsel %vm1711_vm6, %v4502_v17, %v4024_v18 }
 0x49f   :  { %v4186_v20 = vpop.permute.xlu1 %4185  ;;  %16809 = vst [vmem:[#allocation19_spill] sm:$0xff] %v12253_v21  ;;  %v4656_v39 = vsel %vm1841_vm8, %v12253_v21, %v4118_v6  ;;  %v4596_v6 = vsel %vm1711_vm6, %v4505_v45, %v4026_v44 }
 0x4a0   :  { %v4720_v51 = vsel %vm1971_vm10, %v4656_v39, %v4184_v14  ;;  %v4658_v39 = vsel %vm1841_vm8, %v4596_v6, %v4120_v63  ;;  %v5916_v63 = vld [vmem:[%s15600_s7] sm:$0x3]  ;;  %v16812_v6 = vld [vmem:[#allocation121_spill] sm:$0xff] }
 0x4a1   :  { %v4785_v29 = vsel %vm4783_vm14, %v4720_v51, %v4250_v13  ;;  %v4722_v62 = vsel %vm1971_vm10, %v4658_v39, %v4186_v20  ;;  %7411 = vmatprep.subr.msk.bf16.mxu0 %vm2121_vm2, %v5916_v63  ;;  %v6014_v45 = vsel %vm2121_vm2, %v5916_v63, 0 }
 0x4a2   :  { %4135 = vrot.lane.b32.xlu1 %v16806_v30, %s7487_s1  ;;  %4330 = vrot.lane.b32.xlu0 %v16806_v30, %s7492_s4  ;;  %v4315_v1 = vpop.permute.xlu0 %4314 }
 0x4a3   :  { %v4850_v18 = vsel %vm4848_vm15, %v4785_v29, %v4315_v1  ;;  %7337 = vmatpush3.bf16.msra.mxu0 %v6014_v45  ;;  %v16817_v45 = vld [vmem:[#allocation10_spill] sm:$0xff] }
 0x4a4   :  { %v4252_v10 = vpop.permute.xlu1 %4251 }
 0x4a5   :  { %v4787_v13 = vsel %vm4783_vm14, %v4722_v62, %v4252_v10 }
 0x4a6   :  { %4201 = vrot.lane.b32.xlu1 %v16807_v54, %s7489_s24  ;;  %4392 = vrot.lane.b32.xlu0 %v16807_v54, %s7493_s11  ;;  %v4377_v57 = vpop.permute.xlu0 %4376  ;;  %v16810_v54 = vld [vmem:[#allocation122_spill] sm:$0xff] }
 0x4a7   :  { %v4914_v14 = vsel %vm4912_vm0, %v4850_v18, %v4377_v57 }
 0x4aa   :  { %4267 = vrot.lane.b32.xlu1 %v11724_v60, %s7491_s30  ;;  %4454 = vrot.lane.b32.xlu0 %v11724_v60, %s7494_s12  ;;  %v4439_v21 = vpop.permute.xlu0 %4438 }
 0x4ab   :  { %v4317_v41 = vpop.permute.xlu1 %4316  ;;  %v4978_v51 = vsel %vm4976_vm1, %v4914_v14, %v4439_v21  ;;  %v16814_v14 = vld [vmem:[#allocation6_spill] sm:$0xff] }
 0x4ac   :  { %v4852_v1 = vsel %vm4848_vm15, %v4787_v13, %v4317_v41  ;;  %7272 = vmatprep.mubr.msk.bf16.mxu1 %vm5076_vm5, %v4978_v51  ;;  %v16811_v41 = vld [vmem:[#allocation14_spill] sm:$0xff]  ;;  %v16815_v51 = vld [vmem:[#allocation99_spill] sm:$0xff] }
 0x4ae   :  { %4332 = vrot.lane.b32.xlu1 %v16808_v2, %s7492_s4  ;;  %4043 = vrot.lane.b32.xlu0 %v11724_v60, %s7485_s19  ;;  %v4028_v29 = vpop.permute.xlu0 %4027 }
 0x4b0   :  { %v4379_v17 = vpop.permute.xlu1 %4378 }
 0x4b1   :  { %v4916_v44 = vsel %vm4912_vm0, %v4852_v1, %v4379_v17 }
 0x4b2   :  { %4394 = vrot.lane.b32.xlu1 %v16810_v54, %s7493_s11  ;;  %4137 = vrot.lane.b32.xlu0 %v16808_v2, %s7487_s1  ;;  %v4122_v60 = vpop.permute.xlu0 %4121 }
 0x4b6   :  { %4456 = vrot.lane.b32.xlu1 %v11733_v52, %s7494_s12  ;;  %v4441_v57 = vpop.permute.xlu1 %4440  ;;  %4203 = vrot.lane.b32.xlu0 %v16810_v54, %s7489_s24  ;;  %v4188_v21 = vpop.permute.xlu0 %4187  ;;  %v16813_v54 = vld [vmem:[#allocation5_spill] sm:$0xff] }
 0x4b7   :  { %v4980_v12 = vsel %vm4976_vm1, %v4916_v44, %v4441_v57  ;;  %7339 = vmatmul.mubr.msk.bf16.vlgmr.msra.gmra.mrb[32].mxu0 %vm1484_vm3, %v16813_v54 }
 0x4b8   :  { %7273 = vmatmul.mubr.msk.bf16.vlgmr.msra.gmra.mrb[32].mxu1 %vm5076_vm5, %v4980_v12  ;;  %7342 = vmatprep.mubr.msk.bf16.mxu0 %vm1484_vm3, %v16814_v14  ;;  %v16816_v12 = vld [vmem:[#allocation11_spill] sm:$0xff] }
 0x4ba   :  { %4045 = vrot.lane.b32.xlu1 %v11733_v52, %s7485_s19  ;;  %v4030_v10 = vpop.permute.xlu1 %4029  ;;  %4269 = vrot.lane.b32.xlu0 %v11733_v52, %s7491_s30  ;;  %v4254_v39 = vpop.permute.xlu0 %4253  ;;  %v4508_v52 = vsel %vm1581_vm4, %v11561_v53, %v12138_v16  ;;  %v4511_v53 = vsel %vm1581_vm4, %v16730_v25, %v12148_v61 }
 0x4bb   :  { %v4598_v13 = vsel %vm1711_vm6, %v4508_v52, %v4028_v29  ;;  %v16818_v29 = vld [vmem:[#allocation72_spill] sm:$0xff] }
 0x4bc   :  { %v4660_v1 = vsel %vm1841_vm8, %v4598_v13, %v4122_v60  ;;  %v4600_v60 = vsel %vm1711_vm6, %v4511_v53, %v4030_v10  ;;  %v16823_v53 = vld [vmem:[#allocation25_spill] sm:$0xff] }
 0x4bd   :  { %v4724_v63 = vsel %vm1971_vm10, %v4660_v1, %v4188_v21  ;;  %v16819_v1 = vld [vmem:[#allocation21_spill] sm:$0xff] }
 0x4be   :  { %4139 = vrot.lane.b32.xlu1 %v16811_v41, %s7487_s1  ;;  %4334 = vrot.lane.b32.xlu0 %v16811_v41, %s7492_s4  ;;  %v4789_v16 = vsel %vm4783_vm14, %v4724_v63, %v4254_v39 }
 0x4bf   :  { %7343 = vmatmul.mubr.msk.bf16.gmra.mrb[36].mxu0 %vm1484_vm3, %v16816_v12 }
 0x4c0   :  { %v4124_v20 = vpop.permute.xlu1 %4123  ;;  %v4319_v62 = vpop.permute.xlu0 %4318  ;;  %7346 = vmatprep.mubr.msk.bf16.mxu0 %vm1484_vm3, %v16817_v45  ;;  %v16822_v45 = vld [vmem:[#allocation28_spill] sm:$0xff] }
 0x4c1   :  { %v4662_v21 = vsel %vm1841_vm8, %v4600_v60, %v4124_v20 }
 0x4c2   :  { %4205 = vrot.lane.b32.xlu1 %v16812_v6, %s7489_s24  ;;  %4396 = vrot.lane.b32.xlu0 %v16812_v6, %s7493_s11  ;;  %v4854_v6 = vsel %vm4848_vm15, %v4789_v16, %v4319_v62  ;;  %v16824_v16 = vld [vmem:[#allocation73_spill] sm:$0xff] }
 0x4c4   :  { %v4190_v18 = vpop.permute.xlu1 %4189  ;;  %v4381_v57 = vpop.permute.xlu0 %4380 }
 0x4c5   :  { %v4918_v54 = vsel %vm4912_vm0, %v4854_v6, %v4381_v57  ;;  %v4726_v25 = vsel %vm1971_vm10, %v4662_v21, %v4190_v18  ;;  %v16821_v57 = vld [vmem:[#allocation32_spill] sm:$0xff] }
 0x4c6   :  { %4271 = vrot.lane.b32.xlu1 %v11744_v40, %s7491_s30  ;;  %4458 = vrot.lane.b32.xlu0 %v11744_v40, %s7494_s12 }
 0x4c7   :  { %7347 = vmatmul.mubr.msk.bf16.gmra.mrb[40].mxu0 %vm1484_vm3, %v16819_v1 }
 0x4c8   :  { %v4256_v17 = vpop.permute.xlu1 %4255  ;;  %v4443_v52 = vpop.permute.xlu0 %4442 }
 0x4c9   :  { %v4982_v61 = vsel %vm4976_vm1, %v4918_v54, %v4443_v52  ;;  %v4791_v39 = vsel %vm4783_vm14, %v4726_v25, %v4256_v17  ;;  %v16820_v17 = vld [vmem:[#allocation13_spill] sm:$0xff]  ;;  %v16825_v54 = vld [vmem:[#allocation38_spill] sm:$0xff] }
 0x4ca   :  { %4336 = vrot.lane.b32.xlu1 %v16815_v51, %s7492_s4  ;;  %4047 = vrot.lane.b32.xlu0 %v11744_v40, %s7485_s19  ;;  %v16827_v52 = vld [vmem:[#allocation33_spill] sm:$0xff] }
 0x4cb   :  { %7276 = vmatprep.mubr.msk.bf16.mxu1 %vm5076_vm5, %v4982_v61  ;;  %7350 = vmatprep.mubr.msk.bf16.mxu0 %vm1484_vm3, %v16820_v17 }
 0x4cc   :  { %v4321_v44 = vpop.permute.xlu1 %4320  ;;  %v4032_v13 = vpop.permute.xlu0 %4031 }
 0x4cd   :  { %v4856_v10 = vsel %vm4848_vm15, %v4791_v39, %v4321_v44 }
 0x4ce   :  { %4398 = vrot.lane.b32.xlu1 %v16818_v29, %s7493_s11  ;;  %4141 = vrot.lane.b32.xlu0 %v16815_v51, %s7487_s1 }
 0x4cf   :  { %7351 = vmatmul.mubr.msk.bf16.gmra.mrb[44].mxu0 %vm1484_vm3, %v16822_v45  ;;  %v16829_v45 = vld [vmem:[#allocation43_spill] sm:$0xff] }
 0x4d0   :  { %v4383_v14 = vpop.permute.xlu1 %4382  ;;  %v4126_v44 = vpop.permute.xlu0 %4125  ;;  %7354 = vmatprep.mubr.msk.bf16.mxu0 %vm1484_vm3, %v16823_v53  ;;  %v16830_v53 = vld [vmem:[#allocation41_spill] sm:$0xff] }
 0x4d1   :  { %v4920_v20 = vsel %vm4912_vm0, %v4856_v10, %v4383_v14  ;;  %v16826_v14 = vld [vmem:[#allocation34_spill] sm:$0xff] }
 0x4d2   :  { %4460 = vrot.lane.b32.xlu1 %v11762_v23, %s7494_s12  ;;  %4207 = vrot.lane.b32.xlu0 %v16818_v29, %s7489_s24 }
 0x4d4   :  { %v4445_v62 = vpop.permute.xlu1 %4444  ;;  %v4192_v63 = vpop.permute.xlu0 %4191 }
 0x4d5   :  { %v4984_v18 = vsel %vm4976_vm1, %v4920_v20, %v4445_v62  ;;  %v4517_v62 = vsel %vm1581_vm4, %v16786_v28, %v12156_v0 }
 0x4d6   :  { %4049 = vrot.lane.b32.xlu1 %v11762_v23, %s7485_s19  ;;  %7277 = vmatmul.mubr.msk.bf16.gmra.mrb[36].mxu1 %vm5076_vm5, %v4984_v18 }
 0x4d7   :  { %4273 = vrot.lane.b32.xlu0 %v11762_v23, %s7491_s30  ;;  %7355 = vmatmul.mubr.msk.bf16.gmra.mrb[48].mxu0 %vm1484_vm3, %v16825_v54  ;;  %v4514_v23 = vsel %vm1581_vm4, %v12096_v26, %v12150_v3  ;;  %v16828_v3 = vld [vmem:[#allocation124_spill] sm:$0xff]  ;;  %v16831_v54 = vld [vmem:[#allocation45_spill] sm:$0xff] }
 0x4d8   :  { %v4034_v40 = vpop.permute.xlu1 %4033  ;;  %v4258_v6 = vpop.permute.xlu0 %4257  ;;  %7358 = vmatprep.mubr.msk.bf16.mxu0 %vm1484_vm3, %v16826_v14  ;;  %v4602_v25 = vsel %vm1711_vm6, %v4514_v23, %v4032_v13  ;;  %v16832_v14 = vld [vmem:[#allocation44_spill] sm:$0xff] }
 0x4d9   :  { %v4664_v61 = vsel %vm1841_vm8, %v4602_v25, %v4126_v44  ;;  %v4604_v13 = vsel %vm1711_vm6, %v4517_v62, %v4034_v40 }
 0x4da   :  { %4143 = vrot.lane.b32.xlu1 %v16821_v57, %s7487_s1  ;;  %v4728_v20 = vsel %vm1971_vm10, %v4664_v61, %v4192_v63 }
 0x4db   :  { %4338 = vrot.lane.b32.xlu0 %v16821_v57, %s7492_s4  ;;  %v4793_v26 = vsel %vm4783_vm14, %v4728_v20, %v4258_v6  ;;  %v16834_v20 = vld [vmem:[#allocation46_spill] sm:$0xff] }
 0x4dc   :  { %v4128_v12 = vpop.permute.xlu1 %4127  ;;  %v4323_v21 = vpop.permute.xlu0 %4322 }
 0x4dd   :  { %v4858_v1 = vsel %vm4848_vm15, %v4793_v26, %v4323_v21  ;;  %v4666_v18 = vsel %vm1841_vm8, %v4604_v13, %v4128_v12 }
 0x4de   :  { %4209 = vrot.lane.b32.xlu1 %v16824_v16, %s7489_s24 }
 0x4df   :  { %4400 = vrot.lane.b32.xlu0 %v16824_v16, %s7493_s11  ;;  %7359 = vmatmul.mubr.msk.bf16.gmra.mrb[52].mxu0 %vm1484_vm3, %v16829_v45 }
 0x4e0   :  { %v4194_v60 = vpop.permute.xlu1 %4193  ;;  %v4385_v10 = vpop.permute.xlu0 %4384  ;;  %7362 = vmatprep.mubr.msk.bf16.mxu0 %vm1484_vm3, %v16830_v53 }
 0x4e1   :  { %v4922_v17 = vsel %vm4912_vm0, %v4858_v1, %v4385_v10  ;;  %v4730_v28 = vsel %vm1971_vm10, %v4666_v18, %v4194_v60  ;;  %v16833_v10 = vld [vmem:[#allocation3_spill] sm:$0xff] }
 0x4e2   :  { %4275 = vrot.lane.b32.xlu1 %v11764_v50, %s7491_s30 }
 0x4e3   :  { %4462 = vrot.lane.b32.xlu0 %v11764_v50, %s7494_s12 }
 0x4e4   :  { %v4260_v29 = vpop.permute.xlu1 %4259  ;;  %v4447_v63 = vpop.permute.xlu0 %4446 }
 0x4e5   :  { %v4986_v0 = vsel %vm4976_vm1, %v4922_v17, %v4447_v63  ;;  %v4795_v40 = vsel %vm4783_vm14, %v4730_v28, %v4260_v29  ;;  %v16836_v63 = vld [vmem:[#allocation47_spill] sm:$0xff] }
 0x4e6   :  { %4340 = vrot.lane.b32.xlu1 %v16827_v52, %s7492_s4  ;;  %7280 = vmatprep.mubr.msk.bf16.mxu1 %vm5076_vm5, %v4986_v0 }
 0x4e7   :  { %4051 = vrot.lane.b32.xlu0 %v11764_v50, %s7485_s19  ;;  %7363 = vmatmul.mubr.msk.bf16.gmra.mrb[56].mxu0 %vm1484_vm3, %v16831_v54  ;;  %v16839_v54 = vld [vmem:[#allocation49_spill] sm:$0xff] }
 0x4e8   :  { %v4325_v39 = vpop.permute.xlu1 %4324  ;;  %v4036_v6 = vpop.permute.xlu0 %4035  ;;  %7366 = vmatprep.mubr.msk.bf16.mxu0 %vm1484_vm3, %v16832_v14  ;;  %v16841_v14 = vld [vmem:[#allocation65_spill] sm:$0xff] }
 0x4e9   :  { %v4860_v12 = vsel %vm4848_vm15, %v4795_v40, %v4325_v39 }
 0x4ea   :  { %4402 = vrot.lane.b32.xlu1 %v16828_v3, %s7493_s11 }
 0x4eb   :  { %4145 = vrot.lane.b32.xlu0 %v16827_v52, %s7487_s1 }
 0x4ec   :  { %v4387_v44 = vpop.permute.xlu1 %4386  ;;  %v4130_v50 = vpop.permute.xlu0 %4129 }
 0x4ed   :  { %v4924_v16 = vsel %vm4912_vm0, %v4860_v12, %v4387_v44  ;;  %v16835_v44 = vld [vmem:[#allocation48_spill] sm:$0xff] }
 0x4ee   :  { %4464 = vrot.lane.b32.xlu1 %v11783_v9, %s7494_s12 }
 0x4ef   :  { %4211 = vrot.lane.b32.xlu0 %v16828_v3, %s7489_s24  ;;  %7367 = vmatmul.mubr.msk.bf16.gmra.mrb[60].mxu0 %vm1484_vm3, %v16833_v10  ;;  %v7495_v3 = vmov 0.0|0.0  }
 0x4f0   :  { %v4449_v60 = vpop.permute.xlu1 %4448  ;;  %v4196_v25 = vpop.permute.xlu0 %4195  ;;  %7370 = vmatprep.mubr.msk.bf16.mxu0 %vm1484_vm3, %v16834_v20 }
 0x4f1   :  { %v4988_v21 = vsel %vm4976_vm1, %v4924_v16, %v4449_v60 }
 0x4f2   :  { %4053 = vrot.lane.b32.xlu1 %v11783_v9, %s7485_s19  ;;  %7281 = vmatmul.mubr.msk.bf16.gmra.mrb[40].mxu1 %vm5076_vm5, %v4988_v21 }
 0x4f3   :  { %4277 = vrot.lane.b32.xlu0 %v11783_v9, %s7491_s30  ;;  %v4520_v9 = vsel %vm1581_vm4, %v16788_v48, %v12158_v33  ;;  %v4523_v48 = vsel %vm1581_vm4, %v16790_v35, %v12164_v24  ;;  %v16837_v33 = vld [vmem:[#allocation4_spill] sm:$0xff] }
 0x4f4   :  { %v4038_v29 = vpop.permute.xlu1 %4037  ;;  %v4262_v39 = vpop.permute.xlu0 %4261  ;;  %v4606_v13 = vsel %vm1711_vm6, %v4520_v9, %v4036_v6 }
 0x4f5   :  { %v4668_v1 = vsel %vm1841_vm8, %v4606_v13, %v4130_v50  ;;  %v4608_v45 = vsel %vm1711_vm6, %v4523_v48, %v4038_v29  ;;  %v16838_v29 = vld [vmem:[#allocation50_spill] sm:$0xff] }
 0x4f6   :  { %4147 = vrot.lane.b32.xlu1 %v11786_v5, %s7487_s1  ;;  %v16846_v13 = vld [vmem:[#allocation66_spill] sm:$0xff] }
 0x4f7   :  { %4342 = vrot.lane.b32.xlu0 %v11786_v5, %s7492_s4  ;;  %7371 = vmatmul.mubr.msk.bf16.gmra.mrb[64].mxu0 %vm1484_vm3, %v16835_v44  ;;  %v4732_v5 = vsel %vm1971_vm10, %v4668_v1, %v4196_v25  ;;  %v16848_v44 = vld [vmem:[#allocation53_spill] sm:$0xff] }
 0x4f8   :  { %v4132_v23 = vpop.permute.xlu1 %4131  ;;  %v4327_v26 = vpop.permute.xlu0 %4326  ;;  %7374 = vmatprep.mubr.msk.bf16.mxu0 %vm1484_vm3, %v16836_v63 }
 0x4f9   :  { %v4670_v0 = vsel %vm1841_vm8, %v4608_v45, %v4132_v23 }
 0x4fa   :  { %4213 = vrot.lane.b32.xlu1 %v11817_v37, %s7489_s24 }
 0x4fb   :  { %4404 = vrot.lane.b32.xlu0 %v11817_v37, %s7493_s11  ;;  %v4797_v37 = vsel %vm4783_vm14, %v4732_v5, %v4262_v39  ;;  %v16843_v39 = vld [vmem:[#allocation125_spill] sm:$0xff]  ;;  %v16849_v5 = vld [vmem:[#allocation78_spill] sm:$0xff] }
 0x4fc   :  { %v4198_v61 = vpop.permute.xlu1 %4197  ;;  %v4389_v17 = vpop.permute.xlu0 %4388  ;;  %v4862_v28 = vsel %vm4848_vm15, %v4797_v37, %v4327_v26  ;;  %v16845_v26 = vld [vmem:[#allocation51_spill] sm:$0xff] }
 0x4fd   :  { %v4926_v53 = vsel %vm4912_vm0, %v4862_v28, %v4389_v17  ;;  %v4734_v35 = vsel %vm1971_vm10, %v4670_v0, %v4198_v61  ;;  %v16842_v61 = vld [vmem:[#allocation123_spill] sm:$0xff]  ;;  %v16847_v17 = vld [vmem:[#allocation54_spill] sm:$0xff]  ;;  %v4529_v28 = vsel %vm1581_vm4, %v16799_v42, %v12172_v56 }
 0x4fe   :  { %4279 = vrot.lane.b32.xlu1 %v11825_v7, %s7491_s30 }
 0x4ff   :  { %4466 = vrot.lane.b32.xlu0 %v11825_v7, %s7494_s12  ;;  %7375 = vmatmul.mubr.msk.bf16.gmra.mrb[68].mxu0 %vm1484_vm3, %v16838_v29 }
 0x500   :  { %v4264_v62 = vpop.permute.xlu1 %4263  ;;  %v4451_v12 = vpop.permute.xlu0 %4450  ;;  %7378 = vmatprep.mubr.msk.bf16.mxu0 %vm1484_vm3, %v16839_v54  ;;  %v16852_v54 = vld [vmem:[#allocation100_spill] sm:$0xff] }
 0x501   :  { %v4990_v24 = vsel %vm4976_vm1, %v4926_v53, %v4451_v12  ;;  %v4799_v16 = vsel %vm4783_vm14, %v4734_v35, %v4264_v62  ;;  %v16844_v62 = vld [vmem:[#allocation52_spill] sm:$0xff] }
 0x502   :  { %4344 = vrot.lane.b32.xlu1 %v7495_v3, %s7492_s4  ;;  %7284 = vmatprep.mubr.msk.bf16.mxu1 %vm5076_vm5, %v4990_v24  ;;  %v16850_v24 = vld [vmem:[#allocation56_spill] sm:$0xff] }
 0x503   :  { %4055 = vrot.lane.b32.xlu0 %v11822_v32, %s7485_s19 }
 0x504   :  { %v4329_v18 = vpop.permute.xlu1 %4328  ;;  %v4040_v21 = vpop.permute.xlu0 %4039 }
 0x505   :  { %v4864_v7 = vsel %vm4848_vm15, %v4799_v16, %v4329_v18  ;;  %v16851_v16 = vld [vmem:[#allocation55_spill] sm:$0xff] }
 0x506   :  { %4406 = vrot.lane.b32.xlu1 %v16837_v33, %s7493_s11 }
 0x507   :  { %4151 = vrot.lane.b32.xlu0 %v16841_v14, %s7487_s1  ;;  %7379 = vmatmul.mubr.msk.bf16.gmra.mrb[72].mxu0 %vm1484_vm3, %v16844_v62 }
 0x508   :  { %v4391_v40 = vpop.permute.xlu1 %4390  ;;  %v4134_v25 = vpop.permute.xlu0 %4133  ;;  %7382 = vmatprep.mubr.msk.bf16.mxu0 %vm1484_vm3, %v16845_v26 }
 0x509   :  { %v4928_v60 = vsel %vm4912_vm0, %v4864_v7, %v4391_v40 }
 0x50a   :  { %4468 = vrot.lane.b32.xlu1 %v11557_v19, %s7494_s12  ;;  %v16840_v19 = vld [vmem:[#allocation7_spill] sm:$0xff] }
 0x50b   :  { %4217 = vrot.lane.b32.xlu0 %v16843_v39, %s7489_s24 }
 0x50c   :  { %v4453_v6 = vpop.permute.xlu1 %4452  ;;  %v4200_v20 = vpop.permute.xlu0 %4199 }
 0x50d   :  { %v4992_v50 = vsel %vm4976_vm1, %v4928_v60, %v4453_v6 }
 0x50e   :  { %4149 = vrot.lane.b32.xlu1 %v16840_v19, %s7487_s1  ;;  %7285 = vmatmul.mubr.msk.bf16.gmra.mrb[44].mxu1 %vm5076_vm5, %v4992_v50 }
 0x50f   :  { %4283 = vrot.lane.b32.xlu0 %v11827_v34, %s7491_s30  ;;  %7383 = vmatmul.mubr.msk.bf16.gmra.mrb[76].mxu0 %vm1484_vm3, %v16847_v17 }
 0x510   :  { %v4042_v23 = vpop.permute.xlu1 %4041  ;;  %v4266_v3 = vpop.permute.xlu0 %4265  ;;  %7386 = vmatprep.mubr.msk.bf16.mxu0 %vm1484_vm3, %v16848_v44  ;;  %v16859_v44 = vld [vmem:[#allocation126_spill] sm:$0xff] }
 0x512   :  { %4215 = vrot.lane.b32.xlu1 %v16842_v61, %s7489_s24  ;;  %v16854_v61 = vld [vmem:[#allocation57_spill] sm:$0xff] }
 0x513   :  { %4348 = vrot.lane.b32.xlu0 %v16846_v13, %s7492_s4 }
 0x514   :  { %v4136_v10 = vpop.permute.xlu1 %4135  ;;  %v4331_v18 = vpop.permute.xlu0 %4330 }
 0x516   :  { %4281 = vrot.lane.b32.xlu1 %v11822_v32, %s7491_s30  ;;  %v4526_v32 = vsel %vm1581_vm4, %v16792_v31, %v12166_v59  ;;  %v4612_v31 = vsel %vm1711_vm6, %v4529_v28, %v4042_v23 }
 0x517   :  { %4410 = vrot.lane.b32.xlu0 %v16849_v5, %s7493_s11  ;;  %v4610_v63 = vsel %vm1711_vm6, %v4526_v32, %v4040_v21  ;;  %v4674_v53 = vsel %vm1841_vm8, %v4612_v31, %v4136_v10  ;;  %7387 = vmatmul.mubr.msk.bf16.gmra.mrb[80].mxu0 %vm1484_vm3, %v16850_v24 }
 0x518   :  { %v4202_v9 = vpop.permute.xlu1 %4201  ;;  %v4672_v48 = vsel %vm1841_vm8, %v4610_v63, %v4134_v25  ;;  %v4393_v33 = vpop.permute.xlu0 %4392  ;;  %7390 = vmatprep.mubr.msk.bf16.mxu0 %vm1484_vm3, %v16851_v16  ;;  %v16853_v25 = vld [vmem:[#allocation58_spill] sm:$0xff]  ;;  %v16861_v16 = vld [vmem:[#allocation68_spill] sm:$0xff] }
 0x519   :  { %v4736_v45 = vsel %vm1971_vm10, %v4672_v48, %v4200_v20  ;;  %v4738_v42 = vsel %vm1971_vm10, %v4674_v53, %v4202_v9  ;;  %v16856_v9 = vld [vmem:[#allocation60_spill] sm:$0xff] }
 0x51a   :  { %4346 = vrot.lane.b32.xlu1 %v16841_v14, %s7492_s4  ;;  %v4801_v59 = vsel %vm4783_vm14, %v4736_v45, %v4266_v3  ;;  %v16857_v3 = vld [vmem:[#allocation59_spill] sm:$0xff] }
 0x51b   :  { %4472 = vrot.lane.b32.xlu0 %v11835_v4, %s7494_s12  ;;  %v4866_v0 = vsel %vm4848_vm15, %v4801_v59, %v4331_v18 }
 0x51c   :  { %v4268_v1 = vpop.permute.xlu1 %4267  ;;  %v4930_v40 = vsel %vm4912_vm0, %v4866_v0, %v4393_v33  ;;  %v4455_v35 = vpop.permute.xlu0 %4454 }
 0x51d   :  { %v4994_v56 = vsel %vm4976_vm1, %v4930_v40, %v4455_v35  ;;  %v4803_v7 = vsel %vm4783_vm14, %v4738_v42, %v4268_v1  ;;  %v16858_v1 = vld [vmem:[#allocation67_spill] sm:$0xff] }
 0x51e   :  { %4408 = vrot.lane.b32.xlu1 %v16843_v39, %s7493_s11  ;;  %7288 = vmatprep.mubr.msk.bf16.mxu1 %vm5076_vm5, %v4994_v56  ;;  %v16855_v39 = vld [vmem:[#allocation127_spill] sm:$0xff] }
 0x51f   :  { %4059 = vrot.lane.b32.xlu0 %v11835_v4, %s7485_s19  ;;  %7391 = vmatmul.mubr.msk.bf16.gmra.mrb[84].mxu0 %vm1484_vm3, %v16853_v25  ;;  %v4538_v25 = vsel %vm1581_vm4, %v16811_v41, %v12182_v15 }
 0x520   :  { %v4333_v37 = vpop.permute.xlu1 %4332  ;;  %v4044_v29 = vpop.permute.xlu0 %4043  ;;  %7394 = vmatprep.mubr.msk.bf16.mxu0 %vm1484_vm3, %v16854_v61 }
 0x521   :  { %v4868_v60 = vsel %vm4848_vm15, %v4803_v7, %v4333_v37  ;;  %v16860_v37 = vld [vmem:[#allocation2_spill] sm:$0xff] }
 0x522   :  { %4470 = vrot.lane.b32.xlu1 %v11827_v34, %s7494_s12 }
 0x523   :  { %4155 = vrot.lane.b32.xlu0 %v16852_v54, %s7487_s1 }
 0x524   :  { %v4395_v12 = vpop.permute.xlu1 %4394  ;;  %v4138_v23 = vpop.permute.xlu0 %4137 }
 0x525   :  { %v4932_v6 = vsel %vm4912_vm0, %v4868_v60, %v4395_v12 }
 0x526   :  { %4057 = vrot.lane.b32.xlu1 %v11827_v34, %s7485_s19 }
 0x527   :  { %4221 = vrot.lane.b32.xlu0 %v16855_v39, %s7489_s24  ;;  %7395 = vmatmul.mubr.msk.bf16.gmra.mrb[88].mxu0 %vm1484_vm3, %v16856_v9 }
 0x528   :  { %v4457_v21 = vpop.permute.xlu1 %4456  ;;  %v4204_v20 = vpop.permute.xlu0 %4203  ;;  %7398 = vmatprep.mubr.msk.bf16.mxu0 %vm1484_vm3, %v16857_v3 }
 0x529   :  { %v4996_v50 = vsel %vm4976_vm1, %v4932_v6, %v4457_v21 }
 0x52a   :  { %4153 = vrot.lane.b32.xlu1 %v16846_v13, %s7487_s1  ;;  %7289 = vmatmul.mubr.msk.bf16.gmra.mrb[48].mxu1 %vm5076_vm5, %v4996_v50  ;;  %v16862_v50 = vld [vmem:[#allocation70_spill] sm:$0xff] }
 0x52b   :  { %4287 = vrot.lane.b32.xlu0 %v11850_v49, %s7491_s30 }
 0x52c   :  { %v4046_v34 = vpop.permute.xlu1 %4045  ;;  %v4270_v26 = vpop.permute.xlu0 %4269 }
 0x52e   :  { %4219 = vrot.lane.b32.xlu1 %v16849_v5, %s7489_s24 }
 0x52f   :  { %4352 = vrot.lane.b32.xlu0 %v16858_v1, %s7492_s4  ;;  %7399 = vmatmul.mubr.msk.bf16.gmra.mrb[92].mxu0 %vm1484_vm3, %v16860_v37 }
 0x530   :  { %v4140_v10 = vpop.permute.xlu1 %4139  ;;  %v4335_v17 = vpop.permute.xlu0 %4334 }
 0x532   :  { %4285 = vrot.lane.b32.xlu1 %v11835_v4, %s7491_s30  ;;  %v4532_v4 = vsel %vm1581_vm4, %v16806_v30, %v12174_v43  ;;  %v4535_v30 = vsel %vm1581_vm4, %v16808_v2, %v12180_v47 }
 0x533   :  { %4414 = vrot.lane.b32.xlu0 %v16859_v44, %s7493_s11  ;;  %v4614_v32 = vsel %vm1711_vm6, %v4532_v4, %v4044_v29  ;;  %v4616_v45 = vsel %vm1711_vm6, %v4535_v30, %v4046_v34 }
 0x534   :  { %v4206_v62 = vpop.permute.xlu1 %4205  ;;  %v4676_v5 = vsel %vm1841_vm8, %v4614_v32, %v4138_v23  ;;  %v4397_v48 = vpop.permute.xlu0 %4396  ;;  %v4678_v59 = vsel %vm1841_vm8, %v4616_v45, %v4140_v10 }
 0x535   :  { %v4740_v33 = vsel %vm1971_vm10, %v4676_v5, %v4204_v20  ;;  %v4742_v2 = vsel %vm1971_vm10, %v4678_v59, %v4206_v62  ;;  %v4541_v62 = vsel %vm1581_vm4, %v16815_v51, %v12188_v55  ;;  %v16864_v59 = vld [vmem:[#allocation91_spill] sm:$0xff] }
 0x536   :  { %4350 = vrot.lane.b32.xlu1 %v16852_v54, %s7492_s4  ;;  %v4805_v43 = vsel %vm4783_vm14, %v4740_v33, %v4270_v26 }
 0x537   :  { %4476 = vrot.lane.b32.xlu0 %v11868_v8, %s7494_s12  ;;  %v4870_v28 = vsel %vm4848_vm15, %v4805_v43, %v4335_v17 }
 0x538   :  { %v4272_v18 = vpop.permute.xlu1 %4271  ;;  %v4934_v31 = vsel %vm4912_vm0, %v4870_v28, %v4397_v48  ;;  %v4459_v53 = vpop.permute.xlu0 %4458  ;;  %v16863_v48 = vld [vmem:[#allocation74_spill] sm:$0xff] }
 0x539   :  { %v4998_v47 = vsel %vm4976_vm1, %v4934_v31, %v4459_v53  ;;  %v4807_v40 = vsel %vm4783_vm14, %v4742_v2, %v4272_v18  ;;  %v4544_v31 = vsel %vm1581_vm4, %v16821_v57, %v16864_v59 }
 0x53a   :  { %4412 = vrot.lane.b32.xlu1 %v16855_v39, %s7493_s11  ;;  %7292 = vmatprep.mubr.msk.bf16.mxu1 %vm5076_vm5, %v4998_v47 }
 0x53b   :  { %4063 = vrot.lane.b32.xlu0 %v11868_v8, %s7485_s19 }
 0x53c   :  { %v4337_v63 = vpop.permute.xlu1 %4336  ;;  %v4048_v42 = vpop.permute.xlu0 %4047 }
 0x53d   :  { %v4872_v12 = vsel %vm4848_vm15, %v4807_v40, %v4337_v63 }
 0x53e   :  { %4474 = vrot.lane.b32.xlu1 %v11850_v49, %s7494_s12 }
 0x53f   :  { %4159 = vrot.lane.b32.xlu0 %v16861_v16, %s7487_s1 }
 0x540   :  { %v4399_v0 = vpop.permute.xlu1 %4398  ;;  %v4142_v7 = vpop.permute.xlu0 %4141 }
 0x541   :  { %v4936_v35 = vsel %vm4912_vm0, %v4872_v12, %v4399_v0  ;;  %v16867_v12 = vld [vmem:[#allocation15_spill] sm:$0xff] }
 0x542   :  { %4061 = vrot.lane.b32.xlu1 %v11850_v49, %s7485_s19 }
 0x543   :  { %4225 = vrot.lane.b32.xlu0 %v11516_v38, %s7489_s24 }
 0x544   :  { %v4461_v24 = vpop.permute.xlu1 %4460  ;;  %v4208_v6 = vpop.permute.xlu0 %4207 }
 0x545   :  { %v5000_v56 = vsel %vm4976_vm1, %v4936_v35, %v4461_v24  ;;  %v4547_v35 = vsel %vm1581_vm4, %v16827_v52, %v16867_v12 }
 0x546   :  { %4157 = vrot.lane.b32.xlu1 %v16858_v1, %s7487_s1  ;;  %7293 = vmatmul.mubr.msk.bf16.gmra.mrb[52].mxu1 %vm5076_vm5, %v5000_v56 }
 0x547   :  { %4291 = vrot.lane.b32.xlu0 %v11879_v27, %s7491_s30 }
 0x548   :  { %v4050_v49 = vpop.permute.xlu1 %4049 }
 0x549   :  { %v4274_v29 = vpop.permute.xlu0 %4273 }
 0x54a   :  { %4223 = vrot.lane.b32.xlu1 %v16859_v44, %s7489_s24 }
 0x54b   :  { %4356 = vrot.lane.b32.xlu0 %v16862_v50, %s7492_s4 }
 0x54c   :  { %v4144_v60 = vpop.permute.xlu1 %4143 }
 0x54d   :  { %v4339_v23 = vpop.permute.xlu0 %4338 }
 0x54e   :  { %4289 = vrot.lane.b32.xlu1 %v11868_v8, %s7491_s30  ;;  %v4618_v8 = vsel %vm1711_vm6, %v4538_v25, %v4048_v42 }
 0x54f   :  { %4418 = vrot.lane.b32.xlu0 %v11514_v36, %s7493_s11  ;;  %v4680_v61 = vsel %vm1841_vm8, %v4618_v8, %v4142_v7 }
 0x550   :  { %v4210_v21 = vpop.permute.xlu1 %4209  ;;  %v4744_v20 = vsel %vm1971_vm10, %v4680_v61, %v4208_v6 }
 0x551   :  { %v4401_v10 = vpop.permute.xlu0 %4400  ;;  %v4809_v15 = vsel %vm4783_vm14, %v4744_v20, %v4274_v29 }
 0x552   :  { %4354 = vrot.lane.b32.xlu1 %v16861_v16, %s7492_s4  ;;  %v4874_v41 = vsel %vm4848_vm15, %v4809_v15, %v4339_v23 }
 0x553   :  { %4480 = vrot.lane.b32.xlu0 %v11894_v58, %s7494_s12  ;;  %v4938_v9 = vsel %vm4912_vm0, %v4874_v41, %v4401_v10  ;;  %v16873_v41 = vld [vmem:[#allocation102_spill] sm:$0xff] }
 0x554   :  { %v4276_v34 = vpop.permute.xlu1 %4275 }
 0x555   :  { %v4463_v18 = vpop.permute.xlu0 %4462 }
 0x556   :  { %4416 = vrot.lane.b32.xlu1 %v11516_v38, %s7493_s11  ;;  %v4620_v38 = vsel %vm1711_vm6, %v4541_v62, %v4050_v49  ;;  %v5002_v51 = vsel %vm4976_vm1, %v4938_v9, %v4463_v18  ;;  %v16872_v62 = vld [vmem:[#allocation79_spill] sm:$0xff] }
 0x557   :  { %v4682_v26 = vsel %vm1841_vm8, %v4620_v38, %v4144_v60  ;;  %4067 = vrot.lane.b32.xlu0 %v11894_v58, %s7485_s19  ;;  %7296 = vmatprep.mubr.msk.bf16.mxu1 %vm5076_vm5, %v5002_v51 }
 0x558   :  { %v4341_v39 = vpop.permute.xlu1 %4340  ;;  %v4746_v55 = vsel %vm1971_vm10, %v4682_v26, %v4210_v21 }
 0x559   :  { %v4811_v17 = vsel %vm4783_vm14, %v4746_v55, %v4276_v34  ;;  %v4052_v5 = vpop.permute.xlu0 %4051 }
 0x55a   :  { %4478 = vrot.lane.b32.xlu1 %v11879_v27, %s7494_s12  ;;  %v4876_v4 = vsel %vm4848_vm15, %v4811_v17, %v4341_v39  ;;  %v4622_v0 = vsel %vm1711_vm6, %v4544_v31, %v4052_v5  ;;  %v16871_v39 = vld [vmem:[#allocation76_spill] sm:$0xff]  ;;  %v16876_v17 = vld [vmem:[#allocation77_spill] sm:$0xff] }
 0x55b   :  { %4163 = vrot.lane.b32.xlu0 %v16863_v48, %s7487_s1 }
 0x55c   :  { %v4403_v3 = vpop.permute.xlu1 %4402 }
 0x55d   :  { %v4940_v44 = vsel %vm4912_vm0, %v4876_v4, %v4403_v3  ;;  %v4146_v37 = vpop.permute.xlu0 %4145  ;;  %v16874_v3 = vld [vmem:[#allocation37_spill] sm:$0xff]  ;;  %v16877_v4 = vld [vmem:[#allocation19_spill] sm:$0xff] }
 0x55e   :  { %4065 = vrot.lane.b32.xlu1 %v11879_v27, %s7485_s19  ;;  %v4684_v53 = vsel %vm1841_vm8, %v4622_v0, %v4146_v37  ;;  %v4550_v18 = vsel %vm1581_vm4, %v16840_v19, %v16874_v3  ;;  %v16881_v0 = vld [vmem:[#allocation103_spill] sm:$0xff] }
 0x55f   :  { %4229 = vrot.lane.b32.xlu0 %v11531_v46, %s7489_s24 }
 0x560   :  { %v4465_v32 = vpop.permute.xlu1 %4464 }
 0x561   :  { %v5004_v63 = vsel %vm4976_vm1, %v4940_v44, %v4465_v32  ;;  %v4212_v30 = vpop.permute.xlu0 %4211 }
 0x562   :  { %4161 = vrot.lane.b32.xlu1 %v16862_v50, %s7487_s1  ;;  %7297 = vmatmul.mubr.msk.bf16.gmra.mrb[56].mxu1 %vm5076_vm5, %v5004_v63  ;;  %v4748_v40 = vsel %vm1971_vm10, %v4684_v53, %v4212_v30 }
 0x563   :  { %4295 = vrot.lane.b32.xlu0 %v11896_v11, %s7491_s30 }
 0x564   :  { %v4054_v27 = vpop.permute.xlu1 %4053 }
 0x565   :  { %v4278_v45 = vpop.permute.xlu0 %4277  ;;  %v4624_v24 = vsel %vm1711_vm6, %v4547_v35, %v4054_v27 }
 0x566   :  { %4227 = vrot.lane.b32.xlu1 %v11514_v36, %s7489_s24  ;;  %v4813_v57 = vsel %vm4783_vm14, %v4748_v40, %v4278_v45 }
 0x567   :  { %4360 = vrot.lane.b32.xlu0 %v11904_v22, %s7492_s4 }
 0x568   :  { %v4148_v33 = vpop.permute.xlu1 %4147 }
 0x569   :  { %v4343_v28 = vpop.permute.xlu0 %4342  ;;  %v4686_v56 = vsel %vm1841_vm8, %v4624_v24, %v4148_v33 }
 0x56a   :  { %4293 = vrot.lane.b32.xlu1 %v11894_v58, %s7491_s30  ;;  %v16865_v58 = vld [vmem:[#allocation75_spill] sm:$0xff]  ;;  %v4878_v42 = vsel %vm4848_vm15, %v4813_v57, %v4343_v28 }
 0x56b   :  { %4422 = vrot.lane.b32.xlu0 %v16865_v58, %s7493_s11 }
 0x56c   :  { %v4214_v43 = vpop.permute.xlu1 %4213 }
 0x56d   :  { %v4405_v47 = vpop.permute.xlu0 %4404  ;;  %v4750_v52 = vsel %vm1971_vm10, %v4686_v56, %v4214_v43 }
 0x56e   :  { %4358 = vrot.lane.b32.xlu1 %v16863_v48, %s7492_s4  ;;  %v4942_v49 = vsel %vm4912_vm0, %v4878_v42, %v4405_v47 }
 0x570   :  { %v4280_v36 = vpop.permute.xlu1 %4279 }
 0x571   :  { %v4467_v60 = vpop.permute.xlu0 %4466  ;;  %v4815_v21 = vsel %vm4783_vm14, %v4750_v52, %v4280_v36 }
 0x572   :  { %4420 = vrot.lane.b32.xlu1 %v11531_v46, %s7493_s11  ;;  %v16868_v46 = vld [vmem:[#allocation101_spill] sm:$0xff]  ;;  %v5006_v6 = vsel %vm4976_vm1, %v4942_v49, %v4467_v60 }
 0x573   :  { %4484 = vrot.lane.b32.xlu0 %v16868_v46, %s7494_s12  ;;  %7300 = vmatprep.mubr.msk.bf16.mxu1 %vm5076_vm5, %v5006_v6 }
 0x574   :  { %v12673_v2 = vpop.permute.xlu1 %4344 }
 0x575   :  { %16866 = vst [vmem:[#allocation83_spill] sm:$0xff] %v12673_v2  ;;  %v4880_v29 = vsel %vm4848_vm15, %v4815_v21, %v12673_v2  ;;  %v4056_v25 = vpop.permute.xlu0 %4055 }
 0x576   :  { %4482 = vrot.lane.b32.xlu1 %v11896_v11, %s7494_s12  ;;  %v4626_v55 = vsel %vm1711_vm6, %v4550_v18, %v4056_v25  ;;  %v16882_v25 = vld [vmem:[#allocation104_spill] sm:$0xff] }
 0x577   :  { %4069 = vrot.lane.b32.xlu0 %v11896_v11, %s7485_s19 }
 0x578   :  { %v12688_v7 = vpop.permute.xlu1 %4406 }
 0x579   :  { %16869 = vst [vmem:[#allocation18_spill] sm:$0xff] %v12688_v7  ;;  %v4944_v34 = vsel %vm4912_vm0, %v4880_v29, %v12688_v7  ;;  %v4152_v61 = vpop.permute.xlu0 %4151 }
 0x57a   :  { %3978 = vrot.lane.b32.xlu1 %v16865_v58, %s7483_s14  ;;  %v4690_v32 = vsel %vm1841_vm8, %v4626_v55, %v4152_v61 }
 0x57b   :  { %4165 = vrot.lane.b32.xlu0 %v11904_v22, %s7487_s1 }
 0x57c   :  { %v12702_v23 = vpop.permute.xlu1 %4468 }
 0x57d   :  { %16870 = vst [vmem:[#allocation112_spill] sm:$0xff] %v12702_v23  ;;  %v5008_v8 = vsel %vm4976_vm1, %v4944_v34, %v12702_v23  ;;  %v4218_v20 = vpop.permute.xlu0 %4217 }
 0x57e   :  { %4071 = vrot.lane.b32.xlu1 %v16868_v46, %s7485_s19  ;;  %7301 = vmatmul.mubr.msk.bf16.gmra.mrb[60].mxu1 %vm5076_vm5, %v5008_v8  ;;  %v4754_v19 = vsel %vm1971_vm10, %v4690_v32, %v4218_v20 }
 0x57f   :  { %4231 = vrot.lane.b32.xlu0 %v16865_v58, %s7489_s24 }
 0x580   :  { %v4150_v11 = vpop.permute.xlu1 %4149 }
 0x581   :  { %v4284_v38 = vpop.permute.xlu0 %4283  ;;  %v4688_v44 = vsel %vm1841_vm8, %v16877_v4, %v4150_v11 }
 0x582   :  { %4167 = vrot.lane.b32.xlu1 %v16871_v39, %s7487_s1  ;;  %v4819_v43 = vsel %vm4783_vm14, %v4754_v19, %v4284_v38 }
 0x583   :  { %4297 = vrot.lane.b32.xlu0 %v16868_v46, %s7491_s30 }
 0x584   :  { %v4216_v10 = vpop.permute.xlu1 %4215 }
 0x585   :  { %v4349_v9 = vpop.permute.xlu0 %4348  ;;  %v4752_v63 = vsel %vm1971_vm10, %v4688_v44, %v4216_v10 }
 0x586   :  { %4233 = vrot.lane.b32.xlu1 %v16872_v62, %s7489_s24  ;;  %v4884_v47 = vsel %vm4848_vm15, %v4819_v43, %v4349_v9 }
 0x587   :  { %4362 = vrot.lane.b32.xlu0 %v16871_v39, %s7492_s4 }
 0x588   :  { %v4282_v15 = vpop.permute.xlu1 %4281 }
 0x589   :  { %v4817_v30 = vsel %vm4783_vm14, %v4752_v63, %v4282_v15  ;;  %v4411_v36 = vpop.permute.xlu0 %4410 }
 0x58a   :  { %4299 = vrot.lane.b32.xlu1 %v16873_v41, %s7491_s30  ;;  %v4948_v60 = vsel %vm4912_vm0, %v4884_v47, %v4411_v36  ;;  %v12782_v61 = vpop.f32.mrb[32].mxu0 }
 0x58b   :  { %v12727_v51 = vpop.f32.mrb[32].mxu1  ;;  %4424 = vrot.lane.b32.xlu0 %v16872_v62, %s7493_s11  ;;  %v12786_v15 = vpop.f32.mrb[33].mxu0  ;;  %v6442_v18 = vmul.f32 %v12782_v61, %v12782_v61  ;;  %v6310_v44 = vsel %vm1581_vm4, %v12782_v61, 0.0 }
 0x58c   :  { %v4347_v26 = vpop.permute.xlu1 %4346  ;;  %16875 = vst [vmem:[#allocation81_spill] sm:$0xff] %v12727_v51  ;;  %v12736_v5 = vpop.f32.mrb[33].mxu1  ;;  %v5571_v28 = vmul.f32 %v12727_v51, %v12727_v51  ;;  %v5439_v40 = vsel %vm1581_vm4, %v12727_v51, 0.0  ;;  %v6440_v9 = vmul.f32 %v12786_v15, %v12786_v15  ;;  %v6307_v55 = vsel %vm1581_vm4, %v12786_v15, 0.0 }
 0x58d   :  { %16878 = vst [vmem:[#allocation94_spill] sm:$0xff] %v12736_v5  ;;  %v5569_v27 = vmul.f32 %v12736_v5, %v12736_v5  ;;  %v12742_v37 = vpop.f32.mrb[34].mxu1  ;;  %v5436_v59 = vsel %vm1581_vm4, %v12736_v5, 0.0  ;;  %v4882_v53 = vsel %vm4848_vm15, %v4817_v30, %v4347_v26  ;;  %v4473_v6 = vpop.permute.xlu0 %4472  ;;  %v6507_v43 = vsel %vm1581_vm4, %v6442_v18, 0.0 }
 0x58e   :  { %4364 = vrot.lane.b32.xlu1 %v16876_v17, %s7492_s4  ;;  %16879 = vst [vmem:[#allocation95_spill] sm:$0xff] %v12742_v37  ;;  %v12746_v45 = vpop.f32.mrb[35].mxu1  ;;  %v5572_v57 = vmul.f32 %v12742_v37, %v12742_v37  ;;  %v5636_v21 = vsel %vm1581_vm4, %v5571_v28, 0.0  ;;  %v5441_v29 = vsel %vm1581_vm4, %v12742_v37, 0.0  ;;  %v5012_v34 = vsel %vm4976_vm1, %v4948_v60, %v4473_v6  ;;  %v16905_v37 = vld [vmem:[#allocation109_spill] sm:$0xff] }
 0x58f   :  { %16880 = vst [vmem:[#allocation114_spill] sm:$0xff] %v12746_v45  ;;  %v5437_v31 = vsel %vm1581_vm4, %v12746_v45, 0.0  ;;  %v5570_v58 = vmul.f32 %v12746_v45, %v12746_v45  ;;  %4486 = vrot.lane.b32.xlu0 %v16873_v41, %s7494_s12  ;;  %v5633_v35 = vsel %vm1581_vm4, %v5569_v27, 0.0 }
 0x590   :  { %v4409_v33 = vpop.permute.xlu1 %4408  ;;  %v5438_v12 = vadd.f32 %v5437_v31, %v5436_v59  ;;  %v5638_v10 = vsel %vm1581_vm4, %v5572_v57, 0.0 }
 0x591   :  { %v4946_v46 = vsel %vm4912_vm0, %v4882_v53, %v4409_v33  ;;  %v5634_v24 = vsel %vm1581_vm4, %v5570_v58, 0.0  ;;  %v4060_v38 = vpop.permute.xlu0 %4059  ;;  %v16883_v53 = vld [vmem:[#allocation17_spill] sm:$0xff] }
 0x592   :  { %4426 = vrot.lane.b32.xlu1 %v16881_v0, %s7493_s11  ;;  %v5440_v56 = vadd.f32 %v5439_v40, %v5438_v12  ;;  %v5635_v49 = vadd.f32 %v5634_v24, %v5633_v35  ;;  %v4553_v47 = vsel %vm1581_vm4, %v16841_v14, %v16883_v53  ;;  %v16884_v40 = vld [vmem:[#allocation40_spill] sm:$0xff]  ;;  %v16885_v35 = vld [vmem:[#allocation105_spill] sm:$0xff] }
 0x593   :  { %4488 = vrot.lane.b32.xlu0 %v16882_v25, %s7494_s12  ;;  %v4556_v12 = vsel %vm1581_vm4, %v16846_v13, %v16884_v40 }
 0x594   :  { %v4471_v42 = vpop.permute.xlu1 %4470  ;;  %v5637_v8 = vadd.f32 %v5636_v21, %v5635_v49  ;;  %v12780_v11 = vadd.f32 %v5441_v29, %v5440_v56  ;;  %v4630_v24 = vsel %vm1711_vm6, %v4556_v12, %v4060_v38 }
 0x595   :  { %v5010_v52 = vsel %vm4976_vm1, %v4946_v46, %v4471_v42  ;;  %v4156_v4 = vpop.permute.xlu0 %4155 }
 0x596   :  { %3980 = vrot.lane.b32.xlu1 %v16872_v62, %s7483_s14  ;;  %7304 = vmatprep.mubr.msk.bf16.mxu1 %vm5076_vm5, %v5010_v52  ;;  %v12788_v26 = vadd.f32 %v5638_v10, %v5637_v8  ;;  %v12790_v62 = vpop.f32.mrb[34].mxu0  ;;  %v4694_v13 = vsel %vm1841_vm8, %v4630_v24, %v4156_v4 }
 0x597   :  { %7305 = vmatmul.mubr.msk.bf16.gmra.mrb[64].mxu1 %vm5076_vm5, %v5012_v34  ;;  %4073 = vrot.lane.b32.xlu0 %v16873_v41, %s7485_s19  ;;  %v12804_v32 = vpop.f32.mrb[35].mxu0  ;;  %v6504_v41 = vsel %vm1581_vm4, %v6440_v9, 0.0  ;;  %v6443_v63 = vmul.f32 %v12790_v62, %v12790_v62  ;;  %v6312_v36 = vsel %vm1581_vm4, %v12790_v62, 0.0  ;;  %v16886_v9 = vld [vmem:[#allocation107_spill] sm:$0xff] }
 0x598   :  { %v4058_v20 = vpop.permute.xlu1 %4057  ;;  %v6308_v19 = vsel %vm1581_vm4, %v12804_v32, 0.0  ;;  %v6441_v27 = vmul.f32 %v12804_v32, %v12804_v32  ;;  %v12834_v56 = vpop.f32.mrb[36].mxu0 }
 0x599   :  { %v6309_v33 = vadd.f32 %v6308_v19, %v6307_v55  ;;  %v4222_v59 = vpop.permute.xlu0 %4221  ;;  %v6509_v57 = vsel %vm1581_vm4, %v6443_v63, 0.0  ;;  %v4628_v46 = vsel %vm1711_vm6, %v4553_v47, %v4058_v20  ;;  %v6446_v52 = vmul.f32 %v12834_v56, %v12834_v56  ;;  %v12840_v6 = vpop.f32.mrb[37].mxu0 }
 0x59a   :  { %3982 = vrot.lane.b32.xlu1 %v16881_v0, %s7483_s14  ;;  %v6505_v28 = vsel %vm1581_vm4, %v6441_v27, 0.0  ;;  %v6314_v29 = vsel %vm1581_vm4, %v12840_v6, 0.0  ;;  %v6444_v34 = vmul.f32 %v12840_v6, %v12840_v6  ;;  %v12847_v10 = vpop.f32.mrb[38].mxu0  ;;  %v4758_v20 = vsel %vm1971_vm10, %v4694_v13, %v4222_v59 }
 0x59b   :  { %4169 = vrot.lane.b32.xlu0 %v16876_v17, %s7487_s1  ;;  %v6311_v31 = vadd.f32 %v6310_v44, %v6309_v33  ;;  %v6506_v58 = vadd.f32 %v6505_v28, %v6504_v41  ;;  %v12857_v55 = vpop.f32.mrb[39].mxu0  ;;  %v6447_v44 = vmul.f32 %v12847_v10, %v12847_v10  ;;  %v6515_v33 = vsel %vm1581_vm4, %v6446_v52, 0.0 }
 0x59c   :  { %v4154_v3 = vpop.permute.xlu1 %4153  ;;  %v6511_v4 = vsel %vm1581_vm4, %v6444_v34, 0.0  ;;  %v6316_v41 = vsel %vm1581_vm4, %v12857_v55, 0.0  ;;  %v6445_v63 = vmul.f32 %v12857_v55, %v12857_v55  ;;  %v12866_v19 = vpop.f32.mrb[40].mxu0  ;;  %v6320_v59 = vsel %vm1581_vm4, %v12847_v10, 0.0 }
 0x59d   :  { %v6508_v42 = vadd.f32 %v6507_v43, %v6506_v58  ;;  %v6313_v14 = vadd.f32 %v6312_v36, %v6311_v31  ;;  %v4692_v49 = vsel %vm1841_vm8, %v4628_v46, %v4154_v3  ;;  %v4288_v21 = vpop.permute.xlu0 %4287  ;;  %v6318_v3 = vsel %vm1581_vm4, %v12834_v56, 0.0  ;;  %v12870_v36 = vpop.f32.mrb[41].mxu0 }
 0x59e   :  { %4075 = vrot.lane.b32.xlu1 %v16882_v25, %s7485_s19  ;;  %v6513_v31 = vsel %vm1581_vm4, %v6445_v63, 0.0  ;;  %v12877_v58 = vsel %vm1581_vm4, %v12866_v19, 0.0  ;;  %v12881_v53 = vmul.f32 %v12866_v19, %v12866_v19  ;;  %v12883_v47 = vpop.f32.mrb[42].mxu0  ;;  %v6517_v46 = vsel %vm1581_vm4, %v6447_v44, 0.0 }
 0x59f   :  { %4235 = vrot.lane.b32.xlu0 %v16881_v0, %s7489_s24  ;;  %v6510_v8 = vadd.f32 %v6509_v57, %v6508_v42  ;;  %v6315_v18 = vadd.f32 %v6314_v29, %v6313_v14  ;;  %v16888_v57 = vld [vmem:[#allocation24_spill] sm:$0xff]  ;;  %v12893_v14 = vpop.f32.mrb[43].mxu0  ;;  %v6322_v52 = vsel %vm1581_vm4, %v12870_v36, 0.0 }
 0x5a0   :  { %v4220_v30 = vpop.permute.xlu1 %4219 }
 0x5a1   :  { %v4756_v0 = vsel %vm1971_vm10, %v4692_v49, %v4220_v30  ;;  %v6512_v30 = vadd.f32 %v6511_v4, %v6510_v8  ;;  %v6317_v43 = vadd.f32 %v6316_v41, %v6315_v18  ;;  %v4353_v28 = vpop.permute.xlu0 %4352 }
 0x5a2   :  { %4171 = vrot.lane.b32.xlu1 %v16885_v35, %s7487_s1 }
 0x5a3   :  { %4301 = vrot.lane.b32.xlu0 %v16882_v25, %s7491_s30  ;;  %v4823_v25 = vsel %vm4783_vm14, %v4758_v20, %v4288_v21  ;;  %v6319_v24 = vadd.f32 %v6318_v3, %v6317_v43  ;;  %v6514_v42 = vadd.f32 %v6513_v31, %v6512_v30  ;;  %v16892_v43 = vld [vmem:[#allocation106_spill] sm:$0xff] }
 0x5a4   :  { %v4286_v60 = vpop.permute.xlu1 %4285  ;;  %v4888_v49 = vsel %vm4848_vm15, %v4823_v25, %v4353_v28 }
 0x5a5   :  { %v4821_v38 = vsel %vm4783_vm14, %v4756_v0, %v4286_v60  ;;  %v6448_v0 = vmul.f32 %v12870_v36, %v12870_v36  ;;  %v6516_v20 = vadd.f32 %v6515_v33, %v6514_v42  ;;  %v4415_v63 = vpop.permute.xlu0 %4414 }
 0x5a6   :  { %4237 = vrot.lane.b32.xlu1 %v16886_v9, %s7489_s24  ;;  %v4952_v31 = vsel %vm4912_vm0, %v4888_v49, %v4415_v63 }
 0x5a7   :  { %4366 = vrot.lane.b32.xlu0 %v16885_v35, %s7492_s4 }
 0x5a8   :  { %v4351_v27 = vpop.permute.xlu1 %4350 }
 0x5a9   :  { %v4886_v40 = vsel %vm4848_vm15, %v4821_v38, %v4351_v27  ;;  %v12886_v12 = vpop.f32.mrb[36].mxu1  ;;  %v6321_v38 = vadd.f32 %v6320_v59, %v6319_v24  ;;  %v12932_v24 = vpop.f32.mrb[44].mxu0 }
 0x5aa   :  { %16887 = vst [vmem:[#allocation85_spill] sm:$0xff] %v12886_v12  ;;  %4303 = vrot.lane.b32.xlu1 %v16888_v57, %s7491_s30  ;;  %v5575_v13 = vmul.f32 %v12886_v12, %v12886_v12  ;;  %v12898_v60 = vpop.f32.mrb[37].mxu1  ;;  %v5447_v3 = vsel %vm1581_vm4, %v12886_v12, 0.0  ;;  %16893 = vst [vmem:[#allocation113_spill] sm:$0xff] %v12932_v24  ;;  %v12936_v12 = vpop.f32.mrb[45].mxu0 }
 0x5ab   :  { %16889 = vst [vmem:[#allocation84_spill] sm:$0xff] %v12898_v60  ;;  %v5443_v21 = vsel %vm1581_vm4, %v12898_v60, 0.0  ;;  %v5573_v29 = vmul.f32 %v12898_v60, %v12898_v60  ;;  %v12908_v34 = vpop.f32.mrb[38].mxu1  ;;  %4428 = vrot.lane.b32.xlu0 %v16886_v9, %s7493_s11  ;;  %v12941_v49 = vpop.f32.mrb[46].mxu0 }
 0x5ac   :  { %16890 = vst [vmem:[#allocation31_spill] sm:$0xff] %v12908_v34  ;;  %v4413_v8 = vpop.permute.xlu1 %4412  ;;  %v5644_v18 = vsel %vm1581_vm4, %v5575_v13, 0.0  ;;  %v5444_v4 = vadd.f32 %v5443_v21, %v12780_v11  ;;  %v5449_v44 = vsel %vm1581_vm4, %v12908_v34, 0.0  ;;  %v12916_v41 = vpop.f32.mrb[39].mxu1  ;;  %v5576_v27 = vmul.f32 %v12908_v34, %v12908_v34  ;;  %16894 = vst [vmem:[#allocation115_spill] sm:$0xff] %v12941_v49 }
 0x5ad   :  { %16891 = vst [vmem:[#allocation86_spill] sm:$0xff] %v12916_v41  ;;  %v5640_v25 = vsel %vm1581_vm4, %v5573_v29, 0.0  ;;  %v5445_v33 = vsel %vm1581_vm4, %v12916_v41, 0.0  ;;  %v5574_v30 = vmul.f32 %v12916_v41, %v12916_v41  ;;  %v4950_v28 = vsel %vm4912_vm0, %v4886_v40, %v4413_v8 }
 0x5ae   :  { %4368 = vrot.lane.b32.xlu1 %v16892_v43, %s7492_s4  ;;  %v5641_v11 = vadd.f32 %v5640_v25, %v12788_v26  ;;  %v5446_v59 = vadd.f32 %v5445_v33, %v5444_v4  ;;  %v6323_v21 = vadd.f32 %v6322_v52, %v6321_v38  ;;  %v6518_v29 = vadd.f32 %v6517_v46, %v6516_v20  ;;  %v4477_v25 = vpop.permute.xlu0 %4476  ;;  %v16895_v4 = vld [vmem:[#allocation22_spill] sm:$0xff]  ;;  %v12952_v20 = vpop.f32.mrb[47].mxu0 }
 0x5af   :  { %v5642_v42 = vsel %vm1581_vm4, %v5574_v30, 0.0  ;;  %v6519_v34 = vsel %vm1581_vm4, %v6448_v0, 0.0  ;;  %v6451_v40 = vmul.f32 %v12883_v47, %v12883_v47  ;;  %v5016_v8 = vsel %vm4976_vm1, %v4952_v31, %v4477_v25  ;;  %4490 = vrot.lane.b32.xlu0 %v16888_v57, %s7494_s12 }
 0x5b0   :  { %v4475_v13 = vpop.permute.xlu1 %4474  ;;  %v5448_v41 = vadd.f32 %v5447_v3, %v5446_v59  ;;  %v5643_v60 = vadd.f32 %v5642_v42, %v5641_v11  ;;  %v6520_v46 = vadd.f32 %v6519_v34, %v6518_v29  ;;  %v6324_v52 = vsel %vm1581_vm4, %v12893_v14, 0.0 }
 0x5b1   :  { %v5014_v26 = vsel %vm4976_vm1, %v4950_v28, %v4475_v13  ;;  %v6449_v0 = vmul.f32 %v12893_v14, %v12893_v14  ;;  %v6325_v63 = vadd.f32 %v6324_v52, %v6323_v21  ;;  %v5646_v33 = vsel %vm1581_vm4, %v5576_v27, 0.0 }
 0x5b2   :  { %4430 = vrot.lane.b32.xlu1 %v16895_v4, %s7493_s11  ;;  %v5645_v38 = vadd.f32 %v5644_v18, %v5643_v60  ;;  %7308 = vmatprep.mubr.msk.bf16.mxu1 %vm5076_vm5, %v5014_v26  ;;  %v12955_v3 = vadd.f32 %v5449_v44, %v5448_v41  ;;  %v6523_v34 = vsel %vm1581_vm4, %v12881_v53, 0.0  ;;  %v6328_v11 = vsel %vm1581_vm4, %v12883_v47, 0.0  ;;  %v4064_v59 = vpop.permute.xlu0 %4063  ;;  %v16896_v41 = vld [vmem:[#allocation8_spill] sm:$0xff] }
 0x5b3   :  { %7309 = vmatmul.mubr.msk.bf16.gmra.mrb[68].mxu1 %vm5076_vm5, %v5016_v8  ;;  %v6521_v28 = vsel %vm1581_vm4, %v6449_v0, 0.0  ;;  %v6327_v18 = vadd.f32 %v12877_v58, %v6325_v63  ;;  %4492 = vrot.lane.b32.xlu0 %v16896_v41, %s7494_s12  ;;  %v6525_v27 = vsel %vm1581_vm4, %v6451_v40, 0.0  ;;  %v6330_v53 = vsel %vm1581_vm4, %v12936_v12, 0.0 }
 0x5b4   :  { %v4062_v30 = vpop.permute.xlu1 %4061  ;;  %v12964_v60 = vadd.f32 %v5646_v33, %v5645_v38  ;;  %v6522_v44 = vadd.f32 %v6521_v28, %v6520_v46  ;;  %v6452_v31 = vmul.f32 %v12936_v12, %v12936_v12  ;;  %v6454_v58 = vmul.f32 %v12932_v24, %v12932_v24  ;;  %v12992_v33 = vpop.f32.mrb[48].mxu0 }
 0x5b5   :  { %v6329_v13 = vadd.f32 %v6328_v11, %v6327_v18  ;;  %v6453_v26 = vmul.f32 %v12952_v20, %v12952_v20  ;;  %v6334_v46 = vsel %vm1581_vm4, %v12932_v24, 0.0  ;;  %v6455_v52 = vmul.f32 %v12941_v49, %v12941_v49  ;;  %16897 = vst [vmem:[#allocation96_spill] sm:$0xff] %v12992_v33  ;;  %v12997_v18 = vpop.f32.mrb[49].mxu0 }
 0x5b6   :  { %3984 = vrot.lane.b32.xlu1 %v16886_v9, %s7483_s14  ;;  %v6524_v42 = vadd.f32 %v6523_v34, %v6522_v44  ;;  %v6527_v29 = vsel %vm1581_vm4, %v6452_v31, 0.0  ;;  %v6332_v9 = vsel %vm1581_vm4, %v12952_v20, 0.0  ;;  %v4160_v25 = vpop.permute.xlu0 %4159  ;;  %v6531_v11 = vsel %vm1581_vm4, %v6454_v58, 0.0  ;;  %16898 = vst [vmem:[#allocation116_spill] sm:$0xff] %v12997_v18 }
 0x5b7   :  { %v6331_v40 = vadd.f32 %v6330_v53, %v6329_v13  ;;  %4077 = vrot.lane.b32.xlu0 %v16888_v57, %s7485_s19  ;;  %v6529_v0 = vsel %vm1581_vm4, %v6453_v26, 0.0  ;;  %v6336_v28 = vsel %vm1581_vm4, %v12941_v49, 0.0  ;;  %v16899_v57 = vld [vmem:[#allocation27_spill] sm:$0xff]  ;;  %v16901_v13 = vld [vmem:[#allocation92_spill] sm:$0xff]  ;;  %v6533_v58 = vsel %vm1581_vm4, %v6455_v52, 0.0 }
 0x5b8   :  { %v4158_v21 = vpop.permute.xlu1 %4157  ;;  %v6526_v8 = vadd.f32 %v6525_v27, %v6524_v42  ;;  %v4559_v44 = vsel %vm1581_vm4, %v16852_v54, %v16899_v57  ;;  %v13002_v42 = vpop.f32.mrb[50].mxu0  ;;  %v6338_v54 = vsel %vm1581_vm4, %v12997_v18, 0.0  ;;  %v6342_v51 = vsel %vm1581_vm4, %v12992_v33, 0.0 }
 0x5b9   :  { %v6333_v63 = vadd.f32 %v6332_v9, %v6331_v40  ;;  %16900 = vst [vmem:[#allocation97_spill] sm:$0xff] %v13002_v42  ;;  %v6456_v9 = vmul.f32 %v12997_v18, %v12997_v18  ;;  %v4632_v26 = vsel %vm1711_vm6, %v4559_v44, %v4062_v30  ;;  %v6459_v52 = vmul.f32 %v13002_v42, %v13002_v42 }
 0x5ba   :  { %3986 = vrot.lane.b32.xlu1 %v16895_v4, %s7483_s14  ;;  %v6528_v38 = vadd.f32 %v6527_v29, %v6526_v8  ;;  %v4226_v27 = vpop.permute.xlu0 %4225  ;;  %v4562_v29 = vsel %vm1581_vm4, %v16858_v1, %v16901_v13  ;;  %v6458_v1 = vmul.f32 %v12992_v33, %v12992_v33 }
 0x5bb   :  { %v6335_v53 = vadd.f32 %v6334_v46, %v6333_v63  ;;  %4173 = vrot.lane.b32.xlu0 %v16892_v43, %s7487_s1  ;;  %v13019_v46 = vpop.f32.mrb[51].mxu0  ;;  %v6541_v45 = vsel %vm1581_vm4, %v6459_v52, 0.0 }
 0x5bc   :  { %v4224_v34 = vpop.permute.xlu1 %4223  ;;  %v6530_v31 = vadd.f32 %v6529_v0, %v6528_v38  ;;  %16902 = vst [vmem:[#allocation82_spill] sm:$0xff] %v13019_v46  ;;  %v6535_v38 = vsel %vm1581_vm4, %v6456_v9, 0.0  ;;  %v6340_v63 = vsel %vm1581_vm4, %v13019_v46, 0.0  ;;  %v6457_v57 = vmul.f32 %v13019_v46, %v13019_v46  ;;  %v13028_v30 = vpop.f32.mrb[52].mxu0 }
 0x5bd   :  { %v6337_v8 = vadd.f32 %v6336_v28, %v6335_v53  ;;  %16903 = vst [vmem:[#allocation88_spill] sm:$0xff] %v13028_v30  ;;  %v4696_v28 = vsel %vm1841_vm8, %v4632_v26, %v4158_v21  ;;  %v13032_v13 = vpop.f32.mrb[53].mxu0  ;;  %v6462_v21 = vmul.f32 %v13028_v30, %v13028_v30 }
 0x5be   :  { %4079 = vrot.lane.b32.xlu1 %v16896_v41, %s7485_s19  ;;  %v6532_v40 = vadd.f32 %v6531_v11, %v6530_v31  ;;  %v4634_v11 = vsel %vm1711_vm6, %v4562_v29, %v4064_v59  ;;  %v4292_v44 = vpop.permute.xlu0 %4291  ;;  %16904 = vst [vmem:[#allocation87_spill] sm:$0xff] %v13032_v13  ;;  %v6537_v59 = vsel %vm1581_vm4, %v6457_v57, 0.0  ;;  %v13044_v29 = vpop.f32.mrb[54].mxu0  ;;  %v6344_v57 = vsel %vm1581_vm4, %v13002_v42, 0.0 }
 0x5bf   :  { %v6339_v53 = vadd.f32 %v6338_v54, %v6337_v8  ;;  %v4698_v9 = vsel %vm1841_vm8, %v4634_v11, %v4160_v25  ;;  %4239 = vrot.lane.b32.xlu0 %v16895_v4, %s7489_s24  ;;  %16906 = vst [vmem:[#allocation29_spill] sm:$0xff] %v13044_v29  ;;  %v6539_v11 = vsel %vm1581_vm4, %v6458_v1, 0.0  ;;  %v6350_v1 = vsel %vm1581_vm4, %v13028_v30, 0.0 }
 0x5c0   :  { %v4290_v0 = vpop.permute.xlu1 %4289  ;;  %v6534_v31 = vadd.f32 %v6533_v58, %v6532_v40  ;;  %v4760_v58 = vsel %vm1971_vm10, %v4696_v28, %v4224_v34  ;;  %v4762_v25 = vsel %vm1971_vm10, %v4698_v9, %v4226_v27  ;;  %v13048_v40 = vpop.f32.mrb[55].mxu0  ;;  %v6460_v27 = vmul.f32 %v13032_v13, %v13032_v13 }
 0x5c1   :  { %v6341_v26 = vadd.f32 %v6340_v63, %v6339_v53  ;;  %16907 = vst [vmem:[#allocation36_spill] sm:$0xff] %v13048_v40  ;;  %v4825_v4 = vsel %vm4783_vm14, %v4760_v58, %v4290_v0  ;;  %v4827_v5 = vsel %vm4783_vm14, %v4762_v25, %v4292_v44  ;;  %v16909_v0 = vld [vmem:[#allocation110_spill] sm:$0xff]  ;;  %v13067_v52 = vsel %vm1581_vm4, %v6462_v21, 0.0 }
 0x5c2   :  { %4175 = vrot.lane.b32.xlu1 %v16905_v37, %s7487_s1  ;;  %v6536_v54 = vadd.f32 %v6535_v38, %v6534_v31  ;;  %v4357_v23 = vpop.permute.xlu0 %4356  ;;  %v6461_v63 = vmul.f32 %v13048_v40, %v13048_v40  ;;  %v6543_v7 = vsel %vm1581_vm4, %v6460_v27, 0.0 }
 0x5c3   :  { %v6343_v34 = vadd.f32 %v6342_v51, %v6341_v26  ;;  %4305 = vrot.lane.b32.xlu0 %v16896_v41, %s7491_s30  ;;  %v6346_v51 = vsel %vm1581_vm4, %v13032_v13, 0.0  ;;  %v6463_v41 = vmul.f32 %v13044_v29, %v13044_v29 }
 0x5c4   :  { %v4355_v8 = vpop.permute.xlu1 %4354  ;;  %v6538_v28 = vadd.f32 %v6537_v59, %v6536_v54  ;;  %v13079_v59 = vpop.f32.mrb[56].mxu0 }
 0x5c5   :  { %v13058_v38 = vpop.f32.mrb[40].mxu1  ;;  %v6345_v9 = vadd.f32 %v6344_v57, %v6343_v34  ;;  %16911 = vst [vmem:[#allocation71_spill] sm:$0xff] %v13079_v59  ;;  %v4890_v21 = vsel %vm4848_vm15, %v4825_v4, %v4355_v8  ;;  %v4892_v57 = vsel %vm4848_vm15, %v4827_v5, %v4357_v23  ;;  %v16914_v23 = vld [vmem:[#allocation16_spill] sm:$0xff]  ;;  %v6545_v5 = vsel %vm1581_vm4, %v6461_v63, 0.0 }
 0x5c6   :  { %16908 = vst [vmem:[#allocation26_spill] sm:$0xff] %v13058_v38  ;;  %4241 = vrot.lane.b32.xlu1 %v16909_v0, %s7489_s24  ;;  %v5579_v44 = vmul.f32 %v13058_v38, %v13058_v38  ;;  %v13075_v53 = vpop.f32.mrb[41].mxu1  ;;  %v6540_v31 = vadd.f32 %v6539_v11, %v6538_v28  ;;  %v6348_v11 = vsel %vm1581_vm4, %v13048_v40, 0.0  ;;  %v5455_v34 = vsel %vm1581_vm4, %v13058_v38, 0.0  ;;  %v4419_v8 = vpop.permute.xlu0 %4418 }
 0x5c7   :  { %16910 = vst [vmem:[#allocation39_spill] sm:$0xff] %v13075_v53  ;;  %v5451_v58 = vsel %vm1581_vm4, %v13075_v53, 0.0  ;;  %v5577_v25 = vmul.f32 %v13075_v53, %v13075_v53  ;;  %v13086_v54 = vpop.f32.mrb[42].mxu1  ;;  %4370 = vrot.lane.b32.xlu0 %v16905_v37, %s7492_s4  ;;  %v6347_v33 = vadd.f32 %v6346_v51, %v6345_v9 }
 0x5c8   :  { %16912 = vst [vmem:[#allocation80_spill] sm:$0xff] %v13086_v54  ;;  %v4417_v26 = vpop.permute.xlu1 %4416  ;;  %v5452_v28 = vadd.f32 %v5451_v58, %v12955_v3  ;;  %v13094_v4 = vpop.f32.mrb[43].mxu1  ;;  %v5652_v27 = vsel %vm1581_vm4, %v5579_v44, 0.0  ;;  %v6542_v46 = vadd.f32 %v6541_v45, %v6540_v31  ;;  %v4956_v44 = vsel %vm4912_vm0, %v4892_v57, %v4419_v8  ;;  %v16922_v8 = vld [vmem:[#allocation20_spill] sm:$0xff] }
 0x5c9   :  { %16913 = vst [vmem:[#allocation63_spill] sm:$0xff] %v13094_v4  ;;  %v5648_v53 = vsel %vm1581_vm4, %v5577_v25, 0.0  ;;  %v5453_v2 = vsel %vm1581_vm4, %v13094_v4, 0.0  ;;  %v5578_v30 = vmul.f32 %v13094_v4, %v13094_v4  ;;  %v13107_v3 = vpop.f32.mrb[57].mxu0  ;;  %v5580_v25 = vmul.f32 %v13086_v54, %v13086_v54 }
 0x5ca   :  { %4307 = vrot.lane.b32.xlu1 %v16914_v23, %s7491_s30  ;;  %16915 = vst [vmem:[#allocation23_spill] sm:$0xff] %v13107_v3  ;;  %v5649_v58 = vadd.f32 %v5648_v53, %v12964_v60  ;;  %v5454_v38 = vadd.f32 %v5453_v2, %v5452_v28  ;;  %v13113_v40 = vpop.f32.mrb[58].mxu0  ;;  %v4954_v4 = vsel %vm4912_vm0, %v4890_v21, %v4417_v26  ;;  %v4481_v53 = vpop.permute.xlu0 %4480  ;;  %v5457_v2 = vsel %vm1581_vm4, %v13086_v54, 0.0  ;;  %v16918_v21 = vld [vmem:[#allocation9_spill] sm:$0xff] }
 0x5cb   :  { %16916 = vst [vmem:[#allocation64_spill] sm:$0xff] %v13113_v40  ;;  %v5650_v13 = vsel %vm1581_vm4, %v5578_v30, 0.0  ;;  %v13117_v63 = vpop.f32.mrb[59].mxu0  ;;  %v5020_v28 = vsel %vm4976_vm1, %v4956_v44, %v4481_v53  ;;  %4432 = vrot.lane.b32.xlu0 %v16909_v0, %s7493_s11  ;;  %v6544_v45 = vadd.f32 %v6543_v7, %v6542_v46  ;;  %v6349_v30 = vadd.f32 %v6348_v11, %v6347_v33 }
 0x5cc   :  { %v4479_v42 = vpop.permute.xlu1 %4478  ;;  %16917 = vst [vmem:[#allocation12_spill] sm:$0xff] %v13117_v63  ;;  %v5456_v18 = vadd.f32 %v5455_v34, %v5454_v38  ;;  %v5651_v49 = vadd.f32 %v5650_v13, %v5649_v58  ;;  %v6464_v51 = vmul.f32 %v13107_v3, %v13107_v3  ;;  %v13135_v31 = vpop.f32.mrb[60].mxu0  ;;  %v5654_v9 = vsel %vm1581_vm4, %v5580_v25, 0.0 }
 0x5cd   :  { %v5018_v60 = vsel %vm4976_vm1, %v4954_v4, %v4479_v42  ;;  %v6352_v42 = vsel %vm1581_vm4, %v13044_v29, 0.0  ;;  %16919 = vst [vmem:[#allocation119_spill] sm:$0xff] %v13135_v31  ;;  %v6351_v7 = vadd.f32 %v6350_v1, %v6349_v30  ;;  %v6546_v33 = vadd.f32 %v6545_v5, %v6544_v45  ;;  %v16924_v30 = vld [vmem:[#allocation98_spill] sm:$0xff] }
 0x5ce   :  { %4372 = vrot.lane.b32.xlu1 %v16918_v21, %s7492_s4  ;;  %v5653_v38 = vadd.f32 %v5652_v27, %v5651_v49  ;;  %7312 = vmatprep.mubr.msk.bf16.mxu1 %vm5076_vm5, %v5018_v60  ;;  %v13129_v13 = vadd.f32 %v5457_v2, %v5456_v18  ;;  %v13139_v49 = vpop.f32.mrb[61].mxu0  ;;  %v4068_v46 = vpop.permute.xlu0 %4067  ;;  %v6549_v11 = vsel %vm1581_vm4, %v6463_v41, 0.0  ;;  %v6354_v57 = vsel %vm1581_vm4, %v13107_v3, 0.0 }
 0x5cf   :  { %7313 = vmatmul.mubr.msk.bf16.gmra.mrb[72].mxu1 %vm5076_vm5, %v5020_v28  ;;  %16920 = vst [vmem:[#allocation89_spill] sm:$0xff] %v13139_v49  ;;  %v6465_v34 = vmul.f32 %v13117_v63, %v13117_v63  ;;  %v13148_v4 = vpop.f32.mrb[62].mxu0  ;;  %4494 = vrot.lane.b32.xlu0 %v16914_v23, %s7494_s12  ;;  %v6548_v1 = vadd.f32 %v13067_v52, %v6546_v33  ;;  %v6551_v27 = vsel %vm1581_vm4, %v6464_v51, 0.0  ;;  %v6356_v58 = vsel %vm1581_vm4, %v13117_v63, 0.0  ;;  %v16925_v33 = vld [vmem:[#allocation93_spill] sm:$0xff] }
 0x5d0   :  { %v4066_v26 = vpop.permute.xlu1 %4065  ;;  %v13141_v18 = vadd.f32 %v5654_v9, %v5653_v38  ;;  %16921 = vst [vmem:[#allocation118_spill] sm:$0xff] %v13148_v4  ;;  %v6353_v5 = vadd.f32 %v6352_v42, %v6351_v7  ;;  %v6466_v41 = vmul.f32 %v13079_v59, %v13079_v59  ;;  %v6358_v2 = vsel %vm1581_vm4, %v13079_v59, 0.0  ;;  %v13165_v45 = vpop.f32.mrb[63].mxu0 }
 0x5d1   :  { %v6550_v60 = vadd.f32 %v6549_v11, %v6548_v1  ;;  %v6467_v28 = vmul.f32 %v13113_v40, %v13113_v40  ;;  %v6553_v52 = vsel %vm1581_vm4, %v6465_v34, 0.0  ;;  %16923 = vst [vmem:[#allocation62_spill] sm:$0xff] %v13165_v45  ;;  %v6360_v9 = vsel %vm1581_vm4, %v13113_v40, 0.0 }
 0x5d2   :  { %4434 = vrot.lane.b32.xlu1 %v16922_v8, %s7493_s11  ;;  %v6355_v44 = vadd.f32 %v6354_v57, %v6353_v5  ;;  %v4164_v53 = vpop.permute.xlu0 %4163  ;;  %v6555_v51 = vsel %vm1581_vm4, %v6466_v41, 0.0  ;;  %v6468_v7 = vmul.f32 %v13139_v49, %v13139_v49  ;;  %v4565_v11 = vsel %vm1581_vm4, %v16861_v16, %v16925_v33  ;;  %v16926_v57 = vld [vmem:[#allocation111_spill] sm:$0xff] }
 0x5d3   :  { %4496 = vrot.lane.b32.xlu0 %v16924_v30, %s7494_s12  ;;  %v6552_v38 = vadd.f32 %v6551_v27, %v6550_v60  ;;  %v4636_v27 = vsel %vm1711_vm6, %v4565_v11, %v4066_v26  ;;  %v6469_v60 = vmul.f32 %v13165_v45, %v13165_v45 }
 0x5d4   :  { %v4162_v25 = vpop.permute.xlu1 %4161  ;;  %v6357_v42 = vadd.f32 %v6356_v58, %v6355_v44  ;;  %v6557_v58 = vsel %vm1581_vm4, %v6467_v28, 0.0  ;;  %v6362_v44 = vsel %vm1581_vm4, %v13139_v49, 0.0  ;;  %v6559_v28 = vsel %vm1581_vm4, %v6468_v7, 0.0 }
 0x5d5   :  { %v6554_v5 = vadd.f32 %v6553_v52, %v6552_v38  ;;  %v6471_v52 = vmul.f32 %v13148_v4, %v13148_v4  ;;  %v6364_v38 = vsel %vm1581_vm4, %v13165_v45, 0.0  ;;  %v4700_v7 = vsel %vm1841_vm8, %v4636_v27, %v4162_v25 }
 0x5d6   :  { %3988 = vrot.lane.b32.xlu1 %v16909_v0, %s7483_s14  ;;  %v4568_v0 = vsel %vm1581_vm4, %v16862_v50, %v16926_v57  ;;  %v6359_v1 = vadd.f32 %v6358_v2, %v6357_v42  ;;  %v4230_v41 = vpop.permute.xlu0 %4229  ;;  %v6470_v50 = vmul.f32 %v13135_v31, %v13135_v31  ;;  %v13200_v42 = vpop.f32.mrb[64].mxu0 }
 0x5d7   :  { %4081 = vrot.lane.b32.xlu0 %v16914_v23, %s7485_s19  ;;  %v6556_v16 = vadd.f32 %v6555_v51, %v6554_v5  ;;  %v4638_v2 = vsel %vm1711_vm6, %v4568_v0, %v4068_v46  ;;  %16927 = vst [vmem:[#allocation120_spill] sm:$0xff] %v13200_v42  ;;  %v6366_v23 = vsel %vm1581_vm4, %v13135_v31, 0.0  ;;  %v13206_v46 = vpop.f32.mrb[65].mxu0  ;;  %v6474_v5 = vmul.f32 %v13200_v42, %v13200_v42 }
 0x5d8   :  { %v4228_v34 = vpop.permute.xlu1 %4227  ;;  %v6361_v26 = vadd.f32 %v6360_v9, %v6359_v1  ;;  %v6368_v9 = vsel %vm1581_vm4, %v13148_v4, 0.0  ;;  %16928 = vst [vmem:[#allocation90_spill] sm:$0xff] %v13206_v46  ;;  %v4702_v57 = vsel %vm1841_vm8, %v4638_v2, %v4164_v53  ;;  %v6561_v1 = vsel %vm1581_vm4, %v6469_v60, 0.0  ;;  %v13213_v54 = vpop.f32.mrb[66].mxu0 }
 0x5d9   :  { %v6558_v11 = vadd.f32 %v6557_v58, %v6556_v16  ;;  %16929 = vst [vmem:[#allocation69_spill] sm:$0xff] %v13213_v54  ;;  %v6563_v58 = vsel %vm1581_vm4, %v6470_v50, 0.0  ;;  %v6472_v53 = vmul.f32 %v13206_v46, %v13206_v46  ;;  %v13222_v27 = vpop.f32.mrb[67].mxu0  ;;  %v4764_v60 = vsel %vm1971_vm10, %v4700_v7, %v4228_v34 }
 0x5da   :  { %3990 = vrot.lane.b32.xlu1 %v16922_v8, %s7483_s14  ;;  %v6363_v51 = vadd.f32 %v6362_v44, %v6361_v26  ;;  %v4296_v0 = vpop.permute.xlu0 %4295  ;;  %16930 = vst [vmem:[#allocation108_spill] sm:$0xff] %v13222_v27  ;;  %v4766_v16 = vsel %vm1971_vm10, %v4702_v57, %v4230_v41  ;;  %v6565_v26 = vsel %vm1581_vm4, %v6471_v52, 0.0  ;;  %v6475_v2 = vmul.f32 %v13213_v54, %v13213_v54  ;;  %v13229_v4 = vpop.f32.mrb[68].mxu0 }
 0x5db   :  { %4177 = vrot.lane.b32.xlu0 %v16918_v21, %s7487_s1  ;;  %v6560_v44 = vadd.f32 %v6559_v28, %v6558_v11  ;;  %16931 = vst [vmem:[#allocation122_spill] sm:$0xff] %v13229_v4  ;;  %v6374_v11 = vsel %vm1581_vm4, %v13200_v42, 0.0  ;;  %v13234_v31 = vpop.f32.mrb[69].mxu0  ;;  %v4831_v34 = vsel %vm4783_vm14, %v4766_v16, %v4296_v0  ;;  %v13238_v52 = vsel %vm1581_vm4, %v6474_v5, 0.0 }
 0x5dc   :  { %v4294_v33 = vpop.permute.xlu1 %4293  ;;  %v6365_v25 = vadd.f32 %v6364_v38, %v6363_v51  ;;  %v6370_v7 = vsel %vm1581_vm4, %v13206_v46, 0.0  ;;  %v13244_v57 = vpop.f32.mrb[70].mxu0  ;;  %v6567_v5 = vsel %vm1581_vm4, %v6472_v53, 0.0  ;;  %v6573_v45 = vsel %vm1581_vm4, %v6475_v2, 0.0 }
 0x5dd   :  { %v4829_v50 = vsel %vm4783_vm14, %v4764_v60, %v4294_v33  ;;  %v6562_v51 = vadd.f32 %v6561_v1, %v6560_v44  ;;  %v6473_v33 = vmul.f32 %v13222_v27, %v13222_v27  ;;  %16932 = vst [vmem:[#allocation14_spill] sm:$0xff] %v13244_v57  ;;  %v16934_v1 = vld [vmem:[#allocation42_spill] sm:$0xff]  ;;  %v13255_v60 = vpop.f32.mrb[71].mxu0 }
 0x5de   :  { %4083 = vrot.lane.b32.xlu1 %v16924_v30, %s7485_s19  ;;  %v6367_v38 = vadd.f32 %v6366_v23, %v6365_v25  ;;  %v4361_v41 = vpop.permute.xlu0 %4360  ;;  %v6376_v25 = vsel %vm1581_vm4, %v13213_v54, 0.0  ;;  %16935 = vst [vmem:[#allocation5_spill] sm:$0xff] %v13255_v60 }
 0x5df   :  { %4243 = vrot.lane.b32.xlu0 %v16922_v8, %s7489_s24  ;;  %v6564_v0 = vadd.f32 %v6563_v58, %v6562_v51  ;;  %v6372_v8 = vsel %vm1581_vm4, %v13222_v27, 0.0  ;;  %v4896_v51 = vsel %vm4848_vm15, %v4831_v34, %v4361_v41  ;;  %v6569_v40 = vsel %vm1581_vm4, %v6473_v33, 0.0  ;;  %v16939_v34 = vld [vmem:[#allocation117_spill] sm:$0xff] }
 0x5e0   :  { %v4359_v28 = vpop.permute.xlu1 %4358  ;;  %v6369_v44 = vadd.f32 %v6368_v9, %v6367_v38 }
 0x5e1   :  { %v13246_v23 = vpop.f32.mrb[44].mxu1  ;;  %v4894_v16 = vsel %vm4848_vm15, %v4829_v50, %v4359_v28  ;;  %v6566_v28 = vadd.f32 %v6565_v26, %v6564_v0 }
 0x5e2   :  { %16933 = vst [vmem:[#allocation121_spill] sm:$0xff] %v13246_v23  ;;  %4179 = vrot.lane.b32.xlu1 %v16934_v1, %s7487_s1  ;;  %v5583_v42 = vmul.f32 %v13246_v23, %v13246_v23  ;;  %v13260_v46 = vpop.f32.mrb[45].mxu1  ;;  %v6371_v50 = vadd.f32 %v6370_v7, %v6369_v44  ;;  %v5463_v54 = vsel %vm1581_vm4, %v13246_v23, 0.0  ;;  %v4423_v27 = vpop.permute.xlu0 %4422 }
 0x5e3   :  { %16936 = vst [vmem:[#allocation6_spill] sm:$0xff] %v13260_v46  ;;  %v5459_v9 = vsel %vm1581_vm4, %v13260_v46, 0.0  ;;  %v5581_v58 = vmul.f32 %v13260_v46, %v13260_v46  ;;  %v13269_v53 = vpop.f32.mrb[46].mxu1  ;;  %4309 = vrot.lane.b32.xlu0 %v16924_v30, %s7491_s30  ;;  %v13293_v44 = vpop.f32.mrb[72].mxu0 }
 0x5e4   :  { %16937 = vst [vmem:[#allocation99_spill] sm:$0xff] %v13269_v53  ;;  %v4421_v38 = vpop.permute.xlu1 %4420  ;;  %v5460_v2 = vadd.f32 %v5459_v9, %v13129_v13  ;;  %v13275_v49 = vpop.f32.mrb[47].mxu1  ;;  %v6476_v13 = vmul.f32 %v13234_v31, %v13234_v31  ;;  %v5660_v41 = vsel %vm1581_vm4, %v5583_v42, 0.0  ;;  %v5584_v33 = vmul.f32 %v13269_v53, %v13269_v53  ;;  %16940 = vst [vmem:[#allocation10_spill] sm:$0xff] %v13293_v44 }
 0x5e5   :  { %16938 = vst [vmem:[#allocation11_spill] sm:$0xff] %v13275_v49  ;;  %v5656_v59 = vsel %vm1581_vm4, %v5581_v58, 0.0  ;;  %v5461_v46 = vsel %vm1581_vm4, %v13275_v49, 0.0  ;;  %v5582_v26 = vmul.f32 %v13275_v49, %v13275_v49  ;;  %v4958_v9 = vsel %vm4912_vm0, %v4894_v16, %v4421_v38  ;;  %v13297_v63 = vpop.f32.mrb[73].mxu0  ;;  %v16943_v38 = vld [vmem:[#allocation35_spill] sm:$0xff] }
 0x5e6   :  { %4245 = vrot.lane.b32.xlu1 %v16939_v34, %s7489_s24  ;;  %v5657_v7 = vadd.f32 %v5656_v59, %v13141_v18  ;;  %v5462_v0 = vadd.f32 %v5461_v46, %v5460_v2  ;;  %v6568_v49 = vadd.f32 %v6567_v5, %v6566_v28  ;;  %v6373_v30 = vadd.f32 %v6372_v8, %v6371_v50  ;;  %v4485_v18 = vpop.permute.xlu0 %4484  ;;  %v13301_v24 = vpop.f32.mrb[74].mxu0 }
 0x5e7   :  { %v5658_v58 = vsel %vm1581_vm4, %v5582_v26, 0.0  ;;  %16941 = vst [vmem:[#allocation72_spill] sm:$0xff] %v13297_v63  ;;  %v4960_v42 = vsel %vm4912_vm0, %v4896_v51, %v4423_v27  ;;  %16942 = vst [vmem:[#allocation21_spill] sm:$0xff] %v13301_v24  ;;  %v5465_v46 = vsel %vm1581_vm4, %v13269_v53, 0.0  ;;  %4374 = vrot.lane.b32.xlu0 %v16934_v1, %s7492_s4  ;;  %v13310_v8 = vpop.f32.mrb[75].mxu0  ;;  %v6378_v50 = vsel %vm1581_vm4, %v13234_v31, 0.0 }
 0x5e8   :  { %v4483_v23 = vpop.permute.xlu1 %4482  ;;  %v5464_v3 = vadd.f32 %v5463_v54, %v5462_v0  ;;  %v5659_v29 = vadd.f32 %v5658_v58, %v5657_v7  ;;  %v5024_v16 = vsel %vm4976_vm1, %v4960_v42, %v4485_v18  ;;  %v6375_v54 = vadd.f32 %v6374_v11, %v6373_v30  ;;  %16944 = vst [vmem:[#allocation13_spill] sm:$0xff] %v13310_v8 }
 0x5e9   :  { %v5022_v59 = vsel %vm4976_vm1, %v4958_v9, %v4483_v23  ;;  %v6570_v5 = vadd.f32 %v6569_v40, %v6568_v49  ;;  %v6477_v28 = vmul.f32 %v13255_v60, %v13255_v60  ;;  %v5662_v51 = vsel %vm1581_vm4, %v5584_v33, 0.0 }
 0x5ea   :  { %4311 = vrot.lane.b32.xlu1 %v16943_v38, %s7491_s30  ;;  %v5661_v27 = vadd.f32 %v5660_v41, %v5659_v29  ;;  %7316 = vmatprep.mubr.msk.bf16.mxu1 %vm5076_vm5, %v5022_v59  ;;  %v13313_v23 = vadd.f32 %v5465_v46, %v5464_v3  ;;  %v6377_v49 = vadd.f32 %v6376_v25, %v6375_v54  ;;  %v4070_v11 = vpop.permute.xlu0 %4069  ;;  %v6575_v2 = vsel %vm1581_vm4, %v6476_v13, 0.0 }
 0x5eb   :  { %7317 = vmatmul.mubr.msk.bf16.gmra.mrb[76].mxu1 %vm5076_vm5, %v5024_v16  ;;  %v6572_v40 = vadd.f32 %v13238_v52, %v6570_v5  ;;  %v6478_v3 = vmul.f32 %v13229_v4, %v13229_v4  ;;  %v6380_v26 = vsel %vm1581_vm4, %v13255_v60, 0.0  ;;  %4498 = vrot.lane.b32.xlu0 %v16943_v38, %s7494_s12  ;;  %v6382_v25 = vsel %vm1581_vm4, %v13229_v4, 0.0 }
 0x5ec   :  { %v3979_v1 = vpop.permute.xlu1 %3978  ;;  %v13322_v29 = vadd.f32 %v5662_v51, %v5661_v27  ;;  %v6379_v41 = vadd.f32 %v6378_v50, %v6377_v49  ;;  %v6479_v7 = vmul.f32 %v13244_v57, %v13244_v57  ;;  %v6577_v33 = vsel %vm1581_vm4, %v6477_v28, 0.0  ;;  %v13350_v50 = vpop.f32.mrb[76].mxu0 }
 0x5ed   :  { %v6574_v52 = vadd.f32 %v6573_v45, %v6572_v40  ;;  %v6579_v30 = vsel %vm1581_vm4, %v6478_v3, 0.0  ;;  %v6480_v45 = vmul.f32 %v13297_v63, %v13297_v63  ;;  %v6386_v46 = vsel %vm1581_vm4, %v13297_v63, 0.0  ;;  %16945 = vst [vmem:[#allocation32_spill] sm:$0xff] %v13350_v50  ;;  %v13357_v3 = vpop.f32.mrb[77].mxu0 }
 0x5ee   :  { %4436 = vrot.lane.b32.xlu1 %v16939_v34, %s7493_s11  ;;  %v6381_v9 = vadd.f32 %v6380_v26, %v6379_v41  ;;  %v4166_v58 = vpop.permute.xlu0 %4165  ;;  %v6384_v34 = vsel %vm1581_vm4, %v13244_v57, 0.0  ;;  %v6581_v18 = vsel %vm1581_vm4, %v6479_v7, 0.0  ;;  %v6481_v16 = vmul.f32 %v13310_v8, %v13310_v8  ;;  %16946 = vst [vmem:[#allocation28_spill] sm:$0xff] %v13357_v3 }
 0x5ef   :  { %v6576_v0 = vadd.f32 %v6575_v2, %v6574_v52  ;;  %v6482_v5 = vmul.f32 %v13293_v44, %v13293_v44  ;;  %v6583_v51 = vsel %vm1581_vm4, %v6480_v45, 0.0  ;;  %v6483_v40 = vmul.f32 %v13301_v24, %v13301_v24  ;;  %v16947_v2 = vld [vmem:[#allocation61_spill] sm:$0xff] }
 0x5f0   :  { %v4072_v13 = vpop.permute.xlu1 %4071  ;;  %v6383_v42 = vadd.f32 %v6382_v25, %v6381_v9  ;;  %v6388_v49 = vsel %vm1581_vm4, %v13310_v8, 0.0  ;;  %v4571_v26 = vsel %vm1581_vm4, %v16863_v48, %v16947_v2  ;;  %v13362_v25 = vpop.f32.mrb[78].mxu0  ;;  %v4574_v7 = vsel %vm1581_vm4, %v11904_v22, %v3979_v1 }
 0x5f1   :  { %v6578_v59 = vadd.f32 %v6577_v33, %v6576_v0  ;;  %16948 = vst [vmem:[#allocation25_spill] sm:$0xff] %v13362_v25  ;;  %v4640_v33 = vsel %vm1711_vm6, %v4571_v26, %v4070_v11  ;;  %v6390_v0 = vsel %vm1581_vm4, %v13293_v44, 0.0  ;;  %v6585_v9 = vsel %vm1581_vm4, %v6481_v16, 0.0 }
 0x5f2   :  { %v6385_v27 = vadd.f32 %v6384_v34, %v6383_v42  ;;  %v4232_v28 = vpop.permute.xlu0 %4231  ;;  %v6587_v45 = vsel %vm1581_vm4, %v6482_v5, 0.0  ;;  %v4642_v22 = vsel %vm1711_vm6, %v4574_v7, %v4072_v13  ;;  %v6392_v11 = vsel %vm1581_vm4, %v13301_v24, 0.0 }
 0x5f3   :  { %v6580_v54 = vadd.f32 %v6579_v30, %v6578_v59  ;;  %v13370_v30 = vpop.f32.mrb[79].mxu0  ;;  %v6486_v59 = vmul.f32 %v13350_v50, %v13350_v50  ;;  %v6484_v16 = vmul.f32 %v13357_v3, %v13357_v3  ;;  %v4704_v5 = vsel %vm1841_vm8, %v4640_v33, %v4166_v58 }
 0x5f4   :  { %v4168_v38 = vpop.permute.xlu1 %4167  ;;  %v6387_v41 = vadd.f32 %v6386_v46, %v6385_v27  ;;  %16949 = vst [vmem:[#allocation73_spill] sm:$0xff] %v13370_v30  ;;  %v6589_v46 = vsel %vm1581_vm4, %v6483_v40, 0.0  ;;  %v6398_v26 = vsel %vm1581_vm4, %v13350_v50, 0.0  ;;  %v6394_v40 = vsel %vm1581_vm4, %v13357_v3, 0.0 }
 0x5f5   :  { %v6582_v52 = vadd.f32 %v6581_v18, %v6580_v54  ;;  %v13375_v18 = vpop.f32.mrb[80].mxu0  ;;  %v4706_v13 = vsel %vm1841_vm8, %v4642_v22, %v4168_v38  ;;  %v4768_v58 = vsel %vm1971_vm10, %v4704_v5, %v4232_v28  ;;  %v6400_v22 = vsel %vm1581_vm4, %v13362_v25, 0.0 }
 0x5f6   :  { %v6389_v42 = vadd.f32 %v6388_v49, %v6387_v41  ;;  %16950 = vst [vmem:[#allocation38_spill] sm:$0xff] %v13375_v18  ;;  %v4298_v1 = vpop.permute.xlu0 %4297  ;;  %v13383_v54 = vpop.f32.mrb[81].mxu0  ;;  %v6487_v49 = vmul.f32 %v13362_v25, %v13362_v25  ;;  %v6485_v41 = vmul.f32 %v13370_v30, %v13370_v30  ;;  %v6396_v53 = vsel %vm1581_vm4, %v13370_v30, 0.0 }
 0x5f7   :  { %v6584_v48 = vadd.f32 %v6583_v51, %v6582_v52  ;;  %16951 = vst [vmem:[#allocation34_spill] sm:$0xff] %v13383_v54  ;;  %v13388_v2 = vpop.f32.mrb[82].mxu0  ;;  %v6490_v5 = vmul.f32 %v13375_v18, %v13375_v18  ;;  %v6488_v25 = vmul.f32 %v13383_v54, %v13383_v54 }
 0x5f8   :  { %v4234_v34 = vpop.permute.xlu1 %4233  ;;  %v6391_v27 = vadd.f32 %v6390_v0, %v6389_v42  ;;  %v13397_v52 = vpop.f32.mrb[83].mxu0  ;;  %v6595_v0 = vsel %vm1581_vm4, %v6486_v59, 0.0  ;;  %v6591_v42 = vsel %vm1581_vm4, %v6484_v16, 0.0  ;;  %v13412_v59 = vsel %vm1581_vm4, %v13375_v18, 0.0 }
 0x5f9   :  { %v6586_v51 = vadd.f32 %v6585_v9, %v6584_v48  ;;  %16952 = vst [vmem:[#allocation33_spill] sm:$0xff] %v13397_v52  ;;  %v4770_v38 = vsel %vm1971_vm10, %v4706_v13, %v4234_v34  ;;  %v4833_v34 = vsel %vm4783_vm14, %v4768_v58, %v4298_v1  ;;  %v6593_v16 = vsel %vm1581_vm4, %v6485_v41, 0.0 }
 0x5fa   :  { %v6393_v9 = vadd.f32 %v6392_v11, %v6391_v27  ;;  %v4363_v48 = vpop.permute.xlu0 %4362  ;;  %v6402_v27 = vsel %vm1581_vm4, %v13383_v54, 0.0  ;;  %v6404_v30 = vsel %vm1581_vm4, %v13397_v52, 0.0 }
 0x5fb   :  { %v6588_v33 = vadd.f32 %v6587_v45, %v6586_v51  ;;  %v6597_v45 = vsel %vm1581_vm4, %v6487_v49, 0.0  ;;  %v13422_v51 = vpop.f32.mrb[84].mxu0 }
 0x5fc   :  { %v4300_v7 = vpop.permute.xlu1 %4299  ;;  %v6395_v3 = vadd.f32 %v6394_v40, %v6393_v9  ;;  %16955 = vst [vmem:[#allocation41_spill] sm:$0xff] %v13422_v51 }
 0x5fd   :  { %v13407_v50 = vpop.f32.mrb[48].mxu1  ;;  %v6590_v28 = vadd.f32 %v6589_v46, %v6588_v33 }
 0x5fe   :  { %16953 = vst [vmem:[#allocation124_spill] sm:$0xff] %v13407_v50  ;;  %v13415_v11 = vpop.f32.mrb[49].mxu1  ;;  %v6397_v58 = vadd.f32 %v6396_v53, %v6395_v3  ;;  %v5587_v41 = vmul.f32 %v13407_v50, %v13407_v50  ;;  %v4425_v18 = vpop.permute.xlu0 %4424 }
 0x5ff   :  { %16954 = vst [vmem:[#allocation43_spill] sm:$0xff] %v13415_v11  ;;  %v5467_v46 = vsel %vm1581_vm4, %v13415_v11, 0.0  ;;  %v5585_v49 = vmul.f32 %v13415_v11, %v13415_v11  ;;  %v13428_v13 = vpop.f32.mrb[50].mxu1  ;;  %v6592_v40 = vadd.f32 %v6591_v42, %v6590_v28  ;;  %v13446_v3 = vpop.f32.mrb[85].mxu0  ;;  %v4898_v28 = vsel %vm4848_vm15, %v4833_v34, %v4363_v48 }
 0x600   :  { %16956 = vst [vmem:[#allocation45_spill] sm:$0xff] %v13428_v13  ;;  %v4365_v1 = vpop.permute.xlu1 %4364  ;;  %v5468_v33 = vadd.f32 %v5467_v46, %v13313_v23  ;;  %v13433_v9 = vpop.f32.mrb[51].mxu1  ;;  %v6489_v23 = vmul.f32 %v13397_v52, %v13397_v52  ;;  %v5471_v46 = vsel %vm1581_vm4, %v13407_v50, 0.0  ;;  %v5588_v44 = vmul.f32 %v13428_v13, %v13428_v13 }
 0x601   :  { %16957 = vst [vmem:[#allocation44_spill] sm:$0xff] %v13433_v9  ;;  %v5664_v11 = vsel %vm1581_vm4, %v5585_v49, 0.0  ;;  %v5469_v42 = vsel %vm1581_vm4, %v13433_v9, 0.0  ;;  %v5586_v53 = vmul.f32 %v13433_v9, %v13433_v9  ;;  %v13452_v49 = vpop.f32.mrb[86].mxu0  ;;  %v6399_v63 = vadd.f32 %v6398_v26, %v6397_v58 }
 0x602   :  { %v5665_v54 = vadd.f32 %v5664_v11, %v13322_v29  ;;  %v5470_v24 = vadd.f32 %v5469_v42, %v5468_v33  ;;  %16958 = vst [vmem:[#allocation3_spill] sm:$0xff] %v13452_v49  ;;  %v6594_v52 = vadd.f32 %v6593_v16, %v6592_v40  ;;  %v13457_v57 = vpop.f32.mrb[87].mxu0  ;;  %v5668_v48 = vsel %vm1581_vm4, %v5587_v41, 0.0  ;;  %v4487_v29 = vpop.permute.xlu0 %4486 }
 0x603   :  { %v5666_v9 = vsel %vm1581_vm4, %v5586_v53, 0.0  ;;  %v4962_v50 = vsel %vm4912_vm0, %v4898_v28, %v4425_v18  ;;  %v5473_v11 = vsel %vm1581_vm4, %v13428_v13, 0.0  ;;  %v6401_v60 = vadd.f32 %v6400_v22, %v6399_v63 }
 0x604   :  { %v4427_v8 = vpop.permute.xlu1 %4426  ;;  %v5472_v34 = vadd.f32 %v5471_v46, %v5470_v24  ;;  %v5667_v4 = vadd.f32 %v5666_v9, %v5665_v54  ;;  %v5026_v33 = vsel %vm4976_vm1, %v4962_v50, %v4487_v29  ;;  %v6596_v42 = vadd.f32 %v6595_v0, %v6594_v52 }
 0x605   :  { %v4835_v53 = vsel %vm4783_vm14, %v4770_v38, %v4300_v7  ;;  %7320 = vmatprep.mubr.msk.bf16.mxu1 %vm5076_vm5, %v5026_v33  ;;  %v6599_v24 = vsel %vm1581_vm4, %v6488_v25, 0.0  ;;  %v5670_v54 = vsel %vm1581_vm4, %v5588_v44, 0.0  ;;  %v6403_v58 = vadd.f32 %v6402_v27, %v6401_v60  ;;  %v13478_v44 = vpop.f32.mrb[88].mxu0 }
 0x606   :  { %v5669_v26 = vadd.f32 %v5668_v48, %v5667_v4  ;;  %v13466_v16 = vadd.f32 %v5473_v11, %v5472_v34  ;;  %v4900_v18 = vsel %vm4848_vm15, %v4835_v53, %v4365_v1  ;;  %v6598_v41 = vadd.f32 %v6597_v45, %v6596_v42  ;;  %v4489_v52 = vpop.permute.xlu0 %4488  ;;  %16959 = vst [vmem:[#allocation46_spill] sm:$0xff] %v13478_v44  ;;  %v13487_v9 = vpop.f32.mrb[89].mxu0 }
 0x607   :  { %v4964_v50 = vsel %vm4912_vm0, %v4900_v18, %v4427_v8  ;;  %v6491_v4 = vmul.f32 %v13388_v2, %v13388_v2  ;;  %v6601_v7 = vsel %vm1581_vm4, %v6489_v23, 0.0  ;;  %v6405_v38 = vadd.f32 %v6404_v30, %v6403_v58  ;;  %16960 = vst [vmem:[#allocation48_spill] sm:$0xff] %v13487_v9  ;;  %v13494_v46 = vpop.f32.mrb[90].mxu0 }
 0x608   :  { %v3981_v40 = vpop.permute.xlu1 %3980  ;;  %v13472_v63 = vadd.f32 %v5670_v54, %v5669_v26  ;;  %v5028_v0 = vsel %vm4976_vm1, %v4964_v50, %v4489_v52  ;;  %v6600_v25 = vadd.f32 %v6599_v24, %v6598_v41  ;;  %v6603_v60 = vsel %vm1581_vm4, %v6490_v5, 0.0  ;;  %16961 = vst [vmem:[#allocation47_spill] sm:$0xff] %v13494_v46  ;;  %v13501_v26 = vpop.f32.mrb[91].mxu0 }
 0x609   :  { %7321 = vmatmul.mubr.msk.bf16.gmra.mrb[80].mxu1 %vm5076_vm5, %v5028_v0  ;;  %v6408_v8 = vsel %vm1581_vm4, %v13388_v2, 0.0  ;;  %v6492_v22 = vmul.f32 %v13446_v3, %v13446_v3  ;;  %v6407_v27 = vadd.f32 %v13412_v59, %v6405_v38  ;;  %v6605_v30 = vsel %vm1581_vm4, %v6491_v4, 0.0  ;;  %16962 = vst [vmem:[#allocation4_spill] sm:$0xff] %v13501_v26  ;;  %v13508_v41 = vpop.f32.mrb[92].mxu0 }
 0x60a   :  { %v6602_v1 = vadd.f32 %v6601_v7, %v6600_v25  ;;  %v4074_v23 = vpop.permute.xlu0 %4073  ;;  %v6410_v28 = vsel %vm1581_vm4, %v13446_v3, 0.0  ;;  %v6493_v5 = vmul.f32 %v13457_v57, %v13457_v57  ;;  %v6494_v29 = vmul.f32 %v13422_v51, %v13422_v51  ;;  %16963 = vst [vmem:[#allocation50_spill] sm:$0xff] %v13508_v41  ;;  %v13510_v4 = vpop.f32.mrb[93].mxu0 }
 0x60b   :  { %v6409_v34 = vadd.f32 %v6408_v8, %v6407_v27  ;;  %v6607_v59 = vsel %vm1581_vm4, %v6492_v22, 0.0  ;;  %v6412_v11 = vsel %vm1581_vm4, %v13457_v57, 0.0  ;;  %v6414_v54 = vsel %vm1581_vm4, %v13422_v51, 0.0  ;;  %16964 = vst [vmem:[#allocation49_spill] sm:$0xff] %v13510_v4  ;;  %v13517_v38 = vpop.f32.mrb[94].mxu0 }
 0x60c   :  { %v3983_v45 = vpop.permute.xlu1 %3982  ;;  %v6604_v48 = vadd.f32 %v6603_v60, %v6602_v1  ;;  %v6495_v18 = vmul.f32 %v13452_v49, %v13452_v49  ;;  %v6609_v58 = vsel %vm1581_vm4, %v6493_v5, 0.0  ;;  %v6611_v7 = vsel %vm1581_vm4, %v6494_v29, 0.0  ;;  %16965 = vst [vmem:[#allocation7_spill] sm:$0xff] %v13517_v38  ;;  %v13523_v1 = vpop.f32.mrb[95].mxu0 }
 0x60d   :  { %v6411_v42 = vadd.f32 %v6410_v28, %v6409_v34  ;;  %v6416_v0 = vsel %vm1581_vm4, %v13452_v49, 0.0  ;;  %v6496_v25 = vmul.f32 %v13487_v9, %v13487_v9  ;;  %v6498_v27 = vmul.f32 %v13478_v44, %v13478_v44 }
 0x60e   :  { %v6606_v53 = vadd.f32 %v6605_v30, %v6604_v48  ;;  %v4170_v24 = vpop.permute.xlu0 %4169  ;;  %v6613_v28 = vsel %vm1581_vm4, %v6495_v18, 0.0  ;;  %v6418_v5 = vsel %vm1581_vm4, %v13487_v9, 0.0  ;;  %v6497_v48 = vmul.f32 %v13501_v26, %v13501_v26 }
 0x60f   :  { %v6413_v52 = vadd.f32 %v6412_v11, %v6411_v42  ;;  %v4577_v11 = vsel %vm1581_vm4, %v16871_v39, %v3981_v40  ;;  %v6422_v42 = vsel %vm1581_vm4, %v13478_v44, 0.0  ;;  %v4580_v18 = vsel %vm1581_vm4, %v16876_v17, %v3983_v45 }
 0x610   :  { %v4076_v33 = vpop.permute.xlu1 %4075  ;;  %v6608_v50 = vadd.f32 %v6607_v59, %v6606_v53  ;;  %v6499_v59 = vmul.f32 %v13494_v46, %v13494_v46  ;;  %v6615_v53 = vsel %vm1581_vm4, %v6496_v25, 0.0  ;;  %v6424_v40 = vsel %vm1581_vm4, %v13494_v46, 0.0 }
 0x611   :  { %v6415_v8 = vadd.f32 %v6414_v54, %v6413_v52  ;;  %v6420_v54 = vsel %vm1581_vm4, %v13501_v26, 0.0  ;;  %v6617_v25 = vsel %vm1581_vm4, %v6497_v48, 0.0  ;;  %v6502_v48 = vmul.f32 %v13508_v41, %v13508_v41 }
 0x612   :  { %v6610_v22 = vadd.f32 %v6609_v58, %v6608_v50  ;;  %v4236_v30 = vpop.permute.xlu0 %4235  ;;  %v6619_v50 = vsel %vm1581_vm4, %v6498_v27, 0.0  ;;  %v6621_v27 = vsel %vm1581_vm4, %v6499_v59, 0.0  ;;  %v6432_v13 = vsel %vm1581_vm4, %v13517_v38, 0.0 }
 0x613   :  { %v6417_v29 = vadd.f32 %v6416_v0, %v6415_v8  ;;  %v4644_v0 = vsel %vm1711_vm6, %v4577_v11, %v4074_v23  ;;  %v6500_v8 = vmul.f32 %v13510_v4, %v13510_v4 }
 0x614   :  { %v13519_v60 = vpop.permute.xlu1 %4171  ;;  %v6612_v34 = vadd.f32 %v6611_v7, %v6610_v22  ;;  %v4646_v22 = vsel %vm1711_vm6, %v4580_v18, %v4076_v33 }
 0x615   :  { %v6419_v52 = vadd.f32 %v6418_v5, %v6417_v29  ;;  %v6426_v29 = vsel %vm1581_vm4, %v13510_v4, 0.0 }
 0x616   :  { %v6614_v7 = vadd.f32 %v6613_v28, %v6612_v34  ;;  %v4302_v39 = vpop.permute.xlu0 %4301  ;;  %v4708_v28 = vsel %vm1841_vm8, %v4644_v0, %v4170_v24  ;;  %v6430_v34 = vsel %vm1581_vm4, %v13508_v41, 0.0  ;;  %v6623_v0 = vsel %vm1581_vm4, %v6500_v8, 0.0 }
 0x617   :  { %v6421_v5 = vadd.f32 %v6420_v54, %v6419_v52  ;;  %v6503_v41 = vmul.f32 %v13517_v38, %v13517_v38  ;;  %v4772_v26 = vsel %vm1971_vm10, %v4708_v28, %v4236_v30 }
 0x618   :  { %v13541_v58 = vpop.permute.xlu1 %4237  ;;  %v6616_v45 = vadd.f32 %v6615_v53, %v6614_v7 }
 0x619   :  { %v13551_v17 = vpop.f32.mrb[52].mxu1  ;;  %v6423_v53 = vadd.f32 %v6422_v42, %v6421_v5  ;;  %v6501_v5 = vmul.f32 %v13523_v1, %v13523_v1 }
 0x61a   :  { %16966 = vst [vmem:[#allocation65_spill] sm:$0xff] %v13551_v17  ;;  %v13555_v23 = vpop.f32.mrb[53].mxu1  ;;  %v6618_v54 = vadd.f32 %v6617_v25, %v6616_v45  ;;  %v4367_v7 = vpop.permute.xlu0 %4366  ;;  %v5479_v25 = vsel %vm1581_vm4, %v13551_v17, 0.0 }
 0x61b   :  { %16967 = vst [vmem:[#allocation123_spill] sm:$0xff] %v13555_v23  ;;  %v5475_v33 = vsel %vm1581_vm4, %v13555_v23, 0.0  ;;  %v5589_v59 = vmul.f32 %v13555_v23, %v13555_v23  ;;  %v13567_v11 = vpop.f32.mrb[54].mxu1  ;;  %v5591_v23 = vmul.f32 %v13551_v17, %v13551_v17  ;;  %v6425_v44 = vadd.f32 %v6424_v40, %v6423_v53 }
 0x61c   :  { %16968 = vst [vmem:[#allocation125_spill] sm:$0xff] %v13567_v11  ;;  %v4304_v24 = vpop.permute.xlu1 %4303  ;;  %v5476_v18 = vadd.f32 %v5475_v33, %v13466_v16  ;;  %v13570_v52 = vpop.f32.mrb[55].mxu1  ;;  %v5592_v33 = vmul.f32 %v13567_v11, %v13567_v11  ;;  %v6620_v46 = vadd.f32 %v6619_v50, %v6618_v54  ;;  %v6625_v40 = vsel %vm1581_vm4, %v6501_v5, 0.0 }
 0x61d   :  { %16969 = vst [vmem:[#allocation52_spill] sm:$0xff] %v13570_v52  ;;  %v5672_v4 = vsel %vm1581_vm4, %v5589_v59, 0.0  ;;  %v5477_v42 = vsel %vm1581_vm4, %v13570_v52, 0.0  ;;  %v5590_v16 = vmul.f32 %v13570_v52, %v13570_v52 }
 0x61e   :  { %v5673_v8 = vadd.f32 %v5672_v4, %v13472_v63  ;;  %v5478_v45 = vadd.f32 %v5477_v42, %v5476_v18  ;;  %v4429_v49 = vpop.permute.xlu0 %4428  ;;  %v6428_v63 = vsel %vm1581_vm4, %v13523_v1, 0.0  ;;  %v5676_v4 = vsel %vm1581_vm4, %v5591_v23, 0.0 }
 0x61f   :  { %v5674_v59 = vsel %vm1581_vm4, %v5590_v16, 0.0  ;;  %v5481_v18 = vsel %vm1581_vm4, %v13567_v11, 0.0  ;;  %v6427_v42 = vadd.f32 %v6426_v29, %v6425_v44  ;;  %v6622_v17 = vadd.f32 %v6621_v27, %v6620_v46  ;;  %v17020_v11 = vld [vmem:[#allocation34_spill] sm:$0xff] }
 0x620   :  { %v4369_v38 = vpop.permute.xlu1 %4368  ;;  %v5480_v52 = vadd.f32 %v5479_v25, %v5478_v45  ;;  %v5675_v9 = vadd.f32 %v5674_v59, %v5673_v8  ;;  %v4837_v16 = vsel %vm4783_vm14, %v4772_v26, %v4302_v39  ;;  %v5678_v30 = vsel %vm1581_vm4, %v5592_v33, 0.0 }
 0x621   :  { %v4902_v28 = vsel %vm4848_vm15, %v4837_v16, %v4367_v7  ;;  %v6624_v54 = vadd.f32 %v6623_v0, %v6622_v17  ;;  %v6429_v25 = vadd.f32 %v6428_v63, %v6427_v42  ;;  %v4710_v23 = vsel %vm1841_vm8, %v4646_v22, %v13519_v60 }
 0x622   :  { %v5677_v51 = vadd.f32 %v5676_v4, %v5675_v9  ;;  %v5482_v50 = vadd.f32 %v5481_v18, %v5480_v52  ;;  %v4966_v8 = vsel %vm4912_vm0, %v4902_v28, %v4429_v49  ;;  %v4491_v44 = vpop.permute.xlu0 %4490  ;;  %v6627_v26 = vsel %vm1581_vm4, %v6502_v48, 0.0 }
 0x623   :  { %v4774_v9 = vsel %vm1971_vm10, %v4710_v23, %v13541_v58  ;;  %v5030_v39 = vsel %vm4976_vm1, %v4966_v8, %v4491_v44  ;;  %v6431_v27 = vadd.f32 %v6430_v34, %v6429_v25  ;;  %v6626_v29 = vadd.f32 %v6625_v40, %v6624_v54 }
 0x624   :  { %v4431_v53 = vpop.permute.xlu1 %4430  ;;  %v5679_v46 = vadd.f32 %v5678_v30, %v5677_v51  ;;  %v4839_v52 = vsel %vm4783_vm14, %v4774_v9, %v4304_v24  ;;  %7324 = vmatprep.mubr.msk.bf16.mxu1 %vm5076_vm5, %v5030_v39  ;;  %v6629_v17 = vsel %vm1581_vm4, %v6503_v41, 0.0 }
 0x625   :  { %v4904_v60 = vsel %vm4848_vm15, %v4839_v52, %v4369_v38  ;;  %v6433_v22 = vadd.f32 %v6432_v13, %v6431_v27  ;;  %v6628_v51 = vadd.f32 %v6627_v26, %v6626_v29 }
 0x626   :  { %v4968_v48 = vsel %vm4912_vm0, %v4904_v60, %v4431_v53  ;;  %v4493_v7 = vpop.permute.xlu0 %4492 }
 0x627   :  { %v5032_v58 = vsel %vm4976_vm1, %v4968_v48, %v4493_v7  ;;  %v6434_v0 = vrot.slane %v6433_v22, 4  ;;  %v6630_v45 = vadd.f32 %v6629_v17, %v6628_v51 }
 0x628   :  { %v3985_v49 = vpop.permute.xlu1 %3984  ;;  %7325 = vmatmul.mubr.msk.bf16.gmra.mrb[84].mxu1 %vm5076_vm5, %v5032_v58 }
 0x629   :  { %v6435_v24 = vadd.f32 %v6434_v0, %v6433_v22  ;;  %v6631_v5 = vrot.slane %v6630_v45, 4 }
 0x62a   :  { %v4078_v33 = vpop.permute.xlu0 %4077 }
 0x62b   :  { %v6436_v59 = vrot.slane %v6435_v24, 2  ;;  %v6632_v41 = vadd.f32 %v6631_v5, %v6630_v45 }
 0x62c   :  { %v3987_v34 = vpop.permute.xlu1 %3986 }
 0x62d   :  { %v6437_v38 = vadd.f32 %v6436_v59, %v6435_v24  ;;  %v6633_v4 = vrot.slane %v6632_v41, 2 }
 0x62e   :  { %v4174_v13 = vpop.permute.xlu0 %4173 }
 0x62f   :  { %v6438_v18 = vrot.slane %v6437_v38, 1  ;;  %v6634_v42 = vadd.f32 %v6633_v4, %v6632_v41 }
 0x630   :  { %v4080_v63 = vpop.permute.xlu1 %4079 }
 0x631   :  { %v6439_v40 = vadd.f32 %v6438_v18, %v6437_v38  ;;  %v6635_v30 = vrot.slane %v6634_v42, 1 }
 0x632   :  { %v4240_v28 = vpop.permute.xlu0 %4239 }
 0x633   :  { %v6636_v54 = vadd.f32 %v6635_v30, %v6634_v42  ;;  %v13618_v25 = vmul.f32 0.001953125, %v6439_v40  ;;  %v4583_v42 = vsel %vm1581_vm4, %v16885_v35, %v3985_v49  ;;  %v4586_v35 = vsel %vm1581_vm4, %v16892_v43, %v3987_v34 }
 0x634   :  { %v4176_v16 = vpop.permute.xlu1 %4175 }
 0x635   :  { %v13616_v53 = vpop.f32.mrb[56].mxu1  ;;  %v6638_v39 = vmul.f32 0.001953125, %v6636_v54  ;;  %v6639_v27 = vmul.f32 %v13618_v25, %v13618_v25  ;;  %v4648_v54 = vsel %vm1711_vm6, %v4583_v42, %v4078_v33 }
 0x636   :  { %16970 = vst [vmem:[#allocation51_spill] sm:$0xff] %v13616_v53  ;;  %v13620_v23 = vpop.f32.mrb[57].mxu1  ;;  %v4306_v17 = vpop.permute.xlu0 %4305  ;;  %v5595_v60 = vmul.f32 %v13616_v53, %v13616_v53  ;;  %v5487_v0 = vsel %vm1581_vm4, %v13616_v53, 0.0 }
 0x637   :  { %16971 = vst [vmem:[#allocation66_spill] sm:$0xff] %v13620_v23  ;;  %v5483_v8 = vsel %vm1581_vm4, %v13620_v23, 0.0  ;;  %v5593_v44 = vmul.f32 %v13620_v23, %v13620_v23  ;;  %v13626_v26 = vpop.f32.mrb[58].mxu1  ;;  %v6640_v5 = vsub.f32 %v6638_v39, %v6639_v27  ;;  %v4712_v27 = vsel %vm1841_vm8, %v4648_v54, %v4174_v13 }
 0x638   :  { %16972 = vst [vmem:[#allocation54_spill] sm:$0xff] %v13626_v26  ;;  %v4242_v9 = vpop.permute.xlu1 %4241  ;;  %v5484_v29 = vadd.f32 %v5483_v8, %v5482_v50  ;;  %v13630_v52 = vpop.f32.mrb[59].mxu1  ;;  %v5596_v50 = vmul.f32 %v13626_v26, %v13626_v26  ;;  %v5684_v4 = vsel %vm1581_vm4, %v5595_v60, 0.0  ;;  %v5489_v18 = vsel %vm1581_vm4, %v13626_v26, 0.0 }
 0x639   :  { %16973 = vst [vmem:[#allocation53_spill] sm:$0xff] %v13630_v52  ;;  %v5680_v22 = vsel %vm1581_vm4, %v5593_v44, 0.0  ;;  %v5485_v51 = vsel %vm1581_vm4, %v13630_v52, 0.0  ;;  %v5594_v48 = vmul.f32 %v13630_v52, %v13630_v52 }
 0x63a   :  { %v5681_v7 = vadd.f32 %v5680_v22, %v5679_v46  ;;  %v5486_v58 = vadd.f32 %v5485_v51, %v5484_v29  ;;  %v4371_v38 = vpop.permute.xlu0 %4370  ;;  %v6641_v46 = vmax.f32 %v6640_v5, 0.0  ;;  %v5686_v8 = vsel %vm1581_vm4, %v5596_v50, 0.0 }
 0x63b   :  { %v5682_v45 = vsel %vm1581_vm4, %v5594_v48, 0.0  ;;  %v4776_v22 = vsel %vm1971_vm10, %v4712_v27, %v4240_v28  ;;  %v4650_v51 = vsel %vm1711_vm6, %v4586_v35, %v4080_v63 }
 0x63c   :  { %v4308_v24 = vpop.permute.xlu1 %4307  ;;  %v5488_v59 = vadd.f32 %v5487_v0, %v5486_v58  ;;  %v5683_v41 = vadd.f32 %v5682_v45, %v5681_v7  ;;  %v6642_v39 = vadd.f32 1e-05, %v6641_v46  ;;  %v4841_v49 = vsel %vm4783_vm14, %v4776_v22, %v4306_v17 }
 0x63d   :  { %v4906_v33 = vsel %vm4848_vm15, %v4841_v49, %v4371_v38  ;;  %v4714_v7 = vsel %vm1841_vm8, %v4650_v51, %v4176_v16  ;;  %v6305_v16 = vld [vmem:[%s15601_s8] sm:$0x1] }
 0x63e   :  { %v5685_v40 = vadd.f32 %v5684_v4, %v5683_v41  ;;  %v13649_v30 = vadd.f32 %v5489_v18, %v5488_v59  ;;  %v4433_v29 = vpop.permute.xlu0 %4432  ;;  %7436 = vrsqrt.f32 %v6642_v39  ;;  %v4778_v0 = vsel %vm1971_vm10, %v4714_v7, %v4242_v9  ;;  %v13678_v41 = vld [vmem:[%s15602_s9] sm:$0x1] }
 0x63f   :  { %v4970_v13 = vsel %vm4912_vm0, %v4906_v33, %v4433_v29  ;;  %v4843_v50 = vsel %vm4783_vm14, %v4778_v0, %v4308_v24  ;;  %v16974_v18 = vld [vmem:[#allocation30_spill] sm:$0xff] }
 0x640   :  { %v4373_v44 = vpop.permute.xlu1 %4372  ;;  %v13654_v60 = vadd.f32 %v5686_v8, %v5685_v40 }
 0x641   :  { %v4908_v43 = vsel %vm4848_vm15, %v4843_v50, %v4373_v44 }
 0x642   :  { %v4495_v58 = vpop.permute.xlu0 %4494 }
 0x643   :  { %v5034_v28 = vsel %vm4976_vm1, %v4970_v13, %v4495_v58 }
 0x644   :  { %v4435_v48 = vpop.permute.xlu1 %4434  ;;  %7328 = vmatprep.mubr.msk.bf16.mxu1 %vm5076_vm5, %v5034_v28 }
 0x645   :  { %v4972_v63 = vsel %vm4912_vm0, %v4908_v43, %v4435_v48 }
 0x646   :  { %v4497_v17 = vpop.permute.xlu0 %4496 }
 0x647   :  { %v5036_v45 = vsel %vm4976_vm1, %v4972_v63, %v4497_v17 }
 0x648   :  { %v3989_v34 = vpop.permute.xlu1 %3988  ;;  %7329 = vmatmul.mubr.msk.bf16.gmra.mrb[88].mxu1 %vm5076_vm5, %v5036_v45  ;;  %v7437_v9 = vpop.eup %7436 }
 0x649   :  { %v6644_v24 = vmul.f32 %v7437_v9, %v6305_v16  ;;  %v4589_v38 = vsel %vm1581_vm4, %v16905_v37, %v3989_v34 }
 0x64a   :  { %v4082_v59 = vpop.permute.xlu0 %4081 }
 0x64b   :  { %v13683_v4 = vmul.f32 %v6644_v24, %v13618_v25  ;;  %v13686_v46 = vrot.slane %v6644_v24, %v16974_v18  ;;  %v4652_v40 = vsel %vm1711_vm6, %v4589_v38, %v4082_v59 }
 0x64c   :  { %v3991_v5 = vpop.permute.xlu1 %3990 }
 0x64d   :  { %v4592_v42 = vsel %vm1581_vm4, %v16918_v21, %v3991_v5  ;;  %v13696_v37 = vmul.f32 %v13686_v46, %v12786_v15  ;;  %v13700_v25 = vmul.f32 %v13686_v46, %v12804_v32  ;;  %v13707_v29 = vmul.f32 %v12782_v61, %v13686_v46 }
 0x64e   :  { %v4178_v44 = vpop.permute.xlu0 %4177  ;;  %v13711_v22 = vmul.f32 %v12790_v62, %v13686_v46  ;;  %v13715_v15 = vmul.f32 %v13686_v46, %v12840_v6  ;;  %v13725_v61 = vmul.f32 %v13686_v46, %v12857_v55  ;;  %v13729_v62 = vmul.f32 %v12834_v56, %v13686_v46 }
 0x64f   :  { %v4716_v27 = vsel %vm1841_vm8, %v4652_v40, %v4178_v44  ;;  %v13739_v7 = vmul.f32 %v12847_v10, %v13686_v46  ;;  %v13743_v55 = vmul.f32 %v13686_v46, %v12870_v36  ;;  %v13765_v5 = vmul.f32 %v13686_v46, %v12893_v14 }
 0x650   :  { %v4084_v54 = vpop.permute.xlu1 %4083  ;;  %v13769_v59 = vmul.f32 %v12866_v19, %v13686_v46  ;;  %v13773_v24 = vmul.f32 %v12883_v47, %v13686_v46  ;;  %v16979_v19 = vld [vmem:[#allocation113_spill] sm:$0xff]  ;;  %v16980_v47 = vld [vmem:[#allocation115_spill] sm:$0xff] }
 0x651   :  { %v4654_v8 = vsel %vm1711_vm6, %v4592_v42, %v4084_v54  ;;  %v13703_v21 = vpop.f32.mrb[60].mxu1  ;;  %v13778_v54 = vmul.f32 %v13686_v46, %v12936_v12  ;;  %v13787_v44 = vmul.f32 %v16979_v19, %v13686_v46 }
 0x652   :  { %16975 = vst [vmem:[#allocation78_spill] sm:$0xff] %v13703_v21  ;;  %v5495_v32 = vsel %vm1581_vm4, %v13703_v21, 0.0  ;;  %v5599_v35 = vmul.f32 %v13703_v21, %v13703_v21  ;;  %v13721_v49 = vpop.f32.mrb[61].mxu1  ;;  %v4244_v50 = vpop.permute.xlu0 %4243 }
 0x653   :  { %16976 = vst [vmem:[#allocation56_spill] sm:$0xff] %v13721_v49  ;;  %v5491_v6 = vsel %vm1581_vm4, %v13721_v49, 0.0  ;;  %v5597_v51 = vmul.f32 %v13721_v49, %v13721_v49  ;;  %v13735_v33 = vpop.f32.mrb[62].mxu1  ;;  %v4780_v45 = vsel %vm1971_vm10, %v4716_v27, %v4244_v50  ;;  %v13791_v27 = vmul.f32 %v16980_v47, %v13686_v46  ;;  %v16984_v50 = vld [vmem:[#allocation97_spill] sm:$0xff]  ;;  %v16990_v47 = vld [vmem:[#allocation23_spill] sm:$0xff] }
 0x654   :  { %16977 = vst [vmem:[#allocation55_spill] sm:$0xff] %v13735_v33  ;;  %v4180_v48 = vpop.permute.xlu1 %4179  ;;  %v5692_v56 = vsel %vm1581_vm4, %v5599_v35, 0.0  ;;  %v5492_v13 = vadd.f32 %v5491_v6, %v13649_v30  ;;  %v5497_v58 = vsel %vm1581_vm4, %v13735_v33, 0.0  ;;  %v5600_v0 = vmul.f32 %v13735_v33, %v13735_v33  ;;  %v13751_v28 = vpop.f32.mrb[63].mxu1  ;;  %v16981_v6 = vld [vmem:[#allocation116_spill] sm:$0xff] }
 0x655   :  { %16978 = vst [vmem:[#allocation100_spill] sm:$0xff] %v13751_v28  ;;  %v5688_v10 = vsel %vm1581_vm4, %v5597_v51, 0.0  ;;  %v4718_v43 = vsel %vm1841_vm8, %v4654_v8, %v4180_v48  ;;  %v5493_v36 = vsel %vm1581_vm4, %v13751_v28, 0.0  ;;  %v5598_v34 = vmul.f32 %v13751_v28, %v13751_v28  ;;  %v16982_v51 = vld [vmem:[#allocation82_spill] sm:$0xff] }
 0x656   :  { %v5689_v30 = vadd.f32 %v5688_v10, %v13654_v60  ;;  %v5694_v63 = vsel %vm1581_vm4, %v5600_v0, 0.0  ;;  %v5494_v17 = vadd.f32 %v5493_v36, %v5492_v13  ;;  %v4310_v40 = vpop.permute.xlu0 %4309  ;;  %v13783_v8 = vmul.f32 %v13686_v46, %v12952_v20  ;;  %v16983_v13 = vld [vmem:[#allocation96_spill] sm:$0xff] }
 0x657   :  { %v5690_v16 = vsel %vm1581_vm4, %v5598_v34, 0.0  ;;  %v4845_v14 = vsel %vm4783_vm14, %v4780_v45, %v4310_v40  ;;  %v13797_v12 = vmul.f32 %v13686_v46, %v16981_v6  ;;  %v13801_v48 = vmul.f32 %v13686_v46, %v16982_v51  ;;  %v16987_v45 = vld [vmem:[#allocation88_spill] sm:$0xff] }
 0x658   :  { %v4246_v9 = vpop.permute.xlu1 %4245  ;;  %v5496_v60 = vadd.f32 %v5495_v32, %v5494_v17  ;;  %v5691_v38 = vadd.f32 %v5690_v16, %v5689_v30  ;;  %v13805_v0 = vmul.f32 %v16983_v13, %v13686_v46  ;;  %v13809_v10 = vmul.f32 %v16984_v50, %v13686_v46  ;;  %v16994_v50 = vld [vmem:[#allocation64_spill] sm:$0xff] }
 0x659   :  { %v4782_v42 = vsel %vm1971_vm10, %v4718_v43, %v4246_v9  ;;  %v16986_v43 = vld [vmem:[#allocation36_spill] sm:$0xff]  ;;  %v13824_v16 = vmul.f32 %v16987_v45, %v13686_v46  ;;  %v16988_v9 = vld [vmem:[#allocation29_spill] sm:$0xff]  ;;  %v13835_v6 = vmul.f32 %v13686_v46, %v16990_v47 }
 0x65a   :  { %v5693_v32 = vadd.f32 %v5692_v56, %v5691_v38  ;;  %v13793_v35 = vadd.f32 %v5497_v58, %v5496_v60  ;;  %v16985_v56 = vld [vmem:[#allocation87_spill] sm:$0xff]  ;;  %v13817_v36 = vmul.f32 %v13686_v46, %v16986_v43  ;;  %v4375_v30 = vpop.permute.xlu0 %4374  ;;  %v13828_v60 = vmul.f32 %v16988_v9, %v13686_v46  ;;  %v16997_v9 = vld [vmem:[#allocation62_spill] sm:$0xff] }
 0x65b   :  { %v13813_v58 = vmul.f32 %v13686_v46, %v16985_v56  ;;  %v16989_v38 = vld [vmem:[#allocation83_spill] sm:$0xff]  ;;  %v4910_v19 = vsel %vm4848_vm15, %v4845_v14, %v4375_v30  ;;  %v13849_v56 = vmul.f32 %v16994_v50, %v13686_v46  ;;  %v16995_v14 = vld [vmem:[#allocation89_spill] sm:$0xff]  ;;  %v16996_v30 = vld [vmem:[#allocation112_spill] sm:$0xff] }
 0x65c   :  { %v4312_v20 = vpop.permute.xlu1 %4311  ;;  %v13820_v17 = vadd.f32 %v5694_v63, %v5693_v32  ;;  %v16992_v32 = vld [vmem:[#allocation18_spill] sm:$0xff]  ;;  %v13853_v43 = vmul.f32 %v13686_v46, %v16995_v14 }
 0x65d   :  { %v4847_v34 = vsel %vm4783_vm14, %v4782_v42, %v4312_v20  ;;  %v16991_v42 = vld [vmem:[#allocation12_spill] sm:$0xff]  ;;  %v16993_v20 = vld [vmem:[#allocation71_spill] sm:$0xff]  ;;  %v17000_v14 = vld [vmem:[#allocation90_spill] sm:$0xff] }
 0x65e   :  { %v4911_v40 = vsel %vm4848_vm15, %v4847_v34, %v16989_v38  ;;  %v13839_v63 = vmul.f32 %v13686_v46, %v16991_v42  ;;  %v13845_v13 = vmul.f32 %v16993_v20, %v13686_v46  ;;  %v13859_v38 = vmul.f32 %v13686_v46, %v16997_v9  ;;  %v16999_v42 = vld [vmem:[#allocation118_spill] sm:$0xff]  ;;  %v4499_v50 = vpop.permute.xlu0 %4498  ;;  %v17002_v9 = vld [vmem:[#allocation120_spill] sm:$0xff] }
 0x65f   :  { %v4975_v51 = vsel %vm4912_vm0, %v4911_v40, %v16992_v32  ;;  %v16998_v40 = vld [vmem:[#allocation119_spill] sm:$0xff]  ;;  %v13867_v32 = vmul.f32 %v16999_v42, %v13686_v46  ;;  %v13872_v39 = vmul.f32 %v13686_v46, %v17000_v14  ;;  %v13880_v33 = vmul.f32 %v17002_v9, %v13686_v46  ;;  %v17003_v42 = vld [vmem:[#allocation69_spill] sm:$0xff] }
 0x660   :  { %v4437_v34 = vpop.permute.xlu1 %4436  ;;  %v5039_v45 = vsel %vm4976_vm1, %v4975_v51, %v16996_v30  ;;  %v13863_v47 = vmul.f32 %v16998_v40, %v13686_v46  ;;  %v17001_v51 = vld [vmem:[#allocation108_spill] sm:$0xff]  ;;  %v13885_v21 = vmul.f32 %v17003_v42, %v13686_v46 }
 0x661   :  { %v4974_v20 = vsel %vm4912_vm0, %v4910_v19, %v4437_v34  ;;  %v13876_v30 = vmul.f32 %v13686_v46, %v17001_v51  ;;  %v13889_v19 = vmul.f32 %v13686_v46, %v13234_v31  ;;  %v17004_v34 = vld [vmem:[#allocation5_spill] sm:$0xff]  ;;  %v17005_v51 = vld [vmem:[#allocation122_spill] sm:$0xff]  ;;  %v17007_v42 = vld [vmem:[#allocation72_spill] sm:$0xff] }
 0x662   :  { %v5038_v40 = vsel %vm4976_vm1, %v4974_v20, %v4499_v50  ;;  %v13893_v14 = vmul.f32 %v13686_v46, %v17004_v34  ;;  %v13898_v9 = vmul.f32 %v17005_v51, %v13686_v46  ;;  %v17006_v20 = vld [vmem:[#allocation14_spill] sm:$0xff]  ;;  %v13906_v28 = vmul.f32 %v13686_v46, %v17007_v42  ;;  %v17008_v31 = vld [vmem:[#allocation13_spill] sm:$0xff] }
 0x663   :  { %7332 = vmatprep.mubr.msk.bf16.mxu1 %vm5076_vm5, %v5038_v40  ;;  %v13902_v50 = vmul.f32 %v17006_v20, %v13686_v46  ;;  %v13910_v49 = vmul.f32 %v13686_v46, %v17008_v31  ;;  %v17009_v40 = vld [vmem:[#allocation10_spill] sm:$0xff]  ;;  %v17010_v51 = vld [vmem:[#allocation21_spill] sm:$0xff]  ;;  %v17012_v20 = vld [vmem:[#allocation28_spill] sm:$0xff] }
 0x664   :  { %7333 = vmatmul.mubr.msk.bf16.gmra.mrb[92].mxu1 %vm5076_vm5, %v5039_v45  ;;  %v13915_v34 = vmul.f32 %v17009_v40, %v13686_v46  ;;  %v13919_v26 = vmul.f32 %v17010_v51, %v13686_v46  ;;  %v13923_v53 = vmul.f32 %v13686_v46, %v17012_v20  ;;  %v17014_v42 = vld [vmem:[#allocation73_spill] sm:$0xff]  ;;  %v17016_v31 = vld [vmem:[#allocation32_spill] sm:$0xff]  ;;  %v13939_v51 = vmul.f32 %v13686_v46, %v17020_v11 }
 0x665   :  { %v13927_v52 = vmul.f32 %v13686_v46, %v17014_v42  ;;  %v13931_v23 = vmul.f32 %v17016_v31, %v13686_v46  ;;  %v17018_v45 = vld [vmem:[#allocation25_spill] sm:$0xff]  ;;  %v13951_v31 = vmul.f32 %v13388_v2, %v13686_v46  ;;  %v13959_v11 = vmul.f32 %v13686_v46, %v13457_v57 }
 0x666   :  { %17011 = vst [vmem:[#allocation58_spill] sm:$0xff] %v13919_v26  ;;  %17013 = vst [vmem:[#allocation57_spill] sm:$0xff] %v13923_v53  ;;  %v13935_v40 = vmul.f32 %v17018_v45, %v13686_v46  ;;  %v17022_v26 = vld [vmem:[#allocation33_spill] sm:$0xff]  ;;  %v17024_v53 = vld [vmem:[#allocation38_spill] sm:$0xff]  ;;  %v13955_v45 = vmul.f32 %v13686_v46, %v13446_v3 }
 0x667   :  { %17015 = vst [vmem:[#allocation127_spill] sm:$0xff] %v13927_v52  ;;  %17017 = vst [vmem:[#allocation60_spill] sm:$0xff] %v13931_v23  ;;  %v13943_v20 = vmul.f32 %v13686_v46, %v17022_v26  ;;  %v13947_v42 = vmul.f32 %v17024_v53, %v13686_v46 }
 0x668   :  { %17019 = vst [vmem:[#allocation59_spill] sm:$0xff] %v13935_v40  ;;  %17021 = vst [vmem:[#allocation67_spill] sm:$0xff] %v13939_v51  ;;  %v17029_v51 = vld [vmem:[#allocation41_spill] sm:$0xff] }
 0x669   :  { %17023 = vst [vmem:[#allocation126_spill] sm:$0xff] %v13943_v20  ;;  %17025 = vst [vmem:[#allocation2_spill] sm:$0xff] %v13947_v42  ;;  %v13963_v26 = vmul.f32 %v17029_v51, %v13686_v46  ;;  %v17031_v20 = vld [vmem:[#allocation3_spill] sm:$0xff]  ;;  %v17033_v42 = vld [vmem:[#allocation48_spill] sm:$0xff] }
 0x66a   :  { %17026 = vst [vmem:[#allocation68_spill] sm:$0xff] %v13951_v31  ;;  %17027 = vst [vmem:[#allocation70_spill] sm:$0xff] %v13955_v45  ;;  %v13967_v53 = vmul.f32 %v17031_v20, %v13686_v46  ;;  %v13971_v2 = vmul.f32 %v13686_v46, %v17033_v42  ;;  %v17035_v31 = vld [vmem:[#allocation4_spill] sm:$0xff]  ;;  %v17037_v45 = vld [vmem:[#allocation46_spill] sm:$0xff]  ;;  %v6714_v42 = vmul.f32 %v13686_v46, %v13523_v1 }
 0x66b   :  { %17028 = vst [vmem:[#allocation74_spill] sm:$0xff] %v13959_v11  ;;  %17030 = vst [vmem:[#allocation91_spill] sm:$0xff] %v13963_v26  ;;  %v13975_v3 = vmul.f32 %v13686_v46, %v17035_v31  ;;  %v13979_v57 = vmul.f32 %v17037_v45, %v13686_v46  ;;  %v17039_v11 = vld [vmem:[#allocation47_spill] sm:$0xff]  ;;  %v17041_v26 = vld [vmem:[#allocation49_spill] sm:$0xff]  ;;  %v17047_v45 = vsub.f32 %v13678_v41, %v13683_v4 }
 0x66c   :  { %17032 = vst [vmem:[#allocation75_spill] sm:$0xff] %v13967_v53  ;;  %17034 = vst [vmem:[#allocation15_spill] sm:$0xff] %v13971_v2  ;;  %v13983_v51 = vmul.f32 %v17039_v11, %v13686_v46  ;;  %v13987_v20 = vmul.f32 %v13686_v46, %v17041_v26  ;;  %v17043_v2 = vld [vmem:[#allocation50_spill] sm:$0xff]  ;;  %v17045_v31 = vld [vmem:[#allocation7_spill] sm:$0xff] }
 0x66d   :  { %17036 = vst [vmem:[#allocation101_spill] sm:$0xff] %v13975_v3  ;;  %17038 = vst [vmem:[#allocation76_spill] sm:$0xff] %v13979_v57  ;;  %v13993_v53 = vmul.f32 %v17043_v2, %v13686_v46  ;;  %v13997_v3 = vmul.f32 %v17045_v31, %v13686_v46  ;;  %v14003_v11 = vrot.slane %v17047_v45, %v16974_v18 }
 0x66e   :  { %17040 = vst [vmem:[#allocation79_spill] sm:$0xff] %v13983_v51  ;;  %17042 = vst [vmem:[#allocation102_spill] sm:$0xff] %v13987_v20  ;;  %v14005_v51 = vpop.f32.mrb[64].mxu1 }
 0x66f   :  { %17044 = vst [vmem:[#allocation37_spill] sm:$0xff] %v13993_v53  ;;  %17046 = vst [vmem:[#allocation77_spill] sm:$0xff] %v13997_v3  ;;  %v14008_v26 = vadd.f32 %v14003_v11, %v6714_v42  ;;  %v14010_v1 = vpop.f32.mrb[65].mxu1  ;;  %v5603_v4 = vmul.f32 %v14005_v51, %v14005_v51  ;;  %v5503_v53 = vsel %vm1581_vm4, %v14005_v51, 0.0 }
 0x670   :  { %17048 = vst [vmem:[#allocation19_spill] sm:$0xff] %v14005_v51  ;;  %17050 = vst [vmem:[#allocation104_spill] sm:$0xff] %v14010_v1  ;;  %v5499_v2 = vsel %vm1581_vm4, %v14010_v1, 0.0  ;;  %v5601_v46 = vmul.f32 %v14010_v1, %v14010_v1  ;;  %v14016_v31 = vpop.f32.mrb[66].mxu1 }
 0x671   :  { %17049 = vst [vmem:[#allocation103_spill] sm:$0xff] %v14008_v26  ;;  %17051 = vst [vmem:[#allocation17_spill] sm:$0xff] %v14016_v31  ;;  %v5500_v3 = vadd.f32 %v5499_v2, %v13793_v35  ;;  %v14019_v41 = vpop.f32.mrb[67].mxu1  ;;  %v5604_v35 = vmul.f32 %v14016_v31, %v14016_v31  ;;  %v5505_v40 = vsel %vm1581_vm4, %v14016_v31, 0.0 }
 0x672   :  { %17052 = vst [vmem:[#allocation40_spill] sm:$0xff] %v14019_v41  ;;  %v5696_v42 = vsel %vm1581_vm4, %v5601_v46, 0.0  ;;  %v5501_v45 = vsel %vm1581_vm4, %v14019_v41, 0.0  ;;  %v5602_v26 = vmul.f32 %v14019_v41, %v14019_v41  ;;  %v5700_v46 = vsel %vm1581_vm4, %v5603_v4, 0.0 }
 0x673   :  { %v5697_v18 = vadd.f32 %v5696_v42, %v13820_v17  ;;  %v5502_v1 = vadd.f32 %v5501_v45, %v5500_v3  ;;  %v5702_v17 = vsel %vm1581_vm4, %v5604_v35, 0.0 }
 0x674   :  { %v5698_v2 = vsel %vm1581_vm4, %v5602_v26, 0.0 }
 0x675   :  { %v5504_v20 = vadd.f32 %v5503_v53, %v5502_v1  ;;  %v5699_v57 = vadd.f32 %v5698_v2, %v5697_v18 }
 0x677   :  { %v5701_v23 = vadd.f32 %v5700_v46, %v5699_v57  ;;  %v5506_v41 = vadd.f32 %v5505_v40, %v5504_v20 }
 0x679   :  { %v5703_v3 = vadd.f32 %v5702_v17, %v5701_v23 }
 0x686   :  { %v14038_v42 = vpop.f32.mrb[68].mxu1 }
 0x687   :  { %v14040_v45 = vpop.f32.mrb[69].mxu1  ;;  %v5607_v40 = vmul.f32 %v14038_v42, %v14038_v42  ;;  %v5511_v2 = vsel %vm1581_vm4, %v14038_v42, 0.0 }
 0x688   :  { %17053 = vst [vmem:[#allocation105_spill] sm:$0xff] %v14040_v45  ;;  %v5507_v51 = vsel %vm1581_vm4, %v14040_v45, 0.0  ;;  %v5605_v18 = vmul.f32 %v14040_v45, %v14040_v45  ;;  %v14046_v53 = vpop.f32.mrb[70].mxu1 }
 0x689   :  { %v5508_v26 = vadd.f32 %v5507_v51, %v5506_v41  ;;  %v14048_v1 = vpop.f32.mrb[71].mxu1  ;;  %v5608_v51 = vmul.f32 %v14046_v53, %v14046_v53  ;;  %v5513_v45 = vsel %vm1581_vm4, %v14046_v53, 0.0 }
 0x68a   :  { %v5704_v23 = vsel %vm1581_vm4, %v5605_v18, 0.0  ;;  %v5509_v57 = vsel %vm1581_vm4, %v14048_v1, 0.0  ;;  %v5606_v20 = vmul.f32 %v14048_v1, %v14048_v1  ;;  %v5708_v18 = vsel %vm1581_vm4, %v5607_v40, 0.0 }
 0x68b   :  { %v5705_v4 = vadd.f32 %v5704_v23, %v5703_v3  ;;  %v5510_v35 = vadd.f32 %v5509_v57, %v5508_v26  ;;  %v5710_v3 = vsel %vm1581_vm4, %v5608_v51, 0.0  ;;  %v14068_v23 = vadd.f32 %v14003_v11, %v13696_v37 }
 0x68c   :  { %v5706_v41 = vsel %vm1581_vm4, %v5606_v20, 0.0  ;;  %v14072_v57 = vadd.f32 %v14003_v11, %v13700_v25  ;;  %v14076_v20 = vadd.f32 %v14003_v11, %v13707_v29  ;;  %v14080_v40 = vadd.f32 %v14003_v11, %v13711_v22 }
 0x68d   :  { %v5512_v46 = vadd.f32 %v5511_v2, %v5510_v35  ;;  %v5707_v17 = vadd.f32 %v5706_v41, %v5705_v4  ;;  %17054 = vst [vmem:[#allocation107_spill] sm:$0xff] %v14068_v23  ;;  %v14088_v37 = vadd.f32 %v14003_v11, %v13725_v61  ;;  %v14092_v25 = vadd.f32 %v14003_v11, %v13729_v62  ;;  %v17170_v23 = vld [vmem:[#allocation54_spill] sm:$0xff] }
 0x68e   :  { %17055 = vst [vmem:[#allocation24_spill] sm:$0xff] %v14072_v57  ;;  %17056 = vst [vmem:[#allocation106_spill] sm:$0xff] %v14076_v20  ;;  %v14096_v29 = vadd.f32 %v14003_v11, %v13739_v7  ;;  %v14100_v22 = vadd.f32 %v14003_v11, %v13743_v55  ;;  %v14108_v61 = vadd.f32 %v14003_v11, %v13769_v59  ;;  %v17166_v20 = vld [vmem:[#allocation53_spill] sm:$0xff]  ;;  %v17168_v57 = vld [vmem:[#allocation51_spill] sm:$0xff] }
 0x68f   :  { %v5709_v31 = vadd.f32 %v5708_v18, %v5707_v17  ;;  %v5514_v52 = vadd.f32 %v5513_v45, %v5512_v46  ;;  %17057 = vst [vmem:[#allocation22_spill] sm:$0xff] %v14080_v40  ;;  %v14084_v45 = vadd.f32 %v14003_v11, %v13715_v15  ;;  %17059 = vst [vmem:[#allocation27_spill] sm:$0xff] %v14088_v37  ;;  %v17160_v37 = vld [vmem:[#allocation65_spill] sm:$0xff]  ;;  %v17164_v40 = vld [vmem:[#allocation66_spill] sm:$0xff] }
 0x690   :  { %17060 = vst [vmem:[#allocation92_spill] sm:$0xff] %v14092_v25  ;;  %17061 = vst [vmem:[#allocation109_spill] sm:$0xff] %v14096_v29  ;;  %v14104_v15 = vadd.f32 %v14003_v11, %v13765_v5  ;;  %v14112_v62 = vadd.f32 %v14003_v11, %v13773_v24  ;;  %v17158_v29 = vld [vmem:[#allocation123_spill] sm:$0xff]  ;;  %v17159_v25 = vld [vmem:[#allocation52_spill] sm:$0xff] }
 0x691   :  { %v5711_v26 = vadd.f32 %v5710_v3, %v5709_v31  ;;  %17058 = vst [vmem:[#allocation8_spill] sm:$0xff] %v14084_v45  ;;  %17062 = vst [vmem:[#allocation110_spill] sm:$0xff] %v14100_v22  ;;  %v17157_v22 = vld [vmem:[#allocation45_spill] sm:$0xff] }
 0x692   :  { %17063 = vst [vmem:[#allocation16_spill] sm:$0xff] %v14104_v15  ;;  %17064 = vst [vmem:[#allocation9_spill] sm:$0xff] %v14108_v61  ;;  %v14144_v61 = vadd.f32 %v14003_v11, %v13783_v8  ;;  %v14160_v8 = vadd.f32 %v14003_v11, %v13797_v12  ;;  %v14180_v12 = vadd.f32 %v14003_v11, %v13817_v36  ;;  %v17156_v15 = vld [vmem:[#allocation124_spill] sm:$0xff]  ;;  %v17162_v45 = vld [vmem:[#allocation125_spill] sm:$0xff] }
 0x693   :  { %17065 = vst [vmem:[#allocation20_spill] sm:$0xff] %v14112_v62 }
 0x694   :  { %17067 = vst [vmem:[#allocation93_spill] sm:$0xff] %v14144_v61  ;;  %17070 = vst [vmem:[#allocation117_spill] sm:$0xff] %v14160_v8  ;;  %v17154_v61 = vld [vmem:[#allocation43_spill] sm:$0xff] }
 0x695   :  { %17075 = vst [vmem:[#allocation116_spill] sm:$0xff] %v14180_v12  ;;  %v14224_v12 = vadd.f32 %v14003_v11, %v13845_v13  ;;  %v14236_v13 = vadd.f32 %v14003_v11, %v13853_v43  ;;  %v14256_v43 = vadd.f32 %v14003_v11, %v13876_v30  ;;  %v14276_v30 = vadd.f32 %v14003_v11, %v13898_v9 }
 0x697   :  { %17080 = vst [vmem:[#allocation36_spill] sm:$0xff] %v14224_v12  ;;  %17082 = vst [vmem:[#allocation29_spill] sm:$0xff] %v14236_v13 }
 0x698   :  { %17087 = vst [vmem:[#allocation71_spill] sm:$0xff] %v14256_v43  ;;  %17092 = vst [vmem:[#allocation119_spill] sm:$0xff] %v14276_v30  ;;  %v14316_v30 = vadd.f32 %v14003_v11, %v13915_v34 }
 0x69a   :  { %17096 = vst [vmem:[#allocation120_spill] sm:$0xff] %v14316_v30  ;;  %v17101_v30 = vld [vmem:[#allocation127_spill] sm:$0xff] }
 0x6a2   :  { %v14114_v31 = vpop.f32.mrb[72].mxu1 }
 0x6a3   :  { %v14116_v7 = vpop.f32.mrb[73].mxu1  ;;  %v5611_v59 = vmul.f32 %v14114_v31, %v14114_v31  ;;  %v5519_v18 = vsel %vm1581_vm4, %v14114_v31, 0.0 }
 0x6a4   :  { %v5515_v55 = vsel %vm1581_vm4, %v14116_v7, 0.0  ;;  %v5609_v4 = vmul.f32 %v14116_v7, %v14116_v7  ;;  %v14122_v5 = vpop.f32.mrb[74].mxu1 }
 0x6a5   :  { %v5516_v35 = vadd.f32 %v5515_v55, %v5514_v52  ;;  %v14124_v2 = vpop.f32.mrb[75].mxu1  ;;  %v5612_v52 = vmul.f32 %v14122_v5, %v14122_v5 }
 0x6a6   :  { %v5712_v24 = vsel %vm1581_vm4, %v5609_v4, 0.0  ;;  %v5517_v51 = vsel %vm1581_vm4, %v14124_v2, 0.0  ;;  %v5610_v41 = vmul.f32 %v14124_v2, %v14124_v2  ;;  %v14140_v4 = vadd.f32 %v14003_v11, %v13778_v54 }
 0x6a7   :  { %v5713_v46 = vadd.f32 %v5712_v24, %v5711_v26  ;;  %v5518_v17 = vadd.f32 %v5517_v51, %v5516_v35  ;;  %v5716_v26 = vsel %vm1581_vm4, %v5611_v59, 0.0  ;;  %v5521_v35 = vsel %vm1581_vm4, %v14122_v5, 0.0 }
 0x6a8   :  { %v5714_v3 = vsel %vm1581_vm4, %v5610_v41, 0.0  ;;  %17066 = vst [vmem:[#allocation98_spill] sm:$0xff] %v14140_v4  ;;  %v14151_v24 = vadd.f32 %v14003_v11, %v13787_v44  ;;  %v14155_v51 = vadd.f32 %v14003_v11, %v13791_v27  ;;  %v14164_v59 = vadd.f32 %v14003_v11, %v13801_v48  ;;  %v17155_v4 = vld [vmem:[#allocation44_spill] sm:$0xff] }
 0x6a9   :  { %v5520_v55 = vadd.f32 %v5519_v18, %v5518_v17  ;;  %v5715_v62 = vadd.f32 %v5714_v3, %v5713_v46  ;;  %v5718_v46 = vsel %vm1581_vm4, %v5612_v52, 0.0  ;;  %v14168_v44 = vadd.f32 %v14003_v11, %v13805_v0 }
 0x6aa   :  { %17068 = vst [vmem:[#allocation111_spill] sm:$0xff] %v14151_v24  ;;  %17069 = vst [vmem:[#allocation42_spill] sm:$0xff] %v14155_v51  ;;  %v14172_v27 = vadd.f32 %v14003_v11, %v13809_v10  ;;  %v14184_v48 = vadd.f32 %v14003_v11, %v13824_v16  ;;  %v14188_v0 = vadd.f32 %v14003_v11, %v13828_v60  ;;  %v17153_v24 = vld [vmem:[#allocation99_spill] sm:$0xff] }
 0x6ab   :  { %v5717_v41 = vadd.f32 %v5716_v26, %v5715_v62  ;;  %v5522_v54 = vadd.f32 %v5521_v35, %v5520_v55  ;;  %17071 = vst [vmem:[#allocation35_spill] sm:$0xff] %v14164_v59  ;;  %17072 = vst [vmem:[#allocation61_spill] sm:$0xff] %v14168_v44  ;;  %v14176_v62 = vadd.f32 %v14003_v11, %v13813_v58 }
 0x6ac   :  { %17073 = vst [vmem:[#allocation113_spill] sm:$0xff] %v14172_v27  ;;  %17076 = vst [vmem:[#allocation82_spill] sm:$0xff] %v14184_v48 }
 0x6ad   :  { %v5719_v17 = vadd.f32 %v5718_v46, %v5717_v41  ;;  %17074 = vst [vmem:[#allocation115_spill] sm:$0xff] %v14176_v62  ;;  %17077 = vst [vmem:[#allocation96_spill] sm:$0xff] %v14188_v0  ;;  %v14211_v41 = vadd.f32 %v14003_v11, %v13835_v6  ;;  %v14228_v6 = vadd.f32 %v14003_v11, %v13849_v56 }
 0x6ae   :  { %v14240_v56 = vadd.f32 %v14003_v11, %v13859_v38  ;;  %v14260_v38 = vadd.f32 %v14003_v11, %v13880_v33  ;;  %v14280_v33 = vadd.f32 %v14003_v11, %v13902_v50 }
 0x6af   :  { %17078 = vst [vmem:[#allocation97_spill] sm:$0xff] %v14211_v41  ;;  %17081 = vst [vmem:[#allocation88_spill] sm:$0xff] %v14228_v6 }
 0x6b0   :  { %17083 = vst [vmem:[#allocation83_spill] sm:$0xff] %v14240_v56  ;;  %17088 = vst [vmem:[#allocation64_spill] sm:$0xff] %v14260_v38 }
 0x6b1   :  { %17093 = vst [vmem:[#allocation118_spill] sm:$0xff] %v14280_v33 }
 0x6be   :  { %v14190_v18 = vpop.f32.mrb[76].mxu1 }
 0x6bf   :  { %v14192_v10 = vpop.f32.mrb[77].mxu1  ;;  %v5615_v16 = vmul.f32 %v14190_v18, %v14190_v18  ;;  %v5527_v46 = vsel %vm1581_vm4, %v14190_v18, 0.0 }
 0x6c0   :  { %v5523_v58 = vsel %vm1581_vm4, %v14192_v10, 0.0  ;;  %v5613_v52 = vmul.f32 %v14192_v10, %v14192_v10  ;;  %v14198_v36 = vpop.f32.mrb[78].mxu1 }
 0x6c1   :  { %v5524_v3 = vadd.f32 %v5523_v58, %v5522_v54  ;;  %v14202_v55 = vpop.f32.mrb[79].mxu1  ;;  %v14217_v54 = vadd.f32 %v14003_v11, %v13839_v63  ;;  %v5616_v58 = vmul.f32 %v14198_v36, %v14198_v36  ;;  %v5529_v63 = vsel %vm1581_vm4, %v14198_v36, 0.0 }
 0x6c2   :  { %v5720_v60 = vsel %vm1581_vm4, %v5613_v52, 0.0  ;;  %v5525_v26 = vsel %vm1581_vm4, %v14202_v55, 0.0  ;;  %v5614_v35 = vmul.f32 %v14202_v55, %v14202_v55 }
 0x6c3   :  { %v5721_v0 = vadd.f32 %v5720_v60, %v5719_v17  ;;  %v5526_v48 = vadd.f32 %v5525_v26, %v5524_v3  ;;  %17079 = vst [vmem:[#allocation87_spill] sm:$0xff] %v14217_v54  ;;  %v5724_v3 = vsel %vm1581_vm4, %v5615_v16, 0.0  ;;  %v5726_v54 = vsel %vm1581_vm4, %v5616_v58, 0.0 }
 0x6c4   :  { %v5722_v52 = vsel %vm1581_vm4, %v5614_v35, 0.0  ;;  %v14252_v16 = vadd.f32 %v14003_v11, %v13872_v39  ;;  %v14272_v39 = vadd.f32 %v14003_v11, %v13893_v14 }
 0x6c5   :  { %v5528_v41 = vadd.f32 %v5527_v46, %v5526_v48  ;;  %v5723_v17 = vadd.f32 %v5722_v52, %v5721_v0  ;;  %v14244_v48 = vadd.f32 %v14003_v11, %v13863_v47  ;;  %v14248_v0 = vadd.f32 %v14003_v11, %v13867_v32 }
 0x6c6   :  { %17086 = vst [vmem:[#allocation18_spill] sm:$0xff] %v14252_v16  ;;  %v14264_v47 = vadd.f32 %v14003_v11, %v13885_v21  ;;  %v14268_v32 = vadd.f32 %v14003_v11, %v13889_v19  ;;  %17091 = vst [vmem:[#allocation62_spill] sm:$0xff] %v14272_v39 }
 0x6c7   :  { %v5725_v60 = vadd.f32 %v5724_v3, %v5723_v17  ;;  %v5530_v26 = vadd.f32 %v5529_v63, %v5528_v41  ;;  %17084 = vst [vmem:[#allocation23_spill] sm:$0xff] %v14244_v48  ;;  %17085 = vst [vmem:[#allocation12_spill] sm:$0xff] %v14248_v0  ;;  %v14303_v3 = vadd.f32 %v14003_v11, %v13906_v28  ;;  %v17097_v28 = vld [vmem:[#allocation58_spill] sm:$0xff] }
 0x6c8   :  { %17089 = vst [vmem:[#allocation89_spill] sm:$0xff] %v14264_v47  ;;  %17090 = vst [vmem:[#allocation112_spill] sm:$0xff] %v14268_v32  ;;  %v17099_v32 = vld [vmem:[#allocation57_spill] sm:$0xff]  ;;  %v17127_v47 = vld [vmem:[#allocation76_spill] sm:$0xff] }
 0x6c9   :  { %v5727_v35 = vadd.f32 %v5726_v54, %v5725_v60  ;;  %17094 = vst [vmem:[#allocation90_spill] sm:$0xff] %v14303_v3  ;;  %v14320_v3 = vadd.f32 %v14003_v11, %v17097_v28  ;;  %v14328_v34 = vadd.f32 %v14003_v11, %v17099_v32  ;;  %v14332_v28 = vadd.f32 %v14003_v11, %v17101_v30 }
 0x6ca   :  { %v14408_v38 = vadd.f32 %v14003_v11, %v17127_v47  ;;  %v17133_v47 = vld [vmem:[#allocation37_spill] sm:$0xff] }
 0x6cb   :  { %17098 = vst [vmem:[#allocation69_spill] sm:$0xff] %v14320_v3  ;;  %17100 = vst [vmem:[#allocation5_spill] sm:$0xff] %v14328_v34 }
 0x6cc   :  { %17102 = vst [vmem:[#allocation122_spill] sm:$0xff] %v14332_v28  ;;  %17128 = vst [vmem:[#allocation41_spill] sm:$0xff] %v14408_v38  ;;  %v14424_v38 = vadd.f32 %v14003_v11, %v17133_v47 }
 0x6ce   :  { %17134 = vst [vmem:[#allocation4_spill] sm:$0xff] %v14424_v38 }
 0x6dc   :  { %v14282_v41 = vpop.f32.mrb[80].mxu1 }
 0x6dd   :  { %v14284_v21 = vpop.f32.mrb[81].mxu1  ;;  %v5619_v9 = vmul.f32 %v14282_v41, %v14282_v41  ;;  %v5535_v63 = vsel %vm1581_vm4, %v14282_v41, 0.0 }
 0x6de   :  { %v5531_v19 = vsel %vm1581_vm4, %v14284_v21, 0.0  ;;  %v5617_v46 = vmul.f32 %v14284_v21, %v14284_v21  ;;  %v14290_v14 = vpop.f32.mrb[82].mxu1 }
 0x6df   :  { %v5532_v54 = vadd.f32 %v5531_v19, %v5530_v26  ;;  %v14294_v58 = vpop.f32.mrb[83].mxu1  ;;  %v14309_v26 = vadd.f32 %v14003_v11, %v13910_v49  ;;  %v5620_v19 = vmul.f32 %v14290_v14, %v14290_v14  ;;  %v5537_v49 = vsel %vm1581_vm4, %v14290_v14, 0.0 }
 0x6e0   :  { %v5728_v50 = vsel %vm1581_vm4, %v5617_v46, 0.0  ;;  %v5533_v52 = vsel %vm1581_vm4, %v14294_v58, 0.0  ;;  %v5618_v17 = vmul.f32 %v14294_v58, %v14294_v58 }
 0x6e1   :  { %v5729_v60 = vadd.f32 %v5728_v50, %v5727_v35  ;;  %v5534_v33 = vadd.f32 %v5533_v52, %v5532_v54  ;;  %17095 = vst [vmem:[#allocation108_spill] sm:$0xff] %v14309_v26  ;;  %v5732_v54 = vsel %vm1581_vm4, %v5619_v9, 0.0  ;;  %v5734_v26 = vsel %vm1581_vm4, %v5620_v19, 0.0  ;;  %v17105_v9 = vld [vmem:[#allocation59_spill] sm:$0xff] }
 0x6e2   :  { %v5730_v46 = vsel %vm1581_vm4, %v5618_v17, 0.0 }
 0x6e3   :  { %v5536_v39 = vadd.f32 %v5535_v63, %v5534_v33  ;;  %v5731_v35 = vadd.f32 %v5730_v46, %v5729_v60  ;;  %v17103_v33 = vld [vmem:[#allocation60_spill] sm:$0xff]  ;;  %v14340_v60 = vadd.f32 %v14003_v11, %v17105_v9  ;;  %v17111_v46 = vld [vmem:[#allocation2_spill] sm:$0xff] }
 0x6e4   :  { %v14336_v63 = vadd.f32 %v14003_v11, %v17103_v33  ;;  %v14352_v30 = vadd.f32 %v14003_v11, %v17111_v46  ;;  %v17117_v33 = vld [vmem:[#allocation74_spill] sm:$0xff] }
 0x6e5   :  { %v5733_v50 = vadd.f32 %v5732_v54, %v5731_v35  ;;  %v5538_v52 = vadd.f32 %v5537_v49, %v5536_v39  ;;  %17106 = vst [vmem:[#allocation72_spill] sm:$0xff] %v14340_v60  ;;  %v17107_v39 = vld [vmem:[#allocation67_spill] sm:$0xff]  ;;  %v17113_v35 = vld [vmem:[#allocation68_spill] sm:$0xff]  ;;  %v17115_v49 = vld [vmem:[#allocation70_spill] sm:$0xff]  ;;  %v14364_v9 = vadd.f32 %v14003_v11, %v17117_v33 }
 0x6e6   :  { %17104 = vst [vmem:[#allocation14_spill] sm:$0xff] %v14336_v63  ;;  %v14344_v19 = vadd.f32 %v14003_v11, %v17107_v39  ;;  %17112 = vst [vmem:[#allocation21_spill] sm:$0xff] %v14352_v30  ;;  %v14356_v54 = vadd.f32 %v14003_v11, %v17113_v35  ;;  %v17119_v39 = vld [vmem:[#allocation91_spill] sm:$0xff] }
 0x6e7   :  { %v5735_v17 = vadd.f32 %v5734_v26, %v5733_v50  ;;  %v17109_v26 = vld [vmem:[#allocation126_spill] sm:$0xff]  ;;  %v14360_v50 = vadd.f32 %v14003_v11, %v17115_v49  ;;  %17118 = vst [vmem:[#allocation32_spill] sm:$0xff] %v14364_v9 }
 0x6e8   :  { %17108 = vst [vmem:[#allocation13_spill] sm:$0xff] %v14344_v19  ;;  %v14348_v32 = vadd.f32 %v14003_v11, %v17109_v26  ;;  %17114 = vst [vmem:[#allocation28_spill] sm:$0xff] %v14356_v54  ;;  %v14368_v26 = vadd.f32 %v14003_v11, %v17119_v39  ;;  %v17123_v19 = vld [vmem:[#allocation15_spill] sm:$0xff] }
 0x6e9   :  { %17116 = vst [vmem:[#allocation73_spill] sm:$0xff] %v14360_v50  ;;  %v14395_v60 = vadd.f32 %v14003_v11, %v17123_v19  ;;  %v17129_v19 = vld [vmem:[#allocation79_spill] sm:$0xff] }
 0x6ea   :  { %17110 = vst [vmem:[#allocation10_spill] sm:$0xff] %v14348_v32  ;;  %17120 = vst [vmem:[#allocation25_spill] sm:$0xff] %v14368_v26  ;;  %v17121_v32 = vld [vmem:[#allocation75_spill] sm:$0xff] }
 0x6eb   :  { %v14372_v46 = vadd.f32 %v14003_v11, %v17121_v32  ;;  %17124 = vst [vmem:[#allocation33_spill] sm:$0xff] %v14395_v60  ;;  %v14412_v60 = vadd.f32 %v14003_v11, %v17129_v19  ;;  %v17135_v19 = vld [vmem:[#allocation77_spill] sm:$0xff] }
 0x6ed   :  { %17122 = vst [vmem:[#allocation34_spill] sm:$0xff] %v14372_v46  ;;  %17130 = vst [vmem:[#allocation3_spill] sm:$0xff] %v14412_v60 }
 0x6fb   :  { %v14374_v30 = vpop.f32.mrb[84].mxu1 }
 0x6fc   :  { %v14376_v35 = vpop.f32.mrb[85].mxu1  ;;  %v5623_v39 = vmul.f32 %v14374_v30, %v14374_v30  ;;  %v5543_v63 = vsel %vm1581_vm4, %v14374_v30, 0.0 }
 0x6fd   :  { %v5539_v49 = vsel %vm1581_vm4, %v14376_v35, 0.0  ;;  %v5621_v50 = vmul.f32 %v14376_v35, %v14376_v35  ;;  %v14382_v33 = vpop.f32.mrb[86].mxu1 }
 0x6fe   :  { %v5540_v26 = vadd.f32 %v5539_v49, %v5538_v52  ;;  %v14386_v9 = vpop.f32.mrb[87].mxu1  ;;  %v17125_v52 = vld [vmem:[#allocation101_spill] sm:$0xff] }
 0x6ff   :  { %v5736_v32 = vsel %vm1581_vm4, %v5621_v50, 0.0  ;;  %v5541_v46 = vsel %vm1581_vm4, %v14386_v9, 0.0  ;;  %v5622_v54 = vmul.f32 %v14386_v9, %v14386_v9  ;;  %v14401_v49 = vadd.f32 %v14003_v11, %v17125_v52 }
 0x700   :  { %v5737_v28 = vadd.f32 %v5736_v32, %v5735_v17  ;;  %v5542_v34 = vadd.f32 %v5541_v46, %v5540_v26  ;;  %v5624_v50 = vmul.f32 %v14382_v33, %v14382_v33  ;;  %v5740_v26 = vsel %vm1581_vm4, %v5623_v39, 0.0 }
 0x701   :  { %17126 = vst [vmem:[#allocation38_spill] sm:$0xff] %v14401_v49  ;;  %v5738_v3 = vsel %vm1581_vm4, %v5622_v54, 0.0  ;;  %v5545_v46 = vsel %vm1581_vm4, %v14382_v33, 0.0  ;;  %v17131_v54 = vld [vmem:[#allocation102_spill] sm:$0xff] }
 0x702   :  { %v5544_v43 = vadd.f32 %v5543_v63, %v5542_v34  ;;  %v5739_v17 = vadd.f32 %v5738_v3, %v5737_v28  ;;  %v5742_v49 = vsel %vm1581_vm4, %v5624_v50, 0.0  ;;  %v14420_v16 = vadd.f32 %v14003_v11, %v17131_v54 }
 0x703   :  { %v14428_v3 = vadd.f32 %v14003_v11, %v17135_v19 }
 0x704   :  { %v5741_v32 = vadd.f32 %v5740_v26, %v5739_v17  ;;  %v5546_v52 = vadd.f32 %v5545_v46, %v5544_v43  ;;  %17132 = vst [vmem:[#allocation48_spill] sm:$0xff] %v14420_v16 }
 0x705   :  { %17136 = vst [vmem:[#allocation46_spill] sm:$0xff] %v14428_v3 }
 0x706   :  { %v5743_v34 = vadd.f32 %v5742_v49, %v5741_v32 }
 0x71b   :  { %v14430_v28 = vpop.f32.mrb[88].mxu1 }
 0x71c   :  { %v14432_v63 = vpop.f32.mrb[89].mxu1  ;;  %v5627_v11 = vmul.f32 %v14430_v28, %v14430_v28  ;;  %v5551_v19 = vsel %vm1581_vm4, %v14430_v28, 0.0 }
 0x71d   :  { %v5547_v43 = vsel %vm1581_vm4, %v14432_v63, 0.0  ;;  %v5625_v39 = vmul.f32 %v14432_v63, %v14432_v63  ;;  %v14438_v50 = vpop.f32.mrb[90].mxu1 }
 0x71e   :  { %v5548_v17 = vadd.f32 %v5547_v43, %v5546_v52  ;;  %v14440_v26 = vpop.f32.mrb[91].mxu1  ;;  %v5628_v52 = vmul.f32 %v14438_v50, %v14438_v50  ;;  %v5553_v16 = vsel %vm1581_vm4, %v14438_v50, 0.0 }
 0x71f   :  { %v5744_v49 = vsel %vm1581_vm4, %v5625_v39, 0.0  ;;  %v5549_v46 = vsel %vm1581_vm4, %v14440_v26, 0.0  ;;  %v5626_v32 = vmul.f32 %v14440_v26, %v14440_v26  ;;  %v5748_v39 = vsel %vm1581_vm4, %v5627_v11, 0.0 }
 0x720   :  { %v5745_v54 = vadd.f32 %v5744_v49, %v5743_v34  ;;  %v5550_v47 = vadd.f32 %v5549_v46, %v5548_v17  ;;  %v5750_v34 = vsel %vm1581_vm4, %v5628_v52, 0.0 }
 0x721   :  { %v5746_v43 = vsel %vm1581_vm4, %v5626_v32, 0.0 }
 0x722   :  { %v5552_v3 = vadd.f32 %v5551_v19, %v5550_v47  ;;  %v5747_v38 = vadd.f32 %v5746_v43, %v5745_v54 }
 0x724   :  { %v5749_v60 = vadd.f32 %v5748_v39, %v5747_v38  ;;  %v5554_v0 = vadd.f32 %v5553_v16, %v5552_v3 }
 0x726   :  { %v5751_v17 = vadd.f32 %v5750_v34, %v5749_v60 }
 0x737   :  { %v14458_v49 = vpop.f32.mrb[92].mxu1 }
 0x738   :  { %v14460_v46 = vpop.f32.mrb[93].mxu1  ;;  %v5631_v16 = vmul.f32 %v14458_v49, %v14458_v49  ;;  %v5559_v43 = vsel %vm1581_vm4, %v14458_v49, 0.0 }
 0x739   :  { %v5555_v48 = vsel %vm1581_vm4, %v14460_v46, 0.0  ;;  %v5629_v32 = vmul.f32 %v14460_v46, %v14460_v46  ;;  %v14466_v54 = vpop.f32.mrb[94].mxu1 }
 0x73a   :  { %v5556_v11 = vadd.f32 %v5555_v48, %v5554_v0  ;;  %v14468_v47 = vpop.f32.mrb[95].mxu1  ;;  %v5632_v48 = vmul.f32 %v14466_v54, %v14466_v54  ;;  %v5561_v56 = vsel %vm1581_vm4, %v14466_v54, 0.0 }
 0x73b   :  { %v5752_v38 = vsel %vm1581_vm4, %v5629_v32, 0.0  ;;  %v5557_v60 = vsel %vm1581_vm4, %v14468_v47, 0.0  ;;  %v5630_v3 = vmul.f32 %v14468_v47, %v14468_v47  ;;  %v5756_v32 = vsel %vm1581_vm4, %v5631_v16, 0.0 }
 0x73c   :  { %v5753_v19 = vadd.f32 %v5752_v38, %v5751_v17  ;;  %v5558_v52 = vadd.f32 %v5557_v60, %v5556_v11  ;;  %v5758_v17 = vsel %vm1581_vm4, %v5632_v48, 0.0 }
 0x73d   :  { %v5754_v0 = vsel %vm1581_vm4, %v5630_v3, 0.0 }
 0x73e   :  { %v5560_v39 = vadd.f32 %v5559_v43, %v5558_v52  ;;  %v5755_v34 = vadd.f32 %v5754_v0, %v5753_v19 }
 0x740   :  { %v5562_v13 = vadd.f32 %v5561_v56, %v5560_v39  ;;  %v5757_v6 = vadd.f32 %v5756_v32, %v5755_v34  ;;  %v17139_v32 = vld [vmem:[#allocation114_spill] sm:$0xff] }
 0x742   :  { %v5563_v11 = vrot.slane %v5562_v13, 4  ;;  %v5759_v38 = vadd.f32 %v5758_v17, %v5757_v6  ;;  %v5434_v6 = vld [vmem:[%s15603_s5] sm:$0x1] }
 0x744   :  { %v5564_v60 = vadd.f32 %v5563_v11, %v5562_v13  ;;  %v5760_v12 = vrot.slane %v5759_v38, 4  ;;  %v17140_v11 = vld [vmem:[#allocation81_spill] sm:$0xff] }
 0x746   :  { %v5565_v62 = vrot.slane %v5564_v60, 2  ;;  %v5761_v27 = vadd.f32 %v5760_v12, %v5759_v38 }
 0x748   :  { %v5566_v44 = vadd.f32 %v5565_v62, %v5564_v60  ;;  %v5762_v59 = vrot.slane %v5761_v27, 2  ;;  %v17141_v60 = vld [vmem:[#allocation95_spill] sm:$0xff] }
 0x74a   :  { %v5567_v3 = vrot.slane %v5566_v44, 1  ;;  %v5763_v52 = vadd.f32 %v5762_v59, %v5761_v27  ;;  %v14492_v59 = vld [vmem:[%s15604_s6] sm:$0x1] }
 0x74b   :  { %v17137_v27 = vld [vmem:[#allocation30_spill] sm:$0xff] }
 0x74c   :  { %v5568_v19 = vadd.f32 %v5567_v3, %v5566_v44  ;;  %v5764_v43 = vrot.slane %v5763_v52, 1 }
 0x74e   :  { %v5765_v16 = vadd.f32 %v5764_v43, %v5763_v52  ;;  %v5766_v0 = vmul.f32 0.001953125, %v5568_v19  ;;  %v17142_v52 = vld [vmem:[#allocation84_spill] sm:$0xff]  ;;  %v17143_v43 = vld [vmem:[#allocation86_spill] sm:$0xff] }
 0x750   :  { %v5767_v8 = vmul.f32 0.001953125, %v5765_v16  ;;  %v5768_v51 = vmul.f32 %v5766_v0, %v5766_v0 }
 0x752   :  { %v5769_v56 = vsub.f32 %v5767_v8, %v5768_v51  ;;  %v17138_v8 = vld [vmem:[#allocation94_spill] sm:$0xff]  ;;  %v17152_v51 = vld [vmem:[#allocation121_spill] sm:$0xff] }
 0x754   :  { %v5770_v39 = vmax.f32 %v5769_v56, 0.0 }
 0x756   :  { %v5771_v34 = vadd.f32 1e-05, %v5770_v39  ;;  %v17145_v39 = vld [vmem:[#allocation31_spill] sm:$0xff] }
 0x758   :  { %7438 = vrsqrt.f32 %v5771_v34 }
 0x762   :  { %v7439_v13 = vpop.eup %7438 }
 0x763   :  { %v5773_v12 = vmul.f32 %v7439_v13, %v5434_v6  ;;  %v17146_v6 = vld [vmem:[#allocation39_spill] sm:$0xff] }
 0x765   :  { %v14494_v44 = vmul.f32 %v5773_v12, %v5766_v0  ;;  %v14497_v62 = vrot.slane %v5773_v12, %v17137_v27  ;;  %v17144_v0 = vld [vmem:[#allocation85_spill] sm:$0xff]  ;;  %v17147_v12 = vld [vmem:[#allocation63_spill] sm:$0xff] }
 0x767   :  { %v14503_v48 = vmul.f32 %v14497_v62, %v17138_v8  ;;  %v14507_v17 = vmul.f32 %v14497_v62, %v17139_v32  ;;  %v14511_v38 = vmul.f32 %v17140_v11, %v14497_v62  ;;  %v14515_v3 = vmul.f32 %v17141_v60, %v14497_v62  ;;  %v17148_v32 = vld [vmem:[#allocation26_spill] sm:$0xff]  ;;  %v17149_v60 = vld [vmem:[#allocation80_spill] sm:$0xff] }
 0x768   :  { %v14519_v19 = vmul.f32 %v14497_v62, %v17142_v52  ;;  %v14523_v16 = vmul.f32 %v14497_v62, %v17143_v43  ;;  %v14527_v56 = vmul.f32 %v17144_v0, %v14497_v62  ;;  %v14531_v34 = vmul.f32 %v17145_v39, %v14497_v62  ;;  %v17150_v43 = vld [vmem:[#allocation6_spill] sm:$0xff]  ;;  %v17151_v39 = vld [vmem:[#allocation11_spill] sm:$0xff] }
 0x769   :  { %v14535_v13 = vmul.f32 %v14497_v62, %v17146_v6  ;;  %v14539_v8 = vmul.f32 %v14497_v62, %v17147_v12  ;;  %v14543_v11 = vmul.f32 %v17148_v32, %v14497_v62  ;;  %v14547_v52 = vmul.f32 %v17149_v60, %v14497_v62 }
 0x76a   :  { %v14551_v0 = vmul.f32 %v14497_v62, %v17150_v43  ;;  %v14555_v6 = vmul.f32 %v14497_v62, %v17151_v39  ;;  %v14559_v12 = vmul.f32 %v17152_v51, %v14497_v62  ;;  %v14563_v32 = vmul.f32 %v17153_v24, %v14497_v62 }
 0x76b   :  { %v14567_v60 = vmul.f32 %v14497_v62, %v17154_v61  ;;  %v14571_v43 = vmul.f32 %v14497_v62, %v17155_v4  ;;  %v14575_v39 = vmul.f32 %v17156_v15, %v14497_v62  ;;  %v14579_v51 = vmul.f32 %v17157_v22, %v14497_v62 }
 0x76c   :  { %v14583_v24 = vmul.f32 %v14497_v62, %v17158_v29  ;;  %v14587_v61 = vmul.f32 %v14497_v62, %v17159_v25  ;;  %v14591_v4 = vmul.f32 %v17160_v37, %v14497_v62  ;;  %v14595_v15 = vmul.f32 %v17162_v45, %v14497_v62 }
 0x76d   :  { %v14599_v22 = vmul.f32 %v14497_v62, %v17164_v40  ;;  %v14603_v29 = vmul.f32 %v14497_v62, %v17166_v20  ;;  %v14607_v25 = vmul.f32 %v17168_v57, %v14497_v62  ;;  %v14611_v37 = vmul.f32 %v17170_v23, %v14497_v62 }
 0x76e   :  { %17161 = vst [vmem:[#allocation47_spill] sm:$0xff] %v14591_v4  ;;  %17163 = vst [vmem:[#allocation49_spill] sm:$0xff] %v14595_v15  ;;  %v17172_v4 = vld [vmem:[#allocation56_spill] sm:$0xff] }
 0x76f   :  { %17165 = vst [vmem:[#allocation50_spill] sm:$0xff] %v14599_v22  ;;  %17167 = vst [vmem:[#allocation7_spill] sm:$0xff] %v14603_v29  ;;  %v14615_v45 = vmul.f32 %v14497_v62, %v17172_v4  ;;  %v17174_v15 = vld [vmem:[#allocation100_spill] sm:$0xff]  ;;  %v17176_v22 = vld [vmem:[#allocation78_spill] sm:$0xff] }
 0x770   :  { %17169 = vst [vmem:[#allocation58_spill] sm:$0xff] %v14607_v25  ;;  %17171 = vst [vmem:[#allocation57_spill] sm:$0xff] %v14611_v37  ;;  %v14619_v40 = vmul.f32 %v14497_v62, %v17174_v15  ;;  %v14623_v20 = vmul.f32 %v17176_v22, %v14497_v62  ;;  %v17178_v29 = vld [vmem:[#allocation55_spill] sm:$0xff]  ;;  %v17179_v25 = vld [vmem:[#allocation104_spill] sm:$0xff] }
 0x771   :  { %17173 = vst [vmem:[#allocation127_spill] sm:$0xff] %v14615_v45  ;;  %v14627_v57 = vmul.f32 %v17178_v29, %v14497_v62  ;;  %v14631_v23 = vmul.f32 %v14497_v62, %v17179_v25  ;;  %v17180_v37 = vld [vmem:[#allocation40_spill] sm:$0xff]  ;;  %v17181_v45 = vld [vmem:[#allocation19_spill] sm:$0xff]  ;;  %v14651_v25 = vmul.f32 %v14497_v62, %v14048_v1  ;;  %v14671_v1 = vmul.f32 %v14114_v31, %v14497_v62 }
 0x772   :  { %17175 = vst [vmem:[#allocation60_spill] sm:$0xff] %v14619_v40  ;;  %17177 = vst [vmem:[#allocation59_spill] sm:$0xff] %v14623_v20  ;;  %v14635_v4 = vmul.f32 %v14497_v62, %v17180_v37  ;;  %v14639_v15 = vmul.f32 %v17181_v45, %v14497_v62  ;;  %v17182_v40 = vld [vmem:[#allocation17_spill] sm:$0xff]  ;;  %v14655_v37 = vmul.f32 %v14038_v42, %v14497_v62 }
 0x773   :  { %v14643_v22 = vmul.f32 %v17182_v40, %v14497_v62  ;;  %v17183_v20 = vld [vmem:[#allocation105_spill] sm:$0xff]  ;;  %v14659_v45 = vmul.f32 %v14046_v53, %v14497_v62  ;;  %v14663_v40 = vmul.f32 %v14497_v62, %v14116_v7  ;;  %v14675_v42 = vmul.f32 %v14122_v5, %v14497_v62 }
 0x774   :  { %v14647_v29 = vmul.f32 %v14497_v62, %v17183_v20  ;;  %v14667_v20 = vmul.f32 %v14497_v62, %v14124_v2  ;;  %v14679_v53 = vmul.f32 %v14497_v62, %v14192_v10  ;;  %v14683_v7 = vmul.f32 %v14497_v62, %v14202_v55 }
 0x775   :  { %v14687_v2 = vmul.f32 %v14190_v18, %v14497_v62  ;;  %v14691_v31 = vmul.f32 %v14198_v36, %v14497_v62  ;;  %v14695_v5 = vmul.f32 %v14497_v62, %v14284_v21  ;;  %v14699_v10 = vmul.f32 %v14497_v62, %v14294_v58 }
 0x776   :  { %v14703_v55 = vmul.f32 %v14282_v41, %v14497_v62  ;;  %v14707_v18 = vmul.f32 %v14290_v14, %v14497_v62  ;;  %v14711_v36 = vmul.f32 %v14497_v62, %v14376_v35  ;;  %v14715_v21 = vmul.f32 %v14497_v62, %v14386_v9 }
 0x777   :  { %v14719_v58 = vmul.f32 %v14374_v30, %v14497_v62  ;;  %v14723_v41 = vmul.f32 %v14382_v33, %v14497_v62  ;;  %v14727_v14 = vmul.f32 %v14497_v62, %v14432_v63  ;;  %v14731_v35 = vmul.f32 %v14497_v62, %v14440_v26 }
 0x778   :  { %v14735_v9 = vmul.f32 %v14430_v28, %v14497_v62  ;;  %v14739_v30 = vmul.f32 %v14438_v50, %v14497_v62  ;;  %v14743_v33 = vmul.f32 %v14497_v62, %v14460_v46  ;;  %v14747_v63 = vmul.f32 %v14497_v62, %v14468_v47 }
 0x779   :  { %v14751_v26 = vmul.f32 %v14458_v49, %v14497_v62  ;;  %v14755_v28 = vmul.f32 %v14466_v54, %v14497_v62  ;;  %v17185_v50 = vsub.f32 %v14492_v59, %v14494_v44 }
 0x77a   :  { %17184 = vst [vmem:[#allocation67_spill] sm:$0xff] %v14739_v30 }
 0x77b   :  { %v14761_v30 = vrot.slane %v17185_v50, %v17137_v27  ;;  %v17194_v50 = vld [vmem:[#allocation7_spill] sm:$0xff] }
 0x77d   :  { %v14765_v46 = vadd.f32 %v14761_v30, %v14503_v48  ;;  %v14769_v47 = vadd.f32 %v14761_v30, %v14507_v17  ;;  %v14773_v49 = vadd.f32 %v14761_v30, %v14511_v38  ;;  %v14777_v54 = vadd.f32 %v14761_v30, %v14515_v3 }
 0x77e   :  { %v14781_v59 = vadd.f32 %v14761_v30, %v14519_v19  ;;  %v14785_v44 = vadd.f32 %v14761_v30, %v14523_v16  ;;  %v14789_v27 = vadd.f32 %v14761_v30, %v14527_v56  ;;  %v14793_v62 = vadd.f32 %v14761_v30, %v14531_v34 }
 0x77f   :  { %v14797_v48 = vadd.f32 %v14761_v30, %v14535_v13  ;;  %v14801_v17 = vadd.f32 %v14761_v30, %v14539_v8  ;;  %v14805_v38 = vadd.f32 %v14761_v30, %v14543_v11  ;;  %v14809_v3 = vadd.f32 %v14761_v30, %v14547_v52 }
 0x780   :  { %v14813_v19 = vadd.f32 %v14761_v30, %v14551_v0  ;;  %v14817_v16 = vadd.f32 %v14761_v30, %v14555_v6  ;;  %v14821_v56 = vadd.f32 %v14761_v30, %v14559_v12  ;;  %v14825_v34 = vadd.f32 %v14761_v30, %v14563_v32  ;;  %v17188_v12 = vld [vmem:[#allocation47_spill] sm:$0xff] }
 0x781   :  { %v14829_v13 = vadd.f32 %v14761_v30, %v14567_v60  ;;  %v14833_v8 = vadd.f32 %v14761_v30, %v14571_v43  ;;  %v14837_v11 = vadd.f32 %v14761_v30, %v14575_v39  ;;  %v14841_v52 = vadd.f32 %v14761_v30, %v14579_v51  ;;  %v17190_v60 = vld [vmem:[#allocation49_spill] sm:$0xff]  ;;  %v17192_v39 = vld [vmem:[#allocation50_spill] sm:$0xff] }
 0x782   :  { %v14845_v0 = vadd.f32 %v14761_v30, %v14583_v24  ;;  %v14849_v6 = vadd.f32 %v14761_v30, %v14587_v61  ;;  %v14853_v32 = vadd.f32 %v14761_v30, %v17188_v12  ;;  %v14857_v43 = vadd.f32 %v14761_v30, %v17190_v60 }
 0x783   :  { %v14861_v51 = vadd.f32 %v14761_v30, %v17192_v39  ;;  %v14865_v24 = vadd.f32 %v14761_v30, %v17194_v50 }
 0x784   :  { %17186 = vst [vmem:[#allocation126_spill] sm:$0xff] %v14845_v0  ;;  %17187 = vst [vmem:[#allocation2_spill] sm:$0xff] %v14849_v6  ;;  %v17195_v0 = vld [vmem:[#allocation58_spill] sm:$0xff]  ;;  %v17196_v6 = vld [vmem:[#allocation57_spill] sm:$0xff] }
 0x785   :  { %17189 = vst [vmem:[#allocation68_spill] sm:$0xff] %v14853_v32  ;;  %17191 = vst [vmem:[#allocation70_spill] sm:$0xff] %v14857_v43  ;;  %v14869_v61 = vadd.f32 %v14761_v30, %v17195_v0  ;;  %v14873_v12 = vadd.f32 %v14761_v30, %v17196_v6  ;;  %v17197_v32 = vld [vmem:[#allocation127_spill] sm:$0xff]  ;;  %v17198_v43 = vld [vmem:[#allocation60_spill] sm:$0xff]  ;;  %v14889_v0 = vadd.f32 %v14761_v30, %v14627_v57 }
 0x786   :  { %17193 = vst [vmem:[#allocation74_spill] sm:$0xff] %v14861_v51  ;;  %v14877_v60 = vadd.f32 %v14761_v30, %v17197_v32  ;;  %v14881_v39 = vadd.f32 %v14761_v30, %v17198_v43  ;;  %v17199_v51 = vld [vmem:[#allocation59_spill] sm:$0xff]  ;;  %v14893_v6 = vadd.f32 %v14761_v30, %v14631_v23  ;;  %v14897_v32 = vadd.f32 %v14761_v30, %v14635_v4 }
 0x787   :  { %v14885_v50 = vadd.f32 %v14761_v30, %v17199_v51  ;;  %v14901_v43 = vadd.f32 %v14761_v30, %v14639_v15  ;;  %v14905_v51 = vadd.f32 %v14761_v30, %v14643_v22  ;;  %v14909_v57 = vadd.f32 %v14761_v30, %v14647_v29 }
 0x788   :  { %v14913_v23 = vadd.f32 %v14761_v30, %v14651_v25  ;;  %v14917_v4 = vadd.f32 %v14761_v30, %v14655_v37  ;;  %v14921_v15 = vadd.f32 %v14761_v30, %v14659_v45  ;;  %v14925_v22 = vadd.f32 %v14761_v30, %v14663_v40 }
 0x789   :  { %v14929_v29 = vadd.f32 %v14761_v30, %v14667_v20  ;;  %v14933_v25 = vadd.f32 %v14761_v30, %v14671_v1  ;;  %v14937_v37 = vadd.f32 %v14761_v30, %v14675_v42  ;;  %v14941_v45 = vadd.f32 %v14761_v30, %v14679_v53 }
 0x78a   :  { %v14945_v40 = vadd.f32 %v14761_v30, %v14683_v7  ;;  %v14949_v20 = vadd.f32 %v14761_v30, %v14687_v2  ;;  %v14953_v1 = vadd.f32 %v14761_v30, %v14691_v31  ;;  %v14957_v42 = vadd.f32 %v14761_v30, %v14695_v5 }
 0x78b   :  { %v14961_v53 = vadd.f32 %v14761_v30, %v14699_v10  ;;  %v14965_v7 = vadd.f32 %v14761_v30, %v14703_v55  ;;  %v14969_v2 = vadd.f32 %v14761_v30, %v14707_v18  ;;  %v14973_v31 = vadd.f32 %v14761_v30, %v14711_v36 }
 0x78c   :  { %v14977_v5 = vadd.f32 %v14761_v30, %v14715_v21  ;;  %v14981_v10 = vadd.f32 %v14761_v30, %v14719_v58  ;;  %v14985_v55 = vadd.f32 %v14761_v30, %v14723_v41  ;;  %v14989_v18 = vadd.f32 %v14761_v30, %v14727_v14 }
 0x78d   :  { %v14993_v36 = vadd.f32 %v14761_v30, %v14731_v35  ;;  %v14997_v21 = vadd.f32 %v14761_v30, %v14735_v9  ;;  %v15005_v41 = vadd.f32 %v14761_v30, %v14743_v33  ;;  %v15009_v14 = vadd.f32 %v14761_v30, %v14747_v63 }
 0x78e   :  { %17200 = vst [vmem:[#allocation91_spill] sm:$0xff] %v14977_v5  ;;  %v17202_v5 = vld [vmem:[#allocation67_spill] sm:$0xff]  ;;  %v15013_v35 = vadd.f32 %v14761_v30, %v14751_v26  ;;  %v15017_v9 = vadd.f32 %v14761_v30, %v14755_v28 }
 0x78f   :  { %17201 = vst [vmem:[#allocation75_spill] sm:$0xff] %v14997_v21  ;;  %v15001_v58 = vadd.f32 %v14761_v30, %v17202_v5  ;;  %17204 = vst [vmem:[#allocation101_spill] sm:$0xff] %v15005_v41  ;;  %v17207_v21 = vld [vmem:[#allocation107_spill] sm:$0xff]  ;;  %v17209_v41 = vld [vmem:[#allocation106_spill] sm:$0xff] }
 0x790   :  { %17205 = vst [vmem:[#allocation76_spill] sm:$0xff] %v15009_v14  ;;  %17206 = vst [vmem:[#allocation79_spill] sm:$0xff] %v15013_v35  ;;  %v15021_v5 = vadd.f32 %v17207_v21, %v14765_v46  ;;  %v15029_v63 = vadd.f32 %v17209_v41, %v14773_v49  ;;  %v17210_v14 = vld [vmem:[#allocation22_spill] sm:$0xff]  ;;  %v17211_v35 = vld [vmem:[#allocation8_spill] sm:$0xff] }
 0x791   :  { %17203 = vst [vmem:[#allocation15_spill] sm:$0xff] %v15001_v58  ;;  %v17208_v58 = vld [vmem:[#allocation24_spill] sm:$0xff]  ;;  %v15033_v26 = vadd.f32 %v17210_v14, %v14777_v54  ;;  %v15037_v30 = vadd.f32 %v17211_v35, %v14781_v59  ;;  %v17212_v28 = vld [vmem:[#allocation27_spill] sm:$0xff]  ;;  %v17215_v41 = vld [vmem:[#allocation110_spill] sm:$0xff] }
 0x792   :  { %v15025_v33 = vadd.f32 %v17208_v58, %v14769_v47  ;;  %v15041_v46 = vadd.f32 %v17212_v28, %v14785_v44  ;;  %v17213_v21 = vld [vmem:[#allocation92_spill] sm:$0xff]  ;;  %v17214_v58 = vld [vmem:[#allocation109_spill] sm:$0xff]  ;;  %v15053_v54 = vadd.f32 %v17215_v41, %v14797_v48  ;;  %v17221_v41 = vld [vmem:[#allocation111_spill] sm:$0xff] }
 0x793   :  { %v15045_v47 = vadd.f32 %v17213_v21, %v14789_v27  ;;  %v15049_v49 = vadd.f32 %v17214_v58, %v14793_v62  ;;  %v17216_v14 = vld [vmem:[#allocation16_spill] sm:$0xff]  ;;  %v17217_v35 = vld [vmem:[#allocation9_spill] sm:$0xff]  ;;  %v17219_v21 = vld [vmem:[#allocation98_spill] sm:$0xff] }
 0x794   :  { %v15057_v59 = vadd.f32 %v17216_v14, %v14801_v17  ;;  %v15061_v44 = vadd.f32 %v17217_v35, %v14805_v38  ;;  %v17218_v28 = vld [vmem:[#allocation20_spill] sm:$0xff]  ;;  %v15069_v62 = vadd.f32 %v17219_v21, %v14813_v19  ;;  %v17220_v58 = vld [vmem:[#allocation93_spill] sm:$0xff]  ;;  %v15077_v17 = vadd.f32 %v17221_v41, %v14821_v56  ;;  %v17223_v14 = vld [vmem:[#allocation42_spill] sm:$0xff] }
 0x795   :  { %v15065_v27 = vadd.f32 %v17218_v28, %v14809_v3  ;;  %v15073_v48 = vadd.f32 %v17220_v58, %v14817_v16  ;;  %v15081_v38 = vadd.f32 %v17223_v14, %v14825_v34  ;;  %v17225_v35 = vld [vmem:[#allocation117_spill] sm:$0xff]  ;;  %v17227_v28 = vld [vmem:[#allocation35_spill] sm:$0xff]  ;;  %v17232_v41 = vld [vmem:[#allocation126_spill] sm:$0xff] }
 0x796   :  { %17222 = vst [vmem:[#allocation102_spill] sm:$0xff] %v15077_v17  ;;  %v15085_v3 = vadd.f32 %v17225_v35, %v14829_v13  ;;  %v15089_v19 = vadd.f32 %v17227_v28, %v14833_v8  ;;  %v17229_v21 = vld [vmem:[#allocation61_spill] sm:$0xff]  ;;  %v17233_v17 = vld [vmem:[#allocation115_spill] sm:$0xff]  ;;  %v17234_v14 = vld [vmem:[#allocation2_spill] sm:$0xff] }
 0x797   :  { %17224 = vst [vmem:[#allocation37_spill] sm:$0xff] %v15081_v38  ;;  %v15093_v16 = vadd.f32 %v17229_v21, %v14837_v11  ;;  %v17231_v58 = vld [vmem:[#allocation113_spill] sm:$0xff]  ;;  %v15101_v34 = vadd.f32 %v17233_v17, %v17232_v41  ;;  %v17235_v38 = vld [vmem:[#allocation116_spill] sm:$0xff]  ;;  %v17238_v28 = vld [vmem:[#allocation70_spill] sm:$0xff] }
 0x798   :  { %17226 = vst [vmem:[#allocation77_spill] sm:$0xff] %v15085_v3  ;;  %17228 = vst [vmem:[#allocation30_spill] sm:$0xff] %v15089_v19  ;;  %v15097_v56 = vadd.f32 %v17231_v58, %v14841_v52  ;;  %v15105_v13 = vadd.f32 %v17235_v38, %v17234_v14  ;;  %v17236_v35 = vld [vmem:[#allocation68_spill] sm:$0xff]  ;;  %v17237_v3 = vld [vmem:[#allocation82_spill] sm:$0xff] }
 0x799   :  { %17230 = vst [vmem:[#allocation94_spill] sm:$0xff] %v15093_v16  ;;  %v15109_v8 = vadd.f32 %v17237_v3, %v17236_v35  ;;  %v17239_v19 = vld [vmem:[#allocation96_spill] sm:$0xff]  ;;  %v17240_v21 = vld [vmem:[#allocation74_spill] sm:$0xff]  ;;  %v17241_v16 = vld [vmem:[#allocation97_spill] sm:$0xff] }
 0x79a   :  { %v15113_v11 = vadd.f32 %v17239_v19, %v17238_v28  ;;  %v15117_v52 = vadd.f32 %v17241_v16, %v17240_v21  ;;  %v17242_v58 = vld [vmem:[#allocation87_spill] sm:$0xff]  ;;  %v17243_v41 = vld [vmem:[#allocation36_spill] sm:$0xff]  ;;  %v17245_v35 = vld [vmem:[#allocation29_spill] sm:$0xff] }
 0x79b   :  { %v15121_v17 = vadd.f32 %v17242_v58, %v14865_v24  ;;  %v15125_v38 = vadd.f32 %v17243_v41, %v14869_v61  ;;  %v17244_v14 = vld [vmem:[#allocation88_spill] sm:$0xff]  ;;  %v15133_v19 = vadd.f32 %v17245_v35, %v14877_v60  ;;  %v17246_v28 = vld [vmem:[#allocation83_spill] sm:$0xff]  ;;  %v17249_v41 = vld [vmem:[#allocation18_spill] sm:$0xff] }
 0x79c   :  { %v15129_v3 = vadd.f32 %v17244_v14, %v14873_v12  ;;  %v15137_v16 = vadd.f32 %v17246_v28, %v14881_v39  ;;  %v17247_v21 = vld [vmem:[#allocation23_spill] sm:$0xff]  ;;  %v17248_v58 = vld [vmem:[#allocation12_spill] sm:$0xff]  ;;  %v15149_v12 = vadd.f32 %v17249_v41, %v14893_v6  ;;  %v17252_v28 = vld [vmem:[#allocation89_spill] sm:$0xff] }
 0x79d   :  { %v15141_v24 = vadd.f32 %v17247_v21, %v14885_v50  ;;  %v15145_v61 = vadd.f32 %v17248_v58, %v14889_v0  ;;  %v17250_v14 = vld [vmem:[#allocation71_spill] sm:$0xff]  ;;  %v17251_v35 = vld [vmem:[#allocation64_spill] sm:$0xff]  ;;  %v15161_v50 = vadd.f32 %v17252_v28, %v14905_v51  ;;  %v17254_v58 = vld [vmem:[#allocation62_spill] sm:$0xff] }
 0x79e   :  { %v15153_v60 = vadd.f32 %v17250_v14, %v14897_v32  ;;  %v15157_v39 = vadd.f32 %v17251_v35, %v14901_v43  ;;  %v17253_v21 = vld [vmem:[#allocation112_spill] sm:$0xff]  ;;  %v15169_v6 = vadd.f32 %v17254_v58, %v14913_v23  ;;  %v17255_v41 = vld [vmem:[#allocation119_spill] sm:$0xff]  ;;  %v17256_v14 = vld [vmem:[#allocation118_spill] sm:$0xff] }
 0x79f   :  { %v15165_v0 = vadd.f32 %v17253_v21, %v14909_v57  ;;  %v15173_v32 = vadd.f32 %v17255_v41, %v14917_v4  ;;  %v15177_v43 = vadd.f32 %v17256_v14, %v14921_v15  ;;  %v17257_v35 = vld [vmem:[#allocation90_spill] sm:$0xff]  ;;  %v17258_v28 = vld [vmem:[#allocation108_spill] sm:$0xff]  ;;  %v17260_v58 = vld [vmem:[#allocation69_spill] sm:$0xff] }
 0x7a0   :  { %v15181_v51 = vadd.f32 %v17257_v35, %v14925_v22  ;;  %v15185_v57 = vadd.f32 %v17258_v28, %v14929_v29  ;;  %v17259_v21 = vld [vmem:[#allocation120_spill] sm:$0xff]  ;;  %v15193_v4 = vadd.f32 %v17260_v58, %v14937_v37  ;;  %v17261_v41 = vld [vmem:[#allocation5_spill] sm:$0xff]  ;;  %v17262_v14 = vld [vmem:[#allocation122_spill] sm:$0xff] }
 0x7a1   :  { %v15189_v23 = vadd.f32 %v17259_v21, %v14933_v25  ;;  %v15197_v15 = vadd.f32 %v17261_v41, %v14941_v45  ;;  %v15201_v22 = vadd.f32 %v17262_v14, %v14945_v40  ;;  %v17263_v35 = vld [vmem:[#allocation14_spill] sm:$0xff]  ;;  %v17264_v28 = vld [vmem:[#allocation72_spill] sm:$0xff]  ;;  %v17266_v21 = vld [vmem:[#allocation13_spill] sm:$0xff] }
 0x7a2   :  { %v15205_v29 = vadd.f32 %v17263_v35, %v14949_v20  ;;  %v15209_v25 = vadd.f32 %v17264_v28, %v14953_v1  ;;  %v15213_v37 = vadd.f32 %v17266_v21, %v14957_v42  ;;  %v17267_v58 = vld [vmem:[#allocation10_spill] sm:$0xff]  ;;  %v17268_v41 = vld [vmem:[#allocation21_spill] sm:$0xff]  ;;  %v17269_v14 = vld [vmem:[#allocation28_spill] sm:$0xff] }
 0x7a3   :  { %v15217_v45 = vadd.f32 %v17267_v58, %v14961_v53  ;;  %v15221_v40 = vadd.f32 %v17268_v41, %v14965_v7  ;;  %v15225_v20 = vadd.f32 %v17269_v14, %v14969_v2  ;;  %v17270_v35 = vld [vmem:[#allocation73_spill] sm:$0xff]  ;;  %v17272_v28 = vld [vmem:[#allocation91_spill] sm:$0xff]  ;;  %v17277_v58 = vld [vmem:[#allocation34_spill] sm:$0xff] }
 0x7a4   :  { %17265 = vst [vmem:[#allocation114_spill] sm:$0xff] %v15209_v25  ;;  %v15229_v1 = vadd.f32 %v17270_v35, %v14973_v31  ;;  %v17273_v25 = vld [vmem:[#allocation32_spill] sm:$0xff]  ;;  %v17275_v21 = vld [vmem:[#allocation25_spill] sm:$0xff]  ;;  %v15241_v7 = vadd.f32 %v17277_v58, %v14985_v55  ;;  %v17281_v14 = vld [vmem:[#allocation38_spill] sm:$0xff] }
 0x7a5   :  { %v15233_v42 = vadd.f32 %v17273_v25, %v17272_v28  ;;  %v15237_v53 = vadd.f32 %v17275_v21, %v14981_v10  ;;  %v17279_v41 = vld [vmem:[#allocation33_spill] sm:$0xff]  ;;  %v15249_v31 = vadd.f32 %v17281_v14, %v14993_v36  ;;  %v17282_v35 = vld [vmem:[#allocation75_spill] sm:$0xff]  ;;  %v17288_v58 = vld [vmem:[#allocation76_spill] sm:$0xff] }
 0x7a6   :  { %17271 = vst [vmem:[#allocation81_spill] sm:$0xff] %v15229_v1  ;;  %17278 = vst [vmem:[#allocation86_spill] sm:$0xff] %v15241_v7  ;;  %v15245_v2 = vadd.f32 %v17279_v41, %v14989_v18  ;;  %v17283_v1 = vld [vmem:[#allocation41_spill] sm:$0xff]  ;;  %v17284_v28 = vld [vmem:[#allocation15_spill] sm:$0xff] }
 0x7a7   :  { %17274 = vst [vmem:[#allocation95_spill] sm:$0xff] %v15233_v42  ;;  %17276 = vst [vmem:[#allocation84_spill] sm:$0xff] %v15237_v53  ;;  %v15253_v25 = vadd.f32 %v17283_v1, %v17282_v35  ;;  %v17285_v42 = vld [vmem:[#allocation3_spill] sm:$0xff]  ;;  %v17286_v21 = vld [vmem:[#allocation101_spill] sm:$0xff]  ;;  %v6851_v35 = vmax.f32 %v15021_v5, 0.0  ;;  %v6861_v5 = vmax.f32 %v15061_v44, 0.0 }
 0x7a8   :  { %17280 = vst [vmem:[#allocation85_spill] sm:$0xff] %v15245_v2  ;;  %v15257_v10 = vadd.f32 %v17285_v42, %v17284_v28  ;;  %v17287_v53 = vld [vmem:[#allocation48_spill] sm:$0xff]  ;;  %v17289_v7 = vld [vmem:[#allocation103_spill] sm:$0xff]  ;;  %v17292_v14 = vld [vmem:[#allocation46_spill] sm:$0xff]  ;;  %v6852_v42 = vmax.f32 %v15025_v33, 0.0  ;;  %v6853_v28 = vmax.f32 %v15029_v63, 0.0 }
 0x7a9   :  { %v15261_v55 = vadd.f32 %v17287_v53, %v17286_v21  ;;  %v15265_v18 = vadd.f32 %v17289_v7, %v17288_v58  ;;  %v17290_v41 = vld [vmem:[#allocation79_spill] sm:$0xff]  ;;  %v17291_v2 = vld [vmem:[#allocation4_spill] sm:$0xff]  ;;  %v15273_v1 = vadd.f32 %v17292_v14, %v15017_v9  ;;  %v6854_v53 = vmax.f32 %v15033_v26, 0.0  ;;  %6915 = vst.msk [vmem:[%s15605_s10] sm:$0xff] %vm1581_vm4, %v6851_v35  ;;  %v17296_v44 = vld [vmem:[#allocation30_spill] sm:$0xff] }
 0x7aa   :  { %v15269_v36 = vadd.f32 %v17291_v2, %v17290_v41  ;;  %v6855_v21 = vmax.f32 %v15037_v30, 0.0  ;;  %v6856_v7 = vmax.f32 %v15041_v46, 0.0  ;;  %v6857_v58 = vmax.f32 %v15045_v47, 0.0  ;;  %6916 = vst.msk [vmem:[%s15605_s10 + $0x8] sm:$0xff] %vm1581_vm4, %v6852_v42  ;;  %6917 = vst.msk [vmem:[%s15605_s10 + $0x10] sm:$0xff] %vm1581_vm4, %v6853_v28  ;;  %v17293_v30 = vld [vmem:[#allocation102_spill] sm:$0xff] }
 0x7ab   :  { %v6858_v2 = vmax.f32 %v15049_v49, 0.0  ;;  %v6859_v41 = vmax.f32 %v15053_v54, 0.0  ;;  %v6860_v9 = vmax.f32 %v15057_v59, 0.0  ;;  %v6862_v33 = vmax.f32 %v15065_v27, 0.0  ;;  %6918 = vst.msk [vmem:[%s15605_s10 + $0x18] sm:$0xff] %vm1581_vm4, %v6854_v53  ;;  %v17294_v47 = vld [vmem:[#allocation37_spill] sm:$0xff] }
 0x7ac   :  { %v6863_v63 = vmax.f32 %v15069_v62, 0.0  ;;  %v6864_v26 = vmax.f32 %v15073_v48, 0.0  ;;  %v6865_v46 = vmax.f32 %v17293_v30, 0.0  ;;  %v6866_v49 = vmax.f32 %v17294_v47, 0.0  ;;  %6919 = vst.msk [vmem:[%s15605_s10 + $0x20] sm:$0xff] %vm1581_vm4, %v6855_v21  ;;  %6920 = vst.msk [vmem:[%s15605_s10 + $0x28] sm:$0xff] %vm1581_vm4, %v6856_v7 }
 0x7ad   :  { %6921 = vst.msk [vmem:[%s15605_s10 + $0x30] sm:$0xff] %vm1581_vm4, %v6857_v58  ;;  %6922 = vst.msk [vmem:[%s15605_s10 + $0x38] sm:$0xff] %vm1581_vm4, %v6858_v2  ;;  %v17295_v54 = vld [vmem:[#allocation77_spill] sm:$0xff]  ;;  %v6868_v27 = vmax.f32 %v17296_v44, 0.0  ;;  %v17297_v62 = vld [vmem:[#allocation94_spill] sm:$0xff]  ;;  %v6870_v14 = vmax.f32 %v15097_v56, 0.0 }
 0x7ae   :  { %v6867_v59 = vmax.f32 %v17295_v54, 0.0  ;;  %v6869_v48 = vmax.f32 %v17297_v62, 0.0  ;;  %6923 = vst.msk [vmem:[%s15605_s10 + $0x40] sm:$0xff] %vm1581_vm4, %v6859_v41  ;;  %6924 = vst.msk [vmem:[%s15605_s10 + $0x48] sm:$0xff] %vm1581_vm4, %v6860_v9  ;;  %v6871_v56 = vmax.f32 %v15101_v34, 0.0  ;;  %v6872_v35 = vmax.f32 %v15105_v13, 0.0 }
 0x7af   :  { %6925 = vst.msk [vmem:[%s15605_s10 + $0x50] sm:$0xff] %vm1581_vm4, %v6861_v5  ;;  %6926 = vst.msk [vmem:[%s15605_s10 + $0x58] sm:$0xff] %vm1581_vm4, %v6862_v33  ;;  %v6873_v42 = vmax.f32 %v15109_v8, 0.0  ;;  %v6874_v28 = vmax.f32 %v15113_v11, 0.0  ;;  %v6875_v34 = vmax.f32 %v15117_v52, 0.0  ;;  %v6876_v13 = vmax.f32 %v15121_v17, 0.0 }
 0x7b0   :  { %6927 = vst.msk [vmem:[%s15605_s10 + $0x60] sm:$0xff] %vm1581_vm4, %v6863_v63  ;;  %6928 = vst.msk [vmem:[%s15605_s10 + $0x68] sm:$0xff] %vm1581_vm4, %v6864_v26  ;;  %v6877_v8 = vmax.f32 %v15125_v38, 0.0  ;;  %v6878_v11 = vmax.f32 %v15129_v3, 0.0  ;;  %v6879_v52 = vmax.f32 %v15133_v19, 0.0  ;;  %v6880_v17 = vmax.f32 %v15137_v16, 0.0 }
 0x7b1   :  { %6929 = vst.msk [vmem:[%s15605_s10 + $0x70] sm:$0xff] %vm1581_vm4, %v6865_v46  ;;  %6930 = vst.msk [vmem:[%s15605_s10 + $0x78] sm:$0xff] %vm1581_vm4, %v6866_v49  ;;  %v6881_v38 = vmax.f32 %v15141_v24, 0.0  ;;  %v6882_v3 = vmax.f32 %v15145_v61, 0.0  ;;  %v6883_v19 = vmax.f32 %v15149_v12, 0.0  ;;  %v6884_v16 = vmax.f32 %v15153_v60, 0.0 }
 0x7b2   :  { %6931 = vst.msk [vmem:[%s15605_s10 + $0x80] sm:$0xff] %vm1581_vm4, %v6867_v59  ;;  %6932 = vst.msk [vmem:[%s15605_s10 + $0x88] sm:$0xff] %vm1581_vm4, %v6868_v27  ;;  %v6885_v24 = vmax.f32 %v15157_v39, 0.0  ;;  %v6886_v61 = vmax.f32 %v15161_v50, 0.0  ;;  %v6887_v12 = vmax.f32 %v15165_v0, 0.0  ;;  %v6888_v60 = vmax.f32 %v15169_v6, 0.0 }
 0x7b3   :  { %6933 = vst.msk [vmem:[%s15605_s10 + $0x90] sm:$0xff] %vm1581_vm4, %v6869_v48  ;;  %6934 = vst.msk [vmem:[%s15605_s10 + $0x98] sm:$0xff] %vm1581_vm4, %v6870_v14  ;;  %v6889_v39 = vmax.f32 %v15173_v32, 0.0  ;;  %v6890_v50 = vmax.f32 %v15177_v43, 0.0  ;;  %v6891_v0 = vmax.f32 %v15181_v51, 0.0  ;;  %v6892_v6 = vmax.f32 %v15185_v57, 0.0 }
 0x7b4   :  { %6935 = vst.msk [vmem:[%s15605_s10 + $0xa0] sm:$0xff] %vm1581_vm4, %v6871_v56  ;;  %6936 = vst.msk [vmem:[%s15605_s10 + $0xa8] sm:$0xff] %vm1581_vm4, %v6872_v35  ;;  %v6893_v32 = vmax.f32 %v15189_v23, 0.0  ;;  %v6894_v43 = vmax.f32 %v15193_v4, 0.0  ;;  %v6895_v51 = vmax.f32 %v15197_v15, 0.0  ;;  %v6896_v57 = vmax.f32 %v15201_v22, 0.0 }
 0x7b5   :  { %6937 = vst.msk [vmem:[%s15605_s10 + $0xb0] sm:$0xff] %vm1581_vm4, %v6873_v42  ;;  %6938 = vst.msk [vmem:[%s15605_s10 + $0xb8] sm:$0xff] %vm1581_vm4, %v6874_v28  ;;  %v6897_v23 = vmax.f32 %v15205_v29, 0.0  ;;  %v17298_v4 = vld [vmem:[#allocation114_spill] sm:$0xff]  ;;  %v6899_v15 = vmax.f32 %v15213_v37, 0.0  ;;  %v6900_v22 = vmax.f32 %v15217_v45, 0.0 }
 0x7b6   :  { %6939 = vst.msk [vmem:[%s15605_s10 + $0xc0] sm:$0xff] %vm1581_vm4, %v6875_v34  ;;  %6940 = vst.msk [vmem:[%s15605_s10 + $0xc8] sm:$0xff] %vm1581_vm4, %v6876_v13  ;;  %v6898_v53 = vmax.f32 %v17298_v4, 0.0  ;;  %v6901_v29 = vmax.f32 %v15221_v40, 0.0  ;;  %v6902_v21 = vmax.f32 %v15225_v20, 0.0  ;;  %v17299_v37 = vld [vmem:[#allocation81_spill] sm:$0xff] }
 0x7b7   :  { %6941 = vst.msk [vmem:[%s15605_s10 + $0xd0] sm:$0xff] %vm1581_vm4, %v6877_v8  ;;  %6942 = vst.msk [vmem:[%s15605_s10 + $0xd8] sm:$0xff] %vm1581_vm4, %v6878_v11  ;;  %v6903_v45 = vmax.f32 %v17299_v37, 0.0  ;;  %v17300_v40 = vld [vmem:[#allocation95_spill] sm:$0xff]  ;;  %v17301_v7 = vld [vmem:[#allocation84_spill] sm:$0xff]  ;;  %v6908_v33 = vmax.f32 %v15249_v31, 0.0 }
 0x7b8   :  { %6943 = vst.msk [vmem:[%s15605_s10 + $0xe0] sm:$0xff] %vm1581_vm4, %v6879_v52  ;;  %6944 = vst.msk [vmem:[%s15605_s10 + $0xe8] sm:$0xff] %vm1581_vm4, %v6880_v17  ;;  %v6904_v20 = vmax.f32 %v17300_v40, 0.0  ;;  %v6905_v58 = vmax.f32 %v17301_v7, 0.0  ;;  %v17302_v2 = vld [vmem:[#allocation86_spill] sm:$0xff]  ;;  %v17303_v9 = vld [vmem:[#allocation85_spill] sm:$0xff] }
 0x7b9   :  { %6945 = vst.msk [vmem:[%s15605_s10 + $0xf0] sm:$0xff] %vm1581_vm4, %v6881_v38  ;;  %6946 = vst.msk [vmem:[%s15605_s10 + $0xf8] sm:$0xff] %vm1581_vm4, %v6882_v3  ;;  %v6906_v41 = vmax.f32 %v17302_v2, 0.0  ;;  %v6907_v5 = vmax.f32 %v17303_v9, 0.0  ;;  %v6909_v63 = vmax.f32 %v15253_v25, 0.0  ;;  %v6910_v26 = vmax.f32 %v15257_v10, 0.0 }
 0x7ba   :  { %6947 = vst.msk [vmem:[%s15605_s10 + $0x100] sm:$0xff] %vm1581_vm4, %v6883_v19  ;;  %6948 = vst.msk [vmem:[%s15605_s10 + $0x108] sm:$0xff] %vm1581_vm4, %v6884_v16  ;;  %v6911_v31 = vmax.f32 %v15261_v55, 0.0  ;;  %v6912_v25 = vmax.f32 %v15265_v18, 0.0  ;;  %v6913_v10 = vmax.f32 %v15269_v36, 0.0  ;;  %v6914_v30 = vmax.f32 %v15273_v1, 0.0 }
 0x7bb   :  { %6949 = vst.msk [vmem:[%s15605_s10 + $0x110] sm:$0xff] %vm1581_vm4, %v6885_v24  ;;  %6950 = vst.msk [vmem:[%s15605_s10 + $0x118] sm:$0xff] %vm1581_vm4, %v6886_v61 }
 0x7bc   :  { %6951 = vst.msk [vmem:[%s15605_s10 + $0x120] sm:$0xff] %vm1581_vm4, %v6887_v12  ;;  %6952 = vst.msk [vmem:[%s15605_s10 + $0x128] sm:$0xff] %vm1581_vm4, %v6888_v60 }
 0x7bd   :  { %6953 = vst.msk [vmem:[%s15605_s10 + $0x130] sm:$0xff] %vm1581_vm4, %v6889_v39  ;;  %6954 = vst.msk [vmem:[%s15605_s10 + $0x138] sm:$0xff] %vm1581_vm4, %v6890_v50 }
 0x7be   :  { %6955 = vst.msk [vmem:[%s15605_s10 + $0x140] sm:$0xff] %vm1581_vm4, %v6891_v0  ;;  %6956 = vst.msk [vmem:[%s15605_s10 + $0x148] sm:$0xff] %vm1581_vm4, %v6892_v6 }
 0x7bf   :  { %6957 = vst.msk [vmem:[%s15605_s10 + $0x150] sm:$0xff] %vm1581_vm4, %v6893_v32  ;;  %6958 = vst.msk [vmem:[%s15605_s10 + $0x158] sm:$0xff] %vm1581_vm4, %v6894_v43 }
 0x7c0   :  { %6959 = vst.msk [vmem:[%s15605_s10 + $0x160] sm:$0xff] %vm1581_vm4, %v6895_v51  ;;  %6960 = vst.msk [vmem:[%s15605_s10 + $0x168] sm:$0xff] %vm1581_vm4, %v6896_v57 }
 0x7c1   :  { %6961 = vst.msk [vmem:[%s15605_s10 + $0x170] sm:$0xff] %vm1581_vm4, %v6897_v23  ;;  %6962 = vst.msk [vmem:[%s15605_s10 + $0x178] sm:$0xff] %vm1581_vm4, %v6898_v53 }
 0x7c2   :  { %6963 = vst.msk [vmem:[%s15605_s10 + $0x180] sm:$0xff] %vm1581_vm4, %v6899_v15  ;;  %6964 = vst.msk [vmem:[%s15605_s10 + $0x188] sm:$0xff] %vm1581_vm4, %v6900_v22 }
 0x7c3   :  { %6965 = vst.msk [vmem:[%s15605_s10 + $0x190] sm:$0xff] %vm1581_vm4, %v6901_v29  ;;  %6966 = vst.msk [vmem:[%s15605_s10 + $0x198] sm:$0xff] %vm1581_vm4, %v6902_v21 }
 0x7c4   :  { %6967 = vst.msk [vmem:[%s15605_s10 + $0x1a0] sm:$0xff] %vm1581_vm4, %v6903_v45  ;;  %6968 = vst.msk [vmem:[%s15605_s10 + $0x1a8] sm:$0xff] %vm1581_vm4, %v6904_v20 }
 0x7c5   :  { %6969 = vst.msk [vmem:[%s15605_s10 + $0x1b0] sm:$0xff] %vm1581_vm4, %v6905_v58  ;;  %6970 = vst.msk [vmem:[%s15605_s10 + $0x1b8] sm:$0xff] %vm1581_vm4, %v6906_v41 }
 0x7c6   :  { %6971 = vst.msk [vmem:[%s15605_s10 + $0x1c0] sm:$0xff] %vm1581_vm4, %v6907_v5  ;;  %6972 = vst.msk [vmem:[%s15605_s10 + $0x1c8] sm:$0xff] %vm1581_vm4, %v6908_v33 }
 0x7c7   :  { %6973 = vst.msk [vmem:[%s15605_s10 + $0x1d0] sm:$0xff] %vm1581_vm4, %v6909_v63  ;;  %6974 = vst.msk [vmem:[%s15605_s10 + $0x1d8] sm:$0xff] %vm1581_vm4, %v6910_v26 }
 0x7c8   :  { %6975 = vst.msk [vmem:[%s15605_s10 + $0x1e0] sm:$0xff] %vm1581_vm4, %v6911_v31  ;;  %6976 = vst.msk [vmem:[%s15605_s10 + $0x1e8] sm:$0xff] %vm1581_vm4, %v6912_v25 }
 0x7c9   :  { %6977 = vst.msk [vmem:[%s15605_s10 + $0x1f0] sm:$0xff] %vm1581_vm4, %v6913_v10  ;;  %6978 = vst.msk [vmem:[%s15605_s10 + $0x1f8] sm:$0xff] %vm1581_vm4, %v6914_v30 }

</bundles_post_ra>
